<compile_context>
chip_gen: v7x
topology: tpu7x:2x2x1
jax: 0.10.0
libtpu: 0.0.40
codegen_flags: <defaults>
</compile_context>

<pallas_src>
import functools

import jax
import jax.numpy as jnp
from jax.experimental import pallas as pl
from jax.experimental.pallas import tpu as pltpu

FEAT_DIM = 4
HID_DIM = 128
NUM_LAYERS = 2
IN_PAD = 128          # layer-0 feature dim zero-padded to one full lane tile


def _fused_bilstm2_kernel(x_ref, w_ih0_ref, w_hh0_ref, b0_ref,
                          w_ih1_ref, w_hh1_ref, b1_ref,
                          out_ref, proj_ref, h1_ref, *, T, B):
    """Whole 2-layer bidirectional LSTM forward in one kernel invocation.

    x_ref    : (T*B, IN_PAD)  bf16  time-major flat input (row = t*B + b), zero-padded cols
    w_ih*    : (Fin, 8H)      bf16  input weights, cols [0:4H)=fwd, [4H:8H)=rev, gate
                                     order [i, f, o, g] within each direction
    w_hh*    : (2, H, 4H)     bf16  recurrent weights per direction, gate order [i, f, o, g]
    b*       : (1, 8H)        f32   (b_ih + b_hh) per direction, same column layout as w_ih
    out_ref  : (T*B, 2H)      f32   final layer output, time-major flat, cols [0:H)=fwd
    proj_ref : (T*B, 8H)      f32   scratch: per-layer input-projection gates (reused)
    h1_ref   : (T*B, 2H)      f32   scratch: layer-0 output (never leaves VMEM)
    """
    H = HID_DIM

    def run_layer(inp_bf16, w_ih_ref, w_hh_ref, b_ref, dst_ref):
        # Non-recurrent input projection for BOTH directions as one batched matmul,
        # hoisted out of the recurrence (bias folded in).
        proj_ref[...] = (
            jnp.dot(inp_bf16, w_ih_ref[...], preferred_element_type=jnp.float32)
            + b_ref[...])

        w_f = w_hh_ref[0]                     # (H, 4H) bf16, loop-invariant in VMEM
        w_r = w_hh_ref[1]

        h_f = jnp.zeros((B, H), jnp.float32)
        h_r = jnp.zeros((B, H), jnp.float32)
        c = jnp.zeros((2 * B, H), jnp.float32)   # rows [0:B)=fwd, [B:2B)=rev

        # Fully unrolled (T is a small static constant): static slices everywhere and a
        # maximal scheduling window.  The fwd and rev chains are independent, so their
        # MXU pushes / EUP latency interleave.
        for t in range(T):
            t_r = T - 1 - t
            a_f = jnp.dot(h_f.astype(jnp.bfloat16), w_f,
                          preferred_element_type=jnp.float32)
            a_r = jnp.dot(h_r.astype(jnp.bfloat16), w_r,
                          preferred_element_type=jnp.float32)
            pre_f = proj_ref[t * B:(t + 1) * B, 0:4 * H]
            pre_r = proj_ref[t_r * B:(t_r + 1) * B, 4 * H:8 * H]
            # Stack fwd/rev along sublanes so every nonlinearity / VPU op below covers
            # both directions with the same vregs.  Gate order is [i, f, o, g].
            gates = jnp.concatenate([pre_f + a_f, pre_r + a_r], axis=0)   # (2B, 4H)
            ifo = jax.nn.sigmoid(gates[:, 0:3 * H])                        # one EUP slab
            g = jnp.tanh(gates[:, 3 * H:4 * H])
            c = ifo[:, H:2 * H] * c + ifo[:, 0:H] * g
            h = ifo[:, 2 * H:3 * H] * jnp.tanh(c)                          # (2B, H)

            # fwd hidden belongs to time t, rev hidden to time T-1-t; they land in
            # disjoint column halves of the dense (T*B, 2H) layer output.
            dst_ref[t * B:(t + 1) * B, 0:H] = h[0:B]
            dst_ref[t_r * B:(t_r + 1) * B, H:2 * H] = h[B:2 * B]

            h_f = h[0:B]
            h_r = h[B:2 * B]

    # Layer 0: padded raw input -> h1 scratch (stays on-chip).
    run_layer(x_ref[...], w_ih0_ref, w_hh0_ref, b0_ref, h1_ref)
    # Layer 1: layer-0 output -> final output.
    run_layer(h1_ref[...].astype(jnp.bfloat16), w_ih1_ref, w_hh1_ref, b1_ref, out_ref)


def _prep_layer_weights(p, pad_rows_to=None):
    """PyTorch-ordered f32 params -> kernel layout (bf16, gate order [i,f,o,g], dirs concat)."""
    H = HID_DIM

    def reorder(w):   # last-dim columns [i|f|g|o] -> [i|f|o|g]
        return jnp.concatenate(
            [w[..., 0:2 * H], w[..., 3 * H:4 * H], w[..., 2 * H:3 * H]], axis=-1)

    w_ih = reorder(p["w_ih"])                         # (2, in, 4H)
    w_hh = reorder(p["w_hh"])                         # (2, H,  4H)
    bias = reorder(p["bias"])                         # (2, 4H)

    w_ih_cat = jnp.concatenate([w_ih[0], w_ih[1]], axis=1)        # (in, 8H)
    bias_cat = jnp.concatenate([bias[0], bias[1]], axis=0)[None]  # (1, 8H)
    if pad_rows_to is not None and w_ih_cat.shape[0] < pad_rows_to:
        w_ih_cat = jnp.pad(
            w_ih_cat, ((0, pad_rows_to - w_ih_cat.shape[0]), (0, 0)))

    return (w_ih_cat.astype(jnp.bfloat16),
            w_hh.astype(jnp.bfloat16),
            bias_cat.astype(jnp.float32))


def dark_gen_recons_lstm_forward(x, params):
    """x: (B, T, feat_dim) -> (B, T, 2*hid_dim). Matches module.forward (batch_first)."""
    B, T, F = x.shape
    H = HID_DIM

    # Time-major flat rows (row = t*B + b); feature dim zero-padded to one lane tile.
    x_tm = jnp.transpose(x, (1, 0, 2)).reshape(T * B, F).astype(jnp.float32)
    x_pad = jnp.pad(x_tm, ((0, 0), (0, IN_PAD - F))).astype(jnp.bfloat16)

    w_ih0, w_hh0, b0 = _prep_layer_weights(params[0], pad_rows_to=IN_PAD)
    w_ih1, w_hh1, b1 = _prep_layer_weights(params[1], pad_rows_to=None)

    kernel = functools.partial(_fused_bilstm2_kernel, T=T, B=B)

    out_flat = pl.pallas_call(
        kernel,
        out_shape=jax.ShapeDtypeStruct((T * B, 2 * H), jnp.float32),
        grid_spec=pltpu.PrefetchScalarGridSpec(
            num_scalar_prefetch=0,
            grid=(1,),
            in_specs=[
                pl.BlockSpec((T * B, IN_PAD), lambda i: (0, 0)),
                pl.BlockSpec((IN_PAD, 8 * H), lambda i: (0, 0)),
                pl.BlockSpec((2, H, 4 * H), lambda i: (0, 0, 0)),
                pl.BlockSpec((1, 8 * H), lambda i: (0, 0)),
                pl.BlockSpec((2 * H, 8 * H), lambda i: (0, 0)),
                pl.BlockSpec((2, H, 4 * H), lambda i: (0, 0, 0)),
                pl.BlockSpec((1, 8 * H), lambda i: (0, 0)),
            ],
            out_specs=pl.BlockSpec((T * B, 2 * H), lambda i: (0, 0)),
            scratch_shapes=[
                pltpu.VMEM((T * B, 8 * H), jnp.float32),   # per-layer projection gates
                pltpu.VMEM((T * B, 2 * H), jnp.float32),   # layer-0 output (on-chip)
            ],
        ),
        compiler_params=pltpu.CompilerParams(
            dimension_semantics=("arbitrary",)),
    )(x_pad, w_ih0, w_hh0, b0, w_ih1, w_hh1, b1)

    # (T*B, 2H) time-major -> (B, T, 2H). Tiny (16 KB) at these shapes.
    return jnp.transpose(out_flat.reshape(T, B, 2 * H), (1, 0, 2))


def init_params(key, feat_dim=FEAT_DIM, hid_dim=HID_DIM, num_layers=NUM_LAYERS):
    """Deterministic init mirroring nn.LSTM: U(-1/sqrt(hid), 1/sqrt(hid)).

    Master params kept in f32, PyTorch gate order [i, f, g, o] (weights transposed to
    (in, 4H) for x @ W).  The forward pass reorders / casts to bf16 for the kernel.
    """
    k = 1.0 / float(hid_dim) ** 0.5
    params = []
    for layer in range(num_layers):
        in_dim = feat_dim if layer == 0 else 2 * hid_dim
        w_ih_l, w_hh_l, bias_l = [], [], []
        for _direction in range(2):                 # 0 = fwd, 1 = rev
            key, k1, k2, k3, k4 = jax.random.split(key, 5)
            w_ih_l.append(jax.random.uniform(k1, (in_dim, 4 * hid_dim), jnp.float32, -k, k))
            w_hh_l.append(jax.random.uniform(k2, (hid_dim, 4 * hid_dim), jnp.float32, -k, k))
            b_ih = jax.random.uniform(k3, (4 * hid_dim,), jnp.float32, -k, k)
            b_hh = jax.random.uniform(k4, (4 * hid_dim,), jnp.float32, -k, k)
            bias_l.append(b_ih + b_hh)
        params.append({
            "w_ih": jnp.stack(w_ih_l),              # (2, in_dim, 4H)
            "w_hh": jnp.stack(w_hh_l),              # (2, H,      4H)
            "bias": jnp.stack(bias_l),              # (2, 4H)
        })
    return params


# ---------------- pure-JAX f32 reference (for correctness check) ----------------
def _lstm_dir_ref(x_tbf, w_ih, w_hh, bias, reverse):
    T, B, _ = x_tbf.shape
    H = w_hh.shape[0]
    h = jnp.zeros((B, H), jnp.float32)
    c = jnp.zeros((B, H), jnp.float32)
    outs = [None] * T
    order = range(T - 1, -1, -1) if reverse else range(T)
    for t in order:
        gates = x_tbf[t] @ w_ih + h @ w_hh + bias
        i_g = jax.nn.sigmoid(gates[:, 0 * H:1 * H])
        f_g = jax.nn.sigmoid(gates[:, 1 * H:2 * H])
        g_g = jnp.tanh(gates[:, 2 * H:3 * H])
        o_g = jax.nn.sigmoid(gates[:, 3 * H:4 * H])
        c = f_g * c + i_g * g_g
        h = o_g * jnp.tanh(c)
        outs[t] = h
    return jnp.stack(outs, axis=0)


def _forward_ref(x, params, num_layers=NUM_LAYERS):
    h = jnp.transpose(x, (1, 0, 2)).astype(jnp.float32)
    for layer in range(num_layers):
        p = params[layer]
        out_f = _lstm_dir_ref(h, p["w_ih"][0], p["w_hh"][0], p["bias"][0][None, :], reverse=False)
        out_r = _lstm_dir_ref(h, p["w_ih"][1], p["w_hh"][1], p["bias"][1][None, :], reverse=True)
        h = jnp.concatenate([out_f, out_r], axis=-1)
    return jnp.transpose(h, (1, 0, 2))


if __name__ == "__main__":
    key = jax.random.PRNGKey(0)
    k_x, k_p = jax.random.split(key)

    B, T = 2, 8
    x = jax.random.normal(k_x, (B, T, FEAT_DIM), jnp.float32)
    params = init_params(k_p)

    fwd = jax.jit(dark_gen_recons_lstm_forward)
    out = jax.block_until_ready(fwd(x, params))
    assert out.shape == (B, T, 2 * HID_DIM), out.shape

    ref = jax.block_until_ready(_forward_ref(x, params))
    # bf16 MXU weights vs f32 reference -> relaxed tolerance.
    max_err = float(jnp.max(jnp.abs(out - ref)))
    assert max_err < 5e-2, max_err

    print("KERNEL_OK")
</pallas_src>

<mosaic_0001>
module attributes {stable_mosaic.version = 11 : i64} {
  func.func @_fused_bilstm2_kernel(%arg0: i32, %arg1: memref<16x128xbf16, #tpu.memory_space<vmem>>, %arg2: memref<128x1024xbf16, #tpu.memory_space<vmem>>, %arg3: memref<2x128x512xbf16, #tpu.memory_space<vmem>>, %arg4: memref<1x1024xf32, #tpu.memory_space<vmem>>, %arg5: memref<256x1024xbf16, #tpu.memory_space<vmem>>, %arg6: memref<2x128x512xbf16, #tpu.memory_space<vmem>>, %arg7: memref<1x1024xf32, #tpu.memory_space<vmem>>, %arg8: memref<16x256xf32, #tpu.memory_space<vmem>>, %arg9: memref<16x1024xf32, #tpu.memory_space<vmem>>, %arg10: memref<16x256xf32, #tpu.memory_space<vmem>>) attributes {dimension_semantics = [#tpu.dimension_semantics<arbitrary>], iteration_bounds = array<i64: 1>, scalar_prefetch = 0 : i64, scratch_operands = 2 : i64, tpu.core_type = #tpu.core_type<tc>, window_params = [{pipeline_mode = #tpu.pipeline_mode<synchronous>, transform_indices = @transform_0, window_bounds = array<i64: 16, 128>}, {pipeline_mode = #tpu.pipeline_mode<synchronous>, transform_indices = @transform_1, window_bounds = array<i64: 128, 1024>}, {pipeline_mode = #tpu.pipeline_mode<synchronous>, transform_indices = @transform_2, window_bounds = array<i64: 2, 128, 512>}, {pipeline_mode = #tpu.pipeline_mode<synchronous>, transform_indices = @transform_3, window_bounds = array<i64: 1, 1024>}, {pipeline_mode = #tpu.pipeline_mode<synchronous>, transform_indices = @transform_4, window_bounds = array<i64: 256, 1024>}, {pipeline_mode = #tpu.pipeline_mode<synchronous>, transform_indices = @transform_5, window_bounds = array<i64: 2, 128, 512>}, {pipeline_mode = #tpu.pipeline_mode<synchronous>, transform_indices = @transform_6, window_bounds = array<i64: 1, 1024>}, {pipeline_mode = #tpu.pipeline_mode<synchronous>, transform_indices = @transform_7, window_bounds = array<i64: 16, 256>}]} {
    %c0 = arith.constant 0 : index
    %c0_0 = arith.constant 0 : index
    %0 = vector.load %arg1[%c0, %c0_0] : memref<16x128xbf16, #tpu.memory_space<vmem>>, vector<16x128xbf16>
    %c0_1 = arith.constant 0 : index
    %c0_2 = arith.constant 0 : index
    %1 = vector.load %arg2[%c0_1, %c0_2] : memref<128x1024xbf16, #tpu.memory_space<vmem>>, vector<128x1024xbf16>
    %cst = arith.constant dense<0.000000e+00> : vector<16x1024xf32>
    %2 = tpu.matmul %0, %1, %cst {dimension_numbers = #tpu.dot_dimension_numbers<[1], [0], [0], [1], [0, 0, 1, 1], [], []>} : vector<16x128xbf16>, vector<128x1024xbf16>, vector<16x1024xf32> -> vector<16x1024xf32>
    %c0_3 = arith.constant 0 : index
    %c0_4 = arith.constant 0 : index
    %3 = vector.load %arg4[%c0_3, %c0_4] : memref<1x1024xf32, #tpu.memory_space<vmem>>, vector<1x1024xf32>
    %4 = vector.broadcast %3 : vector<1x1024xf32> to vector<16x1024xf32>
    %5 = arith.addf %2, %4 : vector<16x1024xf32>
    %c0_5 = arith.constant 0 : index
    %c0_6 = arith.constant 0 : index
    %6 = vector.load %arg9[%c0_5, %c0_6] : memref<16x1024xf32, #tpu.memory_space<vmem>>, vector<16x1024xf32>
    tpu.vector_store %arg9[%c0_5, %c0_6], %5 {strides = array<i32>} : memref<16x1024xf32, #tpu.memory_space<vmem>>, vector<16x1024xf32>,
    %c0_7 = arith.constant 0 : index
    %c0_8 = arith.constant 0 : index
    %c0_9 = arith.constant 0 : index
    %7 = vector.load %arg3[%c0_7, %c0_8, %c0_9] : memref<2x128x512xbf16, #tpu.memory_space<vmem>>, vector<1x128x512xbf16>
    %8 = vector.shape_cast %7 : vector<1x128x512xbf16> to vector<128x512xbf16>
    %c1 = arith.constant 1 : index
    %c0_10 = arith.constant 0 : index
    %c0_11 = arith.constant 0 : index
    %9 = vector.load %arg3[%c1, %c0_10, %c0_11] : memref<2x128x512xbf16, #tpu.memory_space<vmem>>, vector<1x128x512xbf16>
    %10 = vector.shape_cast %9 : vector<1x128x512xbf16> to vector<128x512xbf16>
    %cst_12 = arith.constant 0.000000e+00 : f32
    %11 = vector.broadcast %cst_12 : f32 to vector<2x128xf32>
    %cst_13 = arith.constant 0.000000e+00 : f32
    %12 = vector.broadcast %cst_13 : f32 to vector<2x128xf32>
    %cst_14 = arith.constant 0.000000e+00 : f32
    %13 = vector.broadcast %cst_14 : f32 to vector<4x128xf32>
    %14 = arith.truncf %11 : vector<2x128xf32> to vector<2x128xbf16>
    %cst_15 = arith.constant dense<0.000000e+00> : vector<2x512xf32>
    %15 = tpu.matmul %14, %8, %cst_15 {dimension_numbers = #tpu.dot_dimension_numbers<[1], [0], [0], [1], [0, 0, 1, 1], [], []>} : vector<2x128xbf16>, vector<128x512xbf16>, vector<2x512xf32> -> vector<2x512xf32>
    %16 = arith.truncf %12 : vector<2x128xf32> to vector<2x128xbf16>
    %cst_16 = arith.constant dense<0.000000e+00> : vector<2x512xf32>
    %17 = tpu.matmul %16, %10, %cst_16 {dimension_numbers = #tpu.dot_dimension_numbers<[1], [0], [0], [1], [0, 0, 1, 1], [], []>} : vector<2x128xbf16>, vector<128x512xbf16>, vector<2x512xf32> -> vector<2x512xf32>
    %c0_17 = arith.constant 0 : index
    %c0_18 = arith.constant 0 : index
    %18 = vector.load %arg9[%c0_17, %c0_18] : memref<16x1024xf32, #tpu.memory_space<vmem>>, vector<2x512xf32>
    %c14 = arith.constant 14 : index
    %c512 = arith.constant 512 : index
    %19 = vector.load %arg9[%c14, %c512] : memref<16x1024xf32, #tpu.memory_space<vmem>>, vector<2x512xf32>
    %20 = arith.addf %18, %15 : vector<2x512xf32>
    %21 = arith.addf %19, %17 : vector<2x512xf32>
    %22 = tpu.concatenate %20, %21 in 0 : vector<2x512xf32>, vector<2x512xf32> -> vector<4x512xf32>
    %23 = vector.extract_strided_slice %22 {offsets = [0, 0], sizes = [4, 384], strides = [1, 1]} : vector<4x512xf32> to vector<4x384xf32>
    %24 = arith.negf %23 : vector<4x384xf32>
    %25 = math.exp %24 : vector<4x384xf32>
    %cst_19 = arith.constant 1.000000e+00 : f32
    %26 = vector.broadcast %cst_19 : f32 to vector<4x384xf32>
    %27 = arith.addf %26, %25 : vector<4x384xf32>
    %28 = arith.divf %26, %27 : vector<4x384xf32>
    %29 = vector.extract_strided_slice %22 {offsets = [0, 384], sizes = [4, 128], strides = [1, 1]} : vector<4x512xf32> to vector<4x128xf32>
    %30 = math.tanh %29 : vector<4x128xf32>
    %31 = vector.extract_strided_slice %28 {offsets = [0, 128], sizes = [4, 128], strides = [1, 1]} : vector<4x384xf32> to vector<4x128xf32>
    %32 = arith.mulf %31, %13 : vector<4x128xf32>
    %33 = vector.extract_strided_slice %28 {offsets = [0, 0], sizes = [4, 128], strides = [1, 1]} : vector<4x384xf32> to vector<4x128xf32>
    %34 = arith.mulf %33, %30 : vector<4x128xf32>
    %35 = arith.addf %32, %34 : vector<4x128xf32>
    %36 = vector.extract_strided_slice %28 {offsets = [0, 256], sizes = [4, 128], strides = [1, 1]} : vector<4x384xf32> to vector<4x128xf32>
    %37 = math.tanh %35 : vector<4x128xf32>
    %38 = arith.mulf %36, %37 : vector<4x128xf32>
    %39 = vector.extract_strided_slice %38 {offsets = [0, 0], sizes = [2, 128], strides = [1, 1]} : vector<4x128xf32> to vector<2x128xf32>
    %c0_20 = arith.constant 0 : index
    %c0_21 = arith.constant 0 : index
    %40 = vector.load %arg10[%c0_20, %c0_21] : memref<16x256xf32, #tpu.memory_space<vmem>>, vector<2x128xf32>
    tpu.vector_store %arg10[%c0_20, %c0_21], %39 {strides = array<i32>} : memref<16x256xf32, #tpu.memory_space<vmem>>, vector<2x128xf32>,
    %41 = vector.extract_strided_slice %38 {offsets = [2, 0], sizes = [2, 128], strides = [1, 1]} : vector<4x128xf32> to vector<2x128xf32>
    %c14_22 = arith.constant 14 : index
    %c128 = arith.constant 128 : index
    %42 = vector.load %arg10[%c14_22, %c128] : memref<16x256xf32, #tpu.memory_space<vmem>>, vector<2x128xf32>
    tpu.vector_store %arg10[%c14_22, %c128], %41 {strides = array<i32>} : memref<16x256xf32, #tpu.memory_space<vmem>>, vector<2x128xf32>,
    %43 = vector.extract_strided_slice %38 {offsets = [0, 0], sizes = [2, 128], strides = [1, 1]} : vector<4x128xf32> to vector<2x128xf32>
    %44 = vector.extract_strided_slice %38 {offsets = [2, 0], sizes = [2, 128], strides = [1, 1]} : vector<4x128xf32> to vector<2x128xf32>
    %45 = arith.truncf %43 : vector<2x128xf32> to vector<2x128xbf16>
    %cst_23 = arith.constant dense<0.000000e+00> : vector<2x512xf32>
    %46 = tpu.matmul %45, %8, %cst_23 {dimension_numbers = #tpu.dot_dimension_numbers<[1], [0], [0], [1], [0, 0, 1, 1], [], []>} : vector<2x128xbf16>, vector<128x512xbf16>, vector<2x512xf32> -> vector<2x512xf32>
    %47 = arith.truncf %44 : vector<2x128xf32> to vector<2x128xbf16>
    %cst_24 = arith.constant dense<0.000000e+00> : vector<2x512xf32>
    %48 = tpu.matmul %47, %10, %cst_24 {dimension_numbers = #tpu.dot_dimension_numbers<[1], [0], [0], [1], [0, 0, 1, 1], [], []>} : vector<2x128xbf16>, vector<128x512xbf16>, vector<2x512xf32> -> vector<2x512xf32>
    %c2 = arith.constant 2 : index
    %c0_25 = arith.constant 0 : index
    %49 = vector.load %arg9[%c2, %c0_25] : memref<16x1024xf32, #tpu.memory_space<vmem>>, vector<2x512xf32>
    %c12 = arith.constant 12 : index
    %c512_26 = arith.constant 512 : index
    %50 = vector.load %arg9[%c12, %c512_26] : memref<16x1024xf32, #tpu.memory_space<vmem>>, vector<2x512xf32>
    %51 = arith.addf %49, %46 : vector<2x512xf32>
    %52 = arith.addf %50, %48 : vector<2x512xf32>
    %53 = tpu.concatenate %51, %52 in 0 : vector<2x512xf32>, vector<2x512xf32> -> vector<4x512xf32>
    %54 = vector.extract_strided_slice %53 {offsets = [0, 0], sizes = [4, 384], strides = [1, 1]} : vector<4x512xf32> to vector<4x384xf32>
    %55 = arith.negf %54 : vector<4x384xf32>
    %56 = math.exp %55 : vector<4x384xf32>
    %cst_27 = arith.constant 1.000000e+00 : f32
    %57 = vector.broadcast %cst_27 : f32 to vector<4x384xf32>
    %58 = arith.addf %57, %56 : vector<4x384xf32>
    %59 = arith.divf %57, %58 : vector<4x384xf32>
    %60 = vector.extract_strided_slice %53 {offsets = [0, 384], sizes = [4, 128], strides = [1, 1]} : vector<4x512xf32> to vector<4x128xf32>
    %61 = math.tanh %60 : vector<4x128xf32>
    %62 = vector.extract_strided_slice %59 {offsets = [0, 128], sizes = [4, 128], strides = [1, 1]} : vector<4x384xf32> to vector<4x128xf32>
    %63 = arith.mulf %62, %35 : vector<4x128xf32>
    %64 = vector.extract_strided_slice %59 {offsets = [0, 0], sizes = [4, 128], strides = [1, 1]} : vector<4x384xf32> to vector<4x128xf32>
    %65 = arith.mulf %64, %61 : vector<4x128xf32>
    %66 = arith.addf %63, %65 : vector<4x128xf32>
    %67 = vector.extract_strided_slice %59 {offsets = [0, 256], sizes = [4, 128], strides = [1, 1]} : vector<4x384xf32> to vector<4x128xf32>
    %68 = math.tanh %66 : vector<4x128xf32>
    %69 = arith.mulf %67, %68 : vector<4x128xf32>
    %70 = vector.extract_strided_slice %69 {offsets = [0, 0], sizes = [2, 128], strides = [1, 1]} : vector<4x128xf32> to vector<2x128xf32>
    %c2_28 = arith.constant 2 : index
    %c0_29 = arith.constant 0 : index
    %71 = vector.load %arg10[%c2_28, %c0_29] : memref<16x256xf32, #tpu.memory_space<vmem>>, vector<2x128xf32>
    tpu.vector_store %arg10[%c2_28, %c0_29], %70 {strides = array<i32>} : memref<16x256xf32, #tpu.memory_space<vmem>>, vector<2x128xf32>,
    %72 = vector.extract_strided_slice %69 {offsets = [2, 0], sizes = [2, 128], strides = [1, 1]} : vector<4x128xf32> to vector<2x128xf32>
    %c12_30 = arith.constant 12 : index
    %c128_31 = arith.constant 128 : index
    %73 = vector.load %arg10[%c12_30, %c128_31] : memref<16x256xf32, #tpu.memory_space<vmem>>, vector<2x128xf32>
    tpu.vector_store %arg10[%c12_30, %c128_31], %72 {strides = array<i32>} : memref<16x256xf32, #tpu.memory_space<vmem>>, vector<2x128xf32>,
    %74 = vector.extract_strided_slice %69 {offsets = [0, 0], sizes = [2, 128], strides = [1, 1]} : vector<4x128xf32> to vector<2x128xf32>
    %75 = vector.extract_strided_slice %69 {offsets = [2, 0], sizes = [2, 128], strides = [1, 1]} : vector<4x128xf32> to vector<2x128xf32>
    %76 = arith.truncf %74 : vector<2x128xf32> to vector<2x128xbf16>
    %cst_32 = arith.constant dense<0.000000e+00> : vector<2x512xf32>
    %77 = tpu.matmul %76, %8, %cst_32 {dimension_numbers = #tpu.dot_dimension_numbers<[1], [0], [0], [1], [0, 0, 1, 1], [], []>} : vector<2x128xbf16>, vector<128x512xbf16>, vector<2x512xf32> -> vector<2x512xf32>
    %78 = arith.truncf %75 : vector<2x128xf32> to vector<2x128xbf16>
    %cst_33 = arith.constant dense<0.000000e+00> : vector<2x512xf32>
    %79 = tpu.matmul %78, %10, %cst_33 {dimension_numbers = #tpu.dot_dimension_numbers<[1], [0], [0], [1], [0, 0, 1, 1], [], []>} : vector<2x128xbf16>, vector<128x512xbf16>, vector<2x512xf32> -> vector<2x512xf32>
    %c4 = arith.constant 4 : index
    %c0_34 = arith.constant 0 : index
    %80 = vector.load %arg9[%c4, %c0_34] : memref<16x1024xf32, #tpu.memory_space<vmem>>, vector<2x512xf32>
    %c10 = arith.constant 10 : index
    %c512_35 = arith.constant 512 : index
    %81 = vector.load %arg9[%c10, %c512_35] : memref<16x1024xf32, #tpu.memory_space<vmem>>, vector<2x512xf32>
    %82 = arith.addf %80, %77 : vector<2x512xf32>
    %83 = arith.addf %81, %79 : vector<2x512xf32>
    %84 = tpu.concatenate %82, %83 in 0 : vector<2x512xf32>, vector<2x512xf32> -> vector<4x512xf32>
    %85 = vector.extract_strided_slice %84 {offsets = [0, 0], sizes = [4, 384], strides = [1, 1]} : vector<4x512xf32> to vector<4x384xf32>
    %86 = arith.negf %85 : vector<4x384xf32>
    %87 = math.exp %86 : vector<4x384xf32>
    %cst_36 = arith.constant 1.000000e+00 : f32
    %88 = vector.broadcast %cst_36 : f32 to vector<4x384xf32>
    %89 = arith.addf %88, %87 : vector<4x384xf32>
    %90 = arith.divf %88, %89 : vector<4x384xf32>
    %91 = vector.extract_strided_slice %84 {offsets = [0, 384], sizes = [4, 128], strides = [1, 1]} : vector<4x512xf32> to vector<4x128xf32>
    %92 = math.tanh %91 : vector<4x128xf32>
    %93 = vector.extract_strided_slice %90 {offsets = [0, 128], sizes = [4, 128], strides = [1, 1]} : vector<4x384xf32> to vector<4x128xf32>
    %94 = arith.mulf %93, %66 : vector<4x128xf32>
    %95 = vector.extract_strided_slice %90 {offsets = [0, 0], sizes = [4, 128], strides = [1, 1]} : vector<4x384xf32> to vector<4x128xf32>
    %96 = arith.mulf %95, %92 : vector<4x128xf32>
    %97 = arith.addf %94, %96 : vector<4x128xf32>
    %98 = vector.extract_strided_slice %90 {offsets = [0, 256], sizes = [4, 128], strides = [1, 1]} : vector<4x384xf32> to vector<4x128xf32>
    %99 = math.tanh %97 : vector<4x128xf32>
    %100 = arith.mulf %98, %99 : vector<4x128xf32>
    %101 = vector.extract_strided_slice %100 {offsets = [0, 0], sizes = [2, 128], strides = [1, 1]} : vector<4x128xf32> to vector<2x128xf32>
    %c4_37 = arith.constant 4 : index
    %c0_38 = arith.constant 0 : index
    %102 = vector.load %arg10[%c4_37, %c0_38] : memref<16x256xf32, #tpu.memory_space<vmem>>, vector<2x128xf32>
    tpu.vector_store %arg10[%c4_37, %c0_38], %101 {strides = array<i32>} : memref<16x256xf32, #tpu.memory_space<vmem>>, vector<2x128xf32>,
    %103 = vector.extract_strided_slice %100 {offsets = [2, 0], sizes = [2, 128], strides = [1, 1]} : vector<4x128xf32> to vector<2x128xf32>
    %c10_39 = arith.constant 10 : index
    %c128_40 = arith.constant 128 : index
    %104 = vector.load %arg10[%c10_39, %c128_40] : memref<16x256xf32, #tpu.memory_space<vmem>>, vector<2x128xf32>
    tpu.vector_store %arg10[%c10_39, %c128_40], %103 {strides = array<i32>} : memref<16x256xf32, #tpu.memory_space<vmem>>, vector<2x128xf32>,
    %105 = vector.extract_strided_slice %100 {offsets = [0, 0], sizes = [2, 128], strides = [1, 1]} : vector<4x128xf32> to vector<2x128xf32>
    %106 = vector.extract_strided_slice %100 {offsets = [2, 0], sizes = [2, 128], strides = [1, 1]} : vector<4x128xf32> to vector<2x128xf32>
    %107 = arith.truncf %105 : vector<2x128xf32> to vector<2x128xbf16>
    %cst_41 = arith.constant dense<0.000000e+00> : vector<2x512xf32>
    %108 = tpu.matmul %107, %8, %cst_41 {dimension_numbers = #tpu.dot_dimension_numbers<[1], [0], [0], [1], [0, 0, 1, 1], [], []>} : vector<2x128xbf16>, vector<128x512xbf16>, vector<2x512xf32> -> vector<2x512xf32>
    %109 = arith.truncf %106 : vector<2x128xf32> to vector<2x128xbf16>
    %cst_42 = arith.constant dense<0.000000e+00> : vector<2x512xf32>
    %110 = tpu.matmul %109, %10, %cst_42 {dimension_numbers = #tpu.dot_dimension_numbers<[1], [0], [0], [1], [0, 0, 1, 1], [], []>} : vector<2x128xbf16>, vector<128x512xbf16>, vector<2x512xf32> -> vector<2x512xf32>
    %c6 = arith.constant 6 : index
    %c0_43 = arith.constant 0 : index
    %111 = vector.load %arg9[%c6, %c0_43] : memref<16x1024xf32, #tpu.memory_space<vmem>>, vector<2x512xf32>
    %c8 = arith.constant 8 : index
    %c512_44 = arith.constant 512 : index
    %112 = vector.load %arg9[%c8, %c512_44] : memref<16x1024xf32, #tpu.memory_space<vmem>>, vector<2x512xf32>
    %113 = arith.addf %111, %108 : vector<2x512xf32>
    %114 = arith.addf %112, %110 : vector<2x512xf32>
    %115 = tpu.concatenate %113, %114 in 0 : vector<2x512xf32>, vector<2x512xf32> -> vector<4x512xf32>
    %116 = vector.extract_strided_slice %115 {offsets = [0, 0], sizes = [4, 384], strides = [1, 1]} : vector<4x512xf32> to vector<4x384xf32>
    %117 = arith.negf %116 : vector<4x384xf32>
    %118 = math.exp %117 : vector<4x384xf32>
    %cst_45 = arith.constant 1.000000e+00 : f32
    %119 = vector.broadcast %cst_45 : f32 to vector<4x384xf32>
    %120 = arith.addf %119, %118 : vector<4x384xf32>
    %121 = arith.divf %119, %120 : vector<4x384xf32>
    %122 = vector.extract_strided_slice %115 {offsets = [0, 384], sizes = [4, 128], strides = [1, 1]} : vector<4x512xf32> to vector<4x128xf32>
    %123 = math.tanh %122 : vector<4x128xf32>
    %124 = vector.extract_strided_slice %121 {offsets = [0, 128], sizes = [4, 128], strides = [1, 1]} : vector<4x384xf32> to vector<4x128xf32>
    %125 = arith.mulf %124, %97 : vector<4x128xf32>
    %126 = vector.extract_strided_slice %121 {offsets = [0, 0], sizes = [4, 128], strides = [1, 1]} : vector<4x384xf32> to vector<4x128xf32>
    %127 = arith.mulf %126, %123 : vector<4x128xf32>
    %128 = arith.addf %125, %127 : vector<4x128xf32>
    %129 = vector.extract_strided_slice %121 {offsets = [0, 256], sizes = [4, 128], strides = [1, 1]} : vector<4x384xf32> to vector<4x128xf32>
    %130 = math.tanh %128 : vector<4x128xf32>
    %131 = arith.mulf %129, %130 : vector<4x128xf32>
    %132 = vector.extract_strided_slice %131 {offsets = [0, 0], sizes = [2, 128], strides = [1, 1]} : vector<4x128xf32> to vector<2x128xf32>
    %c6_46 = arith.constant 6 : index
    %c0_47 = arith.constant 0 : index
    %133 = vector.load %arg10[%c6_46, %c0_47] : memref<16x256xf32, #tpu.memory_space<vmem>>, vector<2x128xf32>
    tpu.vector_store %arg10[%c6_46, %c0_47], %132 {strides = array<i32>} : memref<16x256xf32, #tpu.memory_space<vmem>>, vector<2x128xf32>,
    %134 = vector.extract_strided_slice %131 {offsets = [2, 0], sizes = [2, 128], strides = [1, 1]} : vector<4x128xf32> to vector<2x128xf32>
    %c8_48 = arith.constant 8 : index
    %c128_49 = arith.constant 128 : index
    %135 = vector.load %arg10[%c8_48, %c128_49] : memref<16x256xf32, #tpu.memory_space<vmem>>, vector<2x128xf32>
    tpu.vector_store %arg10[%c8_48, %c128_49], %134 {strides = array<i32>} : memref<16x256xf32, #tpu.memory_space<vmem>>, vector<2x128xf32>,
    %136 = vector.extract_strided_slice %131 {offsets = [0, 0], sizes = [2, 128], strides = [1, 1]} : vector<4x128xf32> to vector<2x128xf32>
    %137 = vector.extract_strided_slice %131 {offsets = [2, 0], sizes = [2, 128], strides = [1, 1]} : vector<4x128xf32> to vector<2x128xf32>
    %138 = arith.truncf %136 : vector<2x128xf32> to vector<2x128xbf16>
    %cst_50 = arith.constant dense<0.000000e+00> : vector<2x512xf32>
    %139 = tpu.matmul %138, %8, %cst_50 {dimension_numbers = #tpu.dot_dimension_numbers<[1], [0], [0], [1], [0, 0, 1, 1], [], []>} : vector<2x128xbf16>, vector<128x512xbf16>, vector<2x512xf32> -> vector<2x512xf32>
    %140 = arith.truncf %137 : vector<2x128xf32> to vector<2x128xbf16>
    %cst_51 = arith.constant dense<0.000000e+00> : vector<2x512xf32>
    %141 = tpu.matmul %140, %10, %cst_51 {dimension_numbers = #tpu.dot_dimension_numbers<[1], [0], [0], [1], [0, 0, 1, 1], [], []>} : vector<2x128xbf16>, vector<128x512xbf16>, vector<2x512xf32> -> vector<2x512xf32>
    %c8_52 = arith.constant 8 : index
    %c0_53 = arith.constant 0 : index
    %142 = vector.load %arg9[%c8_52, %c0_53] : memref<16x1024xf32, #tpu.memory_space<vmem>>, vector<2x512xf32>
    %c6_54 = arith.constant 6 : index
    %c512_55 = arith.constant 512 : index
    %143 = vector.load %arg9[%c6_54, %c512_55] : memref<16x1024xf32, #tpu.memory_space<vmem>>, vector<2x512xf32>
    %144 = arith.addf %142, %139 : vector<2x512xf32>
    %145 = arith.addf %143, %141 : vector<2x512xf32>
    %146 = tpu.concatenate %144, %145 in 0 : vector<2x512xf32>, vector<2x512xf32> -> vector<4x512xf32>
    %147 = vector.extract_strided_slice %146 {offsets = [0, 0], sizes = [4, 384], strides = [1, 1]} : vector<4x512xf32> to vector<4x384xf32>
    %148 = arith.negf %147 : vector<4x384xf32>
    %149 = math.exp %148 : vector<4x384xf32>
    %cst_56 = arith.constant 1.000000e+00 : f32
    %150 = vector.broadcast %cst_56 : f32 to vector<4x384xf32>
    %151 = arith.addf %150, %149 : vector<4x384xf32>
    %152 = arith.divf %150, %151 : vector<4x384xf32>
    %153 = vector.extract_strided_slice %146 {offsets = [0, 384], sizes = [4, 128], strides = [1, 1]} : vector<4x512xf32> to vector<4x128xf32>
    %154 = math.tanh %153 : vector<4x128xf32>
    %155 = vector.extract_strided_slice %152 {offsets = [0, 128], sizes = [4, 128], strides = [1, 1]} : vector<4x384xf32> to vector<4x128xf32>
    %156 = arith.mulf %155, %128 : vector<4x128xf32>
    %157 = vector.extract_strided_slice %152 {offsets = [0, 0], sizes = [4, 128], strides = [1, 1]} : vector<4x384xf32> to vector<4x128xf32>
    %158 = arith.mulf %157, %154 : vector<4x128xf32>
    %159 = arith.addf %156, %158 : vector<4x128xf32>
    %160 = vector.extract_strided_slice %152 {offsets = [0, 256], sizes = [4, 128], strides = [1, 1]} : vector<4x384xf32> to vector<4x128xf32>
    %161 = math.tanh %159 : vector<4x128xf32>
    %162 = arith.mulf %160, %161 : vector<4x128xf32>
    %163 = vector.extract_strided_slice %162 {offsets = [0, 0], sizes = [2, 128], strides = [1, 1]} : vector<4x128xf32> to vector<2x128xf32>
    %c8_57 = arith.constant 8 : index
    %c0_58 = arith.constant 0 : index
    %164 = vector.load %arg10[%c8_57, %c0_58] : memref<16x256xf32, #tpu.memory_space<vmem>>, vector<2x128xf32>
    tpu.vector_store %arg10[%c8_57, %c0_58], %163 {strides = array<i32>} : memref<16x256xf32, #tpu.memory_space<vmem>>, vector<2x128xf32>,
    %165 = vector.extract_strided_slice %162 {offsets = [2, 0], sizes = [2, 128], strides = [1, 1]} : vector<4x128xf32> to vector<2x128xf32>
    %c6_59 = arith.constant 6 : index
    %c128_60 = arith.constant 128 : index
    %166 = vector.load %arg10[%c6_59, %c128_60] : memref<16x256xf32, #tpu.memory_space<vmem>>, vector<2x128xf32>
    tpu.vector_store %arg10[%c6_59, %c128_60], %165 {strides = array<i32>} : memref<16x256xf32, #tpu.memory_space<vmem>>, vector<2x128xf32>,
    %167 = vector.extract_strided_slice %162 {offsets = [0, 0], sizes = [2, 128], strides = [1, 1]} : vector<4x128xf32> to vector<2x128xf32>
    %168 = vector.extract_strided_slice %162 {offsets = [2, 0], sizes = [2, 128], strides = [1, 1]} : vector<4x128xf32> to vector<2x128xf32>
    %169 = arith.truncf %167 : vector<2x128xf32> to vector<2x128xbf16>
    %cst_61 = arith.constant dense<0.000000e+00> : vector<2x512xf32>
    %170 = tpu.matmul %169, %8, %cst_61 {dimension_numbers = #tpu.dot_dimension_numbers<[1], [0], [0], [1], [0, 0, 1, 1], [], []>} : vector<2x128xbf16>, vector<128x512xbf16>, vector<2x512xf32> -> vector<2x512xf32>
    %171 = arith.truncf %168 : vector<2x128xf32> to vector<2x128xbf16>
    %cst_62 = arith.constant dense<0.000000e+00> : vector<2x512xf32>
    %172 = tpu.matmul %171, %10, %cst_62 {dimension_numbers = #tpu.dot_dimension_numbers<[1], [0], [0], [1], [0, 0, 1, 1], [], []>} : vector<2x128xbf16>, vector<128x512xbf16>, vector<2x512xf32> -> vector<2x512xf32>
    %c10_63 = arith.constant 10 : index
    %c0_64 = arith.constant 0 : index
    %173 = vector.load %arg9[%c10_63, %c0_64] : memref<16x1024xf32, #tpu.memory_space<vmem>>, vector<2x512xf32>
    %c4_65 = arith.constant 4 : index
    %c512_66 = arith.constant 512 : index
    %174 = vector.load %arg9[%c4_65, %c512_66] : memref<16x1024xf32, #tpu.memory_space<vmem>>, vector<2x512xf32>
    %175 = arith.addf %173, %170 : vector<2x512xf32>
    %176 = arith.addf %174, %172 : vector<2x512xf32>
    %177 = tpu.concatenate %175, %176 in 0 : vector<2x512xf32>, vector<2x512xf32> -> vector<4x512xf32>
    %178 = vector.extract_strided_slice %177 {offsets = [0, 0], sizes = [4, 384], strides = [1, 1]} : vector<4x512xf32> to vector<4x384xf32>
    %179 = arith.negf %178 : vector<4x384xf32>
    %180 = math.exp %179 : vector<4x384xf32>
    %cst_67 = arith.constant 1.000000e+00 : f32
    %181 = vector.broadcast %cst_67 : f32 to vector<4x384xf32>
    %182 = arith.addf %181, %180 : vector<4x384xf32>
    %183 = arith.divf %181, %182 : vector<4x384xf32>
    %184 = vector.extract_strided_slice %177 {offsets = [0, 384], sizes = [4, 128], strides = [1, 1]} : vector<4x512xf32> to vector<4x128xf32>
    %185 = math.tanh %184 : vector<4x128xf32>
    %186 = vector.extract_strided_slice %183 {offsets = [0, 128], sizes = [4, 128], strides = [1, 1]} : vector<4x384xf32> to vector<4x128xf32>
    %187 = arith.mulf %186, %159 : vector<4x128xf32>
    %188 = vector.extract_strided_slice %183 {offsets = [0, 0], sizes = [4, 128], strides = [1, 1]} : vector<4x384xf32> to vector<4x128xf32>
    %189 = arith.mulf %188, %185 : vector<4x128xf32>
    %190 = arith.addf %187, %189 : vector<4x128xf32>
    %191 = vector.extract_strided_slice %183 {offsets = [0, 256], sizes = [4, 128], strides = [1, 1]} : vector<4x384xf32> to vector<4x128xf32>
    %192 = math.tanh %190 : vector<4x128xf32>
    %193 = arith.mulf %191, %192 : vector<4x128xf32>
    %194 = vector.extract_strided_slice %193 {offsets = [0, 0], sizes = [2, 128], strides = [1, 1]} : vector<4x128xf32> to vector<2x128xf32>
    %c10_68 = arith.constant 10 : index
    %c0_69 = arith.constant 0 : index
    %195 = vector.load %arg10[%c10_68, %c0_69] : memref<16x256xf32, #tpu.memory_space<vmem>>, vector<2x128xf32>
    tpu.vector_store %arg10[%c10_68, %c0_69], %194 {strides = array<i32>} : memref<16x256xf32, #tpu.memory_space<vmem>>, vector<2x128xf32>,
    %196 = vector.extract_strided_slice %193 {offsets = [2, 0], sizes = [2, 128], strides = [1, 1]} : vector<4x128xf32> to vector<2x128xf32>
    %c4_70 = arith.constant 4 : index
    %c128_71 = arith.constant 128 : index
    %197 = vector.load %arg10[%c4_70, %c128_71] : memref<16x256xf32, #tpu.memory_space<vmem>>, vector<2x128xf32>
    tpu.vector_store %arg10[%c4_70, %c128_71], %196 {strides = array<i32>} : memref<16x256xf32, #tpu.memory_space<vmem>>, vector<2x128xf32>,
    %198 = vector.extract_strided_slice %193 {offsets = [0, 0], sizes = [2, 128], strides = [1, 1]} : vector<4x128xf32> to vector<2x128xf32>
    %199 = vector.extract_strided_slice %193 {offsets = [2, 0], sizes = [2, 128], strides = [1, 1]} : vector<4x128xf32> to vector<2x128xf32>
    %200 = arith.truncf %198 : vector<2x128xf32> to vector<2x128xbf16>
    %cst_72 = arith.constant dense<0.000000e+00> : vector<2x512xf32>
    %201 = tpu.matmul %200, %8, %cst_72 {dimension_numbers = #tpu.dot_dimension_numbers<[1], [0], [0], [1], [0, 0, 1, 1], [], []>} : vector<2x128xbf16>, vector<128x512xbf16>, vector<2x512xf32> -> vector<2x512xf32>
    %202 = arith.truncf %199 : vector<2x128xf32> to vector<2x128xbf16>
    %cst_73 = arith.constant dense<0.000000e+00> : vector<2x512xf32>
    %203 = tpu.matmul %202, %10, %cst_73 {dimension_numbers = #tpu.dot_dimension_numbers<[1], [0], [0], [1], [0, 0, 1, 1], [], []>} : vector<2x128xbf16>, vector<128x512xbf16>, vector<2x512xf32> -> vector<2x512xf32>
    %c12_74 = arith.constant 12 : index
    %c0_75 = arith.constant 0 : index
    %204 = vector.load %arg9[%c12_74, %c0_75] : memref<16x1024xf32, #tpu.memory_space<vmem>>, vector<2x512xf32>
    %c2_76 = arith.constant 2 : index
    %c512_77 = arith.constant 512 : index
    %205 = vector.load %arg9[%c2_76, %c512_77] : memref<16x1024xf32, #tpu.memory_space<vmem>>, vector<2x512xf32>
    %206 = arith.addf %204, %201 : vector<2x512xf32>
    %207 = arith.addf %205, %203 : vector<2x512xf32>
    %208 = tpu.concatenate %206, %207 in 0 : vector<2x512xf32>, vector<2x512xf32> -> vector<4x512xf32>
    %209 = vector.extract_strided_slice %208 {offsets = [0, 0], sizes = [4, 384], strides = [1, 1]} : vector<4x512xf32> to vector<4x384xf32>
    %210 = arith.negf %209 : vector<4x384xf32>
    %211 = math.exp %210 : vector<4x384xf32>
    %cst_78 = arith.constant 1.000000e+00 : f32
    %212 = vector.broadcast %cst_78 : f32 to vector<4x384xf32>
    %213 = arith.addf %212, %211 : vector<4x384xf32>
    %214 = arith.divf %212, %213 : vector<4x384xf32>
    %215 = vector.extract_strided_slice %208 {offsets = [0, 384], sizes = [4, 128], strides = [1, 1]} : vector<4x512xf32> to vector<4x128xf32>
    %216 = math.tanh %215 : vector<4x128xf32>
    %217 = vector.extract_strided_slice %214 {offsets = [0, 128], sizes = [4, 128], strides = [1, 1]} : vector<4x384xf32> to vector<4x128xf32>
    %218 = arith.mulf %217, %190 : vector<4x128xf32>
    %219 = vector.extract_strided_slice %214 {offsets = [0, 0], sizes = [4, 128], strides = [1, 1]} : vector<4x384xf32> to vector<4x128xf32>
    %220 = arith.mulf %219, %216 : vector<4x128xf32>
    %221 = arith.addf %218, %220 : vector<4x128xf32>
    %222 = vector.extract_strided_slice %214 {offsets = [0, 256], sizes = [4, 128], strides = [1, 1]} : vector<4x384xf32> to vector<4x128xf32>
    %223 = math.tanh %221 : vector<4x128xf32>
    %224 = arith.mulf %222, %223 : vector<4x128xf32>
    %225 = vector.extract_strided_slice %224 {offsets = [0, 0], sizes = [2, 128], strides = [1, 1]} : vector<4x128xf32> to vector<2x128xf32>
    %c12_79 = arith.constant 12 : index
    %c0_80 = arith.constant 0 : index
    %226 = vector.load %arg10[%c12_79, %c0_80] : memref<16x256xf32, #tpu.memory_space<vmem>>, vector<2x128xf32>
    tpu.vector_store %arg10[%c12_79, %c0_80], %225 {strides = array<i32>} : memref<16x256xf32, #tpu.memory_space<vmem>>, vector<2x128xf32>,
    %227 = vector.extract_strided_slice %224 {offsets = [2, 0], sizes = [2, 128], strides = [1, 1]} : vector<4x128xf32> to vector<2x128xf32>
    %c2_81 = arith.constant 2 : index
    %c128_82 = arith.constant 128 : index
    %228 = vector.load %arg10[%c2_81, %c128_82] : memref<16x256xf32, #tpu.memory_space<vmem>>, vector<2x128xf32>
    tpu.vector_store %arg10[%c2_81, %c128_82], %227 {strides = array<i32>} : memref<16x256xf32, #tpu.memory_space<vmem>>, vector<2x128xf32>,
    %229 = vector.extract_strided_slice %224 {offsets = [0, 0], sizes = [2, 128], strides = [1, 1]} : vector<4x128xf32> to vector<2x128xf32>
    %230 = vector.extract_strided_slice %224 {offsets = [2, 0], sizes = [2, 128], strides = [1, 1]} : vector<4x128xf32> to vector<2x128xf32>
    %231 = arith.truncf %229 : vector<2x128xf32> to vector<2x128xbf16>
    %cst_83 = arith.constant dense<0.000000e+00> : vector<2x512xf32>
    %232 = tpu.matmul %231, %8, %cst_83 {dimension_numbers = #tpu.dot_dimension_numbers<[1], [0], [0], [1], [0, 0, 1, 1], [], []>} : vector<2x128xbf16>, vector<128x512xbf16>, vector<2x512xf32> -> vector<2x512xf32>
    %233 = arith.truncf %230 : vector<2x128xf32> to vector<2x128xbf16>
    %cst_84 = arith.constant dense<0.000000e+00> : vector<2x512xf32>
    %234 = tpu.matmul %233, %10, %cst_84 {dimension_numbers = #tpu.dot_dimension_numbers<[1], [0], [0], [1], [0, 0, 1, 1], [], []>} : vector<2x128xbf16>, vector<128x512xbf16>, vector<2x512xf32> -> vector<2x512xf32>
    %c14_85 = arith.constant 14 : index
    %c0_86 = arith.constant 0 : index
    %235 = vector.load %arg9[%c14_85, %c0_86] : memref<16x1024xf32, #tpu.memory_space<vmem>>, vector<2x512xf32>
    %c0_87 = arith.constant 0 : index
    %c512_88 = arith.constant 512 : index
    %236 = vector.load %arg9[%c0_87, %c512_88] : memref<16x1024xf32, #tpu.memory_space<vmem>>, vector<2x512xf32>
    %237 = arith.addf %235, %232 : vector<2x512xf32>
    %238 = arith.addf %236, %234 : vector<2x512xf32>
    %239 = tpu.concatenate %237, %238 in 0 : vector<2x512xf32>, vector<2x512xf32> -> vector<4x512xf32>
    %240 = vector.extract_strided_slice %239 {offsets = [0, 0], sizes = [4, 384], strides = [1, 1]} : vector<4x512xf32> to vector<4x384xf32>
    %241 = arith.negf %240 : vector<4x384xf32>
    %242 = math.exp %241 : vector<4x384xf32>
    %cst_89 = arith.constant 1.000000e+00 : f32
    %243 = vector.broadcast %cst_89 : f32 to vector<4x384xf32>
    %244 = arith.addf %243, %242 : vector<4x384xf32>
    %245 = arith.divf %243, %244 : vector<4x384xf32>
    %246 = vector.extract_strided_slice %239 {offsets = [0, 384], sizes = [4, 128], strides = [1, 1]} : vector<4x512xf32> to vector<4x128xf32>
    %247 = math.tanh %246 : vector<4x128xf32>
    %248 = vector.extract_strided_slice %245 {offsets = [0, 128], sizes = [4, 128], strides = [1, 1]} : vector<4x384xf32> to vector<4x128xf32>
    %249 = arith.mulf %248, %221 : vector<4x128xf32>
    %250 = vector.extract_strided_slice %245 {offsets = [0, 0], sizes = [4, 128], strides = [1, 1]} : vector<4x384xf32> to vector<4x128xf32>
    %251 = arith.mulf %250, %247 : vector<4x128xf32>
    %252 = arith.addf %249, %251 : vector<4x128xf32>
    %253 = vector.extract_strided_slice %245 {offsets = [0, 256], sizes = [4, 128], strides = [1, 1]} : vector<4x384xf32> to vector<4x128xf32>
    %254 = math.tanh %252 : vector<4x128xf32>
    %255 = arith.mulf %253, %254 : vector<4x128xf32>
    %256 = vector.extract_strided_slice %255 {offsets = [0, 0], sizes = [2, 128], strides = [1, 1]} : vector<4x128xf32> to vector<2x128xf32>
    %c14_90 = arith.constant 14 : index
    %c0_91 = arith.constant 0 : index
    %257 = vector.load %arg10[%c14_90, %c0_91] : memref<16x256xf32, #tpu.memory_space<vmem>>, vector<2x128xf32>
    tpu.vector_store %arg10[%c14_90, %c0_91], %256 {strides = array<i32>} : memref<16x256xf32, #tpu.memory_space<vmem>>, vector<2x128xf32>,
    %258 = vector.extract_strided_slice %255 {offsets = [2, 0], sizes = [2, 128], strides = [1, 1]} : vector<4x128xf32> to vector<2x128xf32>
    %c0_92 = arith.constant 0 : index
    %c128_93 = arith.constant 128 : index
    %259 = vector.load %arg10[%c0_92, %c128_93] : memref<16x256xf32, #tpu.memory_space<vmem>>, vector<2x128xf32>
    tpu.vector_store %arg10[%c0_92, %c128_93], %258 {strides = array<i32>} : memref<16x256xf32, #tpu.memory_space<vmem>>, vector<2x128xf32>,
    %c0_94 = arith.constant 0 : index
    %c0_95 = arith.constant 0 : index
    %260 = vector.load %arg10[%c0_94, %c0_95] : memref<16x256xf32, #tpu.memory_space<vmem>>, vector<16x256xf32>
    %261 = arith.truncf %260 : vector<16x256xf32> to vector<16x256xbf16>
    %c0_96 = arith.constant 0 : index
    %c0_97 = arith.constant 0 : index
    %262 = vector.load %arg5[%c0_96, %c0_97] : memref<256x1024xbf16, #tpu.memory_space<vmem>>, vector<256x1024xbf16>
    %cst_98 = arith.constant dense<0.000000e+00> : vector<16x1024xf32>
    %263 = tpu.matmul %261, %262, %cst_98 {dimension_numbers = #tpu.dot_dimension_numbers<[1], [0], [0], [1], [0, 0, 1, 1], [], []>} : vector<16x256xbf16>, vector<256x1024xbf16>, vector<16x1024xf32> -> vector<16x1024xf32>
    %c0_99 = arith.constant 0 : index
    %c0_100 = arith.constant 0 : index
    %264 = vector.load %arg7[%c0_99, %c0_100] : memref<1x1024xf32, #tpu.memory_space<vmem>>, vector<1x1024xf32>
    %265 = vector.broadcast %264 : vector<1x1024xf32> to vector<16x1024xf32>
    %266 = arith.addf %263, %265 : vector<16x1024xf32>
    %c0_101 = arith.constant 0 : index
    %c0_102 = arith.constant 0 : index
    %267 = vector.load %arg9[%c0_101, %c0_102] : memref<16x1024xf32, #tpu.memory_space<vmem>>, vector<16x1024xf32>
    tpu.vector_store %arg9[%c0_101, %c0_102], %266 {strides = array<i32>} : memref<16x1024xf32, #tpu.memory_space<vmem>>, vector<16x1024xf32>,
    %c0_103 = arith.constant 0 : index
    %c0_104 = arith.constant 0 : index
    %c0_105 = arith.constant 0 : index
    %268 = vector.load %arg6[%c0_103, %c0_104, %c0_105] : memref<2x128x512xbf16, #tpu.memory_space<vmem>>, vector<1x128x512xbf16>
    %269 = vector.shape_cast %268 : vector<1x128x512xbf16> to vector<128x512xbf16>
    %c1_106 = arith.constant 1 : index
    %c0_107 = arith.constant 0 : index
    %c0_108 = arith.constant 0 : index
    %270 = vector.load %arg6[%c1_106, %c0_107, %c0_108] : memref<2x128x512xbf16, #tpu.memory_space<vmem>>, vector<1x128x512xbf16>
    %271 = vector.shape_cast %270 : vector<1x128x512xbf16> to vector<128x512xbf16>
    %cst_109 = arith.constant 0.000000e+00 : f32
    %272 = vector.broadcast %cst_109 : f32 to vector<2x128xf32>
    %cst_110 = arith.constant 0.000000e+00 : f32
    %273 = vector.broadcast %cst_110 : f32 to vector<2x128xf32>
    %cst_111 = arith.constant 0.000000e+00 : f32
    %274 = vector.broadcast %cst_111 : f32 to vector<4x128xf32>
    %275 = arith.truncf %272 : vector<2x128xf32> to vector<2x128xbf16>
    %cst_112 = arith.constant dense<0.000000e+00> : vector<2x512xf32>
    %276 = tpu.matmul %275, %269, %cst_112 {dimension_numbers = #tpu.dot_dimension_numbers<[1], [0], [0], [1], [0, 0, 1, 1], [], []>} : vector<2x128xbf16>, vector<128x512xbf16>, vector<2x512xf32> -> vector<2x512xf32>
    %277 = arith.truncf %273 : vector<2x128xf32> to vector<2x128xbf16>
    %cst_113 = arith.constant dense<0.000000e+00> : vector<2x512xf32>
    %278 = tpu.matmul %277, %271, %cst_113 {dimension_numbers = #tpu.dot_dimension_numbers<[1], [0], [0], [1], [0, 0, 1, 1], [], []>} : vector<2x128xbf16>, vector<128x512xbf16>, vector<2x512xf32> -> vector<2x512xf32>
    %c0_114 = arith.constant 0 : index
    %c0_115 = arith.constant 0 : index
    %279 = vector.load %arg9[%c0_114, %c0_115] : memref<16x1024xf32, #tpu.memory_space<vmem>>, vector<2x512xf32>
    %c14_116 = arith.constant 14 : index
    %c512_117 = arith.constant 512 : index
    %280 = vector.load %arg9[%c14_116, %c512_117] : memref<16x1024xf32, #tpu.memory_space<vmem>>, vector<2x512xf32>
    %281 = arith.addf %279, %276 : vector<2x512xf32>
    %282 = arith.addf %280, %278 : vector<2x512xf32>
    %283 = tpu.concatenate %281, %282 in 0 : vector<2x512xf32>, vector<2x512xf32> -> vector<4x512xf32>
    %284 = vector.extract_strided_slice %283 {offsets = [0, 0], sizes = [4, 384], strides = [1, 1]} : vector<4x512xf32> to vector<4x384xf32>
    %285 = arith.negf %284 : vector<4x384xf32>
    %286 = math.exp %285 : vector<4x384xf32>
    %cst_118 = arith.constant 1.000000e+00 : f32
    %287 = vector.broadcast %cst_118 : f32 to vector<4x384xf32>
    %288 = arith.addf %287, %286 : vector<4x384xf32>
    %289 = arith.divf %287, %288 : vector<4x384xf32>
    %290 = vector.extract_strided_slice %283 {offsets = [0, 384], sizes = [4, 128], strides = [1, 1]} : vector<4x512xf32> to vector<4x128xf32>
    %291 = math.tanh %290 : vector<4x128xf32>
    %292 = vector.extract_strided_slice %289 {offsets = [0, 128], sizes = [4, 128], strides = [1, 1]} : vector<4x384xf32> to vector<4x128xf32>
    %293 = arith.mulf %292, %274 : vector<4x128xf32>
    %294 = vector.extract_strided_slice %289 {offsets = [0, 0], sizes = [4, 128], strides = [1, 1]} : vector<4x384xf32> to vector<4x128xf32>
    %295 = arith.mulf %294, %291 : vector<4x128xf32>
    %296 = arith.addf %293, %295 : vector<4x128xf32>
    %297 = vector.extract_strided_slice %289 {offsets = [0, 256], sizes = [4, 128], strides = [1, 1]} : vector<4x384xf32> to vector<4x128xf32>
    %298 = math.tanh %296 : vector<4x128xf32>
    %299 = arith.mulf %297, %298 : vector<4x128xf32>
    %300 = vector.extract_strided_slice %299 {offsets = [0, 0], sizes = [2, 128], strides = [1, 1]} : vector<4x128xf32> to vector<2x128xf32>
    %c0_119 = arith.constant 0 : index
    %c0_120 = arith.constant 0 : index
    %301 = vector.load %arg8[%c0_119, %c0_120] : memref<16x256xf32, #tpu.memory_space<vmem>>, vector<2x128xf32>
    tpu.vector_store %arg8[%c0_119, %c0_120], %300 {strides = array<i32>} : memref<16x256xf32, #tpu.memory_space<vmem>>, vector<2x128xf32>,
    %302 = vector.extract_strided_slice %299 {offsets = [2, 0], sizes = [2, 128], strides = [1, 1]} : vector<4x128xf32> to vector<2x128xf32>
    %c14_121 = arith.constant 14 : index
    %c128_122 = arith.constant 128 : index
    %303 = vector.load %arg8[%c14_121, %c128_122] : memref<16x256xf32, #tpu.memory_space<vmem>>, vector<2x128xf32>
    tpu.vector_store %arg8[%c14_121, %c128_122], %302 {strides = array<i32>} : memref<16x256xf32, #tpu.memory_space<vmem>>, vector<2x128xf32>,
    %304 = vector.extract_strided_slice %299 {offsets = [0, 0], sizes = [2, 128], strides = [1, 1]} : vector<4x128xf32> to vector<2x128xf32>
    %305 = vector.extract_strided_slice %299 {offsets = [2, 0], sizes = [2, 128], strides = [1, 1]} : vector<4x128xf32> to vector<2x128xf32>
    %306 = arith.truncf %304 : vector<2x128xf32> to vector<2x128xbf16>
    %cst_123 = arith.constant dense<0.000000e+00> : vector<2x512xf32>
    %307 = tpu.matmul %306, %269, %cst_123 {dimension_numbers = #tpu.dot_dimension_numbers<[1], [0], [0], [1], [0, 0, 1, 1], [], []>} : vector<2x128xbf16>, vector<128x512xbf16>, vector<2x512xf32> -> vector<2x512xf32>
    %308 = arith.truncf %305 : vector<2x128xf32> to vector<2x128xbf16>
    %cst_124 = arith.constant dense<0.000000e+00> : vector<2x512xf32>
    %309 = tpu.matmul %308, %271, %cst_124 {dimension_numbers = #tpu.dot_dimension_numbers<[1], [0], [0], [1], [0, 0, 1, 1], [], []>} : vector<2x128xbf16>, vector<128x512xbf16>, vector<2x512xf32> -> vector<2x512xf32>
    %c2_125 = arith.constant 2 : index
    %c0_126 = arith.constant 0 : index
    %310 = vector.load %arg9[%c2_125, %c0_126] : memref<16x1024xf32, #tpu.memory_space<vmem>>, vector<2x512xf32>
    %c12_127 = arith.constant 12 : index
    %c512_128 = arith.constant 512 : index
    %311 = vector.load %arg9[%c12_127, %c512_128] : memref<16x1024xf32, #tpu.memory_space<vmem>>, vector<2x512xf32>
    %312 = arith.addf %310, %307 : vector<2x512xf32>
    %313 = arith.addf %311, %309 : vector<2x512xf32>
    %314 = tpu.concatenate %312, %313 in 0 : vector<2x512xf32>, vector<2x512xf32> -> vector<4x512xf32>
    %315 = vector.extract_strided_slice %314 {offsets = [0, 0], sizes = [4, 384], strides = [1, 1]} : vector<4x512xf32> to vector<4x384xf32>
    %316 = arith.negf %315 : vector<4x384xf32>
    %317 = math.exp %316 : vector<4x384xf32>
    %cst_129 = arith.constant 1.000000e+00 : f32
    %318 = vector.broadcast %cst_129 : f32 to vector<4x384xf32>
    %319 = arith.addf %318, %317 : vector<4x384xf32>
    %320 = arith.divf %318, %319 : vector<4x384xf32>
    %321 = vector.extract_strided_slice %314 {offsets = [0, 384], sizes = [4, 128], strides = [1, 1]} : vector<4x512xf32> to vector<4x128xf32>
    %322 = math.tanh %321 : vector<4x128xf32>
    %323 = vector.extract_strided_slice %320 {offsets = [0, 128], sizes = [4, 128], strides = [1, 1]} : vector<4x384xf32> to vector<4x128xf32>
    %324 = arith.mulf %323, %296 : vector<4x128xf32>
    %325 = vector.extract_strided_slice %320 {offsets = [0, 0], sizes = [4, 128], strides = [1, 1]} : vector<4x384xf32> to vector<4x128xf32>
    %326 = arith.mulf %325, %322 : vector<4x128xf32>
    %327 = arith.addf %324, %326 : vector<4x128xf32>
    %328 = vector.extract_strided_slice %320 {offsets = [0, 256], sizes = [4, 128], strides = [1, 1]} : vector<4x384xf32> to vector<4x128xf32>
    %329 = math.tanh %327 : vector<4x128xf32>
    %330 = arith.mulf %328, %329 : vector<4x128xf32>
    %331 = vector.extract_strided_slice %330 {offsets = [0, 0], sizes = [2, 128], strides = [1, 1]} : vector<4x128xf32> to vector<2x128xf32>
    %c2_130 = arith.constant 2 : index
    %c0_131 = arith.constant 0 : index
    %332 = vector.load %arg8[%c2_130, %c0_131] : memref<16x256xf32, #tpu.memory_space<vmem>>, vector<2x128xf32>
    tpu.vector_store %arg8[%c2_130, %c0_131], %331 {strides = array<i32>} : memref<16x256xf32, #tpu.memory_space<vmem>>, vector<2x128xf32>,
    %333 = vector.extract_strided_slice %330 {offsets = [2, 0], sizes = [2, 128], strides = [1, 1]} : vector<4x128xf32> to vector<2x128xf32>
    %c12_132 = arith.constant 12 : index
    %c128_133 = arith.constant 128 : index
    %334 = vector.load %arg8[%c12_132, %c128_133] : memref<16x256xf32, #tpu.memory_space<vmem>>, vector<2x128xf32>
    tpu.vector_store %arg8[%c12_132, %c128_133], %333 {strides = array<i32>} : memref<16x256xf32, #tpu.memory_space<vmem>>, vector<2x128xf32>,
    %335 = vector.extract_strided_slice %330 {offsets = [0, 0], sizes = [2, 128], strides = [1, 1]} : vector<4x128xf32> to vector<2x128xf32>
    %336 = vector.extract_strided_slice %330 {offsets = [2, 0], sizes = [2, 128], strides = [1, 1]} : vector<4x128xf32> to vector<2x128xf32>
    %337 = arith.truncf %335 : vector<2x128xf32> to vector<2x128xbf16>
    %cst_134 = arith.constant dense<0.000000e+00> : vector<2x512xf32>
    %338 = tpu.matmul %337, %269, %cst_134 {dimension_numbers = #tpu.dot_dimension_numbers<[1], [0], [0], [1], [0, 0, 1, 1], [], []>} : vector<2x128xbf16>, vector<128x512xbf16>, vector<2x512xf32> -> vector<2x512xf32>
    %339 = arith.truncf %336 : vector<2x128xf32> to vector<2x128xbf16>
    %cst_135 = arith.constant dense<0.000000e+00> : vector<2x512xf32>
    %340 = tpu.matmul %339, %271, %cst_135 {dimension_numbers = #tpu.dot_dimension_numbers<[1], [0], [0], [1], [0, 0, 1, 1], [], []>} : vector<2x128xbf16>, vector<128x512xbf16>, vector<2x512xf32> -> vector<2x512xf32>
    %c4_136 = arith.constant 4 : index
    %c0_137 = arith.constant 0 : index
    %341 = vector.load %arg9[%c4_136, %c0_137] : memref<16x1024xf32, #tpu.memory_space<vmem>>, vector<2x512xf32>
    %c10_138 = arith.constant 10 : index
    %c512_139 = arith.constant 512 : index
    %342 = vector.load %arg9[%c10_138, %c512_139] : memref<16x1024xf32, #tpu.memory_space<vmem>>, vector<2x512xf32>
    %343 = arith.addf %341, %338 : vector<2x512xf32>
    %344 = arith.addf %342, %340 : vector<2x512xf32>
    %345 = tpu.concatenate %343, %344 in 0 : vector<2x512xf32>, vector<2x512xf32> -> vector<4x512xf32>
    %346 = vector.extract_strided_slice %345 {offsets = [0, 0], sizes = [4, 384], strides = [1, 1]} : vector<4x512xf32> to vector<4x384xf32>
    %347 = arith.negf %346 : vector<4x384xf32>
    %348 = math.exp %347 : vector<4x384xf32>
    %cst_140 = arith.constant 1.000000e+00 : f32
    %349 = vector.broadcast %cst_140 : f32 to vector<4x384xf32>
    %350 = arith.addf %349, %348 : vector<4x384xf32>
    %351 = arith.divf %349, %350 : vector<4x384xf32>
    %352 = vector.extract_strided_slice %345 {offsets = [0, 384], sizes = [4, 128], strides = [1, 1]} : vector<4x512xf32> to vector<4x128xf32>
    %353 = math.tanh %352 : vector<4x128xf32>
    %354 = vector.extract_strided_slice %351 {offsets = [0, 128], sizes = [4, 128], strides = [1, 1]} : vector<4x384xf32> to vector<4x128xf32>
    %355 = arith.mulf %354, %327 : vector<4x128xf32>
    %356 = vector.extract_strided_slice %351 {offsets = [0, 0], sizes = [4, 128], strides = [1, 1]} : vector<4x384xf32> to vector<4x128xf32>
    %357 = arith.mulf %356, %353 : vector<4x128xf32>
    %358 = arith.addf %355, %357 : vector<4x128xf32>
    %359 = vector.extract_strided_slice %351 {offsets = [0, 256], sizes = [4, 128], strides = [1, 1]} : vector<4x384xf32> to vector<4x128xf32>
    %360 = math.tanh %358 : vector<4x128xf32>
    %361 = arith.mulf %359, %360 : vector<4x128xf32>
    %362 = vector.extract_strided_slice %361 {offsets = [0, 0], sizes = [2, 128], strides = [1, 1]} : vector<4x128xf32> to vector<2x128xf32>
    %c4_141 = arith.constant 4 : index
    %c0_142 = arith.constant 0 : index
    %363 = vector.load %arg8[%c4_141, %c0_142] : memref<16x256xf32, #tpu.memory_space<vmem>>, vector<2x128xf32>
    tpu.vector_store %arg8[%c4_141, %c0_142], %362 {strides = array<i32>} : memref<16x256xf32, #tpu.memory_space<vmem>>, vector<2x128xf32>,
    %364 = vector.extract_strided_slice %361 {offsets = [2, 0], sizes = [2, 128], strides = [1, 1]} : vector<4x128xf32> to vector<2x128xf32>
    %c10_143 = arith.constant 10 : index
    %c128_144 = arith.constant 128 : index
    %365 = vector.load %arg8[%c10_143, %c128_144] : memref<16x256xf32, #tpu.memory_space<vmem>>, vector<2x128xf32>
    tpu.vector_store %arg8[%c10_143, %c128_144], %364 {strides = array<i32>} : memref<16x256xf32, #tpu.memory_space<vmem>>, vector<2x128xf32>,
    %366 = vector.extract_strided_slice %361 {offsets = [0, 0], sizes = [2, 128], strides = [1, 1]} : vector<4x128xf32> to vector<2x128xf32>
    %367 = vector.extract_strided_slice %361 {offsets = [2, 0], sizes = [2, 128], strides = [1, 1]} : vector<4x128xf32> to vector<2x128xf32>
    %368 = arith.truncf %366 : vector<2x128xf32> to vector<2x128xbf16>
    %cst_145 = arith.constant dense<0.000000e+00> : vector<2x512xf32>
    %369 = tpu.matmul %368, %269, %cst_145 {dimension_numbers = #tpu.dot_dimension_numbers<[1], [0], [0], [1], [0, 0, 1, 1], [], []>} : vector<2x128xbf16>, vector<128x512xbf16>, vector<2x512xf32> -> vector<2x512xf32>
    %370 = arith.truncf %367 : vector<2x128xf32> to vector<2x128xbf16>
    %cst_146 = arith.constant dense<0.000000e+00> : vector<2x512xf32>
    %371 = tpu.matmul %370, %271, %cst_146 {dimension_numbers = #tpu.dot_dimension_numbers<[1], [0], [0], [1], [0, 0, 1, 1], [], []>} : vector<2x128xbf16>, vector<128x512xbf16>, vector<2x512xf32> -> vector<2x512xf32>
    %c6_147 = arith.constant 6 : index
    %c0_148 = arith.constant 0 : index
    %372 = vector.load %arg9[%c6_147, %c0_148] : memref<16x1024xf32, #tpu.memory_space<vmem>>, vector<2x512xf32>
    %c8_149 = arith.constant 8 : index
    %c512_150 = arith.constant 512 : index
    %373 = vector.load %arg9[%c8_149, %c512_150] : memref<16x1024xf32, #tpu.memory_space<vmem>>, vector<2x512xf32>
    %374 = arith.addf %372, %369 : vector<2x512xf32>
    %375 = arith.addf %373, %371 : vector<2x512xf32>
    %376 = tpu.concatenate %374, %375 in 0 : vector<2x512xf32>, vector<2x512xf32> -> vector<4x512xf32>
    %377 = vector.extract_strided_slice %376 {offsets = [0, 0], sizes = [4, 384], strides = [1, 1]} : vector<4x512xf32> to vector<4x384xf32>
    %378 = arith.negf %377 : vector<4x384xf32>
    %379 = math.exp %378 : vector<4x384xf32>
    %cst_151 = arith.constant 1.000000e+00 : f32
    %380 = vector.broadcast %cst_151 : f32 to vector<4x384xf32>
    %381 = arith.addf %380, %379 : vector<4x384xf32>
    %382 = arith.divf %380, %381 : vector<4x384xf32>
    %383 = vector.extract_strided_slice %376 {offsets = [0, 384], sizes = [4, 128], strides = [1, 1]} : vector<4x512xf32> to vector<4x128xf32>
    %384 = math.tanh %383 : vector<4x128xf32>
    %385 = vector.extract_strided_slice %382 {offsets = [0, 128], sizes = [4, 128], strides = [1, 1]} : vector<4x384xf32> to vector<4x128xf32>
    %386 = arith.mulf %385, %358 : vector<4x128xf32>
    %387 = vector.extract_strided_slice %382 {offsets = [0, 0], sizes = [4, 128], strides = [1, 1]} : vector<4x384xf32> to vector<4x128xf32>
    %388 = arith.mulf %387, %384 : vector<4x128xf32>
    %389 = arith.addf %386, %388 : vector<4x128xf32>
    %390 = vector.extract_strided_slice %382 {offsets = [0, 256], sizes = [4, 128], strides = [1, 1]} : vector<4x384xf32> to vector<4x128xf32>
    %391 = math.tanh %389 : vector<4x128xf32>
    %392 = arith.mulf %390, %391 : vector<4x128xf32>
    %393 = vector.extract_strided_slice %392 {offsets = [0, 0], sizes = [2, 128], strides = [1, 1]} : vector<4x128xf32> to vector<2x128xf32>
    %c6_152 = arith.constant 6 : index
    %c0_153 = arith.constant 0 : index
    %394 = vector.load %arg8[%c6_152, %c0_153] : memref<16x256xf32, #tpu.memory_space<vmem>>, vector<2x128xf32>
    tpu.vector_store %arg8[%c6_152, %c0_153], %393 {strides = array<i32>} : memref<16x256xf32, #tpu.memory_space<vmem>>, vector<2x128xf32>,
    %395 = vector.extract_strided_slice %392 {offsets = [2, 0], sizes = [2, 128], strides = [1, 1]} : vector<4x128xf32> to vector<2x128xf32>
    %c8_154 = arith.constant 8 : index
    %c128_155 = arith.constant 128 : index
    %396 = vector.load %arg8[%c8_154, %c128_155] : memref<16x256xf32, #tpu.memory_space<vmem>>, vector<2x128xf32>
    tpu.vector_store %arg8[%c8_154, %c128_155], %395 {strides = array<i32>} : memref<16x256xf32, #tpu.memory_space<vmem>>, vector<2x128xf32>,
    %397 = vector.extract_strided_slice %392 {offsets = [0, 0], sizes = [2, 128], strides = [1, 1]} : vector<4x128xf32> to vector<2x128xf32>
    %398 = vector.extract_strided_slice %392 {offsets = [2, 0], sizes = [2, 128], strides = [1, 1]} : vector<4x128xf32> to vector<2x128xf32>
    %399 = arith.truncf %397 : vector<2x128xf32> to vector<2x128xbf16>
    %cst_156 = arith.constant dense<0.000000e+00> : vector<2x512xf32>
    %400 = tpu.matmul %399, %269, %cst_156 {dimension_numbers = #tpu.dot_dimension_numbers<[1], [0], [0], [1], [0, 0, 1, 1], [], []>} : vector<2x128xbf16>, vector<128x512xbf16>, vector<2x512xf32> -> vector<2x512xf32>
    %401 = arith.truncf %398 : vector<2x128xf32> to vector<2x128xbf16>
    %cst_157 = arith.constant dense<0.000000e+00> : vector<2x512xf32>
    %402 = tpu.matmul %401, %271, %cst_157 {dimension_numbers = #tpu.dot_dimension_numbers<[1], [0], [0], [1], [0, 0, 1, 1], [], []>} : vector<2x128xbf16>, vector<128x512xbf16>, vector<2x512xf32> -> vector<2x512xf32>
    %c8_158 = arith.constant 8 : index
    %c0_159 = arith.constant 0 : index
    %403 = vector.load %arg9[%c8_158, %c0_159] : memref<16x1024xf32, #tpu.memory_space<vmem>>, vector<2x512xf32>
    %c6_160 = arith.constant 6 : index
    %c512_161 = arith.constant 512 : index
    %404 = vector.load %arg9[%c6_160, %c512_161] : memref<16x1024xf32, #tpu.memory_space<vmem>>, vector<2x512xf32>
    %405 = arith.addf %403, %400 : vector<2x512xf32>
    %406 = arith.addf %404, %402 : vector<2x512xf32>
    %407 = tpu.concatenate %405, %406 in 0 : vector<2x512xf32>, vector<2x512xf32> -> vector<4x512xf32>
    %408 = vector.extract_strided_slice %407 {offsets = [0, 0], sizes = [4, 384], strides = [1, 1]} : vector<4x512xf32> to vector<4x384xf32>
    %409 = arith.negf %408 : vector<4x384xf32>
    %410 = math.exp %409 : vector<4x384xf32>
    %cst_162 = arith.constant 1.000000e+00 : f32
    %411 = vector.broadcast %cst_162 : f32 to vector<4x384xf32>
    %412 = arith.addf %411, %410 : vector<4x384xf32>
    %413 = arith.divf %411, %412 : vector<4x384xf32>
    %414 = vector.extract_strided_slice %407 {offsets = [0, 384], sizes = [4, 128], strides = [1, 1]} : vector<4x512xf32> to vector<4x128xf32>
    %415 = math.tanh %414 : vector<4x128xf32>
    %416 = vector.extract_strided_slice %413 {offsets = [0, 128], sizes = [4, 128], strides = [1, 1]} : vector<4x384xf32> to vector<4x128xf32>
    %417 = arith.mulf %416, %389 : vector<4x128xf32>
    %418 = vector.extract_strided_slice %413 {offsets = [0, 0], sizes = [4, 128], strides = [1, 1]} : vector<4x384xf32> to vector<4x128xf32>
    %419 = arith.mulf %418, %415 : vector<4x128xf32>
    %420 = arith.addf %417, %419 : vector<4x128xf32>
    %421 = vector.extract_strided_slice %413 {offsets = [0, 256], sizes = [4, 128], strides = [1, 1]} : vector<4x384xf32> to vector<4x128xf32>
    %422 = math.tanh %420 : vector<4x128xf32>
    %423 = arith.mulf %421, %422 : vector<4x128xf32>
    %424 = vector.extract_strided_slice %423 {offsets = [0, 0], sizes = [2, 128], strides = [1, 1]} : vector<4x128xf32> to vector<2x128xf32>
    %c8_163 = arith.constant 8 : index
    %c0_164 = arith.constant 0 : index
    %425 = vector.load %arg8[%c8_163, %c0_164] : memref<16x256xf32, #tpu.memory_space<vmem>>, vector<2x128xf32>
    tpu.vector_store %arg8[%c8_163, %c0_164], %424 {strides = array<i32>} : memref<16x256xf32, #tpu.memory_space<vmem>>, vector<2x128xf32>,
    %426 = vector.extract_strided_slice %423 {offsets = [2, 0], sizes = [2, 128], strides = [1, 1]} : vector<4x128xf32> to vector<2x128xf32>
    %c6_165 = arith.constant 6 : index
    %c128_166 = arith.constant 128 : index
    %427 = vector.load %arg8[%c6_165, %c128_166] : memref<16x256xf32, #tpu.memory_space<vmem>>, vector<2x128xf32>
    tpu.vector_store %arg8[%c6_165, %c128_166], %426 {strides = array<i32>} : memref<16x256xf32, #tpu.memory_space<vmem>>, vector<2x128xf32>,
    %428 = vector.extract_strided_slice %423 {offsets = [0, 0], sizes = [2, 128], strides = [1, 1]} : vector<4x128xf32> to vector<2x128xf32>
    %429 = vector.extract_strided_slice %423 {offsets = [2, 0], sizes = [2, 128], strides = [1, 1]} : vector<4x128xf32> to vector<2x128xf32>
    %430 = arith.truncf %428 : vector<2x128xf32> to vector<2x128xbf16>
    %cst_167 = arith.constant dense<0.000000e+00> : vector<2x512xf32>
    %431 = tpu.matmul %430, %269, %cst_167 {dimension_numbers = #tpu.dot_dimension_numbers<[1], [0], [0], [1], [0, 0, 1, 1], [], []>} : vector<2x128xbf16>, vector<128x512xbf16>, vector<2x512xf32> -> vector<2x512xf32>
    %432 = arith.truncf %429 : vector<2x128xf32> to vector<2x128xbf16>
    %cst_168 = arith.constant dense<0.000000e+00> : vector<2x512xf32>
    %433 = tpu.matmul %432, %271, %cst_168 {dimension_numbers = #tpu.dot_dimension_numbers<[1], [0], [0], [1], [0, 0, 1, 1], [], []>} : vector<2x128xbf16>, vector<128x512xbf16>, vector<2x512xf32> -> vector<2x512xf32>
    %c10_169 = arith.constant 10 : index
    %c0_170 = arith.constant 0 : index
    %434 = vector.load %arg9[%c10_169, %c0_170] : memref<16x1024xf32, #tpu.memory_space<vmem>>, vector<2x512xf32>
    %c4_171 = arith.constant 4 : index
    %c512_172 = arith.constant 512 : index
    %435 = vector.load %arg9[%c4_171, %c512_172] : memref<16x1024xf32, #tpu.memory_space<vmem>>, vector<2x512xf32>
    %436 = arith.addf %434, %431 : vector<2x512xf32>
    %437 = arith.addf %435, %433 : vector<2x512xf32>
    %438 = tpu.concatenate %436, %437 in 0 : vector<2x512xf32>, vector<2x512xf32> -> vector<4x512xf32>
    %439 = vector.extract_strided_slice %438 {offsets = [0, 0], sizes = [4, 384], strides = [1, 1]} : vector<4x512xf32> to vector<4x384xf32>
    %440 = arith.negf %439 : vector<4x384xf32>
    %441 = math.exp %440 : vector<4x384xf32>
    %cst_173 = arith.constant 1.000000e+00 : f32
    %442 = vector.broadcast %cst_173 : f32 to vector<4x384xf32>
    %443 = arith.addf %442, %441 : vector<4x384xf32>
    %444 = arith.divf %442, %443 : vector<4x384xf32>
    %445 = vector.extract_strided_slice %438 {offsets = [0, 384], sizes = [4, 128], strides = [1, 1]} : vector<4x512xf32> to vector<4x128xf32>
    %446 = math.tanh %445 : vector<4x128xf32>
    %447 = vector.extract_strided_slice %444 {offsets = [0, 128], sizes = [4, 128], strides = [1, 1]} : vector<4x384xf32> to vector<4x128xf32>
    %448 = arith.mulf %447, %420 : vector<4x128xf32>
    %449 = vector.extract_strided_slice %444 {offsets = [0, 0], sizes = [4, 128], strides = [1, 1]} : vector<4x384xf32> to vector<4x128xf32>
    %450 = arith.mulf %449, %446 : vector<4x128xf32>
    %451 = arith.addf %448, %450 : vector<4x128xf32>
    %452 = vector.extract_strided_slice %444 {offsets = [0, 256], sizes = [4, 128], strides = [1, 1]} : vector<4x384xf32> to vector<4x128xf32>
    %453 = math.tanh %451 : vector<4x128xf32>
    %454 = arith.mulf %452, %453 : vector<4x128xf32>
    %455 = vector.extract_strided_slice %454 {offsets = [0, 0], sizes = [2, 128], strides = [1, 1]} : vector<4x128xf32> to vector<2x128xf32>
    %c10_174 = arith.constant 10 : index
    %c0_175 = arith.constant 0 : index
    %456 = vector.load %arg8[%c10_174, %c0_175] : memref<16x256xf32, #tpu.memory_space<vmem>>, vector<2x128xf32>
    tpu.vector_store %arg8[%c10_174, %c0_175], %455 {strides = array<i32>} : memref<16x256xf32, #tpu.memory_space<vmem>>, vector<2x128xf32>,
    %457 = vector.extract_strided_slice %454 {offsets = [2, 0], sizes = [2, 128], strides = [1, 1]} : vector<4x128xf32> to vector<2x128xf32>
    %c4_176 = arith.constant 4 : index
    %c128_177 = arith.constant 128 : index
    %458 = vector.load %arg8[%c4_176, %c128_177] : memref<16x256xf32, #tpu.memory_space<vmem>>, vector<2x128xf32>
    tpu.vector_store %arg8[%c4_176, %c128_177], %457 {strides = array<i32>} : memref<16x256xf32, #tpu.memory_space<vmem>>, vector<2x128xf32>,
    %459 = vector.extract_strided_slice %454 {offsets = [0, 0], sizes = [2, 128], strides = [1, 1]} : vector<4x128xf32> to vector<2x128xf32>
    %460 = vector.extract_strided_slice %454 {offsets = [2, 0], sizes = [2, 128], strides = [1, 1]} : vector<4x128xf32> to vector<2x128xf32>
    %461 = arith.truncf %459 : vector<2x128xf32> to vector<2x128xbf16>
    %cst_178 = arith.constant dense<0.000000e+00> : vector<2x512xf32>
    %462 = tpu.matmul %461, %269, %cst_178 {dimension_numbers = #tpu.dot_dimension_numbers<[1], [0], [0], [1], [0, 0, 1, 1], [], []>} : vector<2x128xbf16>, vector<128x512xbf16>, vector<2x512xf32> -> vector<2x512xf32>
    %463 = arith.truncf %460 : vector<2x128xf32> to vector<2x128xbf16>
    %cst_179 = arith.constant dense<0.000000e+00> : vector<2x512xf32>
    %464 = tpu.matmul %463, %271, %cst_179 {dimension_numbers = #tpu.dot_dimension_numbers<[1], [0], [0], [1], [0, 0, 1, 1], [], []>} : vector<2x128xbf16>, vector<128x512xbf16>, vector<2x512xf32> -> vector<2x512xf32>
    %c12_180 = arith.constant 12 : index
    %c0_181 = arith.constant 0 : index
    %465 = vector.load %arg9[%c12_180, %c0_181] : memref<16x1024xf32, #tpu.memory_space<vmem>>, vector<2x512xf32>
    %c2_182 = arith.constant 2 : index
    %c512_183 = arith.constant 512 : index
    %466 = vector.load %arg9[%c2_182, %c512_183] : memref<16x1024xf32, #tpu.memory_space<vmem>>, vector<2x512xf32>
    %467 = arith.addf %465, %462 : vector<2x512xf32>
    %468 = arith.addf %466, %464 : vector<2x512xf32>
    %469 = tpu.concatenate %467, %468 in 0 : vector<2x512xf32>, vector<2x512xf32> -> vector<4x512xf32>
    %470 = vector.extract_strided_slice %469 {offsets = [0, 0], sizes = [4, 384], strides = [1, 1]} : vector<4x512xf32> to vector<4x384xf32>
    %471 = arith.negf %470 : vector<4x384xf32>
    %472 = math.exp %471 : vector<4x384xf32>
    %cst_184 = arith.constant 1.000000e+00 : f32
    %473 = vector.broadcast %cst_184 : f32 to vector<4x384xf32>
    %474 = arith.addf %473, %472 : vector<4x384xf32>
    %475 = arith.divf %473, %474 : vector<4x384xf32>
    %476 = vector.extract_strided_slice %469 {offsets = [0, 384], sizes = [4, 128], strides = [1, 1]} : vector<4x512xf32> to vector<4x128xf32>
    %477 = math.tanh %476 : vector<4x128xf32>
    %478 = vector.extract_strided_slice %475 {offsets = [0, 128], sizes = [4, 128], strides = [1, 1]} : vector<4x384xf32> to vector<4x128xf32>
    %479 = arith.mulf %478, %451 : vector<4x128xf32>
    %480 = vector.extract_strided_slice %475 {offsets = [0, 0], sizes = [4, 128], strides = [1, 1]} : vector<4x384xf32> to vector<4x128xf32>
    %481 = arith.mulf %480, %477 : vector<4x128xf32>
    %482 = arith.addf %479, %481 : vector<4x128xf32>
    %483 = vector.extract_strided_slice %475 {offsets = [0, 256], sizes = [4, 128], strides = [1, 1]} : vector<4x384xf32> to vector<4x128xf32>
    %484 = math.tanh %482 : vector<4x128xf32>
    %485 = arith.mulf %483, %484 : vector<4x128xf32>
    %486 = vector.extract_strided_slice %485 {offsets = [0, 0], sizes = [2, 128], strides = [1, 1]} : vector<4x128xf32> to vector<2x128xf32>
    %c12_185 = arith.constant 12 : index
    %c0_186 = arith.constant 0 : index
    %487 = vector.load %arg8[%c12_185, %c0_186] : memref<16x256xf32, #tpu.memory_space<vmem>>, vector<2x128xf32>
    tpu.vector_store %arg8[%c12_185, %c0_186], %486 {strides = array<i32>} : memref<16x256xf32, #tpu.memory_space<vmem>>, vector<2x128xf32>,
    %488 = vector.extract_strided_slice %485 {offsets = [2, 0], sizes = [2, 128], strides = [1, 1]} : vector<4x128xf32> to vector<2x128xf32>
    %c2_187 = arith.constant 2 : index
    %c128_188 = arith.constant 128 : index
    %489 = vector.load %arg8[%c2_187, %c128_188] : memref<16x256xf32, #tpu.memory_space<vmem>>, vector<2x128xf32>
    tpu.vector_store %arg8[%c2_187, %c128_188], %488 {strides = array<i32>} : memref<16x256xf32, #tpu.memory_space<vmem>>, vector<2x128xf32>,
    %490 = vector.extract_strided_slice %485 {offsets = [0, 0], sizes = [2, 128], strides = [1, 1]} : vector<4x128xf32> to vector<2x128xf32>
    %491 = vector.extract_strided_slice %485 {offsets = [2, 0], sizes = [2, 128], strides = [1, 1]} : vector<4x128xf32> to vector<2x128xf32>
    %492 = arith.truncf %490 : vector<2x128xf32> to vector<2x128xbf16>
    %cst_189 = arith.constant dense<0.000000e+00> : vector<2x512xf32>
    %493 = tpu.matmul %492, %269, %cst_189 {dimension_numbers = #tpu.dot_dimension_numbers<[1], [0], [0], [1], [0, 0, 1, 1], [], []>} : vector<2x128xbf16>, vector<128x512xbf16>, vector<2x512xf32> -> vector<2x512xf32>
    %494 = arith.truncf %491 : vector<2x128xf32> to vector<2x128xbf16>
    %cst_190 = arith.constant dense<0.000000e+00> : vector<2x512xf32>
    %495 = tpu.matmul %494, %271, %cst_190 {dimension_numbers = #tpu.dot_dimension_numbers<[1], [0], [0], [1], [0, 0, 1, 1], [], []>} : vector<2x128xbf16>, vector<128x512xbf16>, vector<2x512xf32> -> vector<2x512xf32>
    %c14_191 = arith.constant 14 : index
    %c0_192 = arith.constant 0 : index
    %496 = vector.load %arg9[%c14_191, %c0_192] : memref<16x1024xf32, #tpu.memory_space<vmem>>, vector<2x512xf32>
    %c0_193 = arith.constant 0 : index
    %c512_194 = arith.constant 512 : index
    %497 = vector.load %arg9[%c0_193, %c512_194] : memref<16x1024xf32, #tpu.memory_space<vmem>>, vector<2x512xf32>
    %498 = arith.addf %496, %493 : vector<2x512xf32>
    %499 = arith.addf %497, %495 : vector<2x512xf32>
    %500 = tpu.concatenate %498, %499 in 0 : vector<2x512xf32>, vector<2x512xf32> -> vector<4x512xf32>
    %501 = vector.extract_strided_slice %500 {offsets = [0, 0], sizes = [4, 384], strides = [1, 1]} : vector<4x512xf32> to vector<4x384xf32>
    %502 = arith.negf %501 : vector<4x384xf32>
    %503 = math.exp %502 : vector<4x384xf32>
    %cst_195 = arith.constant 1.000000e+00 : f32
    %504 = vector.broadcast %cst_195 : f32 to vector<4x384xf32>
    %505 = arith.addf %504, %503 : vector<4x384xf32>
    %506 = arith.divf %504, %505 : vector<4x384xf32>
    %507 = vector.extract_strided_slice %500 {offsets = [0, 384], sizes = [4, 128], strides = [1, 1]} : vector<4x512xf32> to vector<4x128xf32>
    %508 = math.tanh %507 : vector<4x128xf32>
    %509 = vector.extract_strided_slice %506 {offsets = [0, 128], sizes = [4, 128], strides = [1, 1]} : vector<4x384xf32> to vector<4x128xf32>
    %510 = arith.mulf %509, %482 : vector<4x128xf32>
    %511 = vector.extract_strided_slice %506 {offsets = [0, 0], sizes = [4, 128], strides = [1, 1]} : vector<4x384xf32> to vector<4x128xf32>
    %512 = arith.mulf %511, %508 : vector<4x128xf32>
    %513 = arith.addf %510, %512 : vector<4x128xf32>
    %514 = vector.extract_strided_slice %506 {offsets = [0, 256], sizes = [4, 128], strides = [1, 1]} : vector<4x384xf32> to vector<4x128xf32>
    %515 = math.tanh %513 : vector<4x128xf32>
    %516 = arith.mulf %514, %515 : vector<4x128xf32>
    %517 = vector.extract_strided_slice %516 {offsets = [0, 0], sizes = [2, 128], strides = [1, 1]} : vector<4x128xf32> to vector<2x128xf32>
    %c14_196 = arith.constant 14 : index
    %c0_197 = arith.constant 0 : index
    %518 = vector.load %arg8[%c14_196, %c0_197] : memref<16x256xf32, #tpu.memory_space<vmem>>, vector<2x128xf32>
    tpu.vector_store %arg8[%c14_196, %c0_197], %517 {strides = array<i32>} : memref<16x256xf32, #tpu.memory_space<vmem>>, vector<2x128xf32>,
    %519 = vector.extract_strided_slice %516 {offsets = [2, 0], sizes = [2, 128], strides = [1, 1]} : vector<4x128xf32> to vector<2x128xf32>
    %c0_198 = arith.constant 0 : index
    %c128_199 = arith.constant 128 : index
    %520 = vector.load %arg8[%c0_198, %c128_199] : memref<16x256xf32, #tpu.memory_space<vmem>>, vector<2x128xf32>
    tpu.vector_store %arg8[%c0_198, %c128_199], %519 {strides = array<i32>} : memref<16x256xf32, #tpu.memory_space<vmem>>, vector<2x128xf32>,
    return
  }
  func.func @transform_0(%arg0: i32) -> (i32, i32) {
    %c0_i32 = arith.constant 0 : i32
    %c0_i32_0 = arith.constant 0 : i32
    %c0_i32_1 = arith.constant 0 : i32
    return %c0_i32, %c0_i32_0 : i32, i32
  }
  func.func @transform_1(%arg0: i32) -> (i32, i32) {
    %c0_i32 = arith.constant 0 : i32
    %c0_i32_0 = arith.constant 0 : i32
    %c0_i32_1 = arith.constant 0 : i32
    return %c0_i32, %c0_i32_0 : i32, i32
  }
  func.func @transform_2(%arg0: i32) -> (i32, i32, i32) {
    %c0_i32 = arith.constant 0 : i32
    %c0_i32_0 = arith.constant 0 : i32
    %c0_i32_1 = arith.constant 0 : i32
    %c0_i32_2 = arith.constant 0 : i32
    return %c0_i32, %c0_i32_0, %c0_i32_1 : i32, i32, i32
  }
  func.func @transform_3(%arg0: i32) -> (i32, i32) {
    %c0_i32 = arith.constant 0 : i32
    %c0_i32_0 = arith.constant 0 : i32
    %c0_i32_1 = arith.constant 0 : i32
    return %c0_i32, %c0_i32_0 : i32, i32
  }
  func.func @transform_4(%arg0: i32) -> (i32, i32) {
    %c0_i32 = arith.constant 0 : i32
    %c0_i32_0 = arith.constant 0 : i32
    %c0_i32_1 = arith.constant 0 : i32
    return %c0_i32, %c0_i32_0 : i32, i32
  }
  func.func @transform_5(%arg0: i32) -> (i32, i32, i32) {
    %c0_i32 = arith.constant 0 : i32
    %c0_i32_0 = arith.constant 0 : i32
    %c0_i32_1 = arith.constant 0 : i32
    %c0_i32_2 = arith.constant 0 : i32
    return %c0_i32, %c0_i32_0, %c0_i32_1 : i32, i32, i32
  }
  func.func @transform_6(%arg0: i32) -> (i32, i32) {
    %c0_i32 = arith.constant 0 : i32
    %c0_i32_0 = arith.constant 0 : i32
    %c0_i32_1 = arith.constant 0 : i32
    return %c0_i32, %c0_i32_0 : i32, i32
  }
  func.func @transform_7(%arg0: i32) -> (i32, i32) {
    %c0_i32 = arith.constant 0 : i32
    %c0_i32_0 = arith.constant 0 : i32
    %c0_i32_1 = arith.constant 0 : i32
    return %c0_i32, %c0_i32_0 : i32, i32
  }
}

</mosaic_0001>

<bundles_post_ra>
// kernel: dark_gen_recons_lstm_forward.1
= control target key start
LH: loop header
LB: loop body
LE: loop exit
PB: predicated region body
PF: predicated region fallthrough
CT: control target
= control target key end

     0   :  { %v10931_v3 = vmov 0   ;;  %vm1238_vm0 = vcmask 1041408   ;;  %s10923_s1 = inlined_call_operand.vmem [shape: bf16[128,1024], index: 1, kind: input, shape index: {}]   ;;  %s10924_s0 = inlined_call_operand.vmem [shape: bf16[16,128], index: 0, kind: input, shape index: {}]   ;;  %s10925_s2 = inlined_call_operand.vmem [shape: bf16[2,128,512], index: 2, kind: input, shape index: {}]   ;;  %s10926_s3 = inlined_call_operand.vmem [shape: f32[1,1024], index: 3, kind: input, shape index: {}]   ;;  %s10927_s4 = inlined_call_operand.vmem [shape: bf16[256,1024], index: 4, kind: input, shape index: {}]   ;;  %s10928_s5 = inlined_call_operand.vmem [shape: bf16[2,128,512], index: 5, kind: input, shape index: {}]   ;;  %s10929_s6 = inlined_call_operand.vmem [shape: f32[1,1024], index: 6, kind: input, shape index: {}]   ;;  %s10930_s7 = inlined_call_operand.vmem [shape: f32[16,256], index: 7, kind: output, shape index: {}]  }
   0x1   :  { %v29_v0 = vld [vmem:[%s10923_s1] sm:$0xff]  ;;  %v30_v2 = vld [vmem:[%s10923_s1 + $0x8] sm:$0xff]  ;;  %493 = vmatprep.mubr.bf16.mxu0 %v10931_v3  ;;  %536 = vmatprep.mubr.bf16.mxu1 %v10931_v3  ;;  %v31_v62 = vld [vmem:[%s10923_s1 + $0x10] sm:$0xff] }
   0x2   :  { %v33_v1 = vld [vmem:[%s10923_s1 + $0x20] sm:$0xff]  ;;  %v34_v5 = vld [vmem:[%s10923_s1 + $0x28] sm:$0xff] }
   0x3   :  { %v6470_v4 = vcombine.high %v29_v0, %v33_v1  ;;  %v6469_v6 = vcombine.low %v29_v0, %v33_v1  ;;  %v37_v7 = vld [vmem:[%s10923_s1 + $0x40] sm:$0xff]  ;;  %v6472_v9 = vcombine.high %v30_v2, %v34_v5  ;;  %v6471_v10 = vcombine.low %v30_v2, %v34_v5  ;;  %v38_v12 = vld [vmem:[%s10923_s1 + $0x48] sm:$0xff]  ;;  %v35_v0 = vld [vmem:[%s10923_s1 + $0x30] sm:$0xff] }
   0x4   :  { %v41_v8 = vld [vmem:[%s10923_s1 + $0x60] sm:$0xff]  ;;  %v42_v13 = vld [vmem:[%s10923_s1 + $0x68] sm:$0xff]  ;;  %v32_v1 = vld [vmem:[%s10923_s1 + $0x18] sm:$0xff] }
   0x5   :  { %v6478_v11 = vcombine.high %v37_v7, %v41_v8  ;;  %v45_v14 = vld [vmem:[%s10923_s1 + $0x80] sm:$0xff]  ;;  %461 = vmatprep.subr.bf16.mxu0 %v6470_v4  ;;  %v6480_v15 = vcombine.high %v38_v12, %v42_v13  ;;  %v46_v17 = vld [vmem:[%s10923_s1 + $0x88] sm:$0xff]  ;;  %504 = vmatprep.subr.bf16.mxu1 %v6472_v9  ;;  %v6477_v19 = vcombine.low %v37_v7, %v41_v8  ;;  %v36_v2 = vld [vmem:[%s10923_s1 + $0x38] sm:$0xff] }
   0x6   :  { %v49_v16 = vld [vmem:[%s10923_s1 + $0xa0] sm:$0xff]  ;;  %v50_v18 = vld [vmem:[%s10923_s1 + $0xa8] sm:$0xff]  ;;  %462 = vmatpush1.bf16.msra.mxu0 %v6469_v6  ;;  %505 = vmatpush1.bf16.msra.mxu1 %v6471_v10  ;;  %v6479_v20 = vcombine.low %v38_v12, %v42_v13  ;;  %v6474_v7 = vcombine.high %v31_v62, %v35_v0  ;;  %v39_v8 = vld [vmem:[%s10923_s1 + $0x50] sm:$0xff]  ;;  %v6476_v10 = vcombine.high %v32_v1, %v36_v2 }
   0x7   :  { %463 = vmatprep.subr.bf16.mxu0 %v6478_v11  ;;  %v6486_v21 = vcombine.high %v45_v14, %v49_v16  ;;  %506 = vmatprep.subr.bf16.mxu1 %v6480_v15  ;;  %v6488_v22 = vcombine.high %v46_v17, %v50_v18  ;;  %v53_v23 = vld [vmem:[%s10923_s1 + $0xc0] sm:$0xff]  ;;  %v54_v25 = vld [vmem:[%s10923_s1 + $0xc8] sm:$0xff]  ;;  %v6485_v27 = vcombine.low %v45_v14, %v49_v16  ;;  %v43_v9 = vld [vmem:[%s10923_s1 + $0x70] sm:$0xff] }
   0x8   :  { %v57_v24 = vld [vmem:[%s10923_s1 + $0xe0] sm:$0xff]  ;;  %v58_v26 = vld [vmem:[%s10923_s1 + $0xe8] sm:$0xff]  ;;  %v6487_v28 = vcombine.low %v46_v17, %v50_v18  ;;  %v40_v11 = vld [vmem:[%s10923_s1 + $0x58] sm:$0xff]  ;;  %v6473_v13 = vcombine.low %v31_v62, %v35_v0  ;;  %v6475_v14 = vcombine.low %v32_v1, %v36_v2  ;;  %v6482_v15 = vcombine.high %v39_v8, %v43_v9 }
   0x9   :  { %v6494_v29 = vcombine.high %v53_v23, %v57_v24  ;;  %v6496_v30 = vcombine.high %v54_v25, %v58_v26  ;;  %v61_v31 = vld [vmem:[%s10923_s1 + $0x100] sm:$0xff]  ;;  %v62_v33 = vld [vmem:[%s10923_s1 + $0x108] sm:$0xff]  ;;  %v6493_v35 = vcombine.low %v53_v23, %v57_v24  ;;  %v6495_v36 = vcombine.low %v54_v25, %v58_v26  ;;  %v44_v12 = vld [vmem:[%s10923_s1 + $0x78] sm:$0xff] }
   0xa   :  { %464 = vmatpush1.bf16.msra.mxu0 %v6477_v19  ;;  %507 = vmatpush1.bf16.msra.mxu1 %v6479_v20  ;;  %v65_v32 = vld [vmem:[%s10923_s1 + $0x120] sm:$0xff]  ;;  %v66_v34 = vld [vmem:[%s10923_s1 + $0x128] sm:$0xff]  ;;  %v47_v16 = vld [vmem:[%s10923_s1 + $0x90] sm:$0xff]  ;;  %v6484_v17 = vcombine.high %v40_v11, %v44_v12 }
   0xb   :  { %465 = vmatprep.subr.bf16.mxu0 %v6486_v21  ;;  %508 = vmatprep.subr.bf16.mxu1 %v6488_v22  ;;  %v6502_v37 = vcombine.high %v61_v31, %v65_v32  ;;  %v6504_v38 = vcombine.high %v62_v33, %v66_v34  ;;  %v69_v39 = vld [vmem:[%s10923_s1 + $0x140] sm:$0xff]  ;;  %v70_v41 = vld [vmem:[%s10923_s1 + $0x148] sm:$0xff]  ;;  %v6501_v43 = vcombine.low %v61_v31, %v65_v32  ;;  %v51_v18 = vld [vmem:[%s10923_s1 + $0xb0] sm:$0xff] }
   0xc   :  { %v73_v40 = vld [vmem:[%s10923_s1 + $0x160] sm:$0xff]  ;;  %v74_v42 = vld [vmem:[%s10923_s1 + $0x168] sm:$0xff]  ;;  %v6503_v44 = vcombine.low %v62_v33, %v66_v34  ;;  %v48_v19 = vld [vmem:[%s10923_s1 + $0x98] sm:$0xff]  ;;  %v6481_v21 = vcombine.low %v39_v8, %v43_v9  ;;  %v6483_v22 = vcombine.low %v40_v11, %v44_v12  ;;  %v6490_v23 = vcombine.high %v47_v16, %v51_v18 }
   0xd   :  { %v6510_v45 = vcombine.high %v69_v39, %v73_v40  ;;  %v6512_v46 = vcombine.high %v70_v41, %v74_v42  ;;  %v77_v47 = vld [vmem:[%s10923_s1 + $0x180] sm:$0xff]  ;;  %v78_v49 = vld [vmem:[%s10923_s1 + $0x188] sm:$0xff]  ;;  %v6509_v51 = vcombine.low %v69_v39, %v73_v40  ;;  %v6511_v52 = vcombine.low %v70_v41, %v74_v42  ;;  %v52_v20 = vld [vmem:[%s10923_s1 + $0xb8] sm:$0xff] }
   0xe   :  { %466 = vmatpush1.bf16.msra.mxu0 %v6485_v27  ;;  %509 = vmatpush1.bf16.msra.mxu1 %v6487_v28  ;;  %v81_v48 = vld [vmem:[%s10923_s1 + $0x1a0] sm:$0xff]  ;;  %v82_v50 = vld [vmem:[%s10923_s1 + $0x1a8] sm:$0xff]  ;;  %v55_v24 = vld [vmem:[%s10923_s1 + $0xd0] sm:$0xff]  ;;  %v6492_v26 = vcombine.high %v48_v19, %v52_v20 }
   0xf   :  { %467 = vmatprep.subr.bf16.mxu0 %v6494_v29  ;;  %510 = vmatprep.subr.bf16.mxu1 %v6496_v30  ;;  %v6518_v53 = vcombine.high %v77_v47, %v81_v48  ;;  %v85_v54 = vld [vmem:[%s10923_s1 + $0x1c0] sm:$0xff]  ;;  %v6520_v56 = vcombine.high %v78_v49, %v82_v50  ;;  %v86_v57 = vld [vmem:[%s10923_s1 + $0x1c8] sm:$0xff]  ;;  %v6517_v59 = vcombine.low %v77_v47, %v81_v48  ;;  %v59_v25 = vld [vmem:[%s10923_s1 + $0xf0] sm:$0xff] }
  0x10   :  { %v89_v55 = vld [vmem:[%s10923_s1 + $0x1e0] sm:$0xff]  ;;  %v90_v58 = vld [vmem:[%s10923_s1 + $0x1e8] sm:$0xff]  ;;  %v6519_v60 = vcombine.low %v78_v49, %v82_v50  ;;  %v56_v27 = vld [vmem:[%s10923_s1 + $0xd8] sm:$0xff]  ;;  %v6489_v29 = vcombine.low %v47_v16, %v51_v18  ;;  %v6491_v30 = vcombine.low %v48_v19, %v52_v20  ;;  %v6498_v31 = vcombine.high %v55_v24, %v59_v25 }
  0x11   :  { %v6526_v61 = vcombine.high %v85_v54, %v89_v55  ;;  %v6528_v63 = vcombine.high %v86_v57, %v90_v58  ;;  %v6525_v4 = vcombine.low %v85_v54, %v89_v55  ;;  %v6527_v5 = vcombine.low %v86_v57, %v90_v58  ;;  %v7695_v6 = vld [vmem:[%s10924_s0] sm:$0xff]   ;;  %v60_v28 = vld [vmem:[%s10923_s1 + $0xf8] sm:$0xff]  ;;  %v63_v32 = vld [vmem:[%s10923_s1 + $0x110] sm:$0xff] }
  0x12   :  { %468 = vmatpush1.bf16.msra.mxu0 %v6493_v35  ;;  %511 = vmatpush1.bf16.msra.mxu1 %v6495_v36  ;;  %v6500_v33 = vcombine.high %v56_v27, %v60_v28  ;;  %v67_v34 = vld [vmem:[%s10923_s1 + $0x130] sm:$0xff]  ;;  %v64_v35 = vld [vmem:[%s10923_s1 + $0x118] sm:$0xff] }
  0x13   :  { %469 = vmatprep.subr.bf16.mxu0 %v6502_v37  ;;  %512 = vmatprep.subr.bf16.mxu1 %v6504_v38  ;;  %v68_v36 = vld [vmem:[%s10923_s1 + $0x138] sm:$0xff]  ;;  %v6497_v37 = vcombine.low %v55_v24, %v59_v25  ;;  %v6499_v38 = vcombine.low %v56_v27, %v60_v28  ;;  %v6506_v39 = vcombine.high %v63_v32, %v67_v34  ;;  %v71_v40 = vld [vmem:[%s10923_s1 + $0x150] sm:$0xff] }
  0x14   :  { %v75_v41 = vld [vmem:[%s10923_s1 + $0x170] sm:$0xff]  ;;  %v6508_v42 = vcombine.high %v64_v35, %v68_v36  ;;  %v7804_v8 = vld [vmem:[%s10925_s2 + $0x8] ss:$16 sps:$4 sm:$0xff]   ;;  %v7915_v25 = vld [vmem:[%s10925_s2 + $0xac] ss:$16 sps:$4 sm:$0xff]  }
  0x15   :  { %v6514_v47 = vcombine.high %v71_v40, %v75_v41  ;;  %v79_v48 = vld [vmem:[%s10923_s1 + $0x190] sm:$0xff]  ;;  %11199 = vst [vmem:[#allocation4_spill] sm:$0xff] %v7804_v8  ;;  %v7830_v12 = vld [vmem:[%s10925_s2 + $0x28] ss:$16 sps:$4 sm:$0xff]   ;;  %11217 = vst [vmem:[#allocation22_spill] sm:$0xff] %v7915_v25 }
  0x16   :  { %470 = vmatpush1.bf16.msra.mxu0 %v6501_v43  ;;  %513 = vmatpush1.bf16.msra.mxu1 %v6503_v44  ;;  %v72_v43 = vld [vmem:[%s10923_s1 + $0x158] sm:$0xff]  ;;  %v83_v50 = vld [vmem:[%s10923_s1 + $0x1b0] sm:$0xff]  ;;  %11203 = vst [vmem:[#allocation8_spill] sm:$0xff] %v7830_v12 }
  0x17   :  { %471 = vmatprep.subr.bf16.mxu0 %v6510_v45  ;;  %514 = vmatprep.subr.bf16.mxu1 %v6512_v46  ;;  %v76_v44 = vld [vmem:[%s10923_s1 + $0x178] sm:$0xff]  ;;  %v6505_v45 = vcombine.low %v63_v32, %v67_v34  ;;  %v6507_v46 = vcombine.low %v64_v35, %v68_v36  ;;  %v6522_v55 = vcombine.high %v79_v48, %v83_v50  ;;  %v91_v57 = vld [vmem:[%s10923_s1 + $0x1f0] sm:$0xff] }
  0x18   :  { %v6516_v49 = vcombine.high %v72_v43, %v76_v44  ;;  %v6515_v54 = vcombine.low %v72_v43, %v76_v44  ;;  %v7809_v9 = vld [vmem:[%s10925_s2 + $0x24] ss:$16 sps:$4 sm:$0xff]   ;;  %v7823_v11 = vld [vmem:[%s10925_s2 + $0x20] ss:$16 sps:$4 sm:$0xff]   ;;  %v7880_v19 = vld [vmem:[%s10925_s2 + $0x68] ss:$16 sps:$4 sm:$0xff]  }
  0x19   :  { %11200 = vst [vmem:[#allocation5_spill] sm:$0xff] %v7809_v9  ;;  %11202 = vst [vmem:[#allocation7_spill] sm:$0xff] %v7823_v11  ;;  %v7861_v16 = vld [vmem:[%s10925_s2 + $0x64] ss:$16 sps:$4 sm:$0xff]   ;;  %v7873_v18 = vld [vmem:[%s10925_s2 + $0x60] ss:$16 sps:$4 sm:$0xff]  }
  0x1a   :  { %472 = vmatpush1.bf16.msra.mxu0 %v6509_v51  ;;  %515 = vmatpush1.bf16.msra.mxu1 %v6511_v52  ;;  %v80_v51 = vld [vmem:[%s10923_s1 + $0x198] sm:$0xff]  ;;  %11208 = vst [vmem:[#allocation13_spill] sm:$0xff] %v7861_v16  ;;  %11210 = vst [vmem:[#allocation15_spill] sm:$0xff] %v7873_v18  ;;  %v7885_v20 = vld [vmem:[%s10925_s2 + $0x84] ss:$16 sps:$4 sm:$0xff]  }
  0x1b   :  { %473 = vmatprep.subr.bf16.mxu0 %v6518_v53  ;;  %516 = vmatprep.subr.bf16.mxu1 %v6520_v56  ;;  %v84_v52 = vld [vmem:[%s10923_s1 + $0x1b8] sm:$0xff]  ;;  %v6513_v53 = vcombine.low %v71_v40, %v75_v41  ;;  %v87_v56 = vld [vmem:[%s10923_s1 + $0x1d0] sm:$0xff]  ;;  %11211 = vst [vmem:[#allocation16_spill] sm:$0xff] %v7880_v19  ;;  %11212 = vst [vmem:[#allocation17_spill] sm:$0xff] %v7885_v20 }
  0x1c   :  { %v6524_v58 = vcombine.high %v80_v51, %v84_v52  ;;  %v6523_v62 = vcombine.low %v80_v51, %v84_v52  ;;  %v6529_v1 = vcombine.low %v87_v56, %v91_v57  ;;  %v7909_v24 = vld [vmem:[%s10925_s2 + $0xa4] ss:$16 sps:$4 sm:$0xff]   ;;  %v7928_v27 = vld [vmem:[%s10925_s2 + $0xa8] ss:$16 sps:$4 sm:$0xff]   ;;  %v7969_v34 = vld [vmem:[%s10925_s2 + $0xe0] ss:$16 sps:$4 sm:$0xff]  }
  0x1d   :  { %11216 = vst [vmem:[#allocation21_spill] sm:$0xff] %v7909_v24  ;;  %11219 = vst [vmem:[#allocation24_spill] sm:$0xff] %v7928_v27  ;;  %v7933_v28 = vld [vmem:[%s10925_s2 + $0xc4] ss:$16 sps:$4 sm:$0xff]   ;;  %v7976_v35 = vld [vmem:[%s10925_s2 + $0xe8] ss:$16 sps:$4 sm:$0xff]  }
  0x1e   :  { %474 = vmatpush1.bf16.msra.mxu0 %v6517_v59  ;;  %517 = vmatpush1.bf16.msra.mxu1 %v6519_v60  ;;  %v88_v59 = vld [vmem:[%s10923_s1 + $0x1d8] sm:$0xff]  ;;  %11220 = vst [vmem:[#allocation25_spill] sm:$0xff] %v7933_v28  ;;  %v7957_v32 = vld [vmem:[%s10925_s2 + $0xe4] ss:$16 sps:$4 sm:$0xff]   ;;  %11226 = vst [vmem:[#allocation31_spill] sm:$0xff] %v7969_v34 }
  0x1f   :  { %475 = vmatprep.subr.bf16.mxu0 %v6526_v61  ;;  %518 = vmatprep.subr.bf16.mxu1 %v6528_v63  ;;  %v92_v60 = vld [vmem:[%s10923_s1 + $0x1f8] sm:$0xff]  ;;  %v6521_v61 = vcombine.low %v79_v48, %v83_v50  ;;  %v6530_v63 = vcombine.high %v87_v56, %v91_v57  ;;  %11224 = vst [vmem:[#allocation29_spill] sm:$0xff] %v7957_v32  ;;  %11227 = vst [vmem:[#allocation32_spill] sm:$0xff] %v7976_v35  ;;  %v7981_v36 = vld [vmem:[%s10925_s2 + $0x104] ss:$16 sps:$4 sm:$0xff]  }
  0x20   :  { %v6532_v0 = vcombine.high %v88_v59, %v92_v60  ;;  %v6531_v2 = vcombine.low %v88_v59, %v92_v60  ;;  %11228 = vst [vmem:[#allocation33_spill] sm:$0xff] %v7981_v36  ;;  %v8005_v40 = vld [vmem:[%s10925_s2 + $0x124] ss:$16 sps:$4 sm:$0xff]   ;;  %v8011_v41 = vld [vmem:[%s10925_s2 + $0x12c] ss:$16 sps:$4 sm:$0xff]  }
  0x21   :  { %v8026_v43 = vld [vmem:[%s10925_s2 + $0x128] ss:$16 sps:$4 sm:$0xff]   ;;  %v8031_v44 = vld [vmem:[%s10925_s2 + $0x144] ss:$16 sps:$4 sm:$0xff]   ;;  %v8069_v50 = vld [vmem:[%s10925_s2 + $0x160] ss:$16 sps:$4 sm:$0xff]  }
  0x22   :  { %476 = vmatpush1.bf16.msra.mxu0 %v6525_v4  ;;  %519 = vmatpush1.bf16.msra.mxu1 %v6527_v5  ;;  %v7788_v4 = vld [vmem:[%s10925_s2 + $0x4] ss:$16 sps:$4 sm:$0xff]   ;;  %v7793_v5 = vld [vmem:[%s10925_s2 + $0xc] ss:$16 sps:$4 sm:$0xff]   ;;  %v8076_v51 = vld [vmem:[%s10925_s2 + $0x168] ss:$16 sps:$4 sm:$0xff]  }
  0x23   :  { %547 = vmatprep.subr.bf16.mxu0 %v6474_v7  ;;  %590 = vmatprep.subr.bf16.mxu1 %v6476_v10  ;;  %v7798_v7 = vld [vmem:[%s10925_s2] ss:$16 sps:$4 sm:$0xff]   ;;  %v7815_v10 = vld [vmem:[%s10925_s2 + $0x2c] ss:$16 sps:$4 sm:$0xff]   ;;  %v8057_v48 = vld [vmem:[%s10925_s2 + $0x164] ss:$16 sps:$4 sm:$0xff]  }
  0x24   :  { %11201 = vst [vmem:[#allocation6_spill] sm:$0xff] %v7815_v10  ;;  %v8081_v52 = vld [vmem:[%s10925_s2 + $0x184] ss:$16 sps:$4 sm:$0xff]   ;;  %v8111_v57 = vld [vmem:[%s10925_s2 + $0x1ac] ss:$16 sps:$4 sm:$0xff]  }
  0x25   :  { %494 = vmatmul.mubr.bf16.vlgmr.msra.gmra.mrb[0].mxu0 %v7695_v6  ;;  %537 = vmatmul.mubr.bf16.vlgmr.msra.gmra.mrb[0].mxu1 %v7695_v6  ;;  %v8105_v56 = vld [vmem:[%s10925_s2 + $0x1a4] ss:$16 sps:$4 sm:$0xff]   ;;  %v8124_v59 = vld [vmem:[%s10925_s2 + $0x1a8] ss:$16 sps:$4 sm:$0xff]  }
  0x26   :  { %548 = vmatpush1.bf16.msra.mxu0 %v6473_v13  ;;  %591 = vmatpush1.bf16.msra.mxu1 %v6475_v14  ;;  %v7841_v13 = vld [vmem:[%s10925_s2 + $0x4c] ss:$16 sps:$4 sm:$0xff]   ;;  %v7849_v14 = vld [vmem:[%s10925_s2 + $0x40] ss:$16 sps:$4 sm:$0xff]   ;;  %v8129_v60 = vld [vmem:[%s10925_s2 + $0x1c4] ss:$16 sps:$4 sm:$0xff]  }
  0x27   :  { %549 = vmatprep.subr.bf16.mxu0 %v6482_v15  ;;  %592 = vmatprep.subr.bf16.mxu1 %v6484_v17  ;;  %11205 = vst [vmem:[#allocation10_spill] sm:$0xff] %v7841_v13  ;;  %11206 = vst [vmem:[#allocation11_spill] sm:$0xff] %v7849_v14  ;;  %v7856_v15 = vld [vmem:[%s10925_s2 + $0x48] ss:$16 sps:$4 sm:$0xff]   ;;  %v7867_v17 = vld [vmem:[%s10925_s2 + $0x6c] ss:$16 sps:$4 sm:$0xff]  }
  0x28   :  { %579 = vmatprep.mubr.bf16.mxu0 %v10931_v3  ;;  %622 = vmatprep.mubr.bf16.mxu1 %v10931_v3  ;;  %11207 = vst [vmem:[#allocation12_spill] sm:$0xff] %v7856_v15  ;;  %11209 = vst [vmem:[#allocation14_spill] sm:$0xff] %v7867_v17 }
  0x2a   :  { %550 = vmatpush1.bf16.msra.mxu0 %v6481_v21  ;;  %593 = vmatpush1.bf16.msra.mxu1 %v6483_v22  ;;  %v7891_v21 = vld [vmem:[%s10925_s2 + $0x8c] ss:$16 sps:$4 sm:$0xff]   ;;  %v7897_v22 = vld [vmem:[%s10925_s2 + $0x80] ss:$16 sps:$4 sm:$0xff]  }
  0x2b   :  { %551 = vmatprep.subr.bf16.mxu0 %v6490_v23  ;;  %594 = vmatprep.subr.bf16.mxu1 %v6492_v26  ;;  %11213 = vst [vmem:[#allocation18_spill] sm:$0xff] %v7891_v21  ;;  %11214 = vst [vmem:[#allocation19_spill] sm:$0xff] %v7897_v22  ;;  %v7904_v23 = vld [vmem:[%s10925_s2 + $0x88] ss:$16 sps:$4 sm:$0xff]   ;;  %v7921_v26 = vld [vmem:[%s10925_s2 + $0xa0] ss:$16 sps:$4 sm:$0xff]  }
  0x2c   :  { %11215 = vst [vmem:[#allocation20_spill] sm:$0xff] %v7904_v23  ;;  %11218 = vst [vmem:[#allocation23_spill] sm:$0xff] %v7921_v26 }
  0x2e   :  { %552 = vmatpush1.bf16.msra.mxu0 %v6489_v29  ;;  %595 = vmatpush1.bf16.msra.mxu1 %v6491_v30  ;;  %v7939_v29 = vld [vmem:[%s10925_s2 + $0xcc] ss:$16 sps:$4 sm:$0xff]   ;;  %v7945_v30 = vld [vmem:[%s10925_s2 + $0xc0] ss:$16 sps:$4 sm:$0xff]  }
  0x2f   :  { %553 = vmatprep.subr.bf16.mxu0 %v6498_v31  ;;  %596 = vmatprep.subr.bf16.mxu1 %v6500_v33  ;;  %11221 = vst [vmem:[#allocation26_spill] sm:$0xff] %v7939_v29  ;;  %11222 = vst [vmem:[#allocation27_spill] sm:$0xff] %v7945_v30  ;;  %v7952_v31 = vld [vmem:[%s10925_s2 + $0xc8] ss:$16 sps:$4 sm:$0xff]   ;;  %v7963_v33 = vld [vmem:[%s10925_s2 + $0xec] ss:$16 sps:$4 sm:$0xff]  }
  0x30   :  { %11223 = vst [vmem:[#allocation28_spill] sm:$0xff] %v7952_v31  ;;  %11225 = vst [vmem:[#allocation30_spill] sm:$0xff] %v7963_v33 }
  0x32   :  { %554 = vmatpush1.bf16.msra.mxu0 %v6497_v37  ;;  %597 = vmatpush1.bf16.msra.mxu1 %v6499_v38  ;;  %v7987_v37 = vld [vmem:[%s10925_s2 + $0x10c] ss:$16 sps:$4 sm:$0xff]   ;;  %v7993_v38 = vld [vmem:[%s10925_s2 + $0x100] ss:$16 sps:$4 sm:$0xff]  }
  0x33   :  { %555 = vmatprep.subr.bf16.mxu0 %v6506_v39  ;;  %598 = vmatprep.subr.bf16.mxu1 %v6508_v42  ;;  %11229 = vst [vmem:[#allocation34_spill] sm:$0xff] %v7987_v37  ;;  %v8000_v39 = vld [vmem:[%s10925_s2 + $0x108] ss:$16 sps:$4 sm:$0xff]   ;;  %v8019_v42 = vld [vmem:[%s10925_s2 + $0x120] ss:$16 sps:$4 sm:$0xff]  }
  0x36   :  { %556 = vmatpush1.bf16.msra.mxu0 %v6505_v45  ;;  %599 = vmatpush1.bf16.msra.mxu1 %v6507_v46  ;;  %v8037_v45 = vld [vmem:[%s10925_s2 + $0x14c] ss:$16 sps:$4 sm:$0xff]   ;;  %v8045_v46 = vld [vmem:[%s10925_s2 + $0x140] ss:$16 sps:$4 sm:$0xff]  }
  0x37   :  { %557 = vmatprep.subr.bf16.mxu0 %v6514_v47  ;;  %600 = vmatprep.subr.bf16.mxu1 %v6516_v49  ;;  %v8052_v47 = vld [vmem:[%s10925_s2 + $0x148] ss:$16 sps:$4 sm:$0xff]   ;;  %v8063_v49 = vld [vmem:[%s10925_s2 + $0x16c] ss:$16 sps:$4 sm:$0xff]  }
  0x3a   :  { %558 = vmatpush1.bf16.msra.mxu0 %v6513_v53  ;;  %601 = vmatpush1.bf16.msra.mxu1 %v6515_v54  ;;  %v8087_v53 = vld [vmem:[%s10925_s2 + $0x18c] ss:$16 sps:$4 sm:$0xff]   ;;  %v8093_v54 = vld [vmem:[%s10925_s2 + $0x180] ss:$16 sps:$4 sm:$0xff]  }
  0x3b   :  { %559 = vmatprep.subr.bf16.mxu0 %v6522_v55  ;;  %602 = vmatprep.subr.bf16.mxu1 %v6524_v58  ;;  %v8100_v55 = vld [vmem:[%s10925_s2 + $0x188] ss:$16 sps:$4 sm:$0xff]   ;;  %v8117_v58 = vld [vmem:[%s10925_s2 + $0x1a0] ss:$16 sps:$4 sm:$0xff]  }
  0x3e   :  { %560 = vmatpush1.bf16.msra.mxu0 %v6521_v61  ;;  %603 = vmatpush1.bf16.msra.mxu1 %v6523_v62  ;;  %v8135_v61 = vld [vmem:[%s10925_s2 + $0x1cc] ss:$16 sps:$4 sm:$0xff]   ;;  %v8141_v62 = vld [vmem:[%s10925_s2 + $0x1c0] ss:$16 sps:$4 sm:$0xff]  }
  0x3f   :  { %561 = vmatprep.subr.bf16.mxu0 %v6530_v63  ;;  %604 = vmatprep.subr.bf16.mxu1 %v6532_v0  ;;  %11230 = vst [vmem:[#allocation35_spill] sm:$0xff] %v8141_v62  ;;  %v8148_v63 = vld [vmem:[%s10925_s2 + $0x1c8] ss:$16 sps:$4 sm:$0xff]   ;;  %v8153_v0 = vld [vmem:[%s10925_s2 + $0x1e4] ss:$16 sps:$4 sm:$0xff]  }
  0x42   :  { %562 = vmatpush1.bf16.msra.mxu0 %v6529_v1  ;;  %605 = vmatpush1.bf16.msra.mxu1 %v6531_v2  ;;  %v8159_v1 = vld [vmem:[%s10925_s2 + $0x1ec] ss:$16 sps:$4 sm:$0xff]   ;;  %v8165_v2 = vld [vmem:[%s10925_s2 + $0x1e0] ss:$16 sps:$4 sm:$0xff]  }
  0x43   :  { %874 = vmatprep.subr.bf16.mxu0 %v7788_v4  ;;  %915 = vmatprep.subr.bf16.mxu1 %v7793_v5 }
  0x45   :  { %580 = vmatmul.mubr.bf16.vlgmr.msra.gmra.mrb[4].mxu0 %v7695_v6  ;;  %623 = vmatmul.mubr.bf16.vlgmr.msra.gmra.mrb[4].mxu1 %v7695_v6  ;;  %v7835_v6 = vld [vmem:[%s10925_s2 + $0x44] ss:$16 sps:$4 sm:$0xff]  }
  0x46   :  { %875 = vmatpush1.bf16.msra.mxu0 %v7798_v7  ;;  %916 = vmatpush1.bf16.msra.mxu1 %v7804_v8  ;;  %11204 = vst [vmem:[#allocation9_spill] sm:$0xff] %v7835_v6 }
  0x47   :  { %876 = vmatprep.subr.bf16.mxu0 %v7809_v9  ;;  %917 = vmatprep.subr.bf16.mxu1 %v7815_v10 }
  0x48   :  { %906 = vmatprep.mubr.bf16.mxu0 %v10931_v3  ;;  %947 = vmatprep.mubr.bf16.mxu1 %v10931_v3 }
  0x4a   :  { %877 = vmatpush1.bf16.msra.mxu0 %v7823_v11  ;;  %918 = vmatpush1.bf16.msra.mxu1 %v7830_v12 }
  0x4b   :  { %878 = vmatprep.subr.bf16.mxu0 %v7835_v6  ;;  %919 = vmatprep.subr.bf16.mxu1 %v7841_v13 }
  0x4e   :  { %879 = vmatpush1.bf16.msra.mxu0 %v7849_v14  ;;  %920 = vmatpush1.bf16.msra.mxu1 %v7856_v15 }
  0x4f   :  { %880 = vmatprep.subr.bf16.mxu0 %v7861_v16  ;;  %921 = vmatprep.subr.bf16.mxu1 %v7867_v17 }
  0x52   :  { %881 = vmatpush1.bf16.msra.mxu0 %v7873_v18  ;;  %922 = vmatpush1.bf16.msra.mxu1 %v7880_v19 }
  0x53   :  { %882 = vmatprep.subr.bf16.mxu0 %v7885_v20  ;;  %923 = vmatprep.subr.bf16.mxu1 %v7891_v21 }
  0x56   :  { %883 = vmatpush1.bf16.msra.mxu0 %v7897_v22  ;;  %924 = vmatpush1.bf16.msra.mxu1 %v7904_v23 }
  0x57   :  { %884 = vmatprep.subr.bf16.mxu0 %v7909_v24  ;;  %925 = vmatprep.subr.bf16.mxu1 %v7915_v25 }
  0x5a   :  { %885 = vmatpush1.bf16.msra.mxu0 %v7921_v26  ;;  %926 = vmatpush1.bf16.msra.mxu1 %v7928_v27 }
  0x5b   :  { %886 = vmatprep.subr.bf16.mxu0 %v7933_v28  ;;  %927 = vmatprep.subr.bf16.mxu1 %v7939_v29 }
  0x5e   :  { %887 = vmatpush1.bf16.msra.mxu0 %v7945_v30  ;;  %928 = vmatpush1.bf16.msra.mxu1 %v7952_v31 }
  0x5f   :  { %888 = vmatprep.subr.bf16.mxu0 %v7957_v32  ;;  %929 = vmatprep.subr.bf16.mxu1 %v7963_v33 }
  0x62   :  { %889 = vmatpush1.bf16.msra.mxu0 %v7969_v34  ;;  %930 = vmatpush1.bf16.msra.mxu1 %v7976_v35 }
  0x63   :  { %1116 = vmatprep.subr.bf16.mxu0 %v7981_v36  ;;  %1157 = vmatprep.subr.bf16.mxu1 %v7987_v37 }
  0x65   :  { %907 = vmatmul.mubr.bf16.vlgmr.msra.gmra.mrb[8].mxu0 %v10931_v3  ;;  %948 = vmatmul.mubr.bf16.vlgmr.msra.gmra.mrb[8].mxu1 %v10931_v3 }
  0x66   :  { %1117 = vmatpush1.bf16.msra.mxu0 %v7993_v38  ;;  %1158 = vmatpush1.bf16.msra.mxu1 %v8000_v39 }
  0x67   :  { %1118 = vmatprep.subr.bf16.mxu0 %v8005_v40  ;;  %1159 = vmatprep.subr.bf16.mxu1 %v8011_v41 }
  0x68   :  { %1148 = vmatprep.mubr.bf16.mxu0 %v10931_v3  ;;  %1189 = vmatprep.mubr.bf16.mxu1 %v10931_v3  ;;  %v8172_v3 = vld [vmem:[%s10925_s2 + $0x1e8] ss:$16 sps:$4 sm:$0xff]  }
  0x6a   :  { %1119 = vmatpush1.bf16.msra.mxu0 %v8019_v42  ;;  %1160 = vmatpush1.bf16.msra.mxu1 %v8026_v43 }
  0x6b   :  { %1120 = vmatprep.subr.bf16.mxu0 %v8031_v44  ;;  %1161 = vmatprep.subr.bf16.mxu1 %v8037_v45 }
  0x6e   :  { %1121 = vmatpush1.bf16.msra.mxu0 %v8045_v46  ;;  %1162 = vmatpush1.bf16.msra.mxu1 %v8052_v47 }
  0x6f   :  { %1122 = vmatprep.subr.bf16.mxu0 %v8057_v48  ;;  %1163 = vmatprep.subr.bf16.mxu1 %v8063_v49 }
  0x72   :  { %1123 = vmatpush1.bf16.msra.mxu0 %v8069_v50  ;;  %1164 = vmatpush1.bf16.msra.mxu1 %v8076_v51 }
  0x73   :  { %1124 = vmatprep.subr.bf16.mxu0 %v8081_v52  ;;  %1165 = vmatprep.subr.bf16.mxu1 %v8087_v53 }
  0x76   :  { %1125 = vmatpush1.bf16.msra.mxu0 %v8093_v54  ;;  %1166 = vmatpush1.bf16.msra.mxu1 %v8100_v55 }
  0x77   :  { %1126 = vmatprep.subr.bf16.mxu0 %v8105_v56  ;;  %1167 = vmatprep.subr.bf16.mxu1 %v8111_v57 }
  0x7a   :  { %1127 = vmatpush1.bf16.msra.mxu0 %v8117_v58  ;;  %1168 = vmatpush1.bf16.msra.mxu1 %v8124_v59 }
  0x7b   :  { %1128 = vmatprep.subr.bf16.mxu0 %v8129_v60  ;;  %1169 = vmatprep.subr.bf16.mxu1 %v8135_v61 }
  0x7e   :  { %1129 = vmatpush1.bf16.msra.mxu0 %v8141_v62  ;;  %1170 = vmatpush1.bf16.msra.mxu1 %v8148_v63  ;;  %v11231_v62 = vmov 0  }
  0x7f   :  { %1130 = vmatprep.subr.bf16.mxu0 %v8153_v0  ;;  %1171 = vmatprep.subr.bf16.mxu1 %v8159_v1 }
  0x82   :  { %1131 = vmatpush1.bf16.msra.mxu0 %v8165_v2  ;;  %1172 = vmatpush1.bf16.msra.mxu1 %v8172_v3 }
  0x83   :  { %1273 = vmatprep.subr.bf16.mxu0 %v7788_v4  ;;  %1314 = vmatprep.subr.bf16.mxu1 %v7793_v5 }
  0x85   :  { %1149 = vmatmul.mubr.bf16.vlgmr.msra.gmra.mrb[12].mxu0 %v11231_v62  ;;  %1190 = vmatmul.mubr.bf16.vlgmr.msra.gmra.mrb[12].mxu1 %v11231_v62 }
  0x86   :  { %1274 = vmatpush1.bf16.msra.mxu0 %v7798_v7  ;;  %1315 = vmatpush1.bf16.msra.mxu1 %v7804_v8 }
  0x87   :  { %1275 = vmatprep.subr.bf16.mxu0 %v7809_v9  ;;  %1316 = vmatprep.subr.bf16.mxu1 %v7815_v10 }
  0x88   :  { %1305 = vmatprep.mubr.bf16.mxu0 %v11231_v62  ;;  %1346 = vmatprep.mubr.bf16.mxu1 %v11231_v62 }
  0x8a   :  { %1276 = vmatpush1.bf16.msra.mxu0 %v7823_v11  ;;  %1317 = vmatpush1.bf16.msra.mxu1 %v7830_v12 }
  0x8b   :  { %1277 = vmatprep.subr.bf16.mxu0 %v7835_v6  ;;  %1318 = vmatprep.subr.bf16.mxu1 %v7841_v13 }
  0x8e   :  { %1278 = vmatpush1.bf16.msra.mxu0 %v7849_v14  ;;  %1319 = vmatpush1.bf16.msra.mxu1 %v7856_v15 }
  0x8f   :  { %1279 = vmatprep.subr.bf16.mxu0 %v7861_v16  ;;  %1320 = vmatprep.subr.bf16.mxu1 %v7867_v17 }
  0x92   :  { %1280 = vmatpush1.bf16.msra.mxu0 %v7873_v18  ;;  %1321 = vmatpush1.bf16.msra.mxu1 %v7880_v19 }
  0x93   :  { %1281 = vmatprep.subr.bf16.mxu0 %v7885_v20  ;;  %1322 = vmatprep.subr.bf16.mxu1 %v7891_v21 }
  0x96   :  { %1282 = vmatpush1.bf16.msra.mxu0 %v7897_v22  ;;  %1323 = vmatpush1.bf16.msra.mxu1 %v7904_v23 }
  0x97   :  { %1283 = vmatprep.subr.bf16.mxu0 %v7909_v24  ;;  %1324 = vmatprep.subr.bf16.mxu1 %v7915_v25 }
  0x9a   :  { %1284 = vmatpush1.bf16.msra.mxu0 %v7921_v26  ;;  %1325 = vmatpush1.bf16.msra.mxu1 %v7928_v27  ;;  %v95_v27 = vlaneseq }
  0x9b   :  { %1285 = vmatprep.subr.bf16.mxu0 %v7933_v28  ;;  %1326 = vmatprep.subr.bf16.mxu1 %v7939_v29 }
  0x9c   :  { %v8215_v28 = vshrl.u32 %v95_v27, 7 }
  0x9e   :  { %1286 = vmatpush1.bf16.msra.mxu0 %v7945_v30  ;;  %1327 = vmatpush1.bf16.msra.mxu1 %v7952_v31  ;;  %11232 = vst [vmem:[#allocation36_spill] sm:$0xff] %v8215_v28  ;;  %v10973_v29 = vsub.s32 0, %v8215_v28  ;;  %v93_v31 = vld [vmem:[%s10926_s3] sm:$0xff] }
  0x9f   :  { %1287 = vmatprep.subr.bf16.mxu0 %v7957_v32  ;;  %1328 = vmatprep.subr.bf16.mxu1 %v7963_v33  ;;  %v10978_v32 = vsub.s32 1, %v8215_v28  ;;  %v10979_v33 = vsub.s32 2, %v8215_v28 }
  0xa1   :  { %v106_v27 = vrot.slane %v93_v31, %v10979_v33 }
  0xa2   :  { %1288 = vmatpush1.bf16.msra.mxu0 %v7969_v34  ;;  %1329 = vmatpush1.bf16.msra.mxu1 %v7976_v35  ;;  %v10982_v34 = vsub.s32 3, %v8215_v28 }
  0xa3   :  { %1358 = vmatprep.subr.bf16.mxu0 %v7981_v36  ;;  %1399 = vmatprep.subr.bf16.mxu1 %v7987_v37  ;;  %v98_v36 = vrot.slane %v93_v31, %v10973_v29  ;;  %v102_v37 = vrot.slane %v93_v31, %v10978_v32 }
  0xa4   :  { %v110_v35 = vrot.slane %v93_v31, %v10982_v34 }
  0xf8   :  { %v495_v30 = vpop.f32.mrb[0].mxu0  ;;  %v538_v24 = vpop.f32.mrb[0].mxu1 }
  0xf9   :  { %v496_v26 = vadd.f32 %v495_v30, %v98_v36  ;;  %v497_v25 = vpop.f32.mrb[1].mxu0  ;;  %v539_v21 = vadd.f32 %v538_v24, %v106_v27  ;;  %v540_v20 = vpop.f32.mrb[1].mxu1  ;;  %v10983_v24 = vsub.s32 5, %v8215_v28 }
  0xfa   :  { %v498_v23 = vadd.f32 %v497_v25, %v102_v37  ;;  %v499_v22 = vpop.f32.mrb[2].mxu0  ;;  %v541_v18 = vadd.f32 %v540_v20, %v110_v35  ;;  %v542_v17 = vpop.f32.mrb[2].mxu1  ;;  %v10985_v25 = vsub.s32 4, %v8215_v28  ;;  %v10986_v20 = vsub.s32 7, %v8215_v28 }
  0xfb   :  { %633 = vst [vmem:[#allocation2] sm:$0xff] %v496_v26  ;;  %v500_v19 = vadd.f32 %v499_v22, %v98_v36  ;;  %v501_v29 = vpop.f32.mrb[3].mxu0  ;;  %635 = vst [vmem:[#allocation2 + $0x10] sm:$0xff] %v539_v21  ;;  %v543_v33 = vadd.f32 %v542_v17, %v106_v27  ;;  %v544_v16 = vpop.f32.mrb[3].mxu1  ;;  %v10984_v22 = vsub.s32 6, %v8215_v28  ;;  %v118_v17 = vrot.slane %v93_v31, %v10983_v24 }
  0xfc   :  { %634 = vst [vmem:[#allocation2 + $0x8] sm:$0xff] %v498_v23  ;;  %v502_v32 = vadd.f32 %v501_v29, %v102_v37  ;;  %636 = vst [vmem:[#allocation2 + $0x18] sm:$0xff] %v541_v18  ;;  %v545_v34 = vadd.f32 %v544_v16, %v110_v35  ;;  %v114_v23 = vrot.slane %v93_v31, %v10985_v25 }
  0xfd   :  { %641 = vst [vmem:[#allocation2 + $0x40] sm:$0xff] %v500_v19  ;;  %643 = vst [vmem:[#allocation2 + $0x50] sm:$0xff] %v543_v33  ;;  %v122_v16 = vrot.slane %v93_v31, %v10984_v22  ;;  %v126_v18 = vrot.slane %v93_v31, %v10986_v20 }
  0xfe   :  { %642 = vst [vmem:[#allocation2 + $0x48] sm:$0xff] %v502_v32  ;;  %644 = vst [vmem:[#allocation2 + $0x58] sm:$0xff] %v545_v34 }
 0x102   :  { %v1198_v14 = vld [vmem:[#allocation2] sm:$0x3] }
 0x103   :  { %v1199_v6 = vld [vmem:[#allocation2 + $0x8] sm:$0x3]  ;;  %v1201_v10 = vld [vmem:[#allocation2 + $0x18] sm:$0x3] }
 0x118   :  { %v581_v19 = vpop.f32.mrb[4].mxu0  ;;  %v624_v29 = vpop.f32.mrb[4].mxu1 }
 0x119   :  { %v582_v21 = vadd.f32 %v581_v19, %v114_v23  ;;  %v583_v26 = vpop.f32.mrb[5].mxu0  ;;  %v625_v33 = vadd.f32 %v624_v29, %v122_v16  ;;  %v626_v34 = vpop.f32.mrb[5].mxu1 }
 0x11a   :  { %v584_v30 = vadd.f32 %v583_v26, %v118_v17  ;;  %v585_v32 = vpop.f32.mrb[6].mxu0  ;;  %v627_v37 = vadd.f32 %v626_v34, %v126_v18  ;;  %v628_v27 = vpop.f32.mrb[6].mxu1 }
 0x11b   :  { %637 = vst [vmem:[#allocation2 + $0x20] sm:$0xff] %v582_v21  ;;  %v586_v35 = vadd.f32 %v585_v32, %v114_v23  ;;  %v587_v36 = vpop.f32.mrb[7].mxu0  ;;  %639 = vst [vmem:[#allocation2 + $0x30] sm:$0xff] %v625_v33  ;;  %v629_v22 = vadd.f32 %v628_v27, %v122_v16  ;;  %v630_v25 = vpop.f32.mrb[7].mxu1 }
 0x11c   :  { %638 = vst [vmem:[#allocation2 + $0x28] sm:$0xff] %v584_v30  ;;  %v588_v24 = vadd.f32 %v587_v36, %v118_v17  ;;  %640 = vst [vmem:[#allocation2 + $0x38] sm:$0xff] %v627_v37  ;;  %v631_v31 = vadd.f32 %v630_v25, %v126_v18 }
 0x11d   :  { %645 = vst [vmem:[#allocation2 + $0x60] sm:$0xff] %v586_v35  ;;  %647 = vst [vmem:[#allocation2 + $0x70] sm:$0xff] %v629_v22 }
 0x11e   :  { %646 = vst [vmem:[#allocation2 + $0x68] sm:$0xff] %v588_v24  ;;  %648 = vst [vmem:[#allocation2 + $0x78] sm:$0xff] %v631_v31 }
 0x124   :  { %v1202_v30 = vld [vmem:[#allocation2 + $0x60] sm:$0xc0]  ;;  %v1204_v36 = vld [vmem:[#allocation2 + $0x70] sm:$0xc0] }
 0x125   :  { %v1203_v18 = vld [vmem:[#allocation2 + $0x68] sm:$0xc0] }
 0x138   :  { %v908_v19 = vpop.f32.mrb[8].mxu0  ;;  %v949_v26 = vpop.f32.mrb[8].mxu1 }
 0x139   :  { %v910_v29 = vpop.f32.mrb[9].mxu0  ;;  %v951_v20 = vpop.f32.mrb[9].mxu1  ;;  %v1206_v13 = vadd.f32 %v1198_v14, %v908_v19 }
 0x13a   :  { %v912_v21 = vpop.f32.mrb[10].mxu0  ;;  %v953_v32 = vpop.f32.mrb[10].mxu1 }
 0x13b   :  { %v913_v23 = vpop.f32.mrb[11].mxu0  ;;  %v954_v34 = vpop.f32.mrb[11].mxu1  ;;  %v1205_v32 = vld [vmem:[#allocation2 + $0x78] sm:$0xc0] }
 0x158   :  { %v1150_v28 = vpop.f32.mrb[12].mxu0  ;;  %v1191_v33 = vpop.f32.mrb[12].mxu1 }
 0x159   :  { %v1214_v17 = vrot.slane %v1150_v28, 2  ;;  %v1152_v16 = vpop.f32.mrb[13].mxu0  ;;  %v1216_v35 = vrot.slane %v1191_v33, 2  ;;  %v1193_v25 = vpop.f32.mrb[13].mxu1  ;;  %v1200_v28 = vld [vmem:[#allocation2 + $0x10] sm:$0x3] }
 0x15a   :  { %v1215_v37 = vrot.slane %v1152_v16, 2  ;;  %v1154_v24 = vpop.f32.mrb[14].mxu0  ;;  %v1217_v27 = vrot.slane %v1193_v25, 2  ;;  %v1195_v15 = vpop.f32.mrb[14].mxu1  ;;  %v1208_v33 = vadd.f32 %v1200_v28, %v949_v26  ;;  %v1207_v16 = vadd.f32 %v1199_v6, %v910_v29 }
 0x15b   :  { %v1222_v22 = vadd.f32 %v1214_v17, %v1202_v30  ;;  %v1155_v31 = vpop.f32.mrb[15].mxu0  ;;  %v1224_v21 = vadd.f32 %v1216_v35, %v1204_v36  ;;  %v1196_v34 = vpop.f32.mrb[15].mxu1  ;;  %v1209_v17 = vadd.f32 %v1201_v10, %v951_v20 }
 0x15c   :  { %v1223_v23 = vadd.f32 %v1215_v37, %v1203_v18  ;;  %v1225_v11 = vadd.f32 %v1217_v27, %v1205_v32 }
 0x15d   :  { %v1230_v12 = vrot.slane %v1222_v22, 4  ;;  %v1232_v24 = vrot.slane %v1224_v21, 4 }
 0x15e   :  { %v1231_v30 = vrot.slane %v1223_v23, 4  ;;  %v1233_v15 = vrot.slane %v1225_v11, 4 }
 0x15f   :  { %v1239_v25 = vsel %vm1238_vm0, %v1206_v13, %v1230_v12  ;;  %v1241_v36 = vsel %vm1238_vm0, %v1208_v33, %v1232_v24 }
 0x160   :  { %v6629_v31 = vmul.f32 -1.442695, %v1239_v25  ;;  %v1240_v35 = vsel %vm1238_vm0, %v1207_v16, %v1231_v30  ;;  %v1242_v14 = vsel %vm1238_vm0, %v1209_v17, %v1233_v15  ;;  %v6631_v19 = vmul.f32 -1.442695, %v1241_v36  ;;  %v11233_v16 = vld [vmem:[#allocation35_spill] sm:$0xff]  ;;  %v11234_v30 = vld [vmem:[#allocation6_spill] sm:$0xff] }
 0x161   :  { %v6630_v37 = vmul.f32 -1.442695, %v1240_v35  ;;  %v11235_v17 = vld [vmem:[#allocation7_spill] sm:$0xff]  ;;  %v11236_v25 = vld [vmem:[#allocation8_spill] sm:$0xff]  ;;  %v11241_v36 = vld [vmem:[#allocation13_spill] sm:$0xff] }
 0x162   :  { %7095 = vpow2.f32 %v6629_v31  ;;  %v11239_v15 = vld [vmem:[#allocation11_spill] sm:$0xff]  ;;  %v11240_v31 = vld [vmem:[#allocation12_spill] sm:$0xff]  ;;  %v11242_v35 = vld [vmem:[#allocation14_spill] sm:$0xff] }
 0x163   :  { %7097 = vpow2.f32 %v6630_v37  ;;  %v11243_v37 = vld [vmem:[#allocation15_spill] sm:$0xff] }
 0x164   :  { %7099 = vpow2.f32 %v6631_v19  ;;  %v11245_v19 = vld [vmem:[#allocation17_spill] sm:$0xff] }
 0x165   :  { %7101 = vtanh.f32 %v1242_v14  ;;  %v11244_v14 = vld [vmem:[#allocation16_spill] sm:$0xff] }
 0x16c   :  { %v7096_v26 = vpop.eup %7095 }
 0x16d   :  { %v1252_v6 = vadd.f32 1.0, %v7096_v26  ;;  %v7098_v29 = vpop.eup %7097  ;;  %v11246_v26 = vld [vmem:[#allocation18_spill] sm:$0xff] }
 0x16e   :  { %v1253_v10 = vadd.f32 1.0, %v7098_v29  ;;  %v7100_v11 = vpop.eup %7099  ;;  %v11248_v29 = vld [vmem:[#allocation20_spill] sm:$0xff] }
 0x16f   :  { %7103 = vrcp.f32 %v1252_v6  ;;  %v7102_v12 = vpop.eup %7101  ;;  %v1254_v18 = vadd.f32 1.0, %v7100_v11  ;;  %v11247_v6 = vld [vmem:[#allocation19_spill] sm:$0xff]  ;;  %v11250_v11 = vld [vmem:[#allocation22_spill] sm:$0xff] }
 0x170   :  { %7105 = vrcp.f32 %v1253_v10  ;;  %v11249_v10 = vld [vmem:[#allocation21_spill] sm:$0xff] }
 0x171   :  { %7107 = vrcp.f32 %v1254_v18  ;;  %v11255_v18 = vld [vmem:[#allocation27_spill] sm:$0xff] }
 0x179   :  { %v7104_v13 = vpop.eup %7103 }
 0x17a   :  { %v1263_v20 = vmul.f32 %v7104_v13, %v7102_v12  ;;  %v7106_v22 = vpop.eup %7105  ;;  %v11251_v12 = vld [vmem:[#allocation23_spill] sm:$0xff]  ;;  %v11252_v13 = vld [vmem:[#allocation24_spill] sm:$0xff] }
 0x17b   :  { %v1262_v27 = vmul.f32 0.0, %v7106_v22  ;;  %v7108_v23 = vpop.eup %7107  ;;  %v11254_v22 = vld [vmem:[#allocation26_spill] sm:$0xff] }
 0x17d   :  { %v8248_v21 = vadd.f32 %v1263_v20, %v1262_v27  ;;  %v11253_v20 = vld [vmem:[#allocation25_spill] sm:$0xff]  ;;  %v11256_v27 = vld [vmem:[#allocation28_spill] sm:$0xff] }
 0x17f   :  { %7109 = vtanh.f32 %v8248_v21 }
 0x189   :  { %v7110_v32 = vpop.eup %7109 }
 0x18a   :  { %v1266_v34 = vmul.f32 %v7110_v32, %v7108_v23  ;;  %v11257_v23 = vld [vmem:[#allocation29_spill] sm:$0xff]  ;;  %v11258_v32 = vld [vmem:[#allocation30_spill] sm:$0xff] }
 0x18c   :  { %1267 = vst [vmem:[#allocation3] sm:$0x3] %v1266_v34  ;;  %v1269_v28 = vrot.slane %v1266_v34, 4  ;;  %v1272_v33 = vpack.c.bf16 %v1266_v34, %v1266_v34  ;;  %v11259_v34 = vld [vmem:[#allocation31_spill] sm:$0xff] }
 0x18e   :  { %1271 = vst [vmem:[#allocation3 + $0x18] sm:$0xc0] %v1269_v28  ;;  %1306 = vmatmul.mubr.bf16.vlgmr.msra.gmra.mrb[16].mxu0 %v1272_v33  ;;  %1347 = vmatmul.mubr.bf16.vlgmr.msra.gmra.mrb[16].mxu1 %v1272_v33  ;;  %v1356_v24 = vrot.slane %v1272_v33, 1  ;;  %v11260_v28 = vld [vmem:[#allocation32_spill] sm:$0xff]  ;;  %v11261_v33 = vld [vmem:[#allocation33_spill] sm:$0xff] }
 0x18f   :  { %1359 = vmatpush1.bf16.msra.mxu0 %v7993_v38  ;;  %1400 = vmatpush1.bf16.msra.mxu1 %v8000_v39 }
 0x190   :  { %1360 = vmatprep.subr.bf16.mxu0 %v8005_v40  ;;  %1401 = vmatprep.subr.bf16.mxu1 %v8011_v41 }
 0x191   :  { %1390 = vmatprep.mubr.bf16.mxu0 %v11231_v62  ;;  %1431 = vmatprep.mubr.bf16.mxu1 %v11231_v62 }
 0x193   :  { %1361 = vmatpush1.bf16.msra.mxu0 %v8019_v42  ;;  %1402 = vmatpush1.bf16.msra.mxu1 %v8026_v43 }
 0x194   :  { %1362 = vmatprep.subr.bf16.mxu0 %v8031_v44  ;;  %1403 = vmatprep.subr.bf16.mxu1 %v8037_v45 }
 0x197   :  { %1363 = vmatpush1.bf16.msra.mxu0 %v8045_v46  ;;  %1404 = vmatpush1.bf16.msra.mxu1 %v8052_v47 }
 0x198   :  { %1364 = vmatprep.subr.bf16.mxu0 %v8057_v48  ;;  %1405 = vmatprep.subr.bf16.mxu1 %v8063_v49 }
 0x19b   :  { %1365 = vmatpush1.bf16.msra.mxu0 %v8069_v50  ;;  %1406 = vmatpush1.bf16.msra.mxu1 %v8076_v51 }
 0x19c   :  { %1366 = vmatprep.subr.bf16.mxu0 %v8081_v52  ;;  %1407 = vmatprep.subr.bf16.mxu1 %v8087_v53 }
 0x19f   :  { %1367 = vmatpush1.bf16.msra.mxu0 %v8093_v54  ;;  %1408 = vmatpush1.bf16.msra.mxu1 %v8100_v55 }
 0x1a0   :  { %1368 = vmatprep.subr.bf16.mxu0 %v8105_v56  ;;  %1409 = vmatprep.subr.bf16.mxu1 %v8111_v57 }
 0x1a3   :  { %1369 = vmatpush1.bf16.msra.mxu0 %v8117_v58  ;;  %1410 = vmatpush1.bf16.msra.mxu1 %v8124_v59 }
 0x1a4   :  { %1370 = vmatprep.subr.bf16.mxu0 %v8129_v60  ;;  %1411 = vmatprep.subr.bf16.mxu1 %v8135_v61 }
 0x1a7   :  { %1371 = vmatpush1.bf16.msra.mxu0 %v11233_v16  ;;  %1412 = vmatpush1.bf16.msra.mxu1 %v8148_v63 }
 0x1a8   :  { %1372 = vmatprep.subr.bf16.mxu0 %v8153_v0  ;;  %1413 = vmatprep.subr.bf16.mxu1 %v8159_v1 }
 0x1ab   :  { %1373 = vmatpush1.bf16.msra.mxu0 %v8165_v2  ;;  %1414 = vmatpush1.bf16.msra.mxu1 %v8172_v3 }
 0x1ac   :  { %1538 = vmatprep.subr.bf16.mxu0 %v7788_v4  ;;  %1579 = vmatprep.subr.bf16.mxu1 %v7793_v5  ;;  %v11237_v4 = vld [vmem:[#allocation9_spill] sm:$0xff]  ;;  %v11238_v5 = vld [vmem:[#allocation10_spill] sm:$0xff] }
 0x1ae   :  { %1391 = vmatmul.mubr.bf16.vlgmr.msra.gmra.mrb[20].mxu0 %v1356_v24  ;;  %1432 = vmatmul.mubr.bf16.vlgmr.msra.gmra.mrb[20].mxu1 %v1356_v24  ;;  %v11262_v24 = vld [vmem:[#allocation34_spill] sm:$0xff] }
 0x1af   :  { %1539 = vmatpush1.bf16.msra.mxu0 %v7798_v7  ;;  %1580 = vmatpush1.bf16.msra.mxu1 %v7804_v8 }
 0x1b0   :  { %1540 = vmatprep.subr.bf16.mxu0 %v7809_v9  ;;  %1581 = vmatprep.subr.bf16.mxu1 %v11234_v30 }
 0x1b1   :  { %1570 = vmatprep.mubr.bf16.mxu0 %v11231_v62  ;;  %1611 = vmatprep.mubr.bf16.mxu1 %v11231_v62 }
 0x1b3   :  { %1541 = vmatpush1.bf16.msra.mxu0 %v11235_v17  ;;  %1582 = vmatpush1.bf16.msra.mxu1 %v11236_v25  ;;  %v1445_v25 = vld [vmem:[#allocation2 + $0x68] sm:$0x30]  ;;  %v1447_v17 = vld [vmem:[#allocation2 + $0x78] sm:$0x30] }
 0x1b4   :  { %1542 = vmatprep.subr.bf16.mxu0 %v11237_v4  ;;  %1583 = vmatprep.subr.bf16.mxu1 %v11238_v5 }
 0x1b7   :  { %1543 = vmatpush1.bf16.msra.mxu0 %v11239_v15  ;;  %1584 = vmatpush1.bf16.msra.mxu1 %v11240_v31 }
 0x1b8   :  { %1544 = vmatprep.subr.bf16.mxu0 %v11241_v36  ;;  %1585 = vmatprep.subr.bf16.mxu1 %v11242_v35  ;;  %v1444_v35 = vld [vmem:[#allocation2 + $0x60] sm:$0x30] }
 0x1bb   :  { %1545 = vmatpush1.bf16.msra.mxu0 %v11243_v37  ;;  %1586 = vmatpush1.bf16.msra.mxu1 %v11244_v14 }
 0x1bc   :  { %1546 = vmatprep.subr.bf16.mxu0 %v11245_v19  ;;  %1587 = vmatprep.subr.bf16.mxu1 %v11246_v26  ;;  %v1440_v26 = vld [vmem:[#allocation2] sm:$0xc]  ;;  %v1441_v19 = vld [vmem:[#allocation2 + $0x8] sm:$0xc] }
 0x1bf   :  { %1547 = vmatpush1.bf16.msra.mxu0 %v11247_v6  ;;  %1588 = vmatpush1.bf16.msra.mxu1 %v11248_v29 }
 0x1c0   :  { %1548 = vmatprep.subr.bf16.mxu0 %v11249_v10  ;;  %1589 = vmatprep.subr.bf16.mxu1 %v11250_v11 }
 0x1c3   :  { %1549 = vmatpush1.bf16.msra.mxu0 %v11251_v12  ;;  %1590 = vmatpush1.bf16.msra.mxu1 %v11252_v13 }
 0x1c4   :  { %1550 = vmatprep.subr.bf16.mxu0 %v11253_v20  ;;  %1591 = vmatprep.subr.bf16.mxu1 %v11254_v22 }
 0x1c7   :  { %1551 = vmatpush1.bf16.msra.mxu0 %v11255_v18  ;;  %1592 = vmatpush1.bf16.msra.mxu1 %v11256_v27 }
 0x1c8   :  { %1552 = vmatprep.subr.bf16.mxu0 %v11257_v23  ;;  %1593 = vmatprep.subr.bf16.mxu1 %v11258_v32 }
 0x1cb   :  { %1553 = vmatpush1.bf16.msra.mxu0 %v11259_v34  ;;  %1594 = vmatpush1.bf16.msra.mxu1 %v11260_v28  ;;  %v1442_v34 = vld [vmem:[#allocation2 + $0x10] sm:$0xc]  ;;  %v1443_v28 = vld [vmem:[#allocation2 + $0x18] sm:$0xc] }
 0x1cc   :  { %1623 = vmatprep.subr.bf16.mxu0 %v11261_v33  ;;  %1664 = vmatprep.subr.bf16.mxu1 %v11262_v24 }
 0x261   :  { %v1307_v13 = vpop.f32.mrb[16].mxu0  ;;  %v1348_v20 = vpop.f32.mrb[16].mxu1 }
 0x262   :  { %v1309_v12 = vpop.f32.mrb[17].mxu0  ;;  %v1350_v22 = vpop.f32.mrb[17].mxu1  ;;  %v1452_v29 = vrot.slane %v1307_v13, 6  ;;  %v1454_v23 = vrot.slane %v1348_v20, 6 }
 0x263   :  { %v1311_v11 = vpop.f32.mrb[18].mxu0  ;;  %v1352_v18 = vpop.f32.mrb[18].mxu1  ;;  %v1453_v6 = vrot.slane %v1309_v12, 6  ;;  %v1455_v32 = vrot.slane %v1350_v22, 6 }
 0x264   :  { %v1312_v10 = vpop.f32.mrb[19].mxu0  ;;  %v1353_v27 = vpop.f32.mrb[19].mxu1  ;;  %v1460_v37 = vadd.f32 %v1452_v29, %v1440_v26  ;;  %v1462_v24 = vadd.f32 %v1454_v23, %v1442_v34 }
 0x265   :  { %v1461_v18 = vadd.f32 %v1453_v6, %v1441_v19  ;;  %v1463_v10 = vadd.f32 %v1455_v32, %v1443_v28  ;;  %v1446_v27 = vld [vmem:[#allocation2 + $0x70] sm:$0x30] }
 0x266   :  { %v1484_v23 = vrot.slane %v1460_v37, 2 }
 0x267   :  { %v1485_v8 = vrot.slane %v1461_v18, 2  ;;  %v1487_v19 = vrot.slane %v1463_v10, 2 }
 0x281   :  { %v1392_v14 = vpop.f32.mrb[20].mxu0  ;;  %v1433_v33 = vpop.f32.mrb[20].mxu1 }
 0x282   :  { %v1468_v36 = vrot.slane %v1392_v14, 4  ;;  %v1470_v31 = vrot.slane %v1433_v33, 4  ;;  %v1394_v15 = vpop.f32.mrb[21].mxu0  ;;  %v1435_v11 = vpop.f32.mrb[21].mxu1  ;;  %v1486_v14 = vrot.slane %v1462_v24, 2 }
 0x283   :  { %v1469_v13 = vrot.slane %v1394_v15, 4  ;;  %v1471_v20 = vrot.slane %v1435_v11, 4  ;;  %v1396_v12 = vpop.f32.mrb[22].mxu0  ;;  %v1437_v22 = vpop.f32.mrb[22].mxu1 }
 0x284   :  { %v1476_v5 = vadd.f32 %v1468_v36, %v1444_v35  ;;  %v1478_v4 = vadd.f32 %v1470_v31, %v1446_v27  ;;  %v1397_v30 = vpop.f32.mrb[23].mxu0  ;;  %v1438_v9 = vpop.f32.mrb[23].mxu1 }
 0x285   :  { %v1477_v26 = vadd.f32 %v1469_v13, %v1445_v25  ;;  %v1479_v29 = vadd.f32 %v1471_v20, %v1447_v17 }
 0x286   :  { %v1496_v34 = vrot.slane %v1476_v5, 2  ;;  %v1498_v33 = vrot.slane %v1478_v4, 2 }
 0x287   :  { %v1497_v6 = vrot.slane %v1477_v26, 2  ;;  %v1499_v32 = vrot.slane %v1479_v29, 2 }
 0x288   :  { %v1504_v15 = vsel %vm1238_vm0, %v1484_v23, %v1496_v34  ;;  %v1506_v28 = vsel %vm1238_vm0, %v1486_v14, %v1498_v33  ;;  %v11292_v23 = vld [vmem:[#allocation33_spill] sm:$0xff]  ;;  %v11293_v14 = vld [vmem:[#allocation34_spill] sm:$0xff] }
 0x289   :  { %v6632_v36 = vmul.f32 -1.442695, %v1504_v15  ;;  %v1505_v31 = vsel %vm1238_vm0, %v1485_v8, %v1497_v6  ;;  %v1507_v30 = vsel %vm1238_vm0, %v1487_v19, %v1499_v32  ;;  %v6634_v17 = vmul.f32 -1.442695, %v1506_v28 }
 0x28a   :  { %v6633_v9 = vmul.f32 -1.442695, %v1505_v31 }
 0x28b   :  { %7111 = vpow2.f32 %v6632_v36 }
 0x28c   :  { %7113 = vpow2.f32 %v6633_v9 }
 0x28d   :  { %7115 = vtanh.f32 %v1507_v30 }
 0x28e   :  { %7117 = vpow2.f32 %v6634_v17 }
 0x295   :  { %v7112_v25 = vpop.eup %7111 }
 0x296   :  { %v1517_v5 = vadd.f32 1.0, %v7112_v25  ;;  %v7114_v4 = vpop.eup %7113  ;;  %v1705_v25 = vld [vmem:[#allocation2] sm:$0x30] }
 0x297   :  { %v1518_v35 = vadd.f32 1.0, %v7114_v4  ;;  %v7116_v37 = vpop.eup %7115 }
 0x298   :  { %7119 = vrcp.f32 %v1517_v5  ;;  %v7118_v24 = vpop.eup %7117  ;;  %v1707_v5 = vld [vmem:[#allocation2 + $0x10] sm:$0x30] }
 0x299   :  { %7121 = vrcp.f32 %v1518_v35  ;;  %v1519_v8 = vadd.f32 1.0, %v7118_v24  ;;  %v1708_v24 = vld [vmem:[#allocation2 + $0x18] sm:$0x30] }
 0x29b   :  { %7123 = vrcp.f32 %v1519_v8  ;;  %v1709_v8 = vld [vmem:[#allocation2 + $0x60] sm:$0xc] }
 0x2a2   :  { %v7120_v11 = vpop.eup %7119 }
 0x2a3   :  { %v1528_v18 = vmul.f32 %v7120_v11, %v7116_v37  ;;  %v7122_v10 = vpop.eup %7121  ;;  %v1706_v37 = vld [vmem:[#allocation2 + $0x8] sm:$0x30] }
 0x2a4   :  { %v1527_v27 = vmul.f32 %v7122_v10, %v8248_v21  ;;  %v11290_v21 = vld [vmem:[#allocation31_spill] sm:$0xff] }
 0x2a5   :  { %v7124_v20 = vpop.eup %7123 }
 0x2a6   :  { %v8324_v13 = vadd.f32 %v1528_v18, %v1527_v27 }
 0x2a8   :  { %7125 = vtanh.f32 %v8324_v13 }
 0x2b2   :  { %v7126_v12 = vpop.eup %7125 }
 0x2b3   :  { %v1531_v22 = vmul.f32 %v7126_v12, %v7124_v20  ;;  %v1711_v12 = vld [vmem:[#allocation2 + $0x70] sm:$0xc] }
 0x2b5   :  { %v1533_v26 = vrot.slane %v1531_v22, 6  ;;  %v1537_v29 = vpack.c.bf16 %v1531_v22, %v1531_v22 }
 0x2b7   :  { %1535 = vst [vmem:[#allocation3] ss:$28 sps:$4 sm:$0x3c] %v1533_v26   ;;  %1571 = vmatmul.mubr.bf16.vlgmr.msra.gmra.mrb[24].mxu0 %v1537_v29  ;;  %1612 = vmatmul.mubr.bf16.vlgmr.msra.gmra.mrb[24].mxu1 %v1537_v29 }
 0x2b8   :  { %1624 = vmatpush1.bf16.msra.mxu0 %v7993_v38  ;;  %1665 = vmatpush1.bf16.msra.mxu1 %v8000_v39  ;;  %v1621_v38 = vrot.slane %v1537_v29, 1  ;;  %v8362_v39 = vld [vmem:[%s10925_s2 + $0x4] ss:$16 sps:$4 sm:$0xff]  }
 0x2b9   :  { %1625 = vmatprep.subr.bf16.mxu0 %v8005_v40  ;;  %1666 = vmatprep.subr.bf16.mxu1 %v8011_v41  ;;  %v8368_v40 = vld [vmem:[%s10925_s2 + $0xc] ss:$16 sps:$4 sm:$0xff]  }
 0x2ba   :  { %1655 = vmatprep.mubr.bf16.mxu0 %v11231_v62  ;;  %1696 = vmatprep.mubr.bf16.mxu1 %v11231_v62  ;;  %v11264_v41 = vld [vmem:[#allocation5_spill] sm:$0xff] }
 0x2bc   :  { %1626 = vmatpush1.bf16.msra.mxu0 %v8019_v42  ;;  %1667 = vmatpush1.bf16.msra.mxu1 %v8026_v43  ;;  %v11265_v42 = vld [vmem:[#allocation6_spill] sm:$0xff]  ;;  %v11266_v43 = vld [vmem:[#allocation7_spill] sm:$0xff] }
 0x2bd   :  { %1627 = vmatprep.subr.bf16.mxu0 %v8031_v44  ;;  %1668 = vmatprep.subr.bf16.mxu1 %v8037_v45  ;;  %v11267_v44 = vld [vmem:[#allocation8_spill] sm:$0xff]  ;;  %v11268_v45 = vld [vmem:[#allocation9_spill] sm:$0xff] }
 0x2c0   :  { %1628 = vmatpush1.bf16.msra.mxu0 %v8045_v46  ;;  %1669 = vmatpush1.bf16.msra.mxu1 %v8052_v47  ;;  %v11269_v46 = vld [vmem:[#allocation10_spill] sm:$0xff]  ;;  %v11270_v47 = vld [vmem:[#allocation11_spill] sm:$0xff] }
 0x2c1   :  { %1629 = vmatprep.subr.bf16.mxu0 %v8057_v48  ;;  %1670 = vmatprep.subr.bf16.mxu1 %v8063_v49  ;;  %v11272_v48 = vld [vmem:[#allocation13_spill] sm:$0xff]  ;;  %v11273_v49 = vld [vmem:[#allocation14_spill] sm:$0xff] }
 0x2c4   :  { %1630 = vmatpush1.bf16.msra.mxu0 %v8069_v50  ;;  %1671 = vmatpush1.bf16.msra.mxu1 %v8076_v51  ;;  %v11274_v50 = vld [vmem:[#allocation15_spill] sm:$0xff]  ;;  %v11275_v51 = vld [vmem:[#allocation16_spill] sm:$0xff] }
 0x2c5   :  { %1631 = vmatprep.subr.bf16.mxu0 %v8081_v52  ;;  %1672 = vmatprep.subr.bf16.mxu1 %v8087_v53  ;;  %v11276_v52 = vld [vmem:[#allocation17_spill] sm:$0xff]  ;;  %v11277_v53 = vld [vmem:[#allocation18_spill] sm:$0xff] }
 0x2c8   :  { %1632 = vmatpush1.bf16.msra.mxu0 %v8093_v54  ;;  %1673 = vmatpush1.bf16.msra.mxu1 %v8100_v55  ;;  %v11278_v54 = vld [vmem:[#allocation19_spill] sm:$0xff]  ;;  %v11279_v55 = vld [vmem:[#allocation20_spill] sm:$0xff] }
 0x2c9   :  { %1633 = vmatprep.subr.bf16.mxu0 %v8105_v56  ;;  %1674 = vmatprep.subr.bf16.mxu1 %v8111_v57  ;;  %v11280_v56 = vld [vmem:[#allocation21_spill] sm:$0xff]  ;;  %v11281_v57 = vld [vmem:[#allocation22_spill] sm:$0xff] }
 0x2cc   :  { %1634 = vmatpush1.bf16.msra.mxu0 %v8117_v58  ;;  %1675 = vmatpush1.bf16.msra.mxu1 %v8124_v59  ;;  %v11282_v58 = vld [vmem:[#allocation23_spill] sm:$0xff]  ;;  %v11283_v59 = vld [vmem:[#allocation24_spill] sm:$0xff] }
 0x2cd   :  { %1635 = vmatprep.subr.bf16.mxu0 %v8129_v60  ;;  %1676 = vmatprep.subr.bf16.mxu1 %v8135_v61  ;;  %v11284_v60 = vld [vmem:[#allocation25_spill] sm:$0xff]  ;;  %v11285_v61 = vld [vmem:[#allocation26_spill] sm:$0xff] }
 0x2d0   :  { %1636 = vmatpush1.bf16.msra.mxu0 %v11233_v16  ;;  %1677 = vmatpush1.bf16.msra.mxu1 %v8148_v63  ;;  %v11286_v63 = vld [vmem:[#allocation27_spill] sm:$0xff]  ;;  %v11291_v16 = vld [vmem:[#allocation32_spill] sm:$0xff] }
 0x2d1   :  { %1637 = vmatprep.subr.bf16.mxu0 %v8153_v0  ;;  %1678 = vmatprep.subr.bf16.mxu1 %v8159_v1  ;;  %v11287_v0 = vld [vmem:[#allocation28_spill] sm:$0xff]  ;;  %v11288_v1 = vld [vmem:[#allocation29_spill] sm:$0xff] }
 0x2d4   :  { %1638 = vmatpush1.bf16.msra.mxu0 %v8165_v2  ;;  %1679 = vmatpush1.bf16.msra.mxu1 %v8172_v3  ;;  %v11263_v3 = vld [vmem:[#allocation4_spill] sm:$0xff]  ;;  %v11289_v2 = vld [vmem:[#allocation30_spill] sm:$0xff] }
 0x2d5   :  { %1791 = vmatprep.subr.bf16.mxu0 %v8362_v39  ;;  %1832 = vmatprep.subr.bf16.mxu1 %v8368_v40 }
 0x2d7   :  { %1656 = vmatmul.mubr.bf16.vlgmr.msra.gmra.mrb[28].mxu0 %v1621_v38  ;;  %1697 = vmatmul.mubr.bf16.vlgmr.msra.gmra.mrb[28].mxu1 %v1621_v38  ;;  %v1710_v38 = vld [vmem:[#allocation2 + $0x68] sm:$0xc] }
 0x2d8   :  { %1792 = vmatpush1.bf16.msra.mxu0 %v7798_v7  ;;  %1833 = vmatpush1.bf16.msra.mxu1 %v11263_v3  ;;  %v11271_v7 = vld [vmem:[#allocation12_spill] sm:$0xff] }
 0x2d9   :  { %1793 = vmatprep.subr.bf16.mxu0 %v11264_v41  ;;  %1834 = vmatprep.subr.bf16.mxu1 %v11265_v42 }
 0x2da   :  { %1823 = vmatprep.mubr.bf16.mxu0 %v11231_v62  ;;  %1864 = vmatprep.mubr.bf16.mxu1 %v11231_v62 }
 0x2dc   :  { %1794 = vmatpush1.bf16.msra.mxu0 %v11266_v43  ;;  %1835 = vmatpush1.bf16.msra.mxu1 %v11267_v44 }
 0x2dd   :  { %1795 = vmatprep.subr.bf16.mxu0 %v11268_v45  ;;  %1836 = vmatprep.subr.bf16.mxu1 %v11269_v46 }
 0x2e0   :  { %1796 = vmatpush1.bf16.msra.mxu0 %v11270_v47  ;;  %1837 = vmatpush1.bf16.msra.mxu1 %v11271_v7  ;;  %v1712_v7 = vld [vmem:[#allocation2 + $0x78] sm:$0xc] }
 0x2e1   :  { %1797 = vmatprep.subr.bf16.mxu0 %v11272_v48  ;;  %1838 = vmatprep.subr.bf16.mxu1 %v11273_v49 }
 0x2e4   :  { %1798 = vmatpush1.bf16.msra.mxu0 %v11274_v50  ;;  %1839 = vmatpush1.bf16.msra.mxu1 %v11275_v51 }
 0x2e5   :  { %1799 = vmatprep.subr.bf16.mxu0 %v11276_v52  ;;  %1840 = vmatprep.subr.bf16.mxu1 %v11277_v53 }
 0x2e8   :  { %1800 = vmatpush1.bf16.msra.mxu0 %v11278_v54  ;;  %1841 = vmatpush1.bf16.msra.mxu1 %v11279_v55 }
 0x2e9   :  { %1801 = vmatprep.subr.bf16.mxu0 %v11280_v56  ;;  %1842 = vmatprep.subr.bf16.mxu1 %v11281_v57 }
 0x2ec   :  { %1802 = vmatpush1.bf16.msra.mxu0 %v11282_v58  ;;  %1843 = vmatpush1.bf16.msra.mxu1 %v11283_v59 }
 0x2ed   :  { %1803 = vmatprep.subr.bf16.mxu0 %v11284_v60  ;;  %1844 = vmatprep.subr.bf16.mxu1 %v11285_v61 }
 0x2f0   :  { %1804 = vmatpush1.bf16.msra.mxu0 %v11286_v63  ;;  %1845 = vmatpush1.bf16.msra.mxu1 %v11287_v0 }
 0x2f1   :  { %1805 = vmatprep.subr.bf16.mxu0 %v11288_v1  ;;  %1846 = vmatprep.subr.bf16.mxu1 %v11289_v2 }
 0x2f4   :  { %1806 = vmatpush1.bf16.msra.mxu0 %v11290_v21  ;;  %1847 = vmatpush1.bf16.msra.mxu1 %v11291_v16 }
 0x2f5   :  { %1876 = vmatprep.subr.bf16.mxu0 %v11292_v23  ;;  %1917 = vmatprep.subr.bf16.mxu1 %v11293_v14 }
 0x38a   :  { %v1572_v34 = vpop.f32.mrb[24].mxu0  ;;  %v1613_v33 = vpop.f32.mrb[24].mxu1 }
 0x38b   :  { %v1574_v19 = vpop.f32.mrb[25].mxu0  ;;  %v1615_v6 = vpop.f32.mrb[25].mxu1  ;;  %v1717_v31 = vrot.slane %v1572_v34, 4  ;;  %v1719_v30 = vrot.slane %v1613_v33, 4 }
 0x38c   :  { %v1576_v32 = vpop.f32.mrb[26].mxu0  ;;  %v1617_v15 = vpop.f32.mrb[26].mxu1  ;;  %v1718_v9 = vrot.slane %v1574_v19, 4  ;;  %v1720_v17 = vrot.slane %v1615_v6, 4 }
 0x38d   :  { %v1577_v28 = vpop.f32.mrb[27].mxu0  ;;  %v1618_v36 = vpop.f32.mrb[27].mxu1  ;;  %v1725_v4 = vadd.f32 %v1717_v31, %v1705_v25  ;;  %v1727_v35 = vadd.f32 %v1719_v30, %v1707_v5  ;;  %v8426_v31 = vld [vmem:[%s10925_s2 + $0x108] ss:$16 sps:$4 sm:$0xff]   ;;  %v8432_v30 = vld [vmem:[%s10925_s2 + $0x124] ss:$16 sps:$4 sm:$0xff]  }
 0x38e   :  { %v1726_v11 = vadd.f32 %v1718_v9, %v1706_v37  ;;  %v1728_v18 = vadd.f32 %v1720_v17, %v1708_v24  ;;  %v8438_v9 = vld [vmem:[%s10925_s2 + $0x12c] ss:$16 sps:$4 sm:$0xff]   ;;  %v8446_v17 = vld [vmem:[%s10925_s2 + $0x120] ss:$16 sps:$4 sm:$0xff]   ;;  %v8452_v25 = vld [vmem:[%s10925_s2 + $0x128] ss:$16 sps:$4 sm:$0xff]  }
 0x38f   :  { %v1749_v44 = vrot.slane %v1725_v4, 4  ;;  %v1751_v45 = vrot.slane %v1727_v35, 4  ;;  %v8458_v5 = vld [vmem:[%s10925_s2 + $0x144] ss:$16 sps:$4 sm:$0xff]   ;;  %v8464_v4 = vld [vmem:[%s10925_s2 + $0x14c] ss:$16 sps:$4 sm:$0xff]  }
 0x390   :  { %v1750_v50 = vrot.slane %v1726_v11, 4  ;;  %v1752_v51 = vrot.slane %v1728_v18, 4  ;;  %v8470_v35 = vld [vmem:[%s10925_s2 + $0x140] ss:$16 sps:$4 sm:$0xff]   ;;  %v8476_v37 = vld [vmem:[%s10925_s2 + $0x148] ss:$16 sps:$4 sm:$0xff]  }
 0x391   :  { %v8482_v24 = vld [vmem:[%s10925_s2 + $0x164] ss:$16 sps:$4 sm:$0xff]   ;;  %v8488_v11 = vld [vmem:[%s10925_s2 + $0x16c] ss:$16 sps:$4 sm:$0xff]   ;;  %v8494_v18 = vld [vmem:[%s10925_s2 + $0x160] ss:$16 sps:$4 sm:$0xff]  }
 0x3aa   :  { %v1657_v10 = vpop.f32.mrb[28].mxu0  ;;  %v1698_v27 = vpop.f32.mrb[28].mxu1 }
 0x3ab   :  { %v1733_v20 = vrot.slane %v1657_v10, 6  ;;  %v1735_v22 = vrot.slane %v1698_v27, 6  ;;  %v1659_v26 = vpop.f32.mrb[29].mxu0  ;;  %v1700_v29 = vpop.f32.mrb[29].mxu1  ;;  %v8500_v10 = vld [vmem:[%s10925_s2 + $0x168] ss:$16 sps:$4 sm:$0xff]  }
 0x3ac   :  { %v1734_v3 = vrot.slane %v1659_v26, 6  ;;  %v1736_v41 = vrot.slane %v1700_v29, 6  ;;  %v1661_v42 = vpop.f32.mrb[30].mxu0  ;;  %v1702_v43 = vpop.f32.mrb[30].mxu1  ;;  %v8512_v27 = vld [vmem:[%s10925_s2 + $0x18c] ss:$16 sps:$4 sm:$0xff]  }
 0x3ad   :  { %v1741_v46 = vadd.f32 %v1733_v20, %v1709_v8  ;;  %v1743_v47 = vadd.f32 %v1735_v22, %v1711_v12  ;;  %v1662_v48 = vpop.f32.mrb[31].mxu0  ;;  %v1703_v49 = vpop.f32.mrb[31].mxu1  ;;  %v8506_v8 = vld [vmem:[%s10925_s2 + $0x184] ss:$16 sps:$4 sm:$0xff]   ;;  %v8518_v20 = vld [vmem:[%s10925_s2 + $0x180] ss:$16 sps:$4 sm:$0xff]  }
 0x3ae   :  { %v1742_v52 = vadd.f32 %v1734_v3, %v1710_v38  ;;  %v1744_v53 = vadd.f32 %v1736_v41, %v1712_v7  ;;  %v8524_v12 = vld [vmem:[%s10925_s2 + $0x188] ss:$16 sps:$4 sm:$0xff]   ;;  %v8530_v22 = vld [vmem:[%s10925_s2 + $0x1a4] ss:$16 sps:$4 sm:$0xff]   ;;  %v8536_v26 = vld [vmem:[%s10925_s2 + $0x1ac] ss:$16 sps:$4 sm:$0xff]  }
 0x3af   :  { %v1757_v54 = vsel %vm1238_vm0, %v1749_v44, %v1741_v46  ;;  %v1759_v55 = vsel %vm1238_vm0, %v1751_v45, %v1743_v47  ;;  %v8542_v29 = vld [vmem:[%s10925_s2 + $0x1a0] ss:$16 sps:$4 sm:$0xff]   ;;  %v8548_v38 = vld [vmem:[%s10925_s2 + $0x1a8] ss:$16 sps:$4 sm:$0xff]   ;;  %v8554_v3 = vld [vmem:[%s10925_s2 + $0x1c4] ss:$16 sps:$4 sm:$0xff]  }
 0x3b0   :  { %v6635_v56 = vmul.f32 -1.442695, %v1757_v54  ;;  %v1758_v57 = vsel %vm1238_vm0, %v1750_v50, %v1742_v52  ;;  %v1760_v58 = vsel %vm1238_vm0, %v1752_v51, %v1744_v53  ;;  %v6637_v60 = vmul.f32 -1.442695, %v1759_v55  ;;  %v8560_v41 = vld [vmem:[%s10925_s2 + $0x1cc] ss:$16 sps:$4 sm:$0xff]  }
 0x3b1   :  { %v6636_v59 = vmul.f32 -1.442695, %v1758_v57  ;;  %v8566_v42 = vld [vmem:[%s10925_s2 + $0x1c0] ss:$16 sps:$4 sm:$0xff]   ;;  %v8572_v43 = vld [vmem:[%s10925_s2 + $0x1c8] ss:$16 sps:$4 sm:$0xff]  }
 0x3b2   :  { %7127 = vpow2.f32 %v6635_v56  ;;  %v8578_v44 = vld [vmem:[%s10925_s2 + $0x1e4] ss:$16 sps:$4 sm:$0xff]   ;;  %v8584_v45 = vld [vmem:[%s10925_s2 + $0x1ec] ss:$16 sps:$4 sm:$0xff]   ;;  %v8590_v46 = vld [vmem:[%s10925_s2 + $0x1e0] ss:$16 sps:$4 sm:$0xff]  }
 0x3b3   :  { %7129 = vpow2.f32 %v6636_v59  ;;  %v8596_v47 = vld [vmem:[%s10925_s2 + $0x1e8] ss:$16 sps:$4 sm:$0xff]   ;;  %v8605_v48 = vld [vmem:[%s10925_s2] ss:$16 sps:$4 sm:$0xff]   ;;  %v8617_v50 = vld [vmem:[%s10925_s2 + $0x24] ss:$16 sps:$4 sm:$0xff]  }
 0x3b4   :  { %7131 = vtanh.f32 %v1760_v58  ;;  %11294 = vst [vmem:[#allocation35_spill] sm:$0xff] %v8605_v48  ;;  %v8611_v49 = vld [vmem:[%s10925_s2 + $0x8] ss:$16 sps:$4 sm:$0xff]   ;;  %11296 = vst [vmem:[#allocation5_spill] sm:$0xff] %v8617_v50  ;;  %v8623_v51 = vld [vmem:[%s10925_s2 + $0x2c] ss:$16 sps:$4 sm:$0xff]  }
 0x3b5   :  { %7133 = vpow2.f32 %v6637_v60  ;;  %11295 = vst [vmem:[#allocation4_spill] sm:$0xff] %v8611_v49  ;;  %11297 = vst [vmem:[#allocation6_spill] sm:$0xff] %v8623_v51  ;;  %v8631_v52 = vld [vmem:[%s10925_s2 + $0x20] ss:$16 sps:$4 sm:$0xff]   ;;  %v8637_v53 = vld [vmem:[%s10925_s2 + $0x28] ss:$16 sps:$4 sm:$0xff]  }
 0x3b6   :  { %11298 = vst [vmem:[#allocation7_spill] sm:$0xff] %v8631_v52  ;;  %11299 = vst [vmem:[#allocation8_spill] sm:$0xff] %v8637_v53  ;;  %v8643_v54 = vld [vmem:[%s10925_s2 + $0x44] ss:$16 sps:$4 sm:$0xff]   ;;  %v8649_v55 = vld [vmem:[%s10925_s2 + $0x4c] ss:$16 sps:$4 sm:$0xff]  }
 0x3b7   :  { %11300 = vst [vmem:[#allocation9_spill] sm:$0xff] %v8643_v54  ;;  %11301 = vst [vmem:[#allocation10_spill] sm:$0xff] %v8649_v55  ;;  %v8655_v56 = vld [vmem:[%s10925_s2 + $0x40] ss:$16 sps:$4 sm:$0xff]   ;;  %v8661_v57 = vld [vmem:[%s10925_s2 + $0x48] ss:$16 sps:$4 sm:$0xff]  }
 0x3b8   :  { %11302 = vst [vmem:[#allocation11_spill] sm:$0xff] %v8655_v56  ;;  %11303 = vst [vmem:[#allocation12_spill] sm:$0xff] %v8661_v57  ;;  %v8667_v58 = vld [vmem:[%s10925_s2 + $0x64] ss:$16 sps:$4 sm:$0xff]   ;;  %v8673_v59 = vld [vmem:[%s10925_s2 + $0x6c] ss:$16 sps:$4 sm:$0xff]  }
 0x3b9   :  { %11304 = vst [vmem:[#allocation13_spill] sm:$0xff] %v8667_v58  ;;  %11305 = vst [vmem:[#allocation14_spill] sm:$0xff] %v8673_v59  ;;  %v8679_v60 = vld [vmem:[%s10925_s2 + $0x60] ss:$16 sps:$4 sm:$0xff]  }
 0x3ba   :  { %11306 = vst [vmem:[#allocation15_spill] sm:$0xff] %v8679_v60 }
 0x3bc   :  { %v7128_v61 = vpop.eup %7127 }
 0x3bd   :  { %v1770_v63 = vadd.f32 1.0, %v7128_v61  ;;  %v7130_v0 = vpop.eup %7129  ;;  %v8685_v61 = vld [vmem:[%s10925_s2 + $0x68] ss:$16 sps:$4 sm:$0xff]  }
 0x3be   :  { %v1771_v1 = vadd.f32 1.0, %v7130_v0  ;;  %v7132_v2 = vpop.eup %7131  ;;  %11307 = vst [vmem:[#allocation16_spill] sm:$0xff] %v8685_v61  ;;  %v8697_v0 = vld [vmem:[%s10925_s2 + $0x8c] ss:$16 sps:$4 sm:$0xff]  }
 0x3bf   :  { %7135 = vrcp.f32 %v1770_v63  ;;  %v7134_v21 = vpop.eup %7133  ;;  %v8691_v63 = vld [vmem:[%s10925_s2 + $0x84] ss:$16 sps:$4 sm:$0xff]   ;;  %11309 = vst [vmem:[#allocation18_spill] sm:$0xff] %v8697_v0 }
 0x3c0   :  { %7137 = vrcp.f32 %v1771_v1  ;;  %v1772_v34 = vadd.f32 1.0, %v7134_v21  ;;  %11308 = vst [vmem:[#allocation17_spill] sm:$0xff] %v8691_v63  ;;  %v8703_v1 = vld [vmem:[%s10925_s2 + $0x80] ss:$16 sps:$4 sm:$0xff]   ;;  %v8715_v21 = vld [vmem:[%s10925_s2 + $0xa4] ss:$16 sps:$4 sm:$0xff]  }
 0x3c1   :  { %11310 = vst [vmem:[#allocation19_spill] sm:$0xff] %v8703_v1  ;;  %11312 = vst [vmem:[#allocation21_spill] sm:$0xff] %v8715_v21 }
 0x3c2   :  { %7139 = vrcp.f32 %v1772_v34  ;;  %v8739_v34 = vld [vmem:[%s10925_s2 + $0xc4] ss:$16 sps:$4 sm:$0xff]  }
 0x3c3   :  { %11316 = vst [vmem:[#allocation25_spill] sm:$0xff] %v8739_v34 }
 0x3c9   :  { %v7136_v16 = vpop.eup %7135 }
 0x3ca   :  { %v1781_v23 = vmul.f32 %v7136_v16, %v7132_v2  ;;  %v7138_v14 = vpop.eup %7137  ;;  %v8709_v2 = vld [vmem:[%s10925_s2 + $0x88] ss:$16 sps:$4 sm:$0xff]   ;;  %v8721_v16 = vld [vmem:[%s10925_s2 + $0xac] ss:$16 sps:$4 sm:$0xff]  }
 0x3cb   :  { %v1780_v33 = vmul.f32 %v7138_v14, %v8324_v13  ;;  %v8420_v13 = vld [vmem:[%s10925_s2 + $0x100] ss:$16 sps:$4 sm:$0xff]   ;;  %11311 = vst [vmem:[#allocation20_spill] sm:$0xff] %v8709_v2  ;;  %11313 = vst [vmem:[#allocation22_spill] sm:$0xff] %v8721_v16  ;;  %v8733_v14 = vld [vmem:[%s10925_s2 + $0xa8] ss:$16 sps:$4 sm:$0xff]  }
 0x3cc   :  { %v7140_v6 = vpop.eup %7139  ;;  %11315 = vst [vmem:[#allocation24_spill] sm:$0xff] %v8733_v14 }
 0x3cd   :  { %v8410_v19 = vadd.f32 %v1781_v23, %v1780_v33  ;;  %v8727_v23 = vld [vmem:[%s10925_s2 + $0xa0] ss:$16 sps:$4 sm:$0xff]   ;;  %v8745_v33 = vld [vmem:[%s10925_s2 + $0xcc] ss:$16 sps:$4 sm:$0xff]  }
 0x3ce   :  { %11314 = vst [vmem:[#allocation23_spill] sm:$0xff] %v8727_v23  ;;  %11317 = vst [vmem:[#allocation26_spill] sm:$0xff] %v8745_v33 }
 0x3cf   :  { %7141 = vtanh.f32 %v8410_v19 }
 0x3d9   :  { %v7142_v32 = vpop.eup %7141 }
 0x3da   :  { %v1784_v15 = vmul.f32 %v7142_v32, %v7140_v6  ;;  %v8751_v6 = vld [vmem:[%s10925_s2 + $0xc0] ss:$16 sps:$4 sm:$0xff]   ;;  %v8757_v32 = vld [vmem:[%s10925_s2 + $0xc8] ss:$16 sps:$4 sm:$0xff]  }
 0x3db   :  { %11318 = vst [vmem:[#allocation27_spill] sm:$0xff] %v8751_v6  ;;  %11319 = vst [vmem:[#allocation28_spill] sm:$0xff] %v8757_v32 }
 0x3dc   :  { %v1786_v28 = vrot.slane %v1784_v15, 4  ;;  %1789 = vst [vmem:[#allocation3 + $0x18] sm:$0xc] %v1784_v15  ;;  %v8413_v36 = vpack.c.bf16 %v1784_v15, %v1784_v15  ;;  %v8763_v15 = vld [vmem:[%s10925_s2 + $0xe4] ss:$16 sps:$4 sm:$0xff]  }
 0x3dd   :  { %11320 = vst [vmem:[#allocation29_spill] sm:$0xff] %v8763_v15 }
 0x3de   :  { %1788 = vst [vmem:[#allocation3] sm:$0x30] %v1786_v28  ;;  %1824 = vmatmul.mubr.bf16.vlgmr.msra.gmra.mrb[32].mxu0 %v8413_v36  ;;  %1865 = vmatmul.mubr.bf16.vlgmr.msra.gmra.mrb[32].mxu1 %v8413_v36  ;;  %v1874_v7 = vrot.slane %v8413_v36, 1  ;;  %v8769_v28 = vld [vmem:[%s10925_s2 + $0xec] ss:$16 sps:$4 sm:$0xff]  }
 0x3df   :  { %1877 = vmatpush1.bf16.msra.mxu0 %v8420_v13  ;;  %1918 = vmatpush1.bf16.msra.mxu1 %v8426_v31  ;;  %11321 = vst [vmem:[#allocation30_spill] sm:$0xff] %v8769_v28  ;;  %v8775_v36 = vld [vmem:[%s10925_s2 + $0xe0] ss:$16 sps:$4 sm:$0xff]  }
 0x3e0   :  { %1878 = vmatprep.subr.bf16.mxu0 %v8432_v30  ;;  %1919 = vmatprep.subr.bf16.mxu1 %v8438_v9  ;;  %11322 = vst [vmem:[#allocation31_spill] sm:$0xff] %v8775_v36 }
 0x3e1   :  { %1908 = vmatprep.mubr.bf16.mxu0 %v11231_v62  ;;  %1949 = vmatprep.mubr.bf16.mxu1 %v11231_v62 }
 0x3e3   :  { %1879 = vmatpush1.bf16.msra.mxu0 %v8446_v17  ;;  %1920 = vmatpush1.bf16.msra.mxu1 %v8452_v25 }
 0x3e4   :  { %1880 = vmatprep.subr.bf16.mxu0 %v8458_v5  ;;  %1921 = vmatprep.subr.bf16.mxu1 %v8464_v4 }
 0x3e7   :  { %1881 = vmatpush1.bf16.msra.mxu0 %v8470_v35  ;;  %1922 = vmatpush1.bf16.msra.mxu1 %v8476_v37 }
 0x3e8   :  { %1882 = vmatprep.subr.bf16.mxu0 %v8482_v24  ;;  %1923 = vmatprep.subr.bf16.mxu1 %v8488_v11 }
 0x3eb   :  { %1883 = vmatpush1.bf16.msra.mxu0 %v8494_v18  ;;  %1924 = vmatpush1.bf16.msra.mxu1 %v8500_v10 }
 0x3ec   :  { %1884 = vmatprep.subr.bf16.mxu0 %v8506_v8  ;;  %1925 = vmatprep.subr.bf16.mxu1 %v8512_v27 }
 0x3ef   :  { %1885 = vmatpush1.bf16.msra.mxu0 %v8518_v20  ;;  %1926 = vmatpush1.bf16.msra.mxu1 %v8524_v12 }
 0x3f0   :  { %1886 = vmatprep.subr.bf16.mxu0 %v8530_v22  ;;  %1927 = vmatprep.subr.bf16.mxu1 %v8536_v26 }
 0x3f3   :  { %1887 = vmatpush1.bf16.msra.mxu0 %v8542_v29  ;;  %1928 = vmatpush1.bf16.msra.mxu1 %v8548_v38 }
 0x3f4   :  { %1888 = vmatprep.subr.bf16.mxu0 %v8554_v3  ;;  %1929 = vmatprep.subr.bf16.mxu1 %v8560_v41 }
 0x3f7   :  { %1889 = vmatpush1.bf16.msra.mxu0 %v8566_v42  ;;  %1930 = vmatpush1.bf16.msra.mxu1 %v8572_v43 }
 0x3f8   :  { %1890 = vmatprep.subr.bf16.mxu0 %v8578_v44  ;;  %1931 = vmatprep.subr.bf16.mxu1 %v8584_v45 }
 0x3fb   :  { %1891 = vmatpush1.bf16.msra.mxu0 %v8590_v46  ;;  %1932 = vmatpush1.bf16.msra.mxu1 %v8596_v47 }
 0x3fc   :  { %2044 = vmatprep.subr.bf16.mxu0 %v8362_v39  ;;  %2085 = vmatprep.subr.bf16.mxu1 %v8368_v40 }
 0x3fe   :  { %1909 = vmatmul.mubr.bf16.vlgmr.msra.gmra.mrb[36].mxu0 %v1874_v7  ;;  %1950 = vmatmul.mubr.bf16.vlgmr.msra.gmra.mrb[36].mxu1 %v1874_v7  ;;  %v8781_v7 = vld [vmem:[%s10925_s2 + $0xe8] ss:$16 sps:$4 sm:$0xff]  }
 0x3ff   :  { %2045 = vmatpush1.bf16.msra.mxu0 %v8605_v48  ;;  %2086 = vmatpush1.bf16.msra.mxu1 %v8611_v49  ;;  %11323 = vst [vmem:[#allocation32_spill] sm:$0xff] %v8781_v7 }
 0x400   :  { %2046 = vmatprep.subr.bf16.mxu0 %v8617_v50  ;;  %2087 = vmatprep.subr.bf16.mxu1 %v8623_v51 }
 0x401   :  { %2076 = vmatprep.mubr.bf16.mxu0 %v11231_v62  ;;  %2117 = vmatprep.mubr.bf16.mxu1 %v11231_v62 }
 0x403   :  { %2047 = vmatpush1.bf16.msra.mxu0 %v8631_v52  ;;  %2088 = vmatpush1.bf16.msra.mxu1 %v8637_v53 }
 0x404   :  { %2048 = vmatprep.subr.bf16.mxu0 %v8643_v54  ;;  %2089 = vmatprep.subr.bf16.mxu1 %v8649_v55  ;;  %v1964_v54 = vld [vmem:[#allocation2 + $0x70] sm:$0x3] }
 0x407   :  { %2049 = vmatpush1.bf16.msra.mxu0 %v8655_v56  ;;  %2090 = vmatpush1.bf16.msra.mxu1 %v8661_v57  ;;  %v1962_v56 = vld [vmem:[#allocation2 + $0x60] sm:$0x3] }
 0x408   :  { %2050 = vmatprep.subr.bf16.mxu0 %v8667_v58  ;;  %2091 = vmatprep.subr.bf16.mxu1 %v8673_v59  ;;  %v1961_v59 = vld [vmem:[#allocation2 + $0x18] sm:$0xc0] }
 0x40b   :  { %2051 = vmatpush1.bf16.msra.mxu0 %v8679_v60  ;;  %2092 = vmatpush1.bf16.msra.mxu1 %v8685_v61  ;;  %v1959_v60 = vld [vmem:[#allocation2 + $0x8] sm:$0xc0] }
 0x40c   :  { %2052 = vmatprep.subr.bf16.mxu0 %v8691_v63  ;;  %2093 = vmatprep.subr.bf16.mxu1 %v8697_v0  ;;  %v1960_v0 = vld [vmem:[#allocation2 + $0x10] sm:$0xc0] }
 0x40f   :  { %2053 = vmatpush1.bf16.msra.mxu0 %v8703_v1  ;;  %2094 = vmatpush1.bf16.msra.mxu1 %v8709_v2 }
 0x410   :  { %2054 = vmatprep.subr.bf16.mxu0 %v8715_v21  ;;  %2095 = vmatprep.subr.bf16.mxu1 %v8721_v16 }
 0x413   :  { %2055 = vmatpush1.bf16.msra.mxu0 %v8727_v23  ;;  %2096 = vmatpush1.bf16.msra.mxu1 %v8733_v14 }
 0x414   :  { %2056 = vmatprep.subr.bf16.mxu0 %v8739_v34  ;;  %2097 = vmatprep.subr.bf16.mxu1 %v8745_v33 }
 0x417   :  { %2057 = vmatpush1.bf16.msra.mxu0 %v8751_v6  ;;  %2098 = vmatpush1.bf16.msra.mxu1 %v8757_v32 }
 0x418   :  { %2058 = vmatprep.subr.bf16.mxu0 %v8763_v15  ;;  %2099 = vmatprep.subr.bf16.mxu1 %v8769_v28  ;;  %v8787_v15 = vld [vmem:[%s10925_s2 + $0x104] ss:$16 sps:$4 sm:$0xff]   ;;  %v8793_v28 = vld [vmem:[%s10925_s2 + $0x10c] ss:$16 sps:$4 sm:$0xff]  }
 0x419   :  { %11324 = vst [vmem:[#allocation33_spill] sm:$0xff] %v8787_v15  ;;  %11325 = vst [vmem:[#allocation34_spill] sm:$0xff] %v8793_v28 }
 0x41b   :  { %2059 = vmatpush1.bf16.msra.mxu0 %v8775_v36  ;;  %2100 = vmatpush1.bf16.msra.mxu1 %v8781_v7 }
 0x41c   :  { %2129 = vmatprep.subr.bf16.mxu0 %v8787_v15  ;;  %2170 = vmatprep.subr.bf16.mxu1 %v8793_v28  ;;  %v1958_v15 = vld [vmem:[#allocation2] sm:$0xc0] }
 0x4b1   :  { %v1825_v36 = vpop.f32.mrb[32].mxu0  ;;  %v1866_v32 = vpop.f32.mrb[32].mxu1 }
 0x4b2   :  { %v1827_v6 = vpop.f32.mrb[33].mxu0  ;;  %v1868_v33 = vpop.f32.mrb[33].mxu1  ;;  %v1970_v16 = vrot.slane %v1825_v36, 2  ;;  %v1972_v21 = vrot.slane %v1866_v32, 2  ;;  %v1965_v32 = vld [vmem:[#allocation2 + $0x78] sm:$0x3] }
 0x4b3   :  { %v1829_v34 = vpop.f32.mrb[34].mxu0  ;;  %v1870_v7 = vpop.f32.mrb[34].mxu1  ;;  %v1971_v2 = vrot.slane %v1827_v6, 2  ;;  %v1973_v1 = vrot.slane %v1868_v33, 2 }
 0x4b4   :  { %v1830_v14 = vpop.f32.mrb[35].mxu0  ;;  %v1871_v23 = vpop.f32.mrb[35].mxu1  ;;  %v1978_v63 = vadd.f32 %v1970_v16, %v1958_v15  ;;  %v1980_v61 = vadd.f32 %v1972_v21, %v1960_v0 }
 0x4b5   :  { %v1979_v58 = vadd.f32 %v1971_v2, %v1959_v60  ;;  %v1981_v28 = vadd.f32 %v1973_v1, %v1961_v59  ;;  %v1963_v23 = vld [vmem:[#allocation2 + $0x68] sm:$0x3] }
 0x4b6   :  { %v1990_v16 = vrot.slane %v1978_v63, 6  ;;  %v1992_v0 = vrot.slane %v1980_v61, 6 }
 0x4b7   :  { %v1991_v1 = vrot.slane %v1979_v58, 6  ;;  %v1993_v2 = vrot.slane %v1981_v28, 6 }
 0x4d1   :  { %v1910_v57 = vpop.f32.mrb[36].mxu0  ;;  %v1951_v55 = vpop.f32.mrb[36].mxu1 }
 0x4d2   :  { %v1982_v34 = vadd.f32 %v1962_v56, %v1910_v57  ;;  %v1984_v7 = vadd.f32 %v1964_v54, %v1951_v55  ;;  %v1912_v14 = vpop.f32.mrb[37].mxu0  ;;  %v1953_v36 = vpop.f32.mrb[37].mxu1 }
 0x4d3   :  { %v1983_v6 = vadd.f32 %v1963_v23, %v1912_v14  ;;  %v1985_v33 = vadd.f32 %v1965_v32, %v1953_v36  ;;  %v1914_v53 = vpop.f32.mrb[38].mxu0  ;;  %v1955_v52 = vpop.f32.mrb[38].mxu1 }
 0x4d4   :  { %v2002_v21 = vrot.slane %v1982_v34, 6  ;;  %v2004_v15 = vrot.slane %v1984_v7, 6  ;;  %v1915_v60 = vpop.f32.mrb[39].mxu0  ;;  %v1956_v59 = vpop.f32.mrb[39].mxu1 }
 0x4d5   :  { %v2003_v51 = vrot.slane %v1983_v6, 6  ;;  %v2005_v50 = vrot.slane %v1985_v33, 6  ;;  %v11326_v60 = vld [vmem:[#allocation5_spill] sm:$0xff]  ;;  %v11327_v59 = vld [vmem:[#allocation6_spill] sm:$0xff] }
 0x4d6   :  { %v2010_v54 = vsel %vm1238_vm0, %v1990_v16, %v2002_v21  ;;  %v2012_v55 = vsel %vm1238_vm0, %v1992_v0, %v2004_v15 }
 0x4d7   :  { %v6638_v56 = vmul.f32 -1.442695, %v2010_v54  ;;  %v2011_v57 = vsel %vm1238_vm0, %v1991_v1, %v2003_v51  ;;  %v2013_v53 = vsel %vm1238_vm0, %v1993_v2, %v2005_v50  ;;  %v6640_v61 = vmul.f32 -1.442695, %v2012_v55  ;;  %v11328_v1 = vld [vmem:[#allocation7_spill] sm:$0xff]  ;;  %v11329_v2 = vld [vmem:[#allocation8_spill] sm:$0xff] }
 0x4d8   :  { %v6639_v52 = vmul.f32 -1.442695, %v2011_v57  ;;  %v11330_v54 = vld [vmem:[#allocation9_spill] sm:$0xff]  ;;  %v11331_v55 = vld [vmem:[#allocation10_spill] sm:$0xff]  ;;  %v11333_v57 = vld [vmem:[#allocation12_spill] sm:$0xff] }
 0x4d9   :  { %7143 = vpow2.f32 %v6638_v56  ;;  %v11332_v56 = vld [vmem:[#allocation11_spill] sm:$0xff] }
 0x4da   :  { %7145 = vpow2.f32 %v6639_v52  ;;  %v11335_v52 = vld [vmem:[#allocation14_spill] sm:$0xff] }
 0x4db   :  { %7147 = vtanh.f32 %v2013_v53  ;;  %v11334_v53 = vld [vmem:[#allocation13_spill] sm:$0xff] }
 0x4dc   :  { %7149 = vpow2.f32 %v6640_v61  ;;  %v11336_v61 = vld [vmem:[#allocation15_spill] sm:$0xff] }
 0x4e3   :  { %v7144_v63 = vpop.eup %7143 }
 0x4e4   :  { %v2023_v34 = vadd.f32 1.0, %v7144_v63  ;;  %v7146_v58 = vpop.eup %7145  ;;  %v11337_v63 = vld [vmem:[#allocation16_spill] sm:$0xff] }
 0x4e5   :  { %v2024_v28 = vadd.f32 1.0, %v7146_v58  ;;  %v7148_v7 = vpop.eup %7147  ;;  %v11339_v58 = vld [vmem:[#allocation18_spill] sm:$0xff] }
 0x4e6   :  { %7151 = vrcp.f32 %v2023_v34  ;;  %v7150_v14 = vpop.eup %7149  ;;  %v11338_v34 = vld [vmem:[#allocation17_spill] sm:$0xff] }
 0x4e7   :  { %7153 = vrcp.f32 %v2024_v28  ;;  %v2025_v51 = vadd.f32 1.0, %v7150_v14  ;;  %v11340_v28 = vld [vmem:[#allocation19_spill] sm:$0xff]  ;;  %v11342_v14 = vld [vmem:[#allocation21_spill] sm:$0xff] }
 0x4e9   :  { %7155 = vrcp.f32 %v2025_v51  ;;  %v11346_v51 = vld [vmem:[#allocation25_spill] sm:$0xff] }
 0x4f0   :  { %v7152_v23 = vpop.eup %7151 }
 0x4f1   :  { %v2034_v36 = vmul.f32 %v7152_v23, %v7148_v7  ;;  %v7154_v32 = vpop.eup %7153  ;;  %v11341_v7 = vld [vmem:[#allocation20_spill] sm:$0xff]  ;;  %v11343_v23 = vld [vmem:[#allocation22_spill] sm:$0xff] }
 0x4f2   :  { %v2033_v50 = vmul.f32 %v7154_v32, %v8410_v19  ;;  %v11345_v32 = vld [vmem:[#allocation24_spill] sm:$0xff] }
 0x4f3   :  { %v7156_v33 = vpop.eup %7155 }
 0x4f4   :  { %v8801_v6 = vadd.f32 %v2034_v36, %v2033_v50  ;;  %v11344_v36 = vld [vmem:[#allocation23_spill] sm:$0xff]  ;;  %v11347_v50 = vld [vmem:[#allocation26_spill] sm:$0xff] }
 0x4f6   :  { %7157 = vtanh.f32 %v8801_v6 }
 0x500   :  { %v7158_v16 = vpop.eup %7157 }
 0x501   :  { %v2037_v0 = vmul.f32 %v7158_v16, %v7156_v33  ;;  %v11348_v33 = vld [vmem:[#allocation27_spill] sm:$0xff]  ;;  %v11349_v16 = vld [vmem:[#allocation28_spill] sm:$0xff] }
 0x503   :  { %v2039_v21 = vrot.slane %v2037_v0, 2  ;;  %v2043_v15 = vpack.c.bf16 %v2037_v0, %v2037_v0  ;;  %v11350_v0 = vld [vmem:[#allocation29_spill] sm:$0xff] }
 0x505   :  { %2041 = vst [vmem:[#allocation3 + $0x18] ss:$-20 sps:$4 sm:$0xc3] %v2039_v21   ;;  %2077 = vmatmul.mubr.bf16.vlgmr.msra.gmra.mrb[40].mxu0 %v2043_v15  ;;  %2118 = vmatmul.mubr.bf16.vlgmr.msra.gmra.mrb[40].mxu1 %v2043_v15  ;;  %v2127_v19 = vrot.slane %v2043_v15, 1  ;;  %v11351_v21 = vld [vmem:[#allocation30_spill] sm:$0xff]  ;;  %v11352_v15 = vld [vmem:[#allocation31_spill] sm:$0xff] }
 0x506   :  { %2130 = vmatpush1.bf16.msra.mxu0 %v8420_v13  ;;  %2171 = vmatpush1.bf16.msra.mxu1 %v8426_v31 }
 0x507   :  { %2131 = vmatprep.subr.bf16.mxu0 %v8432_v30  ;;  %2172 = vmatprep.subr.bf16.mxu1 %v8438_v9 }
 0x508   :  { %2161 = vmatprep.mubr.bf16.mxu0 %v11231_v62  ;;  %2202 = vmatprep.mubr.bf16.mxu1 %v11231_v62 }
 0x50a   :  { %2132 = vmatpush1.bf16.msra.mxu0 %v8446_v17  ;;  %2173 = vmatpush1.bf16.msra.mxu1 %v8452_v25 }
 0x50b   :  { %2133 = vmatprep.subr.bf16.mxu0 %v8458_v5  ;;  %2174 = vmatprep.subr.bf16.mxu1 %v8464_v4 }
 0x50e   :  { %2134 = vmatpush1.bf16.msra.mxu0 %v8470_v35  ;;  %2175 = vmatpush1.bf16.msra.mxu1 %v8476_v37 }
 0x50f   :  { %2135 = vmatprep.subr.bf16.mxu0 %v8482_v24  ;;  %2176 = vmatprep.subr.bf16.mxu1 %v8488_v11 }
 0x512   :  { %2136 = vmatpush1.bf16.msra.mxu0 %v8494_v18  ;;  %2177 = vmatpush1.bf16.msra.mxu1 %v8500_v10 }
 0x513   :  { %2137 = vmatprep.subr.bf16.mxu0 %v8506_v8  ;;  %2178 = vmatprep.subr.bf16.mxu1 %v8512_v27 }
 0x516   :  { %2138 = vmatpush1.bf16.msra.mxu0 %v8518_v20  ;;  %2179 = vmatpush1.bf16.msra.mxu1 %v8524_v12 }
 0x517   :  { %2139 = vmatprep.subr.bf16.mxu0 %v8530_v22  ;;  %2180 = vmatprep.subr.bf16.mxu1 %v8536_v26 }
 0x51a   :  { %2140 = vmatpush1.bf16.msra.mxu0 %v8542_v29  ;;  %2181 = vmatpush1.bf16.msra.mxu1 %v8548_v38 }
 0x51b   :  { %2141 = vmatprep.subr.bf16.mxu0 %v8554_v3  ;;  %2182 = vmatprep.subr.bf16.mxu1 %v8560_v41 }
 0x51e   :  { %2142 = vmatpush1.bf16.msra.mxu0 %v8566_v42  ;;  %2183 = vmatpush1.bf16.msra.mxu1 %v8572_v43 }
 0x51f   :  { %2143 = vmatprep.subr.bf16.mxu0 %v8578_v44  ;;  %2184 = vmatprep.subr.bf16.mxu1 %v8584_v45 }
 0x522   :  { %2144 = vmatpush1.bf16.msra.mxu0 %v8590_v46  ;;  %2185 = vmatpush1.bf16.msra.mxu1 %v8596_v47 }
 0x523   :  { %2285 = vmatprep.subr.bf16.mxu0 %v8362_v39  ;;  %2326 = vmatprep.subr.bf16.mxu1 %v8368_v40 }
 0x525   :  { %2162 = vmatmul.mubr.bf16.vlgmr.msra.gmra.mrb[44].mxu0 %v2127_v19  ;;  %2203 = vmatmul.mubr.bf16.vlgmr.msra.gmra.mrb[44].mxu1 %v2127_v19  ;;  %v11353_v19 = vld [vmem:[#allocation32_spill] sm:$0xff] }
 0x526   :  { %2286 = vmatpush1.bf16.msra.mxu0 %v8605_v48  ;;  %2327 = vmatpush1.bf16.msra.mxu1 %v8611_v49 }
 0x527   :  { %2287 = vmatprep.subr.bf16.mxu0 %v11326_v60  ;;  %2328 = vmatprep.subr.bf16.mxu1 %v11327_v59  ;;  %v2214_v60 = vld [vmem:[#allocation2 + $0x58] sm:$0x3] }
 0x528   :  { %2317 = vmatprep.mubr.bf16.mxu0 %v11231_v62  ;;  %2358 = vmatprep.mubr.bf16.mxu1 %v11231_v62 }
 0x52a   :  { %2288 = vmatpush1.bf16.msra.mxu0 %v11328_v1  ;;  %2329 = vmatpush1.bf16.msra.mxu1 %v11329_v2 }
 0x52b   :  { %2289 = vmatprep.subr.bf16.mxu0 %v11330_v54  ;;  %2330 = vmatprep.subr.bf16.mxu1 %v11331_v55  ;;  %v2216_v55 = vld [vmem:[#allocation2 + $0x28] sm:$0xc0]  ;;  %v2218_v54 = vld [vmem:[#allocation2 + $0x38] sm:$0xc0] }
 0x52e   :  { %2290 = vmatpush1.bf16.msra.mxu0 %v11332_v56  ;;  %2331 = vmatpush1.bf16.msra.mxu1 %v11333_v57 }
 0x52f   :  { %2291 = vmatprep.subr.bf16.mxu0 %v11334_v53  ;;  %2332 = vmatprep.subr.bf16.mxu1 %v11335_v52 }
 0x532   :  { %2292 = vmatpush1.bf16.msra.mxu0 %v11336_v61  ;;  %2333 = vmatpush1.bf16.msra.mxu1 %v11337_v63 }
 0x533   :  { %2293 = vmatprep.subr.bf16.mxu0 %v11338_v34  ;;  %2334 = vmatprep.subr.bf16.mxu1 %v11339_v58  ;;  %v2215_v34 = vld [vmem:[#allocation2 + $0x20] sm:$0xc0] }
 0x536   :  { %2294 = vmatpush1.bf16.msra.mxu0 %v11340_v28  ;;  %2335 = vmatpush1.bf16.msra.mxu1 %v11341_v7 }
 0x537   :  { %2295 = vmatprep.subr.bf16.mxu0 %v11342_v14  ;;  %2336 = vmatprep.subr.bf16.mxu1 %v11343_v23  ;;  %v11354_v23 = vld [vmem:[#allocation33_spill] sm:$0xff] }
 0x53a   :  { %2296 = vmatpush1.bf16.msra.mxu0 %v11344_v36  ;;  %2337 = vmatpush1.bf16.msra.mxu1 %v11345_v32  ;;  %v11355_v36 = vld [vmem:[#allocation34_spill] sm:$0xff] }
 0x53b   :  { %2297 = vmatprep.subr.bf16.mxu0 %v11346_v51  ;;  %2338 = vmatprep.subr.bf16.mxu1 %v11347_v50 }
 0x53e   :  { %2298 = vmatpush1.bf16.msra.mxu0 %v11348_v33  ;;  %2339 = vmatpush1.bf16.msra.mxu1 %v11349_v16 }
 0x53f   :  { %2299 = vmatprep.subr.bf16.mxu0 %v11350_v0  ;;  %2340 = vmatprep.subr.bf16.mxu1 %v11351_v21 }
 0x542   :  { %2300 = vmatpush1.bf16.msra.mxu0 %v11352_v15  ;;  %2341 = vmatpush1.bf16.msra.mxu1 %v11353_v19  ;;  %v2217_v19 = vld [vmem:[#allocation2 + $0x30] sm:$0xc0] }
 0x543   :  { %2370 = vmatprep.subr.bf16.mxu0 %v11354_v23  ;;  %2411 = vmatprep.subr.bf16.mxu1 %v11355_v36 }
 0x5d8   :  { %v2078_v32 = vpop.f32.mrb[40].mxu0  ;;  %v2119_v51 = vpop.f32.mrb[40].mxu1 }
 0x5d9   :  { %v2080_v14 = vpop.f32.mrb[41].mxu0  ;;  %v2121_v50 = vpop.f32.mrb[41].mxu1 }
 0x5da   :  { %v2082_v7 = vpop.f32.mrb[42].mxu0  ;;  %v2123_v33 = vpop.f32.mrb[42].mxu1 }
 0x5db   :  { %v2083_v28 = vpop.f32.mrb[43].mxu0  ;;  %v2124_v16 = vpop.f32.mrb[43].mxu1 }
 0x5dc   :  { %v2211_v28 = vld [vmem:[#allocation2 + $0x40] sm:$0x3]  ;;  %v2213_v16 = vld [vmem:[#allocation2 + $0x50] sm:$0x3] }
 0x5dd   :  { %v2219_v59 = vadd.f32 %v2211_v28, %v2078_v32 }
 0x5f8   :  { %v2163_v58 = vpop.f32.mrb[44].mxu0  ;;  %v2204_v0 = vpop.f32.mrb[44].mxu1 }
 0x5f9   :  { %v2227_v21 = vrot.slane %v2163_v58, 2  ;;  %v2229_v63 = vrot.slane %v2204_v0, 2  ;;  %v2165_v15 = vpop.f32.mrb[45].mxu0  ;;  %v2206_v61 = vpop.f32.mrb[45].mxu1  ;;  %v2221_v58 = vadd.f32 %v2213_v16, %v2119_v51  ;;  %v2212_v0 = vld [vmem:[#allocation2 + $0x48] sm:$0x3] }
 0x5fa   :  { %v2228_v52 = vrot.slane %v2165_v15, 2  ;;  %v2230_v23 = vrot.slane %v2206_v61, 2  ;;  %v2167_v53 = vpop.f32.mrb[46].mxu0  ;;  %v2208_v36 = vpop.f32.mrb[46].mxu1  ;;  %v2220_v15 = vadd.f32 %v2212_v0, %v2080_v14  ;;  %v2222_v61 = vadd.f32 %v2214_v60, %v2121_v50  ;;  %v11357_v0 = vld [vmem:[#allocation4_spill] sm:$0xff] }
 0x5fb   :  { %v2235_v57 = vadd.f32 %v2227_v21, %v2215_v34  ;;  %v2237_v56 = vadd.f32 %v2229_v63, %v2217_v19  ;;  %v2168_v7 = vpop.f32.mrb[47].mxu0  ;;  %v2209_v33 = vpop.f32.mrb[47].mxu1 }
 0x5fc   :  { %v2236_v2 = vadd.f32 %v2228_v52, %v2216_v55  ;;  %v2238_v1 = vadd.f32 %v2230_v23, %v2218_v54 }
 0x5fd   :  { %v2243_v49 = vrot.slane %v2235_v57, 4  ;;  %v2245_v48 = vrot.slane %v2237_v56, 4 }
 0x5fe   :  { %v2244_v53 = vrot.slane %v2236_v2, 4  ;;  %v2246_v36 = vrot.slane %v2238_v1, 4 }
 0x5ff   :  { %v2251_v63 = vsel %vm1238_vm0, %v2219_v59, %v2243_v49  ;;  %v2253_v34 = vsel %vm1238_vm0, %v2221_v58, %v2245_v48  ;;  %v11356_v58 = vld [vmem:[#allocation35_spill] sm:$0xff] }
 0x600   :  { %v6641_v21 = vmul.f32 -1.442695, %v2251_v63  ;;  %v2252_v19 = vsel %vm1238_vm0, %v2220_v15, %v2244_v53  ;;  %v2254_v55 = vsel %vm1238_vm0, %v2222_v61, %v2246_v36  ;;  %v6643_v52 = vmul.f32 -1.442695, %v2253_v34  ;;  %v11358_v15 = vld [vmem:[#allocation5_spill] sm:$0xff]  ;;  %v11359_v61 = vld [vmem:[#allocation6_spill] sm:$0xff] }
 0x601   :  { %v6642_v54 = vmul.f32 -1.442695, %v2252_v19  ;;  %v11360_v53 = vld [vmem:[#allocation7_spill] sm:$0xff]  ;;  %v11361_v36 = vld [vmem:[#allocation8_spill] sm:$0xff]  ;;  %v11367_v19 = vld [vmem:[#allocation14_spill] sm:$0xff] }
 0x602   :  { %7159 = vpow2.f32 %v6641_v21  ;;  %v11364_v63 = vld [vmem:[#allocation11_spill] sm:$0xff]  ;;  %v11365_v34 = vld [vmem:[#allocation12_spill] sm:$0xff]  ;;  %v11366_v21 = vld [vmem:[#allocation13_spill] sm:$0xff] }
 0x603   :  { %7161 = vpow2.f32 %v6642_v54  ;;  %v11369_v54 = vld [vmem:[#allocation16_spill] sm:$0xff] }
 0x604   :  { %7163 = vtanh.f32 %v2254_v55  ;;  %v11368_v55 = vld [vmem:[#allocation15_spill] sm:$0xff] }
 0x605   :  { %7165 = vpow2.f32 %v6643_v52  ;;  %v11370_v52 = vld [vmem:[#allocation17_spill] sm:$0xff] }
 0x60c   :  { %v7160_v23 = vpop.eup %7159 }
 0x60d   :  { %v2264_v57 = vadd.f32 1.0, %v7160_v23  ;;  %v7162_v56 = vpop.eup %7161  ;;  %v11371_v23 = vld [vmem:[#allocation18_spill] sm:$0xff] }
 0x60e   :  { %v2265_v60 = vadd.f32 1.0, %v7162_v56  ;;  %v7164_v49 = vpop.eup %7163  ;;  %v11373_v56 = vld [vmem:[#allocation20_spill] sm:$0xff] }
 0x60f   :  { %7167 = vrcp.f32 %v2264_v57  ;;  %v7166_v59 = vpop.eup %7165  ;;  %v11372_v57 = vld [vmem:[#allocation19_spill] sm:$0xff] }
 0x610   :  { %7169 = vrcp.f32 %v2265_v60  ;;  %v2266_v14 = vadd.f32 1.0, %v7166_v59  ;;  %v11374_v60 = vld [vmem:[#allocation21_spill] sm:$0xff]  ;;  %v11376_v59 = vld [vmem:[#allocation23_spill] sm:$0xff] }
 0x612   :  { %7171 = vrcp.f32 %v2266_v14  ;;  %v11380_v14 = vld [vmem:[#allocation27_spill] sm:$0xff] }
 0x619   :  { %v7168_v48 = vpop.eup %7167 }
 0x61a   :  { %v2275_v1 = vmul.f32 %v7168_v48, %v7164_v49  ;;  %v7170_v2 = vpop.eup %7169  ;;  %v11375_v49 = vld [vmem:[#allocation22_spill] sm:$0xff]  ;;  %v11377_v48 = vld [vmem:[#allocation24_spill] sm:$0xff] }
 0x61b   :  { %v2274_v32 = vmul.f32 %v7170_v2, %v8801_v6  ;;  %v11379_v2 = vld [vmem:[#allocation26_spill] sm:$0xff] }
 0x61c   :  { %v7172_v50 = vpop.eup %7171 }
 0x61d   :  { %v8877_v51 = vadd.f32 %v2275_v1, %v2274_v32  ;;  %v11378_v1 = vld [vmem:[#allocation25_spill] sm:$0xff]  ;;  %v11381_v32 = vld [vmem:[#allocation28_spill] sm:$0xff] }
 0x61f   :  { %7173 = vtanh.f32 %v8877_v51 }
 0x629   :  { %v7174_v7 = vpop.eup %7173 }
 0x62a   :  { %v2278_v33 = vmul.f32 %v7174_v7, %v7172_v50  ;;  %v11382_v50 = vld [vmem:[#allocation29_spill] sm:$0xff]  ;;  %v11383_v7 = vld [vmem:[#allocation30_spill] sm:$0xff] }
 0x62c   :  { %2279 = vst [vmem:[#allocation3 + $0x10] sm:$0x3] %v2278_v33  ;;  %v2281_v28 = vrot.slane %v2278_v33, 4  ;;  %v2284_v16 = vpack.c.bf16 %v2278_v33, %v2278_v33  ;;  %v11384_v33 = vld [vmem:[#allocation31_spill] sm:$0xff] }
 0x62e   :  { %2283 = vst [vmem:[#allocation3 + $0x8] sm:$0xc0] %v2281_v28  ;;  %2318 = vmatmul.mubr.bf16.vlgmr.msra.gmra.mrb[48].mxu0 %v2284_v16  ;;  %2359 = vmatmul.mubr.bf16.vlgmr.msra.gmra.mrb[48].mxu1 %v2284_v16  ;;  %v2368_v6 = vrot.slane %v2284_v16, 1  ;;  %v11385_v28 = vld [vmem:[#allocation32_spill] sm:$0xff]  ;;  %v11386_v16 = vld [vmem:[#allocation33_spill] sm:$0xff] }
 0x62f   :  { %2371 = vmatpush1.bf16.msra.mxu0 %v8420_v13  ;;  %2412 = vmatpush1.bf16.msra.mxu1 %v8426_v31 }
 0x630   :  { %2372 = vmatprep.subr.bf16.mxu0 %v8432_v30  ;;  %2413 = vmatprep.subr.bf16.mxu1 %v8438_v9 }
 0x631   :  { %2402 = vmatprep.mubr.bf16.mxu0 %v11231_v62  ;;  %2443 = vmatprep.mubr.bf16.mxu1 %v11231_v62 }
 0x633   :  { %2373 = vmatpush1.bf16.msra.mxu0 %v8446_v17  ;;  %2414 = vmatpush1.bf16.msra.mxu1 %v8452_v25 }
 0x634   :  { %2374 = vmatprep.subr.bf16.mxu0 %v8458_v5  ;;  %2415 = vmatprep.subr.bf16.mxu1 %v8464_v4 }
 0x637   :  { %2375 = vmatpush1.bf16.msra.mxu0 %v8470_v35  ;;  %2416 = vmatpush1.bf16.msra.mxu1 %v8476_v37 }
 0x638   :  { %2376 = vmatprep.subr.bf16.mxu0 %v8482_v24  ;;  %2417 = vmatprep.subr.bf16.mxu1 %v8488_v11 }
 0x63b   :  { %2377 = vmatpush1.bf16.msra.mxu0 %v8494_v18  ;;  %2418 = vmatpush1.bf16.msra.mxu1 %v8500_v10 }
 0x63c   :  { %2378 = vmatprep.subr.bf16.mxu0 %v8506_v8  ;;  %2419 = vmatprep.subr.bf16.mxu1 %v8512_v27 }
 0x63f   :  { %2379 = vmatpush1.bf16.msra.mxu0 %v8518_v20  ;;  %2420 = vmatpush1.bf16.msra.mxu1 %v8524_v12 }
 0x640   :  { %2380 = vmatprep.subr.bf16.mxu0 %v8530_v22  ;;  %2421 = vmatprep.subr.bf16.mxu1 %v8536_v26 }
 0x643   :  { %2381 = vmatpush1.bf16.msra.mxu0 %v8542_v29  ;;  %2422 = vmatpush1.bf16.msra.mxu1 %v8548_v38 }
 0x644   :  { %2382 = vmatprep.subr.bf16.mxu0 %v8554_v3  ;;  %2423 = vmatprep.subr.bf16.mxu1 %v8560_v41 }
 0x647   :  { %2383 = vmatpush1.bf16.msra.mxu0 %v8566_v42  ;;  %2424 = vmatpush1.bf16.msra.mxu1 %v8572_v43 }
 0x648   :  { %2384 = vmatprep.subr.bf16.mxu0 %v8578_v44  ;;  %2425 = vmatprep.subr.bf16.mxu1 %v8584_v45 }
 0x64b   :  { %2385 = vmatpush1.bf16.msra.mxu0 %v8590_v46  ;;  %2426 = vmatpush1.bf16.msra.mxu1 %v8596_v47 }
 0x64c   :  { %2550 = vmatprep.subr.bf16.mxu0 %v8362_v39  ;;  %2591 = vmatprep.subr.bf16.mxu1 %v8368_v40  ;;  %v11362_v39 = vld [vmem:[#allocation9_spill] sm:$0xff]  ;;  %v11363_v40 = vld [vmem:[#allocation10_spill] sm:$0xff] }
 0x64e   :  { %2403 = vmatmul.mubr.bf16.vlgmr.msra.gmra.mrb[52].mxu0 %v2368_v6  ;;  %2444 = vmatmul.mubr.bf16.vlgmr.msra.gmra.mrb[52].mxu1 %v2368_v6  ;;  %v11387_v6 = vld [vmem:[#allocation34_spill] sm:$0xff] }
 0x64f   :  { %2551 = vmatpush1.bf16.msra.mxu0 %v11356_v58  ;;  %2592 = vmatpush1.bf16.msra.mxu1 %v11357_v0 }
 0x650   :  { %2552 = vmatprep.subr.bf16.mxu0 %v11358_v15  ;;  %2593 = vmatprep.subr.bf16.mxu1 %v11359_v61 }
 0x651   :  { %2582 = vmatprep.mubr.bf16.mxu0 %v11231_v62  ;;  %2623 = vmatprep.mubr.bf16.mxu1 %v11231_v62 }
 0x653   :  { %2553 = vmatpush1.bf16.msra.mxu0 %v11360_v53  ;;  %2594 = vmatpush1.bf16.msra.mxu1 %v11361_v36  ;;  %v2457_v36 = vld [vmem:[#allocation2 + $0x28] sm:$0x30]  ;;  %v2459_v53 = vld [vmem:[#allocation2 + $0x38] sm:$0x30] }
 0x654   :  { %2554 = vmatprep.subr.bf16.mxu0 %v11362_v39  ;;  %2595 = vmatprep.subr.bf16.mxu1 %v11363_v40 }
 0x657   :  { %2555 = vmatpush1.bf16.msra.mxu0 %v11364_v63  ;;  %2596 = vmatpush1.bf16.msra.mxu1 %v11365_v34 }
 0x658   :  { %2556 = vmatprep.subr.bf16.mxu0 %v11366_v21  ;;  %2597 = vmatprep.subr.bf16.mxu1 %v11367_v19  ;;  %v2456_v19 = vld [vmem:[#allocation2 + $0x20] sm:$0x30] }
 0x65b   :  { %2557 = vmatpush1.bf16.msra.mxu0 %v11368_v55  ;;  %2598 = vmatpush1.bf16.msra.mxu1 %v11369_v54 }
 0x65c   :  { %2558 = vmatprep.subr.bf16.mxu0 %v11370_v52  ;;  %2599 = vmatprep.subr.bf16.mxu1 %v11371_v23  ;;  %v2452_v23 = vld [vmem:[#allocation2 + $0x40] sm:$0xc]  ;;  %v2453_v52 = vld [vmem:[#allocation2 + $0x48] sm:$0xc] }
 0x65f   :  { %2559 = vmatpush1.bf16.msra.mxu0 %v11372_v57  ;;  %2600 = vmatpush1.bf16.msra.mxu1 %v11373_v56 }
 0x660   :  { %2560 = vmatprep.subr.bf16.mxu0 %v11374_v60  ;;  %2601 = vmatprep.subr.bf16.mxu1 %v11375_v49 }
 0x663   :  { %2561 = vmatpush1.bf16.msra.mxu0 %v11376_v59  ;;  %2602 = vmatpush1.bf16.msra.mxu1 %v11377_v48 }
 0x664   :  { %2562 = vmatprep.subr.bf16.mxu0 %v11378_v1  ;;  %2603 = vmatprep.subr.bf16.mxu1 %v11379_v2 }
 0x667   :  { %2563 = vmatpush1.bf16.msra.mxu0 %v11380_v14  ;;  %2604 = vmatpush1.bf16.msra.mxu1 %v11381_v32 }
 0x668   :  { %2564 = vmatprep.subr.bf16.mxu0 %v11382_v50  ;;  %2605 = vmatprep.subr.bf16.mxu1 %v11383_v7 }
 0x66b   :  { %2565 = vmatpush1.bf16.msra.mxu0 %v11384_v33  ;;  %2606 = vmatpush1.bf16.msra.mxu1 %v11385_v28  ;;  %v2454_v33 = vld [vmem:[#allocation2 + $0x50] sm:$0xc]  ;;  %v2455_v28 = vld [vmem:[#allocation2 + $0x58] sm:$0xc] }
 0x66c   :  { %2635 = vmatprep.subr.bf16.mxu0 %v11386_v16  ;;  %2676 = vmatprep.subr.bf16.mxu1 %v11387_v6 }
 0x701   :  { %v2319_v48 = vpop.f32.mrb[48].mxu0  ;;  %v2360_v1 = vpop.f32.mrb[48].mxu1 }
 0x702   :  { %v2321_v59 = vpop.f32.mrb[49].mxu0  ;;  %v2362_v2 = vpop.f32.mrb[49].mxu1  ;;  %v2464_v56 = vrot.slane %v2319_v48, 6  ;;  %v2466_v50 = vrot.slane %v2360_v1, 6 }
 0x703   :  { %v2323_v49 = vpop.f32.mrb[50].mxu0  ;;  %v2364_v14 = vpop.f32.mrb[50].mxu1  ;;  %v2465_v57 = vrot.slane %v2321_v59, 6  ;;  %v2467_v7 = vrot.slane %v2362_v2, 6 }
 0x704   :  { %v2324_v60 = vpop.f32.mrb[51].mxu0  ;;  %v2365_v32 = vpop.f32.mrb[51].mxu1  ;;  %v2472_v55 = vadd.f32 %v2464_v56, %v2452_v23  ;;  %v2474_v6 = vadd.f32 %v2466_v50, %v2454_v33 }
 0x705   :  { %v2473_v14 = vadd.f32 %v2465_v57, %v2453_v52  ;;  %v2475_v60 = vadd.f32 %v2467_v7, %v2455_v28  ;;  %v2458_v32 = vld [vmem:[#allocation2 + $0x30] sm:$0x30] }
 0x706   :  { %v2496_v50 = vrot.slane %v2472_v55, 2 }
 0x707   :  { %v2497_v0 = vrot.slane %v2473_v14, 2  ;;  %v2499_v52 = vrot.slane %v2475_v60, 2 }
 0x721   :  { %v2404_v54 = vpop.f32.mrb[52].mxu0  ;;  %v2445_v16 = vpop.f32.mrb[52].mxu1 }
 0x722   :  { %v2480_v21 = vrot.slane %v2404_v54, 4  ;;  %v2482_v34 = vrot.slane %v2445_v16, 4  ;;  %v2406_v63 = vpop.f32.mrb[53].mxu0  ;;  %v2447_v49 = vpop.f32.mrb[53].mxu1  ;;  %v2498_v54 = vrot.slane %v2474_v6, 2 }
 0x723   :  { %v2481_v48 = vrot.slane %v2406_v63, 4  ;;  %v2483_v1 = vrot.slane %v2447_v49, 4  ;;  %v2408_v59 = vpop.f32.mrb[54].mxu0  ;;  %v2449_v2 = vpop.f32.mrb[54].mxu1 }
 0x724   :  { %v2488_v40 = vadd.f32 %v2480_v21, %v2456_v19  ;;  %v2490_v39 = vadd.f32 %v2482_v34, %v2458_v32  ;;  %v2409_v61 = vpop.f32.mrb[55].mxu0  ;;  %v2450_v15 = vpop.f32.mrb[55].mxu1 }
 0x725   :  { %v2489_v23 = vadd.f32 %v2481_v48, %v2457_v36  ;;  %v2491_v56 = vadd.f32 %v2483_v1, %v2459_v53 }
 0x726   :  { %v2508_v33 = vrot.slane %v2488_v40, 2  ;;  %v2510_v16 = vrot.slane %v2490_v39, 2 }
 0x727   :  { %v2509_v57 = vrot.slane %v2489_v23, 2  ;;  %v2511_v7 = vrot.slane %v2491_v56, 2 }
 0x728   :  { %v2516_v63 = vsel %vm1238_vm0, %v2496_v50, %v2508_v33  ;;  %v2518_v28 = vsel %vm1238_vm0, %v2498_v54, %v2510_v16  ;;  %v11417_v50 = vld [vmem:[#allocation33_spill] sm:$0xff]  ;;  %v11418_v54 = vld [vmem:[#allocation34_spill] sm:$0xff] }
 0x729   :  { %v6644_v21 = vmul.f32 -1.442695, %v2516_v63  ;;  %v2517_v34 = vsel %vm1238_vm0, %v2497_v0, %v2509_v57  ;;  %v2519_v61 = vsel %vm1238_vm0, %v2499_v52, %v2511_v7  ;;  %v6646_v53 = vmul.f32 -1.442695, %v2518_v28 }
 0x72a   :  { %v6645_v15 = vmul.f32 -1.442695, %v2517_v34 }
 0x72b   :  { %7175 = vpow2.f32 %v6644_v21 }
 0x72c   :  { %7177 = vpow2.f32 %v6645_v15 }
 0x72d   :  { %7179 = vtanh.f32 %v2519_v61 }
 0x72e   :  { %7181 = vpow2.f32 %v6646_v53 }
 0x735   :  { %v7176_v36 = vpop.eup %7175 }
 0x736   :  { %v2529_v40 = vadd.f32 1.0, %v7176_v36  ;;  %v7178_v39 = vpop.eup %7177  ;;  %v2717_v36 = vld [vmem:[#allocation2 + $0x40] sm:$0x30] }
 0x737   :  { %v2530_v19 = vadd.f32 1.0, %v7178_v39  ;;  %v7180_v55 = vpop.eup %7179 }
 0x738   :  { %7183 = vrcp.f32 %v2529_v40  ;;  %v7182_v6 = vpop.eup %7181  ;;  %v2719_v40 = vld [vmem:[#allocation2 + $0x50] sm:$0x30] }
 0x739   :  { %7185 = vrcp.f32 %v2530_v19  ;;  %v2531_v0 = vadd.f32 1.0, %v7182_v6  ;;  %v2720_v6 = vld [vmem:[#allocation2 + $0x58] sm:$0x30] }
 0x73b   :  { %7187 = vrcp.f32 %v2531_v0  ;;  %v2721_v0 = vld [vmem:[#allocation2 + $0x20] sm:$0xc] }
 0x742   :  { %v7184_v49 = vpop.eup %7183 }
 0x743   :  { %v2540_v14 = vmul.f32 %v7184_v49, %v7180_v55  ;;  %v7186_v60 = vpop.eup %7185  ;;  %v2718_v55 = vld [vmem:[#allocation2 + $0x48] sm:$0x30] }
 0x744   :  { %v2539_v32 = vmul.f32 %v7186_v60, %v8877_v51  ;;  %v11415_v51 = vld [vmem:[#allocation31_spill] sm:$0xff] }
 0x745   :  { %v7188_v1 = vpop.eup %7187 }
 0x746   :  { %v8953_v48 = vadd.f32 %v2540_v14, %v2539_v32 }
 0x748   :  { %7189 = vtanh.f32 %v8953_v48 }
 0x752   :  { %v7190_v59 = vpop.eup %7189 }
 0x753   :  { %v2543_v2 = vmul.f32 %v7190_v59, %v7188_v1  ;;  %v2723_v59 = vld [vmem:[#allocation2 + $0x30] sm:$0xc] }
 0x755   :  { %v2545_v23 = vrot.slane %v2543_v2, 6  ;;  %v2549_v56 = vpack.c.bf16 %v2543_v2, %v2543_v2 }
 0x757   :  { %2547 = vst [vmem:[#allocation3 + $0x10] ss:$-4 sps:$4 sm:$0x3c] %v2545_v23   ;;  %2583 = vmatmul.mubr.bf16.vlgmr.msra.gmra.mrb[56].mxu0 %v2549_v56  ;;  %2624 = vmatmul.mubr.bf16.vlgmr.msra.gmra.mrb[56].mxu1 %v2549_v56 }
 0x758   :  { %2636 = vmatpush1.bf16.msra.mxu0 %v8420_v13  ;;  %2677 = vmatpush1.bf16.msra.mxu1 %v8426_v31  ;;  %v2633_v13 = vrot.slane %v2549_v56, 1  ;;  %v7415_v31 = vld [vmem:[%s10925_s2 + $0x4] ss:$16 sps:$4 sm:$0xff]  }
 0x759   :  { %2637 = vmatprep.subr.bf16.mxu0 %v8432_v30  ;;  %2678 = vmatprep.subr.bf16.mxu1 %v8438_v9  ;;  %v7416_v30 = vld [vmem:[%s10925_s2 + $0xc] ss:$16 sps:$4 sm:$0xff]   ;;  %v11388_v9 = vld [vmem:[#allocation4_spill] sm:$0xff] }
 0x75a   :  { %2667 = vmatprep.mubr.bf16.mxu0 %v11231_v62  ;;  %2708 = vmatprep.mubr.bf16.mxu1 %v11231_v62 }
 0x75c   :  { %2638 = vmatpush1.bf16.msra.mxu0 %v8446_v17  ;;  %2679 = vmatpush1.bf16.msra.mxu1 %v8452_v25  ;;  %v11389_v17 = vld [vmem:[#allocation5_spill] sm:$0xff]  ;;  %v11390_v25 = vld [vmem:[#allocation6_spill] sm:$0xff] }
 0x75d   :  { %2639 = vmatprep.subr.bf16.mxu0 %v8458_v5  ;;  %2680 = vmatprep.subr.bf16.mxu1 %v8464_v4  ;;  %v11391_v5 = vld [vmem:[#allocation7_spill] sm:$0xff]  ;;  %v11392_v4 = vld [vmem:[#allocation8_spill] sm:$0xff] }
 0x760   :  { %2640 = vmatpush1.bf16.msra.mxu0 %v8470_v35  ;;  %2681 = vmatpush1.bf16.msra.mxu1 %v8476_v37  ;;  %v11393_v35 = vld [vmem:[#allocation9_spill] sm:$0xff]  ;;  %v11394_v37 = vld [vmem:[#allocation10_spill] sm:$0xff] }
 0x761   :  { %2641 = vmatprep.subr.bf16.mxu0 %v8482_v24  ;;  %2682 = vmatprep.subr.bf16.mxu1 %v8488_v11  ;;  %v11395_v24 = vld [vmem:[#allocation11_spill] sm:$0xff]  ;;  %v11396_v11 = vld [vmem:[#allocation12_spill] sm:$0xff] }
 0x764   :  { %2642 = vmatpush1.bf16.msra.mxu0 %v8494_v18  ;;  %2683 = vmatpush1.bf16.msra.mxu1 %v8500_v10  ;;  %v11397_v18 = vld [vmem:[#allocation13_spill] sm:$0xff]  ;;  %v11398_v10 = vld [vmem:[#allocation14_spill] sm:$0xff] }
 0x765   :  { %2643 = vmatprep.subr.bf16.mxu0 %v8506_v8  ;;  %2684 = vmatprep.subr.bf16.mxu1 %v8512_v27  ;;  %v11399_v8 = vld [vmem:[#allocation15_spill] sm:$0xff]  ;;  %v11400_v27 = vld [vmem:[#allocation16_spill] sm:$0xff] }
 0x768   :  { %2644 = vmatpush1.bf16.msra.mxu0 %v8518_v20  ;;  %2685 = vmatpush1.bf16.msra.mxu1 %v8524_v12  ;;  %v11401_v20 = vld [vmem:[#allocation17_spill] sm:$0xff]  ;;  %v11402_v12 = vld [vmem:[#allocation18_spill] sm:$0xff] }
 0x769   :  { %2645 = vmatprep.subr.bf16.mxu0 %v8530_v22  ;;  %2686 = vmatprep.subr.bf16.mxu1 %v8536_v26  ;;  %v11403_v22 = vld [vmem:[#allocation19_spill] sm:$0xff]  ;;  %v11404_v26 = vld [vmem:[#allocation20_spill] sm:$0xff] }
 0x76c   :  { %2646 = vmatpush1.bf16.msra.mxu0 %v8542_v29  ;;  %2687 = vmatpush1.bf16.msra.mxu1 %v8548_v38  ;;  %v11405_v29 = vld [vmem:[#allocation21_spill] sm:$0xff]  ;;  %v11406_v38 = vld [vmem:[#allocation22_spill] sm:$0xff] }
 0x76d   :  { %2647 = vmatprep.subr.bf16.mxu0 %v8554_v3  ;;  %2688 = vmatprep.subr.bf16.mxu1 %v8560_v41  ;;  %v11407_v3 = vld [vmem:[#allocation23_spill] sm:$0xff]  ;;  %v11408_v41 = vld [vmem:[#allocation24_spill] sm:$0xff] }
 0x770   :  { %2648 = vmatpush1.bf16.msra.mxu0 %v8566_v42  ;;  %2689 = vmatpush1.bf16.msra.mxu1 %v8572_v43  ;;  %v11409_v42 = vld [vmem:[#allocation25_spill] sm:$0xff]  ;;  %v11410_v43 = vld [vmem:[#allocation26_spill] sm:$0xff] }
 0x771   :  { %2649 = vmatprep.subr.bf16.mxu0 %v8578_v44  ;;  %2690 = vmatprep.subr.bf16.mxu1 %v8584_v45  ;;  %v11411_v44 = vld [vmem:[#allocation27_spill] sm:$0xff]  ;;  %v11412_v45 = vld [vmem:[#allocation28_spill] sm:$0xff] }
 0x774   :  { %2650 = vmatpush1.bf16.msra.mxu0 %v8590_v46  ;;  %2691 = vmatpush1.bf16.msra.mxu1 %v8596_v47  ;;  %v11413_v46 = vld [vmem:[#allocation29_spill] sm:$0xff]  ;;  %v11414_v47 = vld [vmem:[#allocation30_spill] sm:$0xff] }
 0x775   :  { %2803 = vmatprep.subr.bf16.mxu0 %v7415_v31  ;;  %2844 = vmatprep.subr.bf16.mxu1 %v7416_v30 }
 0x777   :  { %2668 = vmatmul.mubr.bf16.vlgmr.msra.gmra.mrb[60].mxu0 %v2633_v13  ;;  %2709 = vmatmul.mubr.bf16.vlgmr.msra.gmra.mrb[60].mxu1 %v2633_v13  ;;  %v2722_v13 = vld [vmem:[#allocation2 + $0x28] sm:$0xc] }
 0x778   :  { %2804 = vmatpush1.bf16.msra.mxu0 %v11356_v58  ;;  %2845 = vmatpush1.bf16.msra.mxu1 %v11388_v9  ;;  %v11416_v58 = vld [vmem:[#allocation32_spill] sm:$0xff] }
 0x779   :  { %2805 = vmatprep.subr.bf16.mxu0 %v11389_v17  ;;  %2846 = vmatprep.subr.bf16.mxu1 %v11390_v25 }
 0x77a   :  { %2835 = vmatprep.mubr.bf16.mxu0 %v11231_v62  ;;  %2876 = vmatprep.mubr.bf16.mxu1 %v11231_v62 }
 0x77c   :  { %2806 = vmatpush1.bf16.msra.mxu0 %v11391_v5  ;;  %2847 = vmatpush1.bf16.msra.mxu1 %v11392_v4 }
 0x77d   :  { %2807 = vmatprep.subr.bf16.mxu0 %v11393_v35  ;;  %2848 = vmatprep.subr.bf16.mxu1 %v11394_v37  ;;  %v2724_v37 = vld [vmem:[#allocation2 + $0x38] sm:$0xc] }
 0x780   :  { %2808 = vmatpush1.bf16.msra.mxu0 %v11395_v24  ;;  %2849 = vmatpush1.bf16.msra.mxu1 %v11396_v11 }
 0x781   :  { %2809 = vmatprep.subr.bf16.mxu0 %v11397_v18  ;;  %2850 = vmatprep.subr.bf16.mxu1 %v11398_v10 }
 0x784   :  { %2810 = vmatpush1.bf16.msra.mxu0 %v11399_v8  ;;  %2851 = vmatpush1.bf16.msra.mxu1 %v11400_v27 }
 0x785   :  { %2811 = vmatprep.subr.bf16.mxu0 %v11401_v20  ;;  %2852 = vmatprep.subr.bf16.mxu1 %v11402_v12 }
 0x788   :  { %2812 = vmatpush1.bf16.msra.mxu0 %v11403_v22  ;;  %2853 = vmatpush1.bf16.msra.mxu1 %v11404_v26 }
 0x789   :  { %2813 = vmatprep.subr.bf16.mxu0 %v11405_v29  ;;  %2854 = vmatprep.subr.bf16.mxu1 %v11406_v38 }
 0x78c   :  { %2814 = vmatpush1.bf16.msra.mxu0 %v11407_v3  ;;  %2855 = vmatpush1.bf16.msra.mxu1 %v11408_v41 }
 0x78d   :  { %2815 = vmatprep.subr.bf16.mxu0 %v11409_v42  ;;  %2856 = vmatprep.subr.bf16.mxu1 %v11410_v43 }
 0x790   :  { %2816 = vmatpush1.bf16.msra.mxu0 %v11411_v44  ;;  %2857 = vmatpush1.bf16.msra.mxu1 %v11412_v45 }
 0x791   :  { %2817 = vmatprep.subr.bf16.mxu0 %v11413_v46  ;;  %2858 = vmatprep.subr.bf16.mxu1 %v11414_v47 }
 0x794   :  { %2818 = vmatpush1.bf16.msra.mxu0 %v11415_v51  ;;  %2859 = vmatpush1.bf16.msra.mxu1 %v11416_v58 }
 0x795   :  { %2888 = vmatprep.subr.bf16.mxu0 %v11417_v50  ;;  %2929 = vmatprep.subr.bf16.mxu1 %v11418_v54 }
 0x82a   :  { %v2584_v33 = vpop.f32.mrb[56].mxu0  ;;  %v2625_v16 = vpop.f32.mrb[56].mxu1 }
 0x82b   :  { %v2586_v52 = vpop.f32.mrb[57].mxu0  ;;  %v2627_v57 = vpop.f32.mrb[57].mxu1  ;;  %v2729_v34 = vrot.slane %v2584_v33, 4  ;;  %v2731_v61 = vrot.slane %v2625_v16, 4 }
 0x82c   :  { %v2588_v7 = vpop.f32.mrb[58].mxu0  ;;  %v2629_v63 = vpop.f32.mrb[58].mxu1  ;;  %v2730_v15 = vrot.slane %v2586_v52, 4  ;;  %v2732_v53 = vrot.slane %v2627_v57, 4 }
 0x82d   :  { %v2589_v28 = vpop.f32.mrb[59].mxu0  ;;  %v2630_v21 = vpop.f32.mrb[59].mxu1  ;;  %v2737_v39 = vadd.f32 %v2729_v34, %v2717_v36  ;;  %v2739_v19 = vadd.f32 %v2731_v61, %v2719_v40  ;;  %v7420_v34 = vld [vmem:[%s10925_s2 + $0x12c] ss:$16 sps:$4 sm:$0xff]   ;;  %v7421_v61 = vld [vmem:[%s10925_s2 + $0x120] ss:$16 sps:$4 sm:$0xff]  }
 0x82e   :  { %v2738_v49 = vadd.f32 %v2730_v15, %v2718_v55  ;;  %v2740_v14 = vadd.f32 %v2732_v53, %v2720_v6  ;;  %v7418_v28 = vld [vmem:[%s10925_s2 + $0x108] ss:$16 sps:$4 sm:$0xff]   ;;  %v7419_v21 = vld [vmem:[%s10925_s2 + $0x124] ss:$16 sps:$4 sm:$0xff]   ;;  %v7424_v36 = vld [vmem:[%s10925_s2 + $0x14c] ss:$16 sps:$4 sm:$0xff]  }
 0x82f   :  { %v2761_v25 = vrot.slane %v2737_v39, 4  ;;  %v2763_v5 = vrot.slane %v2739_v19, 4  ;;  %v7422_v15 = vld [vmem:[%s10925_s2 + $0x128] ss:$16 sps:$4 sm:$0xff]   ;;  %v7423_v53 = vld [vmem:[%s10925_s2 + $0x144] ss:$16 sps:$4 sm:$0xff]  }
 0x830   :  { %v2762_v18 = vrot.slane %v2738_v49, 4  ;;  %v2764_v10 = vrot.slane %v2740_v14, 4  ;;  %v7425_v40 = vld [vmem:[%s10925_s2 + $0x140] ss:$16 sps:$4 sm:$0xff]   ;;  %v7426_v39 = vld [vmem:[%s10925_s2 + $0x148] ss:$16 sps:$4 sm:$0xff]  }
 0x831   :  { %v7427_v19 = vld [vmem:[%s10925_s2 + $0x164] ss:$16 sps:$4 sm:$0xff]   ;;  %v7428_v55 = vld [vmem:[%s10925_s2 + $0x16c] ss:$16 sps:$4 sm:$0xff]   ;;  %v7429_v6 = vld [vmem:[%s10925_s2 + $0x160] ss:$16 sps:$4 sm:$0xff]  }
 0x832   :  { %v7430_v49 = vld [vmem:[%s10925_s2 + $0x168] ss:$16 sps:$4 sm:$0xff]   ;;  %v7431_v14 = vld [vmem:[%s10925_s2 + $0x184] ss:$16 sps:$4 sm:$0xff]  }
 0x84a   :  { %v2669_v60 = vpop.f32.mrb[60].mxu0  ;;  %v2710_v32 = vpop.f32.mrb[60].mxu1 }
 0x84b   :  { %v2745_v1 = vrot.slane %v2669_v60, 6  ;;  %v2747_v2 = vrot.slane %v2710_v32, 6  ;;  %v2671_v23 = vpop.f32.mrb[61].mxu0  ;;  %v2712_v56 = vpop.f32.mrb[61].mxu1  ;;  %v7432_v60 = vld [vmem:[%s10925_s2 + $0x18c] ss:$16 sps:$4 sm:$0xff]  }
 0x84c   :  { %v2746_v31 = vrot.slane %v2671_v23, 6  ;;  %v2748_v30 = vrot.slane %v2712_v56, 6  ;;  %v2673_v9 = vpop.f32.mrb[62].mxu0  ;;  %v2714_v17 = vpop.f32.mrb[62].mxu1  ;;  %v7434_v32 = vld [vmem:[%s10925_s2 + $0x188] ss:$16 sps:$4 sm:$0xff]  }
 0x84d   :  { %v2753_v4 = vadd.f32 %v2745_v1, %v2721_v0  ;;  %v2755_v35 = vadd.f32 %v2747_v2, %v2723_v59  ;;  %v2674_v24 = vpop.f32.mrb[63].mxu0  ;;  %v2715_v11 = vpop.f32.mrb[63].mxu1  ;;  %v7433_v0 = vld [vmem:[%s10925_s2 + $0x180] ss:$16 sps:$4 sm:$0xff]   ;;  %v7435_v1 = vld [vmem:[%s10925_s2 + $0x1a4] ss:$16 sps:$4 sm:$0xff]  }
 0x84e   :  { %v2754_v8 = vadd.f32 %v2746_v31, %v2722_v13  ;;  %v2756_v27 = vadd.f32 %v2748_v30, %v2724_v37  ;;  %v7436_v59 = vld [vmem:[%s10925_s2 + $0x1ac] ss:$16 sps:$4 sm:$0xff]   ;;  %v7437_v2 = vld [vmem:[%s10925_s2 + $0x1a0] ss:$16 sps:$4 sm:$0xff]   ;;  %v7438_v23 = vld [vmem:[%s10925_s2 + $0x1a8] ss:$16 sps:$4 sm:$0xff]  }
 0x84f   :  { %v2769_v20 = vsel %vm1238_vm0, %v2761_v25, %v2753_v4  ;;  %v2771_v12 = vsel %vm1238_vm0, %v2763_v5, %v2755_v35  ;;  %v7439_v56 = vld [vmem:[%s10925_s2 + $0x1c4] ss:$16 sps:$4 sm:$0xff]   ;;  %v7440_v13 = vld [vmem:[%s10925_s2 + $0x1cc] ss:$16 sps:$4 sm:$0xff]   ;;  %v7441_v31 = vld [vmem:[%s10925_s2 + $0x1c0] ss:$16 sps:$4 sm:$0xff]  }
 0x850   :  { %v6647_v22 = vmul.f32 -1.442695, %v2769_v20  ;;  %v2770_v26 = vsel %vm1238_vm0, %v2762_v18, %v2754_v8  ;;  %v2772_v29 = vsel %vm1238_vm0, %v2764_v10, %v2756_v27  ;;  %v6649_v3 = vmul.f32 -1.442695, %v2771_v12  ;;  %v7442_v30 = vld [vmem:[%s10925_s2 + $0x1c8] ss:$16 sps:$4 sm:$0xff]  }
 0x851   :  { %v6648_v38 = vmul.f32 -1.442695, %v2770_v26  ;;  %v7443_v9 = vld [vmem:[%s10925_s2 + $0x1e4] ss:$16 sps:$4 sm:$0xff]   ;;  %v7444_v17 = vld [vmem:[%s10925_s2 + $0x1ec] ss:$16 sps:$4 sm:$0xff]  }
 0x852   :  { %7191 = vpow2.f32 %v6647_v22  ;;  %v7445_v25 = vld [vmem:[%s10925_s2 + $0x1e0] ss:$16 sps:$4 sm:$0xff]   ;;  %v7446_v5 = vld [vmem:[%s10925_s2 + $0x1e8] ss:$16 sps:$4 sm:$0xff]  }
 0x853   :  { %7193 = vpow2.f32 %v6648_v38  ;;  %v3061_v35 = vld [vmem:[%s10927_s4] sm:$0xff]  ;;  %v3062_v24 = vld [vmem:[%s10927_s4 + $0x8] sm:$0xff] }
 0x854   :  { %7195 = vtanh.f32 %v2772_v29  ;;  %v3065_v37 = vld [vmem:[%s10927_s4 + $0x20] sm:$0xff]  ;;  %v3066_v10 = vld [vmem:[%s10927_s4 + $0x28] sm:$0xff] }
 0x855   :  { %7197 = vpow2.f32 %v6649_v3  ;;  %v6653_v11 = vcombine.low %v3061_v35, %v3065_v37  ;;  %v6654_v18 = vcombine.high %v3061_v35, %v3065_v37  ;;  %v6655_v8 = vcombine.low %v3062_v24, %v3066_v10  ;;  %v3069_v20 = vld [vmem:[%s10927_s4 + $0x40] sm:$0xff]  ;;  %v3070_v22 = vld [vmem:[%s10927_s4 + $0x48] sm:$0xff] }
 0x856   :  { %v6656_v27 = vcombine.high %v3062_v24, %v3066_v10  ;;  %v3073_v12 = vld [vmem:[%s10927_s4 + $0x60] sm:$0xff]  ;;  %v3074_v29 = vld [vmem:[%s10927_s4 + $0x68] sm:$0xff] }
 0x857   :  { %v6662_v26 = vcombine.high %v3069_v20, %v3073_v12  ;;  %v6661_v38 = vcombine.low %v3069_v20, %v3073_v12  ;;  %v6663_v3 = vcombine.low %v3070_v22, %v3074_v29  ;;  %v3125_v24 = vld [vmem:[%s10927_s4 + $0x200] sm:$0xff] }
 0x85c   :  { %v7192_v41 = vpop.eup %7191 }
 0x85d   :  { %v2782_v42 = vadd.f32 1.0, %v7192_v41  ;;  %v7194_v43 = vpop.eup %7193  ;;  %v6664_v41 = vcombine.high %v3070_v22, %v3074_v29  ;;  %v3133_v22 = vld [vmem:[%s10927_s4 + $0x240] sm:$0xff]  ;;  %v3134_v29 = vld [vmem:[%s10927_s4 + $0x248] sm:$0xff] }
 0x85e   :  { %v2783_v44 = vadd.f32 1.0, %v7194_v43  ;;  %v7196_v45 = vpop.eup %7195  ;;  %v3081_v43 = vld [vmem:[%s10927_s4 + $0xa0] sm:$0xff] }
 0x85f   :  { %7199 = vrcp.f32 %v2782_v42  ;;  %v7198_v46 = vpop.eup %7197  ;;  %v3077_v42 = vld [vmem:[%s10927_s4 + $0x80] sm:$0xff] }
 0x860   :  { %7201 = vrcp.f32 %v2783_v44  ;;  %v2784_v50 = vadd.f32 1.0, %v7198_v46  ;;  %v3078_v44 = vld [vmem:[%s10927_s4 + $0x88] sm:$0xff] }
 0x861   :  { %v3082_v46 = vld [vmem:[%s10927_s4 + $0xa8] sm:$0xff] }
 0x862   :  { %7203 = vrcp.f32 %v2784_v50  ;;  %v3085_v50 = vld [vmem:[%s10927_s4 + $0xc0] sm:$0xff] }
 0x869   :  { %v7200_v47 = vpop.eup %7199 }
 0x86a   :  { %v2793_v51 = vmul.f32 %v7200_v47, %v7196_v45  ;;  %v7202_v58 = vpop.eup %7201  ;;  %v6670_v45 = vcombine.high %v3077_v42, %v3081_v43  ;;  %v6669_v47 = vcombine.low %v3077_v42, %v3081_v43 }
 0x86b   :  { %v2792_v54 = vmul.f32 %v7202_v58, %v8953_v48  ;;  %v7417_v48 = vld [vmem:[%s10925_s2 + $0x100] ss:$16 sps:$4 sm:$0xff]   ;;  %v6672_v58 = vcombine.high %v3078_v44, %v3082_v46 }
 0x86c   :  { %v7204_v16 = vpop.eup %7203 }
 0x86d   :  { %v9033_v33 = vadd.f32 %v2793_v51, %v2792_v54  ;;  %v6671_v51 = vcombine.low %v3078_v44, %v3082_v46  ;;  %v3089_v54 = vld [vmem:[%s10927_s4 + $0xe0] sm:$0xff]  ;;  %v3142_v46 = vld [vmem:[%s10927_s4 + $0x288] sm:$0xff] }
 0x86e   :  { %v3141_v44 = vld [vmem:[%s10927_s4 + $0x280] sm:$0xff] }
 0x86f   :  { %7205 = vtanh.f32 %v9033_v33 }
 0x879   :  { %v7206_v52 = vpop.eup %7205 }
 0x87a   :  { %v2796_v57 = vmul.f32 %v7206_v52, %v7204_v16  ;;  %v3086_v16 = vld [vmem:[%s10927_s4 + $0xc8] sm:$0xff]  ;;  %v6678_v52 = vcombine.high %v3085_v50, %v3089_v54 }
 0x87c   :  { %v2798_v7 = vrot.slane %v2796_v57, 4  ;;  %2801 = vst [vmem:[#allocation3 + $0x8] sm:$0xc] %v2796_v57  ;;  %v9036_v63 = vpack.c.bf16 %v2796_v57, %v2796_v57  ;;  %v3090_v57 = vld [vmem:[%s10927_s4 + $0xe8] sm:$0xff] }
 0x87e   :  { %2800 = vst [vmem:[#allocation3 + $0x10] sm:$0x30] %v2798_v7  ;;  %2836 = vmatmul.mubr.bf16.vlgmr.msra.gmra.mrb[64].mxu0 %v9036_v63  ;;  %2877 = vmatmul.mubr.bf16.vlgmr.msra.gmra.mrb[64].mxu1 %v9036_v63  ;;  %v2886_v4 = vrot.slane %v9036_v63, 1  ;;  %v6677_v7 = vcombine.low %v3085_v50, %v3089_v54  ;;  %v6679_v63 = vcombine.low %v3086_v16, %v3090_v57 }
 0x87f   :  { %2889 = vmatpush1.bf16.msra.mxu0 %v7417_v48  ;;  %2930 = vmatpush1.bf16.msra.mxu1 %v7418_v28  ;;  %v6680_v48 = vcombine.high %v3086_v16, %v3090_v57  ;;  %v3093_v28 = vld [vmem:[%s10927_s4 + $0x100] sm:$0xff]  ;;  %v3150_v57 = vld [vmem:[%s10927_s4 + $0x2c8] sm:$0xff] }
 0x880   :  { %2890 = vmatprep.subr.bf16.mxu0 %v7419_v21  ;;  %2931 = vmatprep.subr.bf16.mxu1 %v7420_v34  ;;  %v3097_v21 = vld [vmem:[%s10927_s4 + $0x120] sm:$0xff]  ;;  %v3094_v34 = vld [vmem:[%s10927_s4 + $0x108] sm:$0xff] }
 0x881   :  { %2920 = vmatprep.mubr.bf16.mxu0 %v11231_v62  ;;  %2961 = vmatprep.mubr.bf16.mxu1 %v11231_v62  ;;  %v3149_v16 = vld [vmem:[%s10927_s4 + $0x2c0] sm:$0xff] }
 0x883   :  { %2891 = vmatpush1.bf16.msra.mxu0 %v7421_v61  ;;  %2932 = vmatpush1.bf16.msra.mxu1 %v7422_v15  ;;  %v6686_v61 = vcombine.high %v3093_v28, %v3097_v21  ;;  %v3098_v15 = vld [vmem:[%s10927_s4 + $0x128] sm:$0xff] }
 0x884   :  { %2892 = vmatprep.subr.bf16.mxu0 %v7423_v53  ;;  %2933 = vmatprep.subr.bf16.mxu1 %v7424_v36  ;;  %v6685_v53 = vcombine.low %v3093_v28, %v3097_v21  ;;  %v6687_v36 = vcombine.low %v3094_v34, %v3098_v15 }
 0x887   :  { %2893 = vmatpush1.bf16.msra.mxu0 %v7425_v40  ;;  %2934 = vmatpush1.bf16.msra.mxu1 %v7426_v39  ;;  %v6688_v40 = vcombine.high %v3094_v34, %v3098_v15  ;;  %v3101_v39 = vld [vmem:[%s10927_s4 + $0x140] sm:$0xff]  ;;  %v3158_v15 = vld [vmem:[%s10927_s4 + $0x308] sm:$0xff] }
 0x888   :  { %2894 = vmatprep.subr.bf16.mxu0 %v7427_v19  ;;  %2935 = vmatprep.subr.bf16.mxu1 %v7428_v55  ;;  %v3105_v19 = vld [vmem:[%s10927_s4 + $0x160] sm:$0xff]  ;;  %v3102_v55 = vld [vmem:[%s10927_s4 + $0x148] sm:$0xff] }
 0x889   :  { %v3157_v34 = vld [vmem:[%s10927_s4 + $0x300] sm:$0xff] }
 0x88b   :  { %2895 = vmatpush1.bf16.msra.mxu0 %v7429_v6  ;;  %2936 = vmatpush1.bf16.msra.mxu1 %v7430_v49  ;;  %v6694_v6 = vcombine.high %v3101_v39, %v3105_v19  ;;  %v3106_v49 = vld [vmem:[%s10927_s4 + $0x168] sm:$0xff] }
 0x88c   :  { %2896 = vmatprep.subr.bf16.mxu0 %v7431_v14  ;;  %2937 = vmatprep.subr.bf16.mxu1 %v7432_v60  ;;  %v6693_v14 = vcombine.low %v3101_v39, %v3105_v19  ;;  %v6695_v60 = vcombine.low %v3102_v55, %v3106_v49 }
 0x88f   :  { %2897 = vmatpush1.bf16.msra.mxu0 %v7433_v0  ;;  %2938 = vmatpush1.bf16.msra.mxu1 %v7434_v32  ;;  %v6696_v0 = vcombine.high %v3102_v55, %v3106_v49  ;;  %v3109_v32 = vld [vmem:[%s10927_s4 + $0x180] sm:$0xff]  ;;  %v3166_v49 = vld [vmem:[%s10927_s4 + $0x348] sm:$0xff] }
 0x890   :  { %2898 = vmatprep.subr.bf16.mxu0 %v7435_v1  ;;  %2939 = vmatprep.subr.bf16.mxu1 %v7436_v59  ;;  %v3113_v1 = vld [vmem:[%s10927_s4 + $0x1a0] sm:$0xff]  ;;  %v3110_v59 = vld [vmem:[%s10927_s4 + $0x188] sm:$0xff] }
 0x891   :  { %v3165_v55 = vld [vmem:[%s10927_s4 + $0x340] sm:$0xff] }
 0x893   :  { %2899 = vmatpush1.bf16.msra.mxu0 %v7437_v2  ;;  %2940 = vmatpush1.bf16.msra.mxu1 %v7438_v23  ;;  %v6702_v2 = vcombine.high %v3109_v32, %v3113_v1  ;;  %v3114_v23 = vld [vmem:[%s10927_s4 + $0x1a8] sm:$0xff] }
 0x894   :  { %2900 = vmatprep.subr.bf16.mxu0 %v7439_v56  ;;  %2941 = vmatprep.subr.bf16.mxu1 %v7440_v13  ;;  %v6701_v56 = vcombine.low %v3109_v32, %v3113_v1  ;;  %v6703_v13 = vcombine.low %v3110_v59, %v3114_v23 }
 0x897   :  { %2901 = vmatpush1.bf16.msra.mxu0 %v7441_v31  ;;  %2942 = vmatpush1.bf16.msra.mxu1 %v7442_v30  ;;  %v6704_v31 = vcombine.high %v3110_v59, %v3114_v23  ;;  %v3117_v30 = vld [vmem:[%s10927_s4 + $0x1c0] sm:$0xff]  ;;  %v3174_v23 = vld [vmem:[%s10927_s4 + $0x388] sm:$0xff] }
 0x898   :  { %2902 = vmatprep.subr.bf16.mxu0 %v7443_v9  ;;  %2943 = vmatprep.subr.bf16.mxu1 %v7444_v17  ;;  %v3121_v9 = vld [vmem:[%s10927_s4 + $0x1e0] sm:$0xff]  ;;  %v3118_v17 = vld [vmem:[%s10927_s4 + $0x1c8] sm:$0xff] }
 0x899   :  { %v3173_v59 = vld [vmem:[%s10927_s4 + $0x380] sm:$0xff] }
 0x89b   :  { %2903 = vmatpush1.bf16.msra.mxu0 %v7445_v25  ;;  %2944 = vmatpush1.bf16.msra.mxu1 %v7446_v5  ;;  %v6710_v25 = vcombine.high %v3117_v30, %v3121_v9  ;;  %v3122_v5 = vld [vmem:[%s10927_s4 + $0x1e8] sm:$0xff] }
 0x89c   :  { %3871 = vmatprep.subr.bf16.mxu0 %v6654_v18  ;;  %3914 = vmatprep.subr.bf16.mxu1 %v6656_v27  ;;  %v6711_v35 = vcombine.low %v3118_v17, %v3122_v5  ;;  %v6712_v37 = vcombine.high %v3118_v17, %v3122_v5  ;;  %v3126_v18 = vld [vmem:[%s10927_s4 + $0x208] sm:$0xff] }
 0x89e   :  { %2921 = vmatmul.mubr.bf16.vlgmr.msra.gmra.mrb[68].mxu0 %v2886_v4  ;;  %2962 = vmatmul.mubr.bf16.vlgmr.msra.gmra.mrb[68].mxu1 %v2886_v4  ;;  %v6709_v4 = vcombine.low %v3117_v30, %v3121_v9  ;;  %v3181_v30 = vld [vmem:[%s10927_s4 + $0x3c0] sm:$0xff] }
 0x89f   :  { %3872 = vmatpush1.bf16.msra.mxu0 %v6653_v11  ;;  %3915 = vmatpush1.bf16.msra.mxu1 %v6655_v8  ;;  %v3129_v11 = vld [vmem:[%s10927_s4 + $0x220] sm:$0xff]  ;;  %v3130_v8 = vld [vmem:[%s10927_s4 + $0x228] sm:$0xff] }
 0x8a0   :  { %3873 = vmatprep.subr.bf16.mxu0 %v6662_v26  ;;  %3916 = vmatprep.subr.bf16.mxu1 %v6664_v41  ;;  %v6718_v10 = vcombine.high %v3125_v24, %v3129_v11  ;;  %v6717_v27 = vcombine.low %v3125_v24, %v3129_v11  ;;  %v6719_v20 = vcombine.low %v3126_v18, %v3130_v8  ;;  %v3137_v26 = vld [vmem:[%s10927_s4 + $0x260] sm:$0xff] }
 0x8a1   :  { %v6720_v12 = vcombine.high %v3126_v18, %v3130_v8  ;;  %v6725_v41 = vcombine.low %v3133_v22, %v3137_v26  ;;  %v3185_v9 = vld [vmem:[%s10927_s4 + $0x3e0] sm:$0xff]  ;;  %v9328_v18 = vld [vmem:[%s10927_s4 + $0x10] sm:$0xff]  ;;  %v9338_v8 = vld [vmem:[%s10927_s4 + $0x18] sm:$0xff] }
 0x8a2   :  { %v6774_v5 = vcombine.high %v3181_v30, %v3185_v9  ;;  %v6773_v24 = vcombine.low %v3181_v30, %v3185_v9 }
 0x8a3   :  { %3874 = vmatpush1.bf16.msra.mxu0 %v6661_v38  ;;  %3917 = vmatpush1.bf16.msra.mxu1 %v6663_v3  ;;  %v6726_v38 = vcombine.high %v3133_v22, %v3137_v26  ;;  %v3138_v3 = vld [vmem:[%s10927_s4 + $0x268] sm:$0xff] }
 0x8a4   :  { %3875 = vmatprep.subr.bf16.mxu0 %v6670_v45  ;;  %3918 = vmatprep.subr.bf16.mxu1 %v6672_v58  ;;  %v6727_v42 = vcombine.low %v3134_v29, %v3138_v3  ;;  %v6728_v43 = vcombine.high %v3134_v29, %v3138_v3  ;;  %v3145_v45 = vld [vmem:[%s10927_s4 + $0x2a0] sm:$0xff] }
 0x8a5   :  { %v6733_v58 = vcombine.low %v3141_v44, %v3145_v45 }
 0x8a7   :  { %3876 = vmatpush1.bf16.msra.mxu0 %v6669_v47  ;;  %3919 = vmatpush1.bf16.msra.mxu1 %v6671_v51  ;;  %v6734_v47 = vcombine.high %v3141_v44, %v3145_v45  ;;  %v3146_v51 = vld [vmem:[%s10927_s4 + $0x2a8] sm:$0xff] }
 0x8a8   :  { %3877 = vmatprep.subr.bf16.mxu0 %v6678_v52  ;;  %3920 = vmatprep.subr.bf16.mxu1 %v6680_v48  ;;  %v6735_v50 = vcombine.low %v3142_v46, %v3146_v51  ;;  %v6736_v54 = vcombine.high %v3142_v46, %v3146_v51  ;;  %v3153_v52 = vld [vmem:[%s10927_s4 + $0x2e0] sm:$0xff] }
 0x8a9   :  { %v6741_v48 = vcombine.low %v3149_v16, %v3153_v52 }
 0x8ab   :  { %3878 = vmatpush1.bf16.msra.mxu0 %v6677_v7  ;;  %3921 = vmatpush1.bf16.msra.mxu1 %v6679_v63  ;;  %v6742_v7 = vcombine.high %v3149_v16, %v3153_v52  ;;  %v3154_v63 = vld [vmem:[%s10927_s4 + $0x2e8] sm:$0xff]  ;;  %v2973_v52 = vld [vmem:[#allocation2 + $0x58] sm:$0xc0] }
 0x8ac   :  { %3879 = vmatprep.subr.bf16.mxu0 %v6686_v61  ;;  %3922 = vmatprep.subr.bf16.mxu1 %v6688_v40  ;;  %v6743_v28 = vcombine.low %v3150_v57, %v3154_v63  ;;  %v6744_v21 = vcombine.high %v3150_v57, %v3154_v63  ;;  %v3161_v61 = vld [vmem:[%s10927_s4 + $0x320] sm:$0xff]  ;;  %v2971_v16 = vld [vmem:[#allocation2 + $0x48] sm:$0xc0] }
 0x8ad   :  { %v6749_v40 = vcombine.low %v3157_v34, %v3161_v61  ;;  %v2974_v63 = vld [vmem:[#allocation2 + $0x20] sm:$0x3] }
 0x8af   :  { %3880 = vmatpush1.bf16.msra.mxu0 %v6685_v53  ;;  %3923 = vmatpush1.bf16.msra.mxu1 %v6687_v36  ;;  %v6750_v53 = vcombine.high %v3157_v34, %v3161_v61  ;;  %v3162_v36 = vld [vmem:[%s10927_s4 + $0x328] sm:$0xff]  ;;  %v2976_v61 = vld [vmem:[#allocation2 + $0x30] sm:$0x3] }
 0x8b0   :  { %3881 = vmatprep.subr.bf16.mxu0 %v6694_v6  ;;  %3924 = vmatprep.subr.bf16.mxu1 %v6696_v0  ;;  %v6751_v39 = vcombine.low %v3158_v15, %v3162_v36  ;;  %v6752_v19 = vcombine.high %v3158_v15, %v3162_v36  ;;  %v3169_v6 = vld [vmem:[%s10927_s4 + $0x360] sm:$0xff]  ;;  %v2975_v15 = vld [vmem:[#allocation2 + $0x28] sm:$0x3] }
 0x8b1   :  { %v6757_v0 = vcombine.low %v3165_v55, %v3169_v6 }
 0x8b3   :  { %3882 = vmatpush1.bf16.msra.mxu0 %v6693_v14  ;;  %3925 = vmatpush1.bf16.msra.mxu1 %v6695_v60  ;;  %v6758_v14 = vcombine.high %v3165_v55, %v3169_v6  ;;  %v3170_v60 = vld [vmem:[%s10927_s4 + $0x368] sm:$0xff] }
 0x8b4   :  { %3883 = vmatprep.subr.bf16.mxu0 %v6702_v2  ;;  %3926 = vmatprep.subr.bf16.mxu1 %v6704_v31  ;;  %v6759_v32 = vcombine.low %v3166_v49, %v3170_v60  ;;  %v6760_v1 = vcombine.high %v3166_v49, %v3170_v60  ;;  %v3177_v2 = vld [vmem:[%s10927_s4 + $0x3a0] sm:$0xff]  ;;  %v3178_v31 = vld [vmem:[%s10927_s4 + $0x3a8] sm:$0xff] }
 0x8b5   :  { %v6767_v17 = vcombine.low %v3174_v23, %v3178_v31 }
 0x8b7   :  { %3884 = vmatpush1.bf16.msra.mxu0 %v6701_v56  ;;  %3927 = vmatpush1.bf16.msra.mxu1 %v6703_v13  ;;  %v6765_v56 = vcombine.low %v3173_v59, %v3177_v2  ;;  %v6766_v13 = vcombine.high %v3173_v59, %v3177_v2 }
 0x8b8   :  { %3885 = vmatprep.subr.bf16.mxu0 %v6710_v25  ;;  %3928 = vmatprep.subr.bf16.mxu1 %v6712_v37  ;;  %v6768_v25 = vcombine.high %v3174_v23, %v3178_v31 }
 0x8bb   :  { %3886 = vmatpush1.bf16.msra.mxu0 %v6709_v4  ;;  %3929 = vmatpush1.bf16.msra.mxu1 %v6711_v35  ;;  %v3182_v4 = vld [vmem:[%s10927_s4 + $0x3c8] sm:$0xff] }
 0x8bc   :  { %3887 = vmatprep.subr.bf16.mxu0 %v6718_v10  ;;  %3930 = vmatprep.subr.bf16.mxu1 %v6720_v12  ;;  %v3186_v35 = vld [vmem:[%s10927_s4 + $0x3e8] sm:$0xff]  ;;  %v9333_v10 = vld [vmem:[%s10927_s4 + $0x30] sm:$0xff] }
 0x8bd   :  { %v6776_v37 = vcombine.high %v3182_v4, %v3186_v35  ;;  %v6775_v11 = vcombine.low %v3182_v4, %v3186_v35  ;;  %v6657_v12 = vcombine.low %v9328_v18, %v9333_v10 }
 0x8bf   :  { %3888 = vmatpush1.bf16.msra.mxu0 %v6717_v27  ;;  %3931 = vmatpush1.bf16.msra.mxu1 %v6719_v20  ;;  %v6658_v27 = vcombine.high %v9328_v18, %v9333_v10  ;;  %v9345_v20 = vld [vmem:[%s10927_s4 + $0x38] sm:$0xff]  ;;  %v3091_v18 = vld [vmem:[%s10927_s4 + $0xf0] sm:$0xff] }
 0x8c0   :  { %3889 = vmatprep.subr.bf16.mxu0 %v6726_v38  ;;  %3932 = vmatprep.subr.bf16.mxu1 %v6728_v43  ;;  %v6659_v22 = vcombine.low %v9338_v8, %v9345_v20  ;;  %v6660_v26 = vcombine.high %v9338_v8, %v9345_v20  ;;  %v3088_v10 = vld [vmem:[%s10927_s4 + $0xd8] sm:$0xff] }
 0x8c1   :  { %v3092_v8 = vld [vmem:[%s10927_s4 + $0xf8] sm:$0xff] }
 0x8c3   :  { %3890 = vmatpush1.bf16.msra.mxu0 %v6725_v41  ;;  %3933 = vmatpush1.bf16.msra.mxu1 %v6727_v42 }
 0x8c4   :  { %3891 = vmatprep.subr.bf16.mxu0 %v6734_v47  ;;  %3934 = vmatprep.subr.bf16.mxu1 %v6736_v54  ;;  %v2972_v54 = vld [vmem:[#allocation2 + $0x50] sm:$0xc0] }
 0x8c7   :  { %3892 = vmatpush1.bf16.msra.mxu0 %v6733_v58  ;;  %3935 = vmatpush1.bf16.msra.mxu1 %v6735_v50  ;;  %v2970_v50 = vld [vmem:[#allocation2 + $0x40] sm:$0xc0] }
 0x8c8   :  { %3893 = vmatprep.subr.bf16.mxu0 %v6742_v7  ;;  %3936 = vmatprep.subr.bf16.mxu1 %v6744_v21 }
 0x8cb   :  { %3894 = vmatpush1.bf16.msra.mxu0 %v6741_v48  ;;  %3937 = vmatpush1.bf16.msra.mxu1 %v6743_v28 }
 0x8cc   :  { %3895 = vmatprep.subr.bf16.mxu0 %v6750_v53  ;;  %3938 = vmatprep.subr.bf16.mxu1 %v6752_v19  ;;  %v2977_v19 = vld [vmem:[#allocation2 + $0x38] sm:$0x3] }
 0x8cf   :  { %3896 = vmatpush1.bf16.msra.mxu0 %v6749_v40  ;;  %3939 = vmatpush1.bf16.msra.mxu1 %v6751_v39 }
 0x8d0   :  { %3897 = vmatprep.subr.bf16.mxu0 %v6758_v14  ;;  %3940 = vmatprep.subr.bf16.mxu1 %v6760_v1 }
 0x8d3   :  { %3898 = vmatpush1.bf16.msra.mxu0 %v6757_v0  ;;  %3941 = vmatpush1.bf16.msra.mxu1 %v6759_v32 }
 0x8d4   :  { %3899 = vmatprep.subr.bf16.mxu0 %v6766_v13  ;;  %3942 = vmatprep.subr.bf16.mxu1 %v6768_v25 }
 0x8d7   :  { %3900 = vmatpush1.bf16.msra.mxu0 %v6765_v56  ;;  %3943 = vmatpush1.bf16.msra.mxu1 %v6767_v17 }
 0x8d8   :  { %3901 = vmatprep.subr.bf16.mxu0 %v6774_v5  ;;  %3944 = vmatprep.subr.bf16.mxu1 %v6776_v37 }
 0x8db   :  { %3902 = vmatpush1.bf16.msra.mxu0 %v6773_v24  ;;  %3945 = vmatpush1.bf16.msra.mxu1 %v6775_v11 }
 0x8dc   :  { %3957 = vmatprep.subr.bf16.mxu0 %v6658_v27  ;;  %4000 = vmatprep.subr.bf16.mxu1 %v6660_v26 }
 0x951   :  { %v2837_v29 = vpop.f32.mrb[64].mxu0  ;;  %v2878_v38 = vpop.f32.mrb[64].mxu1 }
 0x952   :  { %v2839_v3 = vpop.f32.mrb[65].mxu0  ;;  %v2880_v41 = vpop.f32.mrb[65].mxu1  ;;  %v2982_v46 = vrot.slane %v2837_v29, 2  ;;  %v2984_v47 = vrot.slane %v2878_v38, 2 }
 0x953   :  { %v2841_v42 = vpop.f32.mrb[66].mxu0  ;;  %v2882_v43 = vpop.f32.mrb[66].mxu1  ;;  %v2983_v51 = vrot.slane %v2839_v3, 2  ;;  %v2985_v58 = vrot.slane %v2880_v41, 2 }
 0x954   :  { %v2842_v44 = vpop.f32.mrb[67].mxu0  ;;  %v2883_v45 = vpop.f32.mrb[67].mxu1  ;;  %v2990_v57 = vadd.f32 %v2982_v46, %v2970_v50  ;;  %v2992_v7 = vadd.f32 %v2984_v47, %v2972_v54  ;;  %v3055_v50 = vld [vmem:[#allocation3] sm:$0xff]  ;;  %v3071_v54 = vld [vmem:[%s10927_s4 + $0x50] sm:$0xff] }
 0x955   :  { %v2991_v48 = vadd.f32 %v2983_v51, %v2971_v16  ;;  %v2993_v28 = vadd.f32 %v2985_v58, %v2973_v52  ;;  %v3058_v58 = vld [vmem:[#allocation3 + $0x18] sm:$0xff]  ;;  %v3075_v16 = vld [vmem:[%s10927_s4 + $0x70] sm:$0xff] }
 0x956   :  { %v3002_v60 = vrot.slane %v2990_v57, 6  ;;  %v3004_v0 = vrot.slane %v2992_v7, 6  ;;  %v3076_v7 = vld [vmem:[%s10927_s4 + $0x78] sm:$0xff] }
 0x957   :  { %v3003_v23 = vrot.slane %v2991_v48, 6  ;;  %v3005_v56 = vrot.slane %v2993_v28, 6  ;;  %v3079_v28 = vld [vmem:[%s10927_s4 + $0x90] sm:$0xff] }
 0x971   :  { %v2922_v21 = vpop.f32.mrb[68].mxu0  ;;  %v2963_v34 = vpop.f32.mrb[68].mxu1 }
 0x972   :  { %v2994_v53 = vadd.f32 %v2974_v63, %v2922_v21  ;;  %v2996_v36 = vadd.f32 %v2976_v61, %v2963_v34  ;;  %v2924_v40 = vpop.f32.mrb[69].mxu0  ;;  %v2965_v39 = vpop.f32.mrb[69].mxu1  ;;  %v6666_v21 = vcombine.high %v3071_v54, %v3075_v16  ;;  %v3083_v61 = vld [vmem:[%s10927_s4 + $0xb0] sm:$0xff] }
 0x973   :  { %v2995_v55 = vadd.f32 %v2975_v15, %v2924_v40  ;;  %v2997_v6 = vadd.f32 %v2977_v19, %v2965_v39  ;;  %v2926_v49 = vpop.f32.mrb[70].mxu0  ;;  %v2967_v14 = vpop.f32.mrb[70].mxu1  ;;  %v3080_v15 = vld [vmem:[%s10927_s4 + $0x98] sm:$0xff]  ;;  %v6674_v39 = vcombine.high %v3079_v28, %v3083_v61  ;;  %v6673_v20 = vcombine.low %v3079_v28, %v3083_v61 }
 0x974   :  { %v3014_v32 = vrot.slane %v2994_v53, 6  ;;  %v3016_v1 = vrot.slane %v2996_v36, 6  ;;  %v2927_v59 = vpop.f32.mrb[71].mxu0  ;;  %v2968_v2 = vpop.f32.mrb[71].mxu1  ;;  %v3084_v53 = vld [vmem:[%s10927_s4 + $0xb8] sm:$0xff]  ;;  %v6665_v36 = vcombine.low %v3071_v54, %v3075_v16  ;;  %v3095_v49 = vld [vmem:[%s10927_s4 + $0x110] sm:$0xff] }
 0x975   :  { %v3015_v13 = vrot.slane %v2995_v55, 6  ;;  %v3017_v31 = vrot.slane %v2997_v6, 6  ;;  %v6676_v19 = vcombine.high %v3080_v15, %v3084_v53  ;;  %v3087_v55 = vld [vmem:[%s10927_s4 + $0xd0] sm:$0xff]  ;;  %v6684_v6 = vcombine.high %v3088_v10, %v3092_v8 }
 0x976   :  { %v3022_v30 = vsel %vm1238_vm0, %v3002_v60, %v3014_v32  ;;  %v3024_v9 = vsel %vm1238_vm0, %v3004_v0, %v3016_v1  ;;  %v3099_v14 = vld [vmem:[%s10927_s4 + $0x130] sm:$0xff]  ;;  %v3096_v60 = vld [vmem:[%s10927_s4 + $0x118] sm:$0xff]  ;;  %v6681_v32 = vcombine.low %v3087_v55, %v3091_v18  ;;  %v6683_v1 = vcombine.low %v3088_v10, %v3092_v8 }
 0x977   :  { %v6650_v17 = vmul.f32 -1.442695, %v3022_v30  ;;  %v3023_v25 = vsel %vm1238_vm0, %v3003_v23, %v3015_v13  ;;  %v3025_v5 = vsel %vm1238_vm0, %v3005_v56, %v3017_v31  ;;  %v6652_v35 = vmul.f32 -1.442695, %v3024_v9  ;;  %v3100_v0 = vld [vmem:[%s10927_s4 + $0x138] sm:$0xff]  ;;  %v3103_v23 = vld [vmem:[%s10927_s4 + $0x150] sm:$0xff] }
 0x978   :  { %v6651_v4 = vmul.f32 -1.442695, %v3023_v25  ;;  %v6690_v59 = vcombine.high %v3095_v49, %v3099_v14  ;;  %v6692_v2 = vcombine.high %v3096_v60, %v3100_v0  ;;  %v3107_v56 = vld [vmem:[%s10927_s4 + $0x170] sm:$0xff]  ;;  %v3104_v13 = vld [vmem:[%s10927_s4 + $0x158] sm:$0xff]  ;;  %v6689_v30 = vcombine.low %v3095_v49, %v3099_v14 }
 0x979   :  { %7207 = vpow2.f32 %v6650_v17  ;;  %v3108_v31 = vld [vmem:[%s10927_s4 + $0x178] sm:$0xff]  ;;  %v6691_v9 = vcombine.low %v3096_v60, %v3100_v0  ;;  %v6698_v17 = vcombine.high %v3103_v23, %v3107_v56  ;;  %v3151_v10 = vld [vmem:[%s10927_s4 + $0x2d0] sm:$0xff] }
 0x97a   :  { %7209 = vpow2.f32 %v6651_v4  ;;  %v6700_v25 = vcombine.high %v3104_v13, %v3108_v31  ;;  %v3115_v4 = vld [vmem:[%s10927_s4 + $0x1b0] sm:$0xff] }
 0x97b   :  { %7211 = vtanh.f32 %v3025_v5  ;;  %v3111_v5 = vld [vmem:[%s10927_s4 + $0x190] sm:$0xff] }
 0x97c   :  { %7213 = vpow2.f32 %v6652_v35  ;;  %v3112_v35 = vld [vmem:[%s10927_s4 + $0x198] sm:$0xff]  ;;  %v3155_v8 = vld [vmem:[%s10927_s4 + $0x2f0] sm:$0xff] }
 0x97d   :  { %v6746_v49 = vcombine.high %v3151_v10, %v3155_v8  ;;  %v3159_v60 = vld [vmem:[%s10927_s4 + $0x310] sm:$0xff] }
 0x97e   :  { %v3163_v0 = vld [vmem:[%s10927_s4 + $0x330] sm:$0xff] }
 0x983   :  { %v7208_v37 = vpop.eup %7207 }
 0x984   :  { %v3035_v24 = vadd.f32 1.0, %v7208_v37  ;;  %v7210_v11 = vpop.eup %7209  ;;  %v3116_v37 = vld [vmem:[%s10927_s4 + $0x1b8] sm:$0xff] }
 0x985   :  { %v3036_v27 = vadd.f32 1.0, %v7210_v11  ;;  %v7212_v26 = vpop.eup %7211  ;;  %v6699_v11 = vcombine.low %v3104_v13, %v3108_v31  ;;  %v3167_v13 = vld [vmem:[%s10927_s4 + $0x350] sm:$0xff] }
 0x986   :  { %7215 = vrcp.f32 %v3035_v24  ;;  %v7214_v29 = vpop.eup %7213  ;;  %v6697_v24 = vcombine.low %v3103_v23, %v3107_v56  ;;  %v6754_v23 = vcombine.high %v3159_v60, %v3163_v0  ;;  %v3171_v31 = vld [vmem:[%s10927_s4 + $0x370] sm:$0xff] }
 0x987   :  { %7217 = vrcp.f32 %v3036_v27  ;;  %v3037_v42 = vadd.f32 1.0, %v7214_v29  ;;  %v6706_v27 = vcombine.high %v3111_v5, %v3115_v4  ;;  %v3119_v29 = vld [vmem:[%s10927_s4 + $0x1d0] sm:$0xff] }
 0x989   :  { %7219 = vrcp.f32 %v3037_v42  ;;  %v6705_v42 = vcombine.low %v3111_v5, %v3115_v4  ;;  %v6762_v5 = vcombine.high %v3167_v13, %v3171_v31 }
 0x990   :  { %v7216_v38 = vpop.eup %7215 }
 0x991   :  { %v3046_v3 = vmul.f32 %v7216_v38, %v7212_v26  ;;  %v7218_v41 = vpop.eup %7217  ;;  %v6708_v26 = vcombine.high %v3112_v35, %v3116_v37  ;;  %v3123_v38 = vld [vmem:[%s10927_s4 + $0x1f0] sm:$0xff] }
 0x992   :  { %v3045_v43 = vmul.f32 %v7218_v41, %v9033_v33  ;;  %v3072_v33 = vld [vmem:[%s10927_s4 + $0x58] sm:$0xff] }
 0x993   :  { %v7220_v45 = vpop.eup %7219  ;;  %v6668_v34 = vcombine.high %v3072_v33, %v3076_v7  ;;  %v6667_v40 = vcombine.low %v3072_v33, %v3076_v7  ;;  %v3124_v41 = vld [vmem:[%s10927_s4 + $0x1f8] sm:$0xff] }
 0x994   :  { %v3047_v44 = vadd.f32 %v3046_v3, %v3045_v43  ;;  %v3120_v3 = vld [vmem:[%s10927_s4 + $0x1d8] sm:$0xff]  ;;  %v6707_v43 = vcombine.low %v3112_v35, %v3116_v37  ;;  %v3175_v35 = vld [vmem:[%s10927_s4 + $0x390] sm:$0xff] }
 0x995   :  { %v6715_v54 = vcombine.low %v3120_v3, %v3124_v41  ;;  %v3136_v7 = vld [vmem:[%s10927_s4 + $0x258] sm:$0xff]  ;;  %v3179_v37 = vld [vmem:[%s10927_s4 + $0x3b0] sm:$0xff] }
 0x996   :  { %7221 = vtanh.f32 %v3047_v44  ;;  %v6714_v44 = vcombine.high %v3119_v29, %v3123_v38 }
 0x9a0   :  { %v7222_v46 = vpop.eup %7221 }
 0x9a1   :  { %v3049_v47 = vmul.f32 %v7222_v46, %v7220_v45  ;;  %v6716_v45 = vcombine.high %v3120_v3, %v3124_v41  ;;  %v3127_v46 = vld [vmem:[%s10927_s4 + $0x210] sm:$0xff] }
 0x9a2   :  { %v3183_v3 = vld [vmem:[%s10927_s4 + $0x3d0] sm:$0xff] }
 0x9a3   :  { %v3051_v51 = vrot.slane %v3049_v47, 2  ;;  %v3131_v47 = vld [vmem:[%s10927_s4 + $0x230] sm:$0xff] }
 0x9a4   :  { %v6722_v16 = vcombine.high %v3127_v46, %v3131_v47  ;;  %v6721_v28 = vcombine.low %v3127_v46, %v3131_v47  ;;  %v3187_v41 = vld [vmem:[%s10927_s4 + $0x3f0] sm:$0xff] }
 0x9a5   :  { %3053 = vst [vmem:[#allocation3 + $0x8] ss:$12 sps:$4 sm:$0xc3] %v3051_v51   ;;  %v3128_v51 = vld [vmem:[%s10927_s4 + $0x218] sm:$0xff]  ;;  %v6778_v46 = vcombine.high %v3183_v3, %v3187_v41 }
 0x9ac   :  { %v3056_v52 = vld [vmem:[#allocation3 + $0x8] sm:$0xff]  ;;  %v3057_v57 = vld [vmem:[#allocation3 + $0x10] sm:$0xff] }
 0x9ad   :  { %v3060_v63 = vpack.c.bf16 %v3058_v58, %v3056_v52  ;;  %v9370_v48 = vpack.c.bf16 %v3057_v57, %v3055_v50  ;;  %v3132_v58 = vld [vmem:[%s10927_s4 + $0x238] sm:$0xff]  ;;  %v6713_v50 = vcombine.low %v3119_v29, %v3123_v38  ;;  %v3135_v52 = vld [vmem:[%s10927_s4 + $0x250] sm:$0xff]  ;;  %v6770_v29 = vcombine.high %v3175_v35, %v3179_v37 }
 0x9ae   :  { %v6724_v33 = vcombine.high %v3128_v51, %v3132_v58  ;;  %v3139_v57 = vld [vmem:[%s10927_s4 + $0x270] sm:$0xff] }
 0x9af   :  { %3903 = vmatprep.mubr.bf16.mxu0 %v3060_v63  ;;  %3946 = vmatprep.mubr.bf16.mxu1 %v3060_v63 }
 0x9b0   :  { %3904 = vmatmul.mubr.bf16.vlgmr.msra.gmra.mrb[72].mxu0 %v9370_v48  ;;  %3947 = vmatmul.mubr.bf16.vlgmr.msra.gmra.mrb[72].mxu1 %v9370_v48 }
 0x9b1   :  { %3958 = vmatpush1.bf16.msra.mxu0 %v6657_v12  ;;  %4001 = vmatpush1.bf16.msra.mxu1 %v6659_v22  ;;  %v6675_v12 = vcombine.low %v3080_v15, %v3084_v53  ;;  %v6682_v22 = vcombine.high %v3087_v55, %v3091_v18  ;;  %v3143_v15 = vld [vmem:[%s10927_s4 + $0x290] sm:$0xff] }
 0x9b2   :  { %3989 = vmatprep.mubr.bf16.mxu0 %v3060_v63  ;;  %4032 = vmatprep.mubr.bf16.mxu1 %v3060_v63  ;;  %v3140_v63 = vld [vmem:[%s10927_s4 + $0x278] sm:$0xff]  ;;  %v3147_v53 = vld [vmem:[%s10927_s4 + $0x2b0] sm:$0xff] }
 0x9b3   :  { %3959 = vmatprep.subr.bf16.mxu0 %v6666_v21  ;;  %4002 = vmatprep.subr.bf16.mxu1 %v6668_v34  ;;  %v6723_v21 = vcombine.low %v3128_v51, %v3132_v58  ;;  %v6730_v34 = vcombine.high %v3135_v52, %v3139_v57  ;;  %v6732_v61 = vcombine.high %v3136_v7, %v3140_v63 }
 0x9b4   :  { %v6738_v55 = vcombine.high %v3143_v15, %v3147_v53  ;;  %v6777_v51 = vcombine.low %v3183_v3, %v3187_v41  ;;  %v9874_v3 = vld [vmem:[%s10928_s5 + $0x1ac] ss:$16 sps:$4 sm:$0xff]   ;;  %v9881_v41 = vld [vmem:[%s10928_s5 + $0x1a0] ss:$16 sps:$4 sm:$0xff]  }
 0x9b5   :  { %3960 = vmatpush1.bf16.msra.mxu0 %v6665_v36  ;;  %4003 = vmatpush1.bf16.msra.mxu1 %v6667_v40  ;;  %v3144_v36 = vld [vmem:[%s10927_s4 + $0x298] sm:$0xff] }
 0x9b6   :  { %3961 = vmatprep.subr.bf16.mxu0 %v6674_v39  ;;  %4004 = vmatprep.subr.bf16.mxu1 %v6676_v19  ;;  %v3148_v40 = vld [vmem:[%s10927_s4 + $0x2b8] sm:$0xff]  ;;  %v6729_v39 = vcombine.low %v3135_v52, %v3139_v57  ;;  %v6731_v19 = vcombine.low %v3136_v7, %v3140_v63  ;;  %v9573_v52 = vld [vmem:[%s10928_s5 + $0x24] ss:$16 sps:$4 sm:$0xff]   ;;  %v9587_v7 = vld [vmem:[%s10928_s5 + $0x20] ss:$16 sps:$4 sm:$0xff]  }
 0x9b7   :  { %v6740_v18 = vcombine.high %v3144_v36, %v3148_v40  ;;  %11422 = vst [vmem:[#allocation6_spill] sm:$0xff] %v9573_v52  ;;  %v9578_v57 = vld [vmem:[%s10928_s5 + $0x2c] ss:$16 sps:$4 sm:$0xff]   ;;  %11424 = vst [vmem:[#allocation8_spill] sm:$0xff] %v9587_v7  ;;  %v9592_v63 = vld [vmem:[%s10928_s5 + $0x28] ss:$16 sps:$4 sm:$0xff]  }
 0x9b8   :  { %11423 = vst [vmem:[#allocation7_spill] sm:$0xff] %v9578_v57  ;;  %11425 = vst [vmem:[#allocation9_spill] sm:$0xff] %v9592_v63 }
 0x9b9   :  { %3962 = vmatpush1.bf16.msra.mxu0 %v6673_v20  ;;  %4005 = vmatpush1.bf16.msra.mxu1 %v6675_v12  ;;  %v3152_v20 = vld [vmem:[%s10927_s4 + $0x2d8] sm:$0xff] }
 0x9ba   :  { %3963 = vmatprep.subr.bf16.mxu0 %v6682_v22  ;;  %4006 = vmatprep.subr.bf16.mxu1 %v6684_v6  ;;  %v3156_v12 = vld [vmem:[%s10927_s4 + $0x2f8] sm:$0xff]  ;;  %v6737_v22 = vcombine.low %v3143_v15, %v3147_v53  ;;  %v6739_v6 = vcombine.low %v3144_v36, %v3148_v40  ;;  %v9637_v53 = vld [vmem:[%s10928_s5 + $0x60] ss:$16 sps:$4 sm:$0xff]   ;;  %v9649_v40 = vld [vmem:[%s10928_s5 + $0x84] ss:$16 sps:$4 sm:$0xff]  }
 0x9bb   :  { %v6748_v14 = vcombine.high %v3152_v20, %v3156_v12  ;;  %v9630_v15 = vld [vmem:[%s10928_s5 + $0x6c] ss:$16 sps:$4 sm:$0xff]   ;;  %11432 = vst [vmem:[#allocation16_spill] sm:$0xff] %v9637_v53  ;;  %v9642_v36 = vld [vmem:[%s10928_s5 + $0x68] ss:$16 sps:$4 sm:$0xff]   ;;  %11434 = vst [vmem:[#allocation18_spill] sm:$0xff] %v9649_v40 }
 0x9bc   :  { %11431 = vst [vmem:[#allocation15_spill] sm:$0xff] %v9630_v15  ;;  %11433 = vst [vmem:[#allocation17_spill] sm:$0xff] %v9642_v36 }
 0x9bd   :  { %3964 = vmatpush1.bf16.msra.mxu0 %v6681_v32  ;;  %4007 = vmatpush1.bf16.msra.mxu1 %v6683_v1  ;;  %v3160_v32 = vld [vmem:[%s10927_s4 + $0x318] sm:$0xff] }
 0x9be   :  { %3965 = vmatprep.subr.bf16.mxu0 %v6690_v59  ;;  %4008 = vmatprep.subr.bf16.mxu1 %v6692_v2  ;;  %v3164_v1 = vld [vmem:[%s10927_s4 + $0x338] sm:$0xff]  ;;  %v6745_v59 = vcombine.low %v3151_v10, %v3155_v8  ;;  %v6747_v2 = vcombine.low %v3152_v20, %v3156_v12  ;;  %v9685_v8 = vld [vmem:[%s10928_s5 + $0xa0] ss:$16 sps:$4 sm:$0xff]   ;;  %v9697_v12 = vld [vmem:[%s10928_s5 + $0xc4] ss:$16 sps:$4 sm:$0xff]  }
 0x9bf   :  { %v6756_v56 = vcombine.high %v3160_v32, %v3164_v1  ;;  %v9678_v10 = vld [vmem:[%s10928_s5 + $0xac] ss:$16 sps:$4 sm:$0xff]   ;;  %11440 = vst [vmem:[#allocation24_spill] sm:$0xff] %v9685_v8  ;;  %v9690_v20 = vld [vmem:[%s10928_s5 + $0xa8] ss:$16 sps:$4 sm:$0xff]   ;;  %11442 = vst [vmem:[#allocation26_spill] sm:$0xff] %v9697_v12 }
 0x9c0   :  { %11439 = vst [vmem:[#allocation23_spill] sm:$0xff] %v9678_v10  ;;  %11441 = vst [vmem:[#allocation25_spill] sm:$0xff] %v9690_v20 }
 0x9c1   :  { %3966 = vmatpush1.bf16.msra.mxu0 %v6689_v30  ;;  %4009 = vmatpush1.bf16.msra.mxu1 %v6691_v9  ;;  %v3168_v30 = vld [vmem:[%s10927_s4 + $0x358] sm:$0xff] }
 0x9c2   :  { %3967 = vmatprep.subr.bf16.mxu0 %v6698_v17  ;;  %4010 = vmatprep.subr.bf16.mxu1 %v6700_v25  ;;  %v3172_v9 = vld [vmem:[%s10927_s4 + $0x378] sm:$0xff]  ;;  %v6753_v17 = vcombine.low %v3159_v60, %v3163_v0  ;;  %v6755_v25 = vcombine.low %v3160_v32, %v3164_v1  ;;  %v9733_v0 = vld [vmem:[%s10928_s5 + $0xe0] ss:$16 sps:$4 sm:$0xff]   ;;  %v9745_v1 = vld [vmem:[%s10928_s5 + $0x104] ss:$16 sps:$4 sm:$0xff]  }
 0x9c3   :  { %v6764_v4 = vcombine.high %v3168_v30, %v3172_v9  ;;  %v9726_v60 = vld [vmem:[%s10928_s5 + $0xec] ss:$16 sps:$4 sm:$0xff]   ;;  %11448 = vst [vmem:[#allocation32_spill] sm:$0xff] %v9733_v0  ;;  %v9738_v32 = vld [vmem:[%s10928_s5 + $0xe8] ss:$16 sps:$4 sm:$0xff]   ;;  %11450 = vst [vmem:[#allocation34_spill] sm:$0xff] %v9745_v1 }
 0x9c4   :  { %11447 = vst [vmem:[#allocation31_spill] sm:$0xff] %v9726_v60  ;;  %11449 = vst [vmem:[#allocation33_spill] sm:$0xff] %v9738_v32 }
 0x9c5   :  { %3968 = vmatpush1.bf16.msra.mxu0 %v6697_v24  ;;  %4011 = vmatpush1.bf16.msra.mxu1 %v6699_v11  ;;  %v3176_v24 = vld [vmem:[%s10927_s4 + $0x398] sm:$0xff] }
 0x9c6   :  { %3969 = vmatprep.subr.bf16.mxu0 %v6706_v27  ;;  %4012 = vmatprep.subr.bf16.mxu1 %v6708_v26  ;;  %v3180_v11 = vld [vmem:[%s10927_s4 + $0x3b8] sm:$0xff]  ;;  %v6761_v27 = vcombine.low %v3167_v13, %v3171_v31  ;;  %v6763_v26 = vcombine.low %v3168_v30, %v3172_v9  ;;  %v9783_v31 = vld [vmem:[%s10928_s5 + $0x120] ss:$16 sps:$4 sm:$0xff]   ;;  %v9795_v9 = vld [vmem:[%s10928_s5 + $0x144] ss:$16 sps:$4 sm:$0xff]  }
 0x9c7   :  { %v6772_v38 = vcombine.high %v3176_v24, %v3180_v11  ;;  %v9774_v13 = vld [vmem:[%s10928_s5 + $0x12c] ss:$16 sps:$4 sm:$0xff]   ;;  %v9788_v30 = vld [vmem:[%s10928_s5 + $0x128] ss:$16 sps:$4 sm:$0xff]  }
 0x9c9   :  { %3970 = vmatpush1.bf16.msra.mxu0 %v6705_v42  ;;  %4013 = vmatpush1.bf16.msra.mxu1 %v6707_v43  ;;  %v3184_v42 = vld [vmem:[%s10927_s4 + $0x3d8] sm:$0xff] }
 0x9ca   :  { %3971 = vmatprep.subr.bf16.mxu0 %v6714_v44  ;;  %4014 = vmatprep.subr.bf16.mxu1 %v6716_v45  ;;  %v3188_v43 = vld [vmem:[%s10927_s4 + $0x3f8] sm:$0xff]  ;;  %v6769_v44 = vcombine.low %v3175_v35, %v3179_v37  ;;  %v6771_v45 = vcombine.low %v3176_v24, %v3180_v11  ;;  %v9833_v37 = vld [vmem:[%s10928_s5 + $0x160] ss:$16 sps:$4 sm:$0xff]   ;;  %v9845_v11 = vld [vmem:[%s10928_s5 + $0x184] ss:$16 sps:$4 sm:$0xff]  }
 0x9cb   :  { %v6780_v47 = vcombine.high %v3184_v42, %v3188_v43  ;;  %v6779_v58 = vcombine.low %v3184_v42, %v3188_v43  ;;  %v9826_v35 = vld [vmem:[%s10928_s5 + $0x16c] ss:$16 sps:$4 sm:$0xff]   ;;  %v9838_v24 = vld [vmem:[%s10928_s5 + $0x168] ss:$16 sps:$4 sm:$0xff]   ;;  %v9893_v43 = vld [vmem:[%s10928_s5 + $0x1c4] ss:$16 sps:$4 sm:$0xff]  }
 0x9cc   :  { %v9886_v42 = vld [vmem:[%s10928_s5 + $0x1a8] ss:$16 sps:$4 sm:$0xff]  }
 0x9cd   :  { %3972 = vmatpush1.bf16.msra.mxu0 %v6713_v50  ;;  %4015 = vmatpush1.bf16.msra.mxu1 %v6715_v54  ;;  %v9551_v50 = vld [vmem:[%s10928_s5 + $0x4] ss:$16 sps:$4 sm:$0xff]   ;;  %v9556_v54 = vld [vmem:[%s10928_s5 + $0xc] ss:$16 sps:$4 sm:$0xff]  }
 0x9ce   :  { %3973 = vmatprep.subr.bf16.mxu0 %v6722_v16  ;;  %4016 = vmatprep.subr.bf16.mxu1 %v6724_v33  ;;  %11419 = vst [vmem:[#allocation35_spill] sm:$0xff] %v9556_v54  ;;  %v9561_v16 = vld [vmem:[%s10928_s5] ss:$16 sps:$4 sm:$0xff]   ;;  %v9566_v33 = vld [vmem:[%s10928_s5 + $0x8] ss:$16 sps:$4 sm:$0xff]  }
 0x9cf   :  { %11420 = vst [vmem:[#allocation4_spill] sm:$0xff] %v9561_v16  ;;  %11421 = vst [vmem:[#allocation5_spill] sm:$0xff] %v9566_v33 }
 0x9d1   :  { %3974 = vmatpush1.bf16.msra.mxu0 %v6721_v28  ;;  %4017 = vmatpush1.bf16.msra.mxu1 %v6723_v21  ;;  %v9604_v28 = vld [vmem:[%s10928_s5 + $0x4c] ss:$16 sps:$4 sm:$0xff]   ;;  %v9613_v21 = vld [vmem:[%s10928_s5 + $0x40] ss:$16 sps:$4 sm:$0xff]  }
 0x9d2   :  { %3975 = vmatprep.subr.bf16.mxu0 %v6730_v34  ;;  %4018 = vmatprep.subr.bf16.mxu1 %v6732_v61  ;;  %11427 = vst [vmem:[#allocation11_spill] sm:$0xff] %v9604_v28  ;;  %11428 = vst [vmem:[#allocation12_spill] sm:$0xff] %v9613_v21  ;;  %v9618_v34 = vld [vmem:[%s10928_s5 + $0x48] ss:$16 sps:$4 sm:$0xff]   ;;  %v9625_v61 = vld [vmem:[%s10928_s5 + $0x64] ss:$16 sps:$4 sm:$0xff]  }
 0x9d3   :  { %11429 = vst [vmem:[#allocation13_spill] sm:$0xff] %v9618_v34  ;;  %11430 = vst [vmem:[#allocation14_spill] sm:$0xff] %v9625_v61 }
 0x9d5   :  { %3976 = vmatpush1.bf16.msra.mxu0 %v6729_v39  ;;  %4019 = vmatpush1.bf16.msra.mxu1 %v6731_v19  ;;  %v9654_v39 = vld [vmem:[%s10928_s5 + $0x8c] ss:$16 sps:$4 sm:$0xff]   ;;  %v9661_v19 = vld [vmem:[%s10928_s5 + $0x80] ss:$16 sps:$4 sm:$0xff]  }
 0x9d6   :  { %3977 = vmatprep.subr.bf16.mxu0 %v6738_v55  ;;  %4020 = vmatprep.subr.bf16.mxu1 %v6740_v18  ;;  %11435 = vst [vmem:[#allocation19_spill] sm:$0xff] %v9654_v39  ;;  %11436 = vst [vmem:[#allocation20_spill] sm:$0xff] %v9661_v19  ;;  %v9666_v55 = vld [vmem:[%s10928_s5 + $0x88] ss:$16 sps:$4 sm:$0xff]   ;;  %v9673_v18 = vld [vmem:[%s10928_s5 + $0xa4] ss:$16 sps:$4 sm:$0xff]  }
 0x9d7   :  { %11437 = vst [vmem:[#allocation21_spill] sm:$0xff] %v9666_v55  ;;  %11438 = vst [vmem:[#allocation22_spill] sm:$0xff] %v9673_v18 }
 0x9d9   :  { %3978 = vmatpush1.bf16.msra.mxu0 %v6737_v22  ;;  %4021 = vmatpush1.bf16.msra.mxu1 %v6739_v6  ;;  %v9702_v22 = vld [vmem:[%s10928_s5 + $0xcc] ss:$16 sps:$4 sm:$0xff]   ;;  %v9709_v6 = vld [vmem:[%s10928_s5 + $0xc0] ss:$16 sps:$4 sm:$0xff]  }
 0x9da   :  { %3979 = vmatprep.subr.bf16.mxu0 %v6746_v49  ;;  %4022 = vmatprep.subr.bf16.mxu1 %v6748_v14  ;;  %11443 = vst [vmem:[#allocation27_spill] sm:$0xff] %v9702_v22  ;;  %11444 = vst [vmem:[#allocation28_spill] sm:$0xff] %v9709_v6  ;;  %v9714_v49 = vld [vmem:[%s10928_s5 + $0xc8] ss:$16 sps:$4 sm:$0xff]   ;;  %v9721_v14 = vld [vmem:[%s10928_s5 + $0xe4] ss:$16 sps:$4 sm:$0xff]  }
 0x9db   :  { %11445 = vst [vmem:[#allocation29_spill] sm:$0xff] %v9714_v49  ;;  %11446 = vst [vmem:[#allocation30_spill] sm:$0xff] %v9721_v14 }
 0x9dd   :  { %3980 = vmatpush1.bf16.msra.mxu0 %v6745_v59  ;;  %4023 = vmatpush1.bf16.msra.mxu1 %v6747_v2  ;;  %v9750_v59 = vld [vmem:[%s10928_s5 + $0x10c] ss:$16 sps:$4 sm:$0xff]   ;;  %v9757_v2 = vld [vmem:[%s10928_s5 + $0x100] ss:$16 sps:$4 sm:$0xff]  }
 0x9de   :  { %3981 = vmatprep.subr.bf16.mxu0 %v6754_v23  ;;  %4024 = vmatprep.subr.bf16.mxu1 %v6756_v56  ;;  %11451 = vst [vmem:[#allocation37_spill] sm:$0xff] %v9750_v59  ;;  %v9762_v23 = vld [vmem:[%s10928_s5 + $0x108] ss:$16 sps:$4 sm:$0xff]   ;;  %v9769_v56 = vld [vmem:[%s10928_s5 + $0x124] ss:$16 sps:$4 sm:$0xff]  }
 0x9e1   :  { %3982 = vmatpush1.bf16.msra.mxu0 %v6753_v17  ;;  %4025 = vmatpush1.bf16.msra.mxu1 %v6755_v25  ;;  %v9800_v17 = vld [vmem:[%s10928_s5 + $0x14c] ss:$16 sps:$4 sm:$0xff]   ;;  %v9809_v25 = vld [vmem:[%s10928_s5 + $0x140] ss:$16 sps:$4 sm:$0xff]  }
 0x9e2   :  { %3983 = vmatprep.subr.bf16.mxu0 %v6762_v5  ;;  %4026 = vmatprep.subr.bf16.mxu1 %v6764_v4  ;;  %v9814_v5 = vld [vmem:[%s10928_s5 + $0x148] ss:$16 sps:$4 sm:$0xff]   ;;  %v9821_v4 = vld [vmem:[%s10928_s5 + $0x164] ss:$16 sps:$4 sm:$0xff]  }
 0x9e5   :  { %3984 = vmatpush1.bf16.msra.mxu0 %v6761_v27  ;;  %4027 = vmatpush1.bf16.msra.mxu1 %v6763_v26  ;;  %v9850_v27 = vld [vmem:[%s10928_s5 + $0x18c] ss:$16 sps:$4 sm:$0xff]   ;;  %v9857_v26 = vld [vmem:[%s10928_s5 + $0x180] ss:$16 sps:$4 sm:$0xff]  }
 0x9e6   :  { %3985 = vmatprep.subr.bf16.mxu0 %v6770_v29  ;;  %4028 = vmatprep.subr.bf16.mxu1 %v6772_v38  ;;  %v9862_v29 = vld [vmem:[%s10928_s5 + $0x188] ss:$16 sps:$4 sm:$0xff]   ;;  %v9869_v38 = vld [vmem:[%s10928_s5 + $0x1a4] ss:$16 sps:$4 sm:$0xff]  }
 0x9e9   :  { %3986 = vmatpush1.bf16.msra.mxu0 %v6769_v44  ;;  %4029 = vmatpush1.bf16.msra.mxu1 %v6771_v45  ;;  %v9898_v44 = vld [vmem:[%s10928_s5 + $0x1cc] ss:$16 sps:$4 sm:$0xff]   ;;  %v9905_v45 = vld [vmem:[%s10928_s5 + $0x1c0] ss:$16 sps:$4 sm:$0xff]  }
 0x9ea   :  { %3987 = vmatprep.subr.bf16.mxu0 %v6778_v46  ;;  %4030 = vmatprep.subr.bf16.mxu1 %v6780_v47  ;;  %11452 = vst [vmem:[#allocation38_spill] sm:$0xff] %v9898_v44  ;;  %v9910_v46 = vld [vmem:[%s10928_s5 + $0x1c8] ss:$16 sps:$4 sm:$0xff]   ;;  %v9917_v47 = vld [vmem:[%s10928_s5 + $0x1e4] ss:$16 sps:$4 sm:$0xff]  }
 0x9ed   :  { %3988 = vmatpush1.bf16.msra.mxu0 %v6777_v51  ;;  %4031 = vmatpush1.bf16.msra.mxu1 %v6779_v58  ;;  %v9922_v51 = vld [vmem:[%s10928_s5 + $0x1ec] ss:$16 sps:$4 sm:$0xff]   ;;  %v9929_v58 = vld [vmem:[%s10928_s5 + $0x1e0] ss:$16 sps:$4 sm:$0xff]  }
 0x9ee   :  { %4284 = vmatprep.subr.bf16.mxu0 %v9551_v50  ;;  %4325 = vmatprep.subr.bf16.mxu1 %v9556_v54 }
 0x9f0   :  { %3990 = vmatmul.mubr.bf16.vlgmr.msra.gmra.mrb[76].mxu0 %v9370_v48  ;;  %4033 = vmatmul.mubr.bf16.vlgmr.msra.gmra.mrb[76].mxu1 %v9370_v48  ;;  %v9599_v48 = vld [vmem:[%s10928_s5 + $0x44] ss:$16 sps:$4 sm:$0xff]  }
 0x9f1   :  { %4285 = vmatpush1.bf16.msra.mxu0 %v9561_v16  ;;  %4326 = vmatpush1.bf16.msra.mxu1 %v9566_v33  ;;  %11426 = vst [vmem:[#allocation10_spill] sm:$0xff] %v9599_v48 }
 0x9f2   :  { %4286 = vmatprep.subr.bf16.mxu0 %v9573_v52  ;;  %4327 = vmatprep.subr.bf16.mxu1 %v9578_v57 }
 0x9f3   :  { %4316 = vmatprep.mubr.bf16.mxu0 %v11231_v62  ;;  %4357 = vmatprep.mubr.bf16.mxu1 %v11231_v62 }
 0x9f5   :  { %4287 = vmatpush1.bf16.msra.mxu0 %v9587_v7  ;;  %4328 = vmatpush1.bf16.msra.mxu1 %v9592_v63 }
 0x9f6   :  { %4288 = vmatprep.subr.bf16.mxu0 %v9599_v48  ;;  %4329 = vmatprep.subr.bf16.mxu1 %v9604_v28 }
 0x9f9   :  { %4289 = vmatpush1.bf16.msra.mxu0 %v9613_v21  ;;  %4330 = vmatpush1.bf16.msra.mxu1 %v9618_v34 }
 0x9fa   :  { %4290 = vmatprep.subr.bf16.mxu0 %v9625_v61  ;;  %4331 = vmatprep.subr.bf16.mxu1 %v9630_v15 }
 0x9fd   :  { %4291 = vmatpush1.bf16.msra.mxu0 %v9637_v53  ;;  %4332 = vmatpush1.bf16.msra.mxu1 %v9642_v36 }
 0x9fe   :  { %4292 = vmatprep.subr.bf16.mxu0 %v9649_v40  ;;  %4333 = vmatprep.subr.bf16.mxu1 %v9654_v39 }
 0xa01   :  { %4293 = vmatpush1.bf16.msra.mxu0 %v9661_v19  ;;  %4334 = vmatpush1.bf16.msra.mxu1 %v9666_v55 }
 0xa02   :  { %4294 = vmatprep.subr.bf16.mxu0 %v9673_v18  ;;  %4335 = vmatprep.subr.bf16.mxu1 %v9678_v10 }
 0xa05   :  { %4295 = vmatpush1.bf16.msra.mxu0 %v9685_v8  ;;  %4336 = vmatpush1.bf16.msra.mxu1 %v9690_v20 }
 0xa06   :  { %4296 = vmatprep.subr.bf16.mxu0 %v9697_v12  ;;  %4337 = vmatprep.subr.bf16.mxu1 %v9702_v22 }
 0xa09   :  { %4297 = vmatpush1.bf16.msra.mxu0 %v9709_v6  ;;  %4338 = vmatpush1.bf16.msra.mxu1 %v9714_v49 }
 0xa0a   :  { %4298 = vmatprep.subr.bf16.mxu0 %v9721_v14  ;;  %4339 = vmatprep.subr.bf16.mxu1 %v9726_v60 }
 0xa0d   :  { %4299 = vmatpush1.bf16.msra.mxu0 %v9733_v0  ;;  %4340 = vmatpush1.bf16.msra.mxu1 %v9738_v32 }
 0xa0e   :  { %4526 = vmatprep.subr.bf16.mxu0 %v9745_v1  ;;  %4567 = vmatprep.subr.bf16.mxu1 %v9750_v59 }
 0xa10   :  { %4317 = vmatmul.mubr.bf16.vlgmr.msra.gmra.mrb[80].mxu0 %v11231_v62  ;;  %4358 = vmatmul.mubr.bf16.vlgmr.msra.gmra.mrb[80].mxu1 %v11231_v62 }
 0xa11   :  { %4527 = vmatpush1.bf16.msra.mxu0 %v9757_v2  ;;  %4568 = vmatpush1.bf16.msra.mxu1 %v9762_v23 }
 0xa12   :  { %4528 = vmatprep.subr.bf16.mxu0 %v9769_v56  ;;  %4569 = vmatprep.subr.bf16.mxu1 %v9774_v13 }
 0xa13   :  { %4558 = vmatprep.mubr.bf16.mxu0 %v11231_v62  ;;  %4599 = vmatprep.mubr.bf16.mxu1 %v11231_v62 }
 0xa15   :  { %4529 = vmatpush1.bf16.msra.mxu0 %v9783_v31  ;;  %4570 = vmatpush1.bf16.msra.mxu1 %v9788_v30 }
 0xa16   :  { %4530 = vmatprep.subr.bf16.mxu0 %v9795_v9  ;;  %4571 = vmatprep.subr.bf16.mxu1 %v9800_v17 }
 0xa19   :  { %4531 = vmatpush1.bf16.msra.mxu0 %v9809_v25  ;;  %4572 = vmatpush1.bf16.msra.mxu1 %v9814_v5 }
 0xa1a   :  { %4532 = vmatprep.subr.bf16.mxu0 %v9821_v4  ;;  %4573 = vmatprep.subr.bf16.mxu1 %v9826_v35 }
 0xa1d   :  { %4533 = vmatpush1.bf16.msra.mxu0 %v9833_v37  ;;  %4574 = vmatpush1.bf16.msra.mxu1 %v9838_v24 }
 0xa1e   :  { %4534 = vmatprep.subr.bf16.mxu0 %v9845_v11  ;;  %4575 = vmatprep.subr.bf16.mxu1 %v9850_v27 }
 0xa21   :  { %4535 = vmatpush1.bf16.msra.mxu0 %v9857_v26  ;;  %4576 = vmatpush1.bf16.msra.mxu1 %v9862_v29 }
 0xa22   :  { %4536 = vmatprep.subr.bf16.mxu0 %v9869_v38  ;;  %4577 = vmatprep.subr.bf16.mxu1 %v9874_v3 }
 0xa25   :  { %4537 = vmatpush1.bf16.msra.mxu0 %v9881_v41  ;;  %4578 = vmatpush1.bf16.msra.mxu1 %v9886_v42 }
 0xa26   :  { %4538 = vmatprep.subr.bf16.mxu0 %v9893_v43  ;;  %4579 = vmatprep.subr.bf16.mxu1 %v9898_v44  ;;  %v9934_v44 = vld [vmem:[%s10928_s5 + $0x1e8] ss:$16 sps:$4 sm:$0xff]  }
 0xa29   :  { %4539 = vmatpush1.bf16.msra.mxu0 %v9905_v45  ;;  %4580 = vmatpush1.bf16.msra.mxu1 %v9910_v46 }
 0xa2a   :  { %4540 = vmatprep.subr.bf16.mxu0 %v9917_v47  ;;  %4581 = vmatprep.subr.bf16.mxu1 %v9922_v51 }
 0xa2d   :  { %4541 = vmatpush1.bf16.msra.mxu0 %v9929_v58  ;;  %4582 = vmatpush1.bf16.msra.mxu1 %v9934_v44 }
 0xa2e   :  { %4682 = vmatprep.subr.bf16.mxu0 %v9551_v50  ;;  %4723 = vmatprep.subr.bf16.mxu1 %v9556_v54 }
 0xa30   :  { %4559 = vmatmul.mubr.bf16.vlgmr.msra.gmra.mrb[84].mxu0 %v11231_v62  ;;  %4600 = vmatmul.mubr.bf16.vlgmr.msra.gmra.mrb[84].mxu1 %v11231_v62 }
 0xa31   :  { %4683 = vmatpush1.bf16.msra.mxu0 %v9561_v16  ;;  %4724 = vmatpush1.bf16.msra.mxu1 %v9566_v33 }
 0xa32   :  { %4684 = vmatprep.subr.bf16.mxu0 %v9573_v52  ;;  %4725 = vmatprep.subr.bf16.mxu1 %v9578_v57 }
 0xa33   :  { %4714 = vmatprep.mubr.bf16.mxu0 %v11231_v62  ;;  %4755 = vmatprep.mubr.bf16.mxu1 %v11231_v62 }
 0xa35   :  { %4685 = vmatpush1.bf16.msra.mxu0 %v9587_v7  ;;  %4726 = vmatpush1.bf16.msra.mxu1 %v9592_v63 }
 0xa36   :  { %4686 = vmatprep.subr.bf16.mxu0 %v9599_v48  ;;  %4727 = vmatprep.subr.bf16.mxu1 %v9604_v28 }
 0xa39   :  { %4687 = vmatpush1.bf16.msra.mxu0 %v9613_v21  ;;  %4728 = vmatpush1.bf16.msra.mxu1 %v9618_v34 }
 0xa3a   :  { %4688 = vmatprep.subr.bf16.mxu0 %v9625_v61  ;;  %4729 = vmatprep.subr.bf16.mxu1 %v9630_v15 }
 0xa3d   :  { %4689 = vmatpush1.bf16.msra.mxu0 %v9637_v53  ;;  %4730 = vmatpush1.bf16.msra.mxu1 %v9642_v36 }
 0xa3e   :  { %4690 = vmatprep.subr.bf16.mxu0 %v9649_v40  ;;  %4731 = vmatprep.subr.bf16.mxu1 %v9654_v39 }
 0xa41   :  { %4691 = vmatpush1.bf16.msra.mxu0 %v9661_v19  ;;  %4732 = vmatpush1.bf16.msra.mxu1 %v9666_v55 }
 0xa42   :  { %4692 = vmatprep.subr.bf16.mxu0 %v9673_v18  ;;  %4733 = vmatprep.subr.bf16.mxu1 %v9678_v10 }
 0xa45   :  { %4693 = vmatpush1.bf16.msra.mxu0 %v9685_v8  ;;  %4734 = vmatpush1.bf16.msra.mxu1 %v9690_v20 }
 0xa46   :  { %4694 = vmatprep.subr.bf16.mxu0 %v9697_v12  ;;  %4735 = vmatprep.subr.bf16.mxu1 %v9702_v22  ;;  %v3189_v22 = vld [vmem:[%s10929_s6] sm:$0xff] }
 0xa47   :  { %v11453_v12 = vld [vmem:[#allocation36_spill] sm:$0xff] }
 0xa49   :  { %4695 = vmatpush1.bf16.msra.mxu0 %v9709_v6  ;;  %4736 = vmatpush1.bf16.msra.mxu1 %v9714_v49  ;;  %v11454_v6 = vsub.s32 0, %v11453_v12  ;;  %v11455_v49 = vsub.s32 2, %v11453_v12 }
 0xa4a   :  { %4696 = vmatprep.subr.bf16.mxu0 %v9721_v14  ;;  %4737 = vmatprep.subr.bf16.mxu1 %v9726_v60  ;;  %v11456_v60 = vsub.s32 1, %v11453_v12 }
 0xa4b   :  { %v3194_v20 = vrot.slane %v3189_v22, %v11454_v6  ;;  %v3202_v14 = vrot.slane %v3189_v22, %v11455_v49 }
 0xa4c   :  { %v3198_v8 = vrot.slane %v3189_v22, %v11456_v60 }
 0xa4d   :  { %4697 = vmatpush1.bf16.msra.mxu0 %v9733_v0  ;;  %4738 = vmatpush1.bf16.msra.mxu1 %v9738_v32  ;;  %v11457_v0 = vsub.s32 3, %v11453_v12 }
 0xa4e   :  { %4767 = vmatprep.subr.bf16.mxu0 %v9745_v1  ;;  %4808 = vmatprep.subr.bf16.mxu1 %v9750_v59 }
 0xa4f   :  { %v3206_v32 = vrot.slane %v3189_v22, %v11457_v0 }
 0xa83   :  { %v3905_v10 = vpop.f32.mrb[72].mxu0  ;;  %v3948_v1 = vpop.f32.mrb[72].mxu1 }
 0xa84   :  { %v3906_v18 = vadd.f32 %v3905_v10, %v3194_v20  ;;  %v3949_v59 = vadd.f32 %v3948_v1, %v3202_v14  ;;  %v3907_v55 = vpop.f32.mrb[73].mxu0  ;;  %v3950_v19 = vpop.f32.mrb[73].mxu1  ;;  %v11458_v10 = vsub.s32 4, %v11453_v12 }
 0xa85   :  { %v3908_v39 = vadd.f32 %v3907_v55, %v3198_v8  ;;  %v3951_v40 = vadd.f32 %v3950_v19, %v3206_v32  ;;  %v3909_v36 = vpop.f32.mrb[74].mxu0  ;;  %v3952_v53 = vpop.f32.mrb[74].mxu1  ;;  %v11459_v19 = vsub.s32 6, %v11453_v12 }
 0xa86   :  { %4043 = vst [vmem:[#allocation2] sm:$0xff] %v3906_v18  ;;  %4045 = vst [vmem:[#allocation2 + $0x10] sm:$0xff] %v3949_v59  ;;  %v3910_v6 = vadd.f32 %v3909_v36, %v3194_v20  ;;  %v3953_v49 = vadd.f32 %v3952_v53, %v3202_v14  ;;  %v3911_v15 = vpop.f32.mrb[75].mxu0  ;;  %v3954_v61 = vpop.f32.mrb[75].mxu1  ;;  %v3210_v55 = vrot.slane %v3189_v22, %v11458_v10  ;;  %v11460_v18 = vsub.s32 5, %v11453_v12 }
 0xa87   :  { %4044 = vst [vmem:[#allocation2 + $0x8] sm:$0xff] %v3908_v39  ;;  %4046 = vst [vmem:[#allocation2 + $0x18] sm:$0xff] %v3951_v40  ;;  %v3912_v60 = vadd.f32 %v3911_v15, %v3198_v8  ;;  %v3955_v0 = vadd.f32 %v3954_v61, %v3206_v32  ;;  %v3218_v1 = vrot.slane %v3189_v22, %v11459_v19  ;;  %v11461_v53 = vsub.s32 7, %v11453_v12 }
 0xa88   :  { %4051 = vst [vmem:[#allocation2 + $0x40] sm:$0xff] %v3910_v6  ;;  %4053 = vst [vmem:[#allocation2 + $0x50] sm:$0xff] %v3953_v49  ;;  %v3214_v36 = vrot.slane %v3189_v22, %v11460_v18 }
 0xa89   :  { %4052 = vst [vmem:[#allocation2 + $0x48] sm:$0xff] %v3912_v60  ;;  %4054 = vst [vmem:[#allocation2 + $0x58] sm:$0xff] %v3955_v0  ;;  %v3222_v20 = vrot.slane %v3189_v22, %v11461_v53 }
 0xa8e   :  { %v4611_v7 = vld [vmem:[#allocation2 + $0x18] sm:$0x3] }
 0xac3   :  { %v3991_v39 = vpop.f32.mrb[76].mxu0  ;;  %v4034_v40 = vpop.f32.mrb[76].mxu1 }
 0xac4   :  { %v3992_v15 = vadd.f32 %v3991_v39, %v3210_v55  ;;  %v4035_v61 = vadd.f32 %v4034_v40, %v3218_v1  ;;  %v3993_v8 = vpop.f32.mrb[77].mxu0  ;;  %v4036_v14 = vpop.f32.mrb[77].mxu1 }
 0xac5   :  { %v3994_v32 = vadd.f32 %v3993_v8, %v3214_v36  ;;  %v4037_v59 = vadd.f32 %v4036_v14, %v3222_v20  ;;  %v3995_v6 = vpop.f32.mrb[78].mxu0  ;;  %v4038_v49 = vpop.f32.mrb[78].mxu1 }
 0xac6   :  { %4047 = vst [vmem:[#allocation2 + $0x20] sm:$0xff] %v3992_v15  ;;  %4049 = vst [vmem:[#allocation2 + $0x30] sm:$0xff] %v4035_v61  ;;  %v3996_v60 = vadd.f32 %v3995_v6, %v3210_v55  ;;  %v4039_v0 = vadd.f32 %v4038_v49, %v3218_v1  ;;  %v3997_v10 = vpop.f32.mrb[79].mxu0  ;;  %v4040_v19 = vpop.f32.mrb[79].mxu1 }
 0xac7   :  { %4048 = vst [vmem:[#allocation2 + $0x28] sm:$0xff] %v3994_v32  ;;  %4050 = vst [vmem:[#allocation2 + $0x38] sm:$0xff] %v4037_v59  ;;  %v3998_v12 = vadd.f32 %v3997_v10, %v3214_v36  ;;  %v4041_v22 = vadd.f32 %v4040_v19, %v3222_v20 }
 0xac8   :  { %4055 = vst [vmem:[#allocation2 + $0x60] sm:$0xff] %v3996_v60  ;;  %4057 = vst [vmem:[#allocation2 + $0x70] sm:$0xff] %v4039_v0 }
 0xac9   :  { %4056 = vst [vmem:[#allocation2 + $0x68] sm:$0xff] %v3998_v12  ;;  %4058 = vst [vmem:[#allocation2 + $0x78] sm:$0xff] %v4041_v22 }
 0xacf   :  { %v4612_v6 = vld [vmem:[#allocation2 + $0x60] sm:$0xc0]  ;;  %v4614_v20 = vld [vmem:[#allocation2 + $0x70] sm:$0xc0] }
 0xad0   :  { %v4613_v34 = vld [vmem:[#allocation2 + $0x68] sm:$0xc0]  ;;  %v4615_v21 = vld [vmem:[#allocation2 + $0x78] sm:$0xc0] }
 0xae3   :  { %v4318_v18 = vpop.f32.mrb[80].mxu0  ;;  %v4359_v53 = vpop.f32.mrb[80].mxu1 }
 0xae4   :  { %v4320_v39 = vpop.f32.mrb[81].mxu0  ;;  %v4361_v40 = vpop.f32.mrb[81].mxu1 }
 0xae5   :  { %v4322_v8 = vpop.f32.mrb[82].mxu0  ;;  %v4363_v14 = vpop.f32.mrb[82].mxu1 }
 0xae6   :  { %v4323_v15 = vpop.f32.mrb[83].mxu0  ;;  %v4364_v61 = vpop.f32.mrb[83].mxu1 }
 0xae7   :  { %v4608_v15 = vld [vmem:[#allocation2] sm:$0x3]  ;;  %v4610_v61 = vld [vmem:[#allocation2 + $0x10] sm:$0x3] }
 0xae8   :  { %v4616_v63 = vadd.f32 %v4608_v15, %v4318_v18 }
 0xb03   :  { %v4560_v55 = vpop.f32.mrb[84].mxu0  ;;  %v4601_v1 = vpop.f32.mrb[84].mxu1 }
 0xb04   :  { %v4624_v49 = vrot.slane %v4560_v55, 2  ;;  %v4626_v32 = vrot.slane %v4601_v1, 2  ;;  %v4562_v59 = vpop.f32.mrb[85].mxu0  ;;  %v4603_v36 = vpop.f32.mrb[85].mxu1  ;;  %v4618_v55 = vadd.f32 %v4610_v61, %v4359_v53  ;;  %v4609_v1 = vld [vmem:[#allocation2 + $0x8] sm:$0x3] }
 0xb05   :  { %v4625_v60 = vrot.slane %v4562_v59, 2  ;;  %v4627_v0 = vrot.slane %v4603_v36, 2  ;;  %v4564_v10 = vpop.f32.mrb[86].mxu0  ;;  %v4605_v19 = vpop.f32.mrb[86].mxu1  ;;  %v4617_v59 = vadd.f32 %v4609_v1, %v4320_v39  ;;  %v4619_v36 = vadd.f32 %v4611_v7, %v4361_v40 }
 0xb06   :  { %v4632_v12 = vadd.f32 %v4624_v49, %v4612_v6  ;;  %v4634_v22 = vadd.f32 %v4626_v32, %v4614_v20  ;;  %v4565_v8 = vpop.f32.mrb[87].mxu0  ;;  %v4606_v14 = vpop.f32.mrb[87].mxu1 }
 0xb07   :  { %v4633_v28 = vadd.f32 %v4625_v60, %v4613_v34  ;;  %v4635_v48 = vadd.f32 %v4627_v0, %v4615_v21 }
 0xb08   :  { %v4640_v57 = vrot.slane %v4632_v12, 4  ;;  %v4642_v52 = vrot.slane %v4634_v22, 4 }
 0xb09   :  { %v4641_v10 = vrot.slane %v4633_v28, 4  ;;  %v4643_v19 = vrot.slane %v4635_v48, 4 }
 0xb0a   :  { %v4648_v6 = vsel %vm1238_vm0, %v4616_v63, %v4640_v57  ;;  %v4650_v49 = vsel %vm1238_vm0, %v4618_v55, %v4642_v52  ;;  %v11462_v55 = vld [vmem:[#allocation38_spill] sm:$0xff] }
 0xb0b   :  { %v6877_v32 = vmul.f32 -1.442695, %v4648_v6  ;;  %v4649_v20 = vsel %vm1238_vm0, %v4617_v59, %v4641_v10  ;;  %v4651_v34 = vsel %vm1238_vm0, %v4619_v36, %v4643_v19  ;;  %v6879_v18 = vmul.f32 -1.442695, %v4650_v49  ;;  %v11463_v59 = vld [vmem:[#allocation6_spill] sm:$0xff]  ;;  %v11464_v36 = vld [vmem:[#allocation7_spill] sm:$0xff] }
 0xb0c   :  { %v6878_v21 = vmul.f32 -1.442695, %v4649_v20  ;;  %v11465_v10 = vld [vmem:[#allocation8_spill] sm:$0xff]  ;;  %v11466_v19 = vld [vmem:[#allocation9_spill] sm:$0xff]  ;;  %v11467_v6 = vld [vmem:[#allocation10_spill] sm:$0xff] }
 0xb0d   :  { %7223 = vpow2.f32 %v6877_v32  ;;  %v11468_v49 = vld [vmem:[#allocation11_spill] sm:$0xff]  ;;  %v11469_v32 = vld [vmem:[#allocation12_spill] sm:$0xff]  ;;  %v11470_v20 = vld [vmem:[#allocation13_spill] sm:$0xff] }
 0xb0e   :  { %7225 = vpow2.f32 %v6878_v21  ;;  %v11472_v21 = vld [vmem:[#allocation15_spill] sm:$0xff] }
 0xb0f   :  { %7227 = vtanh.f32 %v4651_v34  ;;  %v11471_v34 = vld [vmem:[#allocation14_spill] sm:$0xff] }
 0xb10   :  { %7229 = vpow2.f32 %v6879_v18  ;;  %v11473_v18 = vld [vmem:[#allocation16_spill] sm:$0xff] }
 0xb17   :  { %v7224_v53 = vpop.eup %7223 }
 0xb18   :  { %v4661_v60 = vadd.f32 1.0, %v7224_v53  ;;  %v7226_v39 = vpop.eup %7225  ;;  %v11474_v53 = vld [vmem:[#allocation17_spill] sm:$0xff] }
 0xb19   :  { %v4662_v7 = vadd.f32 1.0, %v7226_v39  ;;  %v7228_v57 = vpop.eup %7227  ;;  %v11476_v39 = vld [vmem:[#allocation19_spill] sm:$0xff] }
 0xb1a   :  { %7231 = vrcp.f32 %v4661_v60  ;;  %v7230_v63 = vpop.eup %7229  ;;  %v11475_v60 = vld [vmem:[#allocation18_spill] sm:$0xff] }
 0xb1b   :  { %7233 = vrcp.f32 %v4662_v7  ;;  %v4663_v40 = vadd.f32 1.0, %v7230_v63  ;;  %v11477_v7 = vld [vmem:[#allocation20_spill] sm:$0xff]  ;;  %v11479_v63 = vld [vmem:[#allocation22_spill] sm:$0xff] }
 0xb1d   :  { %7235 = vrcp.f32 %v4663_v40  ;;  %v11483_v40 = vld [vmem:[#allocation26_spill] sm:$0xff] }
 0xb24   :  { %v7232_v52 = vpop.eup %7231 }
 0xb25   :  { %v4672_v48 = vmul.f32 %v7232_v52, %v7228_v57  ;;  %v7234_v28 = vpop.eup %7233  ;;  %v11478_v57 = vld [vmem:[#allocation21_spill] sm:$0xff]  ;;  %v11480_v52 = vld [vmem:[#allocation23_spill] sm:$0xff] }
 0xb26   :  { %v4671_v0 = vmul.f32 0.0, %v7234_v28  ;;  %v11482_v28 = vld [vmem:[#allocation25_spill] sm:$0xff] }
 0xb27   :  { %v7236_v22 = vpop.eup %7235 }
 0xb28   :  { %v10001_v12 = vadd.f32 %v4672_v48, %v4671_v0  ;;  %v11481_v48 = vld [vmem:[#allocation24_spill] sm:$0xff]  ;;  %v11484_v0 = vld [vmem:[#allocation27_spill] sm:$0xff] }
 0xb2a   :  { %7237 = vtanh.f32 %v10001_v12 }
 0xb34   :  { %v7238_v8 = vpop.eup %7237 }
 0xb35   :  { %v4675_v14 = vmul.f32 %v7238_v8, %v7236_v22  ;;  %v11485_v22 = vld [vmem:[#allocation28_spill] sm:$0xff]  ;;  %v11486_v8 = vld [vmem:[#allocation29_spill] sm:$0xff] }
 0xb37   :  { %4676 = vst [vmem:[%s10930_s7] sm:$0x3] %v4675_v14  ;;  %v4678_v15 = vrot.slane %v4675_v14, 4  ;;  %v4681_v61 = vpack.c.bf16 %v4675_v14, %v4675_v14  ;;  %v11487_v14 = vld [vmem:[#allocation30_spill] sm:$0xff] }
 0xb39   :  { %4680 = vst [vmem:[%s10930_s7 + $0x18] sm:$0xc0] %v4678_v15  ;;  %4715 = vmatmul.mubr.bf16.vlgmr.msra.gmra.mrb[88].mxu0 %v4681_v61  ;;  %4756 = vmatmul.mubr.bf16.vlgmr.msra.gmra.mrb[88].mxu1 %v4681_v61  ;;  %v4765_v1 = vrot.slane %v4681_v61, 1  ;;  %v11488_v15 = vld [vmem:[#allocation31_spill] sm:$0xff]  ;;  %v11489_v61 = vld [vmem:[#allocation32_spill] sm:$0xff] }
 0xb3a   :  { %4768 = vmatpush1.bf16.msra.mxu0 %v9757_v2  ;;  %4809 = vmatpush1.bf16.msra.mxu1 %v9762_v23 }
 0xb3b   :  { %4769 = vmatprep.subr.bf16.mxu0 %v9769_v56  ;;  %4810 = vmatprep.subr.bf16.mxu1 %v9774_v13 }
 0xb3c   :  { %4799 = vmatprep.mubr.bf16.mxu0 %v11231_v62  ;;  %4840 = vmatprep.mubr.bf16.mxu1 %v11231_v62 }
 0xb3e   :  { %4770 = vmatpush1.bf16.msra.mxu0 %v9783_v31  ;;  %4811 = vmatpush1.bf16.msra.mxu1 %v9788_v30 }
 0xb3f   :  { %4771 = vmatprep.subr.bf16.mxu0 %v9795_v9  ;;  %4812 = vmatprep.subr.bf16.mxu1 %v9800_v17 }
 0xb42   :  { %4772 = vmatpush1.bf16.msra.mxu0 %v9809_v25  ;;  %4813 = vmatpush1.bf16.msra.mxu1 %v9814_v5 }
 0xb43   :  { %4773 = vmatprep.subr.bf16.mxu0 %v9821_v4  ;;  %4814 = vmatprep.subr.bf16.mxu1 %v9826_v35 }
 0xb46   :  { %4774 = vmatpush1.bf16.msra.mxu0 %v9833_v37  ;;  %4815 = vmatpush1.bf16.msra.mxu1 %v9838_v24 }
 0xb47   :  { %4775 = vmatprep.subr.bf16.mxu0 %v9845_v11  ;;  %4816 = vmatprep.subr.bf16.mxu1 %v9850_v27 }
 0xb4a   :  { %4776 = vmatpush1.bf16.msra.mxu0 %v9857_v26  ;;  %4817 = vmatpush1.bf16.msra.mxu1 %v9862_v29 }
 0xb4b   :  { %4777 = vmatprep.subr.bf16.mxu0 %v9869_v38  ;;  %4818 = vmatprep.subr.bf16.mxu1 %v9874_v3 }
 0xb4e   :  { %4778 = vmatpush1.bf16.msra.mxu0 %v9881_v41  ;;  %4819 = vmatpush1.bf16.msra.mxu1 %v9886_v42 }
 0xb4f   :  { %4779 = vmatprep.subr.bf16.mxu0 %v9893_v43  ;;  %4820 = vmatprep.subr.bf16.mxu1 %v11462_v55 }
 0xb52   :  { %4780 = vmatpush1.bf16.msra.mxu0 %v9905_v45  ;;  %4821 = vmatpush1.bf16.msra.mxu1 %v9910_v46 }
 0xb53   :  { %4781 = vmatprep.subr.bf16.mxu0 %v9917_v47  ;;  %4822 = vmatprep.subr.bf16.mxu1 %v9922_v51 }
 0xb56   :  { %4782 = vmatpush1.bf16.msra.mxu0 %v9929_v58  ;;  %4823 = vmatpush1.bf16.msra.mxu1 %v9934_v44 }
 0xb57   :  { %4947 = vmatprep.subr.bf16.mxu0 %v9551_v50  ;;  %4988 = vmatprep.subr.bf16.mxu1 %v9556_v54 }
 0xb59   :  { %4800 = vmatmul.mubr.bf16.vlgmr.msra.gmra.mrb[92].mxu0 %v4765_v1  ;;  %4841 = vmatmul.mubr.bf16.vlgmr.msra.gmra.mrb[92].mxu1 %v4765_v1  ;;  %v11490_v1 = vld [vmem:[#allocation33_spill] sm:$0xff] }
 0xb5a   :  { %4948 = vmatpush1.bf16.msra.mxu0 %v9561_v16  ;;  %4989 = vmatpush1.bf16.msra.mxu1 %v9566_v33 }
 0xb5b   :  { %4949 = vmatprep.subr.bf16.mxu0 %v11463_v59  ;;  %4990 = vmatprep.subr.bf16.mxu1 %v11464_v36  ;;  %v4854_v36 = vld [vmem:[#allocation2 + $0x68] sm:$0x30]  ;;  %v4856_v59 = vld [vmem:[#allocation2 + $0x78] sm:$0x30] }
 0xb5c   :  { %4979 = vmatprep.mubr.bf16.mxu0 %v11231_v62  ;;  %5020 = vmatprep.mubr.bf16.mxu1 %v11231_v62 }
 0xb5e   :  { %4950 = vmatpush1.bf16.msra.mxu0 %v11465_v10  ;;  %4991 = vmatpush1.bf16.msra.mxu1 %v11466_v19 }
 0xb5f   :  { %4951 = vmatprep.subr.bf16.mxu0 %v11467_v6  ;;  %4992 = vmatprep.subr.bf16.mxu1 %v11468_v49 }
 0xb62   :  { %4952 = vmatpush1.bf16.msra.mxu0 %v11469_v32  ;;  %4993 = vmatpush1.bf16.msra.mxu1 %v11470_v20  ;;  %v4853_v20 = vld [vmem:[#allocation2 + $0x60] sm:$0x30] }
 0xb63   :  { %4953 = vmatprep.subr.bf16.mxu0 %v11471_v34  ;;  %4994 = vmatprep.subr.bf16.mxu1 %v11472_v21 }
 0xb66   :  { %4954 = vmatpush1.bf16.msra.mxu0 %v11473_v18  ;;  %4995 = vmatpush1.bf16.msra.mxu1 %v11474_v53  ;;  %v4849_v53 = vld [vmem:[#allocation2] sm:$0xc]  ;;  %v4850_v18 = vld [vmem:[#allocation2 + $0x8] sm:$0xc] }
 0xb67   :  { %4955 = vmatprep.subr.bf16.mxu0 %v11475_v60  ;;  %4996 = vmatprep.subr.bf16.mxu1 %v11476_v39 }
 0xb6a   :  { %4956 = vmatpush1.bf16.msra.mxu0 %v11477_v7  ;;  %4997 = vmatpush1.bf16.msra.mxu1 %v11478_v57 }
 0xb6b   :  { %4957 = vmatprep.subr.bf16.mxu0 %v11479_v63  ;;  %4998 = vmatprep.subr.bf16.mxu1 %v11480_v52  ;;  %v11491_v52 = vld [vmem:[#allocation34_spill] sm:$0xff] }
 0xb6e   :  { %4958 = vmatpush1.bf16.msra.mxu0 %v11481_v48  ;;  %4999 = vmatpush1.bf16.msra.mxu1 %v11482_v28  ;;  %v11492_v48 = vld [vmem:[#allocation37_spill] sm:$0xff] }
 0xb6f   :  { %4959 = vmatprep.subr.bf16.mxu0 %v11483_v40  ;;  %5000 = vmatprep.subr.bf16.mxu1 %v11484_v0 }
 0xb72   :  { %4960 = vmatpush1.bf16.msra.mxu0 %v11485_v22  ;;  %5001 = vmatpush1.bf16.msra.mxu1 %v11486_v8 }
 0xb73   :  { %4961 = vmatprep.subr.bf16.mxu0 %v11487_v14  ;;  %5002 = vmatprep.subr.bf16.mxu1 %v11488_v15 }
 0xb76   :  { %4962 = vmatpush1.bf16.msra.mxu0 %v11489_v61  ;;  %5003 = vmatpush1.bf16.msra.mxu1 %v11490_v1  ;;  %v4851_v61 = vld [vmem:[#allocation2 + $0x10] sm:$0xc]  ;;  %v4852_v1 = vld [vmem:[#allocation2 + $0x18] sm:$0xc] }
 0xb77   :  { %5032 = vmatprep.subr.bf16.mxu0 %v11491_v52  ;;  %5073 = vmatprep.subr.bf16.mxu1 %v11492_v48 }
 0xc0c   :  { %v4716_v28 = vpop.f32.mrb[88].mxu0  ;;  %v4757_v40 = vpop.f32.mrb[88].mxu1 }
 0xc0d   :  { %v4718_v63 = vpop.f32.mrb[89].mxu0  ;;  %v4759_v0 = vpop.f32.mrb[89].mxu1  ;;  %v4861_v39 = vrot.slane %v4716_v28, 6  ;;  %v4863_v14 = vrot.slane %v4757_v40, 6 }
 0xc0e   :  { %v4720_v57 = vpop.f32.mrb[90].mxu0  ;;  %v4761_v22 = vpop.f32.mrb[90].mxu1  ;;  %v4862_v60 = vrot.slane %v4718_v63, 6  ;;  %v4864_v15 = vrot.slane %v4759_v0, 6 }
 0xc0f   :  { %v4721_v7 = vpop.f32.mrb[91].mxu0  ;;  %v4762_v8 = vpop.f32.mrb[91].mxu1  ;;  %v4869_v34 = vadd.f32 %v4861_v39, %v4849_v53  ;;  %v4871_v48 = vadd.f32 %v4863_v14, %v4851_v61 }
 0xc10   :  { %v4870_v22 = vadd.f32 %v4862_v60, %v4850_v18  ;;  %v4872_v7 = vadd.f32 %v4864_v15, %v4852_v1  ;;  %v4855_v8 = vld [vmem:[#allocation2 + $0x70] sm:$0x30] }
 0xc11   :  { %v4893_v14 = vrot.slane %v4869_v34, 2 }
 0xc12   :  { %v4894_v54 = vrot.slane %v4870_v22, 2  ;;  %v4896_v18 = vrot.slane %v4872_v7, 2 }
 0xc2c   :  { %v4801_v21 = vpop.f32.mrb[92].mxu0  ;;  %v4842_v52 = vpop.f32.mrb[92].mxu1 }
 0xc2d   :  { %v4877_v32 = vrot.slane %v4801_v21, 4  ;;  %v4879_v49 = vrot.slane %v4842_v52, 4  ;;  %v4803_v6 = vpop.f32.mrb[93].mxu0  ;;  %v4844_v57 = vpop.f32.mrb[93].mxu1  ;;  %v4895_v21 = vrot.slane %v4871_v48, 2 }
 0xc2e   :  { %v4878_v28 = vrot.slane %v4803_v6, 4  ;;  %v4880_v40 = vrot.slane %v4844_v57, 4  ;;  %v4805_v63 = vpop.f32.mrb[94].mxu0  ;;  %v4846_v0 = vpop.f32.mrb[94].mxu1 }
 0xc2f   :  { %v4885_v19 = vadd.f32 %v4877_v32, %v4853_v20  ;;  %v4887_v10 = vadd.f32 %v4879_v49, %v4855_v8  ;;  %v4806_v33 = vpop.f32.mrb[95].mxu0  ;;  %v4847_v16 = vpop.f32.mrb[95].mxu1 }
 0xc30   :  { %v4886_v53 = vadd.f32 %v4878_v28, %v4854_v36  ;;  %v4888_v39 = vadd.f32 %v4880_v40, %v4856_v59 }
 0xc31   :  { %v4905_v52 = vrot.slane %v4885_v19, 2  ;;  %v4907_v61 = vrot.slane %v4887_v10, 2 }
 0xc32   :  { %v4906_v60 = vrot.slane %v4886_v53, 2  ;;  %v4908_v15 = vrot.slane %v4888_v39, 2 }
 0xc33   :  { %v4913_v6 = vsel %vm1238_vm0, %v4893_v14, %v4905_v52  ;;  %v4915_v1 = vsel %vm1238_vm0, %v4895_v21, %v4907_v61  ;;  %v11524_v14 = vld [vmem:[#allocation34_spill] sm:$0xff]  ;;  %v11525_v21 = vld [vmem:[#allocation37_spill] sm:$0xff] }
 0xc34   :  { %v6880_v32 = vmul.f32 -1.442695, %v4913_v6  ;;  %v4914_v49 = vsel %vm1238_vm0, %v4894_v54, %v4906_v60  ;;  %v4916_v33 = vsel %vm1238_vm0, %v4896_v18, %v4908_v15  ;;  %v6882_v59 = vmul.f32 -1.442695, %v4915_v1 }
 0xc35   :  { %v6881_v16 = vmul.f32 -1.442695, %v4914_v49 }
 0xc36   :  { %7239 = vpow2.f32 %v6880_v32 }
 0xc37   :  { %7241 = vpow2.f32 %v6881_v16 }
 0xc38   :  { %7243 = vtanh.f32 %v4916_v33 }
 0xc39   :  { %7245 = vpow2.f32 %v6882_v59 }
 0xc40   :  { %v7240_v36 = vpop.eup %7239 }
 0xc41   :  { %v4926_v19 = vadd.f32 1.0, %v7240_v36  ;;  %v7242_v10 = vpop.eup %7241  ;;  %v5114_v36 = vld [vmem:[#allocation2] sm:$0x30] }
 0xc42   :  { %v4927_v20 = vadd.f32 1.0, %v7242_v10  ;;  %v7244_v34 = vpop.eup %7243 }
 0xc43   :  { %7247 = vrcp.f32 %v4926_v19  ;;  %v7246_v48 = vpop.eup %7245  ;;  %v5116_v19 = vld [vmem:[#allocation2 + $0x10] sm:$0x30] }
 0xc44   :  { %7249 = vrcp.f32 %v4927_v20  ;;  %v4928_v54 = vadd.f32 1.0, %v7246_v48  ;;  %v5117_v48 = vld [vmem:[#allocation2 + $0x18] sm:$0x30] }
 0xc46   :  { %7251 = vrcp.f32 %v4928_v54  ;;  %v5118_v54 = vld [vmem:[#allocation2 + $0x60] sm:$0xc] }
 0xc4d   :  { %v7248_v57 = vpop.eup %7247 }
 0xc4e   :  { %v4937_v22 = vmul.f32 %v7248_v57, %v7244_v34  ;;  %v7250_v7 = vpop.eup %7249  ;;  %v5115_v34 = vld [vmem:[#allocation2 + $0x8] sm:$0x30] }
 0xc4f   :  { %v4936_v8 = vmul.f32 %v7250_v7, %v10001_v12  ;;  %v11522_v12 = vld [vmem:[#allocation32_spill] sm:$0xff] }
 0xc50   :  { %v7252_v40 = vpop.eup %7251 }
 0xc51   :  { %v10083_v28 = vadd.f32 %v4937_v22, %v4936_v8 }
 0xc53   :  { %7253 = vtanh.f32 %v10083_v28 }
 0xc5d   :  { %v7254_v63 = vpop.eup %7253 }
 0xc5e   :  { %v4940_v0 = vmul.f32 %v7254_v63, %v7252_v40  ;;  %v5120_v63 = vld [vmem:[#allocation2 + $0x70] sm:$0xc] }
 0xc60   :  { %v4942_v53 = vrot.slane %v4940_v0, 6  ;;  %v4946_v39 = vpack.c.bf16 %v4940_v0, %v4940_v0 }
 0xc62   :  { %4944 = vst [vmem:[%s10930_s7] ss:$28 sps:$4 sm:$0x3c] %v4942_v53   ;;  %4980 = vmatmul.mubr.bf16.vlgmr.msra.gmra.mrb[96].mxu0 %v4946_v39  ;;  %5021 = vmatmul.mubr.bf16.vlgmr.msra.gmra.mrb[96].mxu1 %v4946_v39 }
 0xc63   :  { %5033 = vmatpush1.bf16.msra.mxu0 %v9757_v2  ;;  %5074 = vmatpush1.bf16.msra.mxu1 %v9762_v23  ;;  %v5030_v2 = vrot.slane %v4946_v39, 1  ;;  %v11493_v23 = vld [vmem:[#allocation35_spill] sm:$0xff] }
 0xc64   :  { %5034 = vmatprep.subr.bf16.mxu0 %v9769_v56  ;;  %5075 = vmatprep.subr.bf16.mxu1 %v9774_v13  ;;  %v11494_v56 = vld [vmem:[#allocation4_spill] sm:$0xff]  ;;  %v11495_v13 = vld [vmem:[#allocation5_spill] sm:$0xff] }
 0xc65   :  { %5064 = vmatprep.mubr.bf16.mxu0 %v11231_v62  ;;  %5105 = vmatprep.mubr.bf16.mxu1 %v11231_v62 }
 0xc67   :  { %5035 = vmatpush1.bf16.msra.mxu0 %v9783_v31  ;;  %5076 = vmatpush1.bf16.msra.mxu1 %v9788_v30  ;;  %v11496_v31 = vld [vmem:[#allocation6_spill] sm:$0xff]  ;;  %v11497_v30 = vld [vmem:[#allocation7_spill] sm:$0xff] }
 0xc68   :  { %5036 = vmatprep.subr.bf16.mxu0 %v9795_v9  ;;  %5077 = vmatprep.subr.bf16.mxu1 %v9800_v17  ;;  %v11498_v9 = vld [vmem:[#allocation8_spill] sm:$0xff]  ;;  %v11499_v17 = vld [vmem:[#allocation9_spill] sm:$0xff] }
 0xc6b   :  { %5037 = vmatpush1.bf16.msra.mxu0 %v9809_v25  ;;  %5078 = vmatpush1.bf16.msra.mxu1 %v9814_v5  ;;  %v11501_v25 = vld [vmem:[#allocation11_spill] sm:$0xff]  ;;  %v11502_v5 = vld [vmem:[#allocation12_spill] sm:$0xff] }
 0xc6c   :  { %5038 = vmatprep.subr.bf16.mxu0 %v9821_v4  ;;  %5079 = vmatprep.subr.bf16.mxu1 %v9826_v35  ;;  %v11503_v4 = vld [vmem:[#allocation13_spill] sm:$0xff]  ;;  %v11504_v35 = vld [vmem:[#allocation14_spill] sm:$0xff] }
 0xc6f   :  { %5039 = vmatpush1.bf16.msra.mxu0 %v9833_v37  ;;  %5080 = vmatpush1.bf16.msra.mxu1 %v9838_v24  ;;  %v11505_v37 = vld [vmem:[#allocation15_spill] sm:$0xff]  ;;  %v11506_v24 = vld [vmem:[#allocation16_spill] sm:$0xff] }
 0xc70   :  { %5040 = vmatprep.subr.bf16.mxu0 %v9845_v11  ;;  %5081 = vmatprep.subr.bf16.mxu1 %v9850_v27  ;;  %v11507_v11 = vld [vmem:[#allocation17_spill] sm:$0xff]  ;;  %v11508_v27 = vld [vmem:[#allocation18_spill] sm:$0xff] }
 0xc73   :  { %5041 = vmatpush1.bf16.msra.mxu0 %v9857_v26  ;;  %5082 = vmatpush1.bf16.msra.mxu1 %v9862_v29  ;;  %v11509_v26 = vld [vmem:[#allocation19_spill] sm:$0xff]  ;;  %v11510_v29 = vld [vmem:[#allocation20_spill] sm:$0xff] }
 0xc74   :  { %5042 = vmatprep.subr.bf16.mxu0 %v9869_v38  ;;  %5083 = vmatprep.subr.bf16.mxu1 %v9874_v3  ;;  %v11511_v38 = vld [vmem:[#allocation21_spill] sm:$0xff]  ;;  %v11512_v3 = vld [vmem:[#allocation22_spill] sm:$0xff] }
 0xc77   :  { %5043 = vmatpush1.bf16.msra.mxu0 %v9881_v41  ;;  %5084 = vmatpush1.bf16.msra.mxu1 %v9886_v42  ;;  %v11513_v41 = vld [vmem:[#allocation23_spill] sm:$0xff]  ;;  %v11514_v42 = vld [vmem:[#allocation24_spill] sm:$0xff] }
 0xc78   :  { %5044 = vmatprep.subr.bf16.mxu0 %v9893_v43  ;;  %5085 = vmatprep.subr.bf16.mxu1 %v11462_v55  ;;  %v11515_v43 = vld [vmem:[#allocation25_spill] sm:$0xff] }
 0xc79   :  { %v11523_v55 = vld [vmem:[#allocation33_spill] sm:$0xff] }
 0xc7b   :  { %5045 = vmatpush1.bf16.msra.mxu0 %v9905_v45  ;;  %5086 = vmatpush1.bf16.msra.mxu1 %v9910_v46  ;;  %v11517_v45 = vld [vmem:[#allocation27_spill] sm:$0xff]  ;;  %v11518_v46 = vld [vmem:[#allocation28_spill] sm:$0xff] }
 0xc7c   :  { %5046 = vmatprep.subr.bf16.mxu0 %v9917_v47  ;;  %5087 = vmatprep.subr.bf16.mxu1 %v9922_v51  ;;  %v11519_v47 = vld [vmem:[#allocation29_spill] sm:$0xff]  ;;  %v11520_v51 = vld [vmem:[#allocation30_spill] sm:$0xff] }
 0xc7f   :  { %5047 = vmatpush1.bf16.msra.mxu0 %v9929_v58  ;;  %5088 = vmatpush1.bf16.msra.mxu1 %v9934_v44  ;;  %v11516_v44 = vld [vmem:[#allocation26_spill] sm:$0xff]  ;;  %v11521_v58 = vld [vmem:[#allocation31_spill] sm:$0xff] }
 0xc80   :  { %5200 = vmatprep.subr.bf16.mxu0 %v9551_v50  ;;  %5241 = vmatprep.subr.bf16.mxu1 %v11493_v23  ;;  %v11500_v50 = vld [vmem:[#allocation10_spill] sm:$0xff] }
 0xc82   :  { %5065 = vmatmul.mubr.bf16.vlgmr.msra.gmra.mrb[100].mxu0 %v5030_v2  ;;  %5106 = vmatmul.mubr.bf16.vlgmr.msra.gmra.mrb[100].mxu1 %v5030_v2  ;;  %v5119_v2 = vld [vmem:[#allocation2 + $0x68] sm:$0xc] }
 0xc83   :  { %5201 = vmatpush1.bf16.msra.mxu0 %v11494_v56  ;;  %5242 = vmatpush1.bf16.msra.mxu1 %v11495_v13 }
 0xc84   :  { %5202 = vmatprep.subr.bf16.mxu0 %v11496_v31  ;;  %5243 = vmatprep.subr.bf16.mxu1 %v11497_v30 }
 0xc85   :  { %5232 = vmatprep.mubr.bf16.mxu0 %v11231_v62  ;;  %5273 = vmatprep.mubr.bf16.mxu1 %v11231_v62 }
 0xc87   :  { %5203 = vmatpush1.bf16.msra.mxu0 %v11498_v9  ;;  %5244 = vmatpush1.bf16.msra.mxu1 %v11499_v17 }
 0xc88   :  { %5204 = vmatprep.subr.bf16.mxu0 %v11500_v50  ;;  %5245 = vmatprep.subr.bf16.mxu1 %v11501_v25  ;;  %v5121_v25 = vld [vmem:[#allocation2 + $0x78] sm:$0xc] }
 0xc8b   :  { %5205 = vmatpush1.bf16.msra.mxu0 %v11502_v5  ;;  %5246 = vmatpush1.bf16.msra.mxu1 %v11503_v4 }
 0xc8c   :  { %5206 = vmatprep.subr.bf16.mxu0 %v11504_v35  ;;  %5247 = vmatprep.subr.bf16.mxu1 %v11505_v37 }
 0xc8f   :  { %5207 = vmatpush1.bf16.msra.mxu0 %v11506_v24  ;;  %5248 = vmatpush1.bf16.msra.mxu1 %v11507_v11 }
 0xc90   :  { %5208 = vmatprep.subr.bf16.mxu0 %v11508_v27  ;;  %5249 = vmatprep.subr.bf16.mxu1 %v11509_v26 }
 0xc93   :  { %5209 = vmatpush1.bf16.msra.mxu0 %v11510_v29  ;;  %5250 = vmatpush1.bf16.msra.mxu1 %v11511_v38 }
 0xc94   :  { %5210 = vmatprep.subr.bf16.mxu0 %v11512_v3  ;;  %5251 = vmatprep.subr.bf16.mxu1 %v11513_v41 }
 0xc97   :  { %5211 = vmatpush1.bf16.msra.mxu0 %v11514_v42  ;;  %5252 = vmatpush1.bf16.msra.mxu1 %v11515_v43 }
 0xc98   :  { %5212 = vmatprep.subr.bf16.mxu0 %v11516_v44  ;;  %5253 = vmatprep.subr.bf16.mxu1 %v11517_v45 }
 0xc9b   :  { %5213 = vmatpush1.bf16.msra.mxu0 %v11518_v46  ;;  %5254 = vmatpush1.bf16.msra.mxu1 %v11519_v47 }
 0xc9c   :  { %5214 = vmatprep.subr.bf16.mxu0 %v11520_v51  ;;  %5255 = vmatprep.subr.bf16.mxu1 %v11521_v58 }
 0xc9f   :  { %5215 = vmatpush1.bf16.msra.mxu0 %v11522_v12  ;;  %5256 = vmatpush1.bf16.msra.mxu1 %v11523_v55 }
 0xca0   :  { %5285 = vmatprep.subr.bf16.mxu0 %v11524_v14  ;;  %5326 = vmatprep.subr.bf16.mxu1 %v11525_v21 }
 0xd35   :  { %v4981_v52 = vpop.f32.mrb[96].mxu0  ;;  %v5022_v61 = vpop.f32.mrb[96].mxu1 }
 0xd36   :  { %v4983_v18 = vpop.f32.mrb[97].mxu0  ;;  %v5024_v60 = vpop.f32.mrb[97].mxu1  ;;  %v5126_v49 = vrot.slane %v4981_v52, 4  ;;  %v5128_v33 = vrot.slane %v5022_v61, 4 }
 0xd37   :  { %v4985_v15 = vpop.f32.mrb[98].mxu0  ;;  %v5026_v6 = vpop.f32.mrb[98].mxu1  ;;  %v5127_v16 = vrot.slane %v4983_v18, 4  ;;  %v5129_v59 = vrot.slane %v5024_v60, 4 }
 0xd38   :  { %v4986_v1 = vpop.f32.mrb[99].mxu0  ;;  %v5027_v32 = vpop.f32.mrb[99].mxu1  ;;  %v5134_v10 = vadd.f32 %v5126_v49, %v5114_v36  ;;  %v5136_v20 = vadd.f32 %v5128_v33, %v5116_v19  ;;  %v10196_v49 = vld [vmem:[%s10928_s5 + $0x12c] ss:$16 sps:$4 sm:$0xff]   ;;  %v10204_v33 = vld [vmem:[%s10928_s5 + $0x120] ss:$16 sps:$4 sm:$0xff]  }
 0xd39   :  { %v5135_v57 = vadd.f32 %v5127_v16, %v5115_v34  ;;  %v5137_v22 = vadd.f32 %v5129_v59, %v5117_v48  ;;  %v10184_v1 = vld [vmem:[%s10928_s5 + $0x108] ss:$16 sps:$4 sm:$0xff]   ;;  %v10190_v32 = vld [vmem:[%s10928_s5 + $0x124] ss:$16 sps:$4 sm:$0xff]   ;;  %v10222_v36 = vld [vmem:[%s10928_s5 + $0x14c] ss:$16 sps:$4 sm:$0xff]  }
 0xd3a   :  { %v5158_v30 = vrot.slane %v5134_v10, 4  ;;  %v5160_v9 = vrot.slane %v5136_v20, 4  ;;  %v10210_v16 = vld [vmem:[%s10928_s5 + $0x128] ss:$16 sps:$4 sm:$0xff]   ;;  %v10216_v59 = vld [vmem:[%s10928_s5 + $0x144] ss:$16 sps:$4 sm:$0xff]  }
 0xd3b   :  { %v5159_v35 = vrot.slane %v5135_v57, 4  ;;  %v5161_v37 = vrot.slane %v5137_v22, 4  ;;  %v10228_v19 = vld [vmem:[%s10928_s5 + $0x140] ss:$16 sps:$4 sm:$0xff]   ;;  %v10234_v10 = vld [vmem:[%s10928_s5 + $0x148] ss:$16 sps:$4 sm:$0xff]  }
 0xd3c   :  { %v10240_v20 = vld [vmem:[%s10928_s5 + $0x164] ss:$16 sps:$4 sm:$0xff]   ;;  %v10246_v34 = vld [vmem:[%s10928_s5 + $0x16c] ss:$16 sps:$4 sm:$0xff]   ;;  %v10252_v48 = vld [vmem:[%s10928_s5 + $0x160] ss:$16 sps:$4 sm:$0xff]  }
 0xd3d   :  { %v10258_v57 = vld [vmem:[%s10928_s5 + $0x168] ss:$16 sps:$4 sm:$0xff]   ;;  %v10264_v22 = vld [vmem:[%s10928_s5 + $0x184] ss:$16 sps:$4 sm:$0xff]  }
 0xd55   :  { %v5066_v7 = vpop.f32.mrb[100].mxu0  ;;  %v5107_v8 = vpop.f32.mrb[100].mxu1 }
 0xd56   :  { %v5142_v40 = vrot.slane %v5066_v7, 6  ;;  %v5144_v0 = vrot.slane %v5107_v8, 6  ;;  %v5068_v53 = vpop.f32.mrb[101].mxu0  ;;  %v5109_v39 = vpop.f32.mrb[101].mxu1  ;;  %v10270_v7 = vld [vmem:[%s10928_s5 + $0x18c] ss:$16 sps:$4 sm:$0xff]  }
 0xd57   :  { %v5143_v23 = vrot.slane %v5068_v53, 6  ;;  %v5145_v56 = vrot.slane %v5109_v39, 6  ;;  %v5070_v13 = vpop.f32.mrb[102].mxu0  ;;  %v5111_v31 = vpop.f32.mrb[102].mxu1  ;;  %v10282_v8 = vld [vmem:[%s10928_s5 + $0x188] ss:$16 sps:$4 sm:$0xff]  }
 0xd58   :  { %v5150_v17 = vadd.f32 %v5142_v40, %v5118_v54  ;;  %v5152_v50 = vadd.f32 %v5144_v0, %v5120_v63  ;;  %v5071_v5 = vpop.f32.mrb[103].mxu0  ;;  %v5112_v4 = vpop.f32.mrb[103].mxu1  ;;  %v10276_v54 = vld [vmem:[%s10928_s5 + $0x180] ss:$16 sps:$4 sm:$0xff]   ;;  %v10288_v40 = vld [vmem:[%s10928_s5 + $0x1a4] ss:$16 sps:$4 sm:$0xff]  }
 0xd59   :  { %v5151_v24 = vadd.f32 %v5143_v23, %v5119_v2  ;;  %v5153_v11 = vadd.f32 %v5145_v56, %v5121_v25  ;;  %v10294_v63 = vld [vmem:[%s10928_s5 + $0x1ac] ss:$16 sps:$4 sm:$0xff]   ;;  %v10300_v0 = vld [vmem:[%s10928_s5 + $0x1a0] ss:$16 sps:$4 sm:$0xff]   ;;  %v10306_v53 = vld [vmem:[%s10928_s5 + $0x1a8] ss:$16 sps:$4 sm:$0xff]  }
 0xd5a   :  { %v5166_v27 = vsel %vm1238_vm0, %v5158_v30, %v5150_v17  ;;  %v5168_v26 = vsel %vm1238_vm0, %v5160_v9, %v5152_v50  ;;  %v10312_v39 = vld [vmem:[%s10928_s5 + $0x1c4] ss:$16 sps:$4 sm:$0xff]   ;;  %v10318_v2 = vld [vmem:[%s10928_s5 + $0x1cc] ss:$16 sps:$4 sm:$0xff]   ;;  %v10324_v23 = vld [vmem:[%s10928_s5 + $0x1c0] ss:$16 sps:$4 sm:$0xff]  }
 0xd5b   :  { %v6883_v29 = vmul.f32 -1.442695, %v5166_v27  ;;  %v5167_v38 = vsel %vm1238_vm0, %v5159_v35, %v5151_v24  ;;  %v5169_v3 = vsel %vm1238_vm0, %v5161_v37, %v5153_v11  ;;  %v6885_v42 = vmul.f32 -1.442695, %v5168_v26  ;;  %v10330_v56 = vld [vmem:[%s10928_s5 + $0x1c8] ss:$16 sps:$4 sm:$0xff]  }
 0xd5c   :  { %v6884_v41 = vmul.f32 -1.442695, %v5167_v38  ;;  %v10336_v13 = vld [vmem:[%s10928_s5 + $0x1e4] ss:$16 sps:$4 sm:$0xff]   ;;  %v10342_v31 = vld [vmem:[%s10928_s5 + $0x1ec] ss:$16 sps:$4 sm:$0xff]  }
 0xd5d   :  { %7255 = vpow2.f32 %v6883_v29  ;;  %v10348_v30 = vld [vmem:[%s10928_s5 + $0x1e0] ss:$16 sps:$4 sm:$0xff]   ;;  %v10354_v9 = vld [vmem:[%s10928_s5 + $0x1e8] ss:$16 sps:$4 sm:$0xff]   ;;  %v10361_v50 = vld [vmem:[%s10928_s5 + $0x4] ss:$16 sps:$4 sm:$0xff]  }
 0xd5e   :  { %7257 = vpow2.f32 %v6884_v41  ;;  %v10367_v25 = vld [vmem:[%s10928_s5 + $0xc] ss:$16 sps:$4 sm:$0xff]   ;;  %v10373_v5 = vld [vmem:[%s10928_s5] ss:$16 sps:$4 sm:$0xff]   ;;  %v10379_v4 = vld [vmem:[%s10928_s5 + $0x8] ss:$16 sps:$4 sm:$0xff]  }
 0xd5f   :  { %7259 = vtanh.f32 %v5169_v3  ;;  %11526 = vst [vmem:[#allocation36_spill] sm:$0xff] %v10367_v25  ;;  %11527 = vst [vmem:[#allocation38_spill] sm:$0xff] %v10373_v5  ;;  %v10385_v35 = vld [vmem:[%s10928_s5 + $0x24] ss:$16 sps:$4 sm:$0xff]   ;;  %v10391_v37 = vld [vmem:[%s10928_s5 + $0x2c] ss:$16 sps:$4 sm:$0xff]  }
 0xd60   :  { %7261 = vpow2.f32 %v6885_v42  ;;  %11528 = vst [vmem:[#allocation35_spill] sm:$0xff] %v10379_v4  ;;  %11529 = vst [vmem:[#allocation4_spill] sm:$0xff] %v10385_v35  ;;  %v10399_v24 = vld [vmem:[%s10928_s5 + $0x20] ss:$16 sps:$4 sm:$0xff]   ;;  %v10405_v11 = vld [vmem:[%s10928_s5 + $0x28] ss:$16 sps:$4 sm:$0xff]  }
 0xd61   :  { %11530 = vst [vmem:[#allocation5_spill] sm:$0xff] %v10391_v37  ;;  %11531 = vst [vmem:[#allocation6_spill] sm:$0xff] %v10399_v24  ;;  %v10411_v27 = vld [vmem:[%s10928_s5 + $0x44] ss:$16 sps:$4 sm:$0xff]   ;;  %v10417_v26 = vld [vmem:[%s10928_s5 + $0x4c] ss:$16 sps:$4 sm:$0xff]  }
 0xd62   :  { %11532 = vst [vmem:[#allocation7_spill] sm:$0xff] %v10405_v11  ;;  %11533 = vst [vmem:[#allocation8_spill] sm:$0xff] %v10411_v27  ;;  %v10423_v29 = vld [vmem:[%s10928_s5 + $0x40] ss:$16 sps:$4 sm:$0xff]   ;;  %v10429_v38 = vld [vmem:[%s10928_s5 + $0x48] ss:$16 sps:$4 sm:$0xff]  }
 0xd63   :  { %11534 = vst [vmem:[#allocation9_spill] sm:$0xff] %v10417_v26  ;;  %11535 = vst [vmem:[#allocation10_spill] sm:$0xff] %v10423_v29  ;;  %v10435_v3 = vld [vmem:[%s10928_s5 + $0x64] ss:$16 sps:$4 sm:$0xff]   ;;  %v10441_v41 = vld [vmem:[%s10928_s5 + $0x6c] ss:$16 sps:$4 sm:$0xff]  }
 0xd64   :  { %11536 = vst [vmem:[#allocation11_spill] sm:$0xff] %v10429_v38  ;;  %11537 = vst [vmem:[#allocation12_spill] sm:$0xff] %v10435_v3  ;;  %v10447_v42 = vld [vmem:[%s10928_s5 + $0x60] ss:$16 sps:$4 sm:$0xff]  }
 0xd65   :  { %11538 = vst [vmem:[#allocation13_spill] sm:$0xff] %v10441_v41  ;;  %11539 = vst [vmem:[#allocation14_spill] sm:$0xff] %v10447_v42 }
 0xd67   :  { %v7256_v43 = vpop.eup %7255 }
 0xd68   :  { %v5179_v44 = vadd.f32 1.0, %v7256_v43  ;;  %v7258_v45 = vpop.eup %7257  ;;  %v10453_v43 = vld [vmem:[%s10928_s5 + $0x68] ss:$16 sps:$4 sm:$0xff]  }
 0xd69   :  { %v5180_v46 = vadd.f32 1.0, %v7258_v45  ;;  %v7260_v47 = vpop.eup %7259  ;;  %11540 = vst [vmem:[#allocation15_spill] sm:$0xff] %v10453_v43  ;;  %v10465_v45 = vld [vmem:[%s10928_s5 + $0x8c] ss:$16 sps:$4 sm:$0xff]  }
 0xd6a   :  { %7263 = vrcp.f32 %v5179_v44  ;;  %v7262_v51 = vpop.eup %7261  ;;  %v10459_v44 = vld [vmem:[%s10928_s5 + $0x84] ss:$16 sps:$4 sm:$0xff]   ;;  %11542 = vst [vmem:[#allocation17_spill] sm:$0xff] %v10465_v45 }
 0xd6b   :  { %7265 = vrcp.f32 %v5180_v46  ;;  %v5181_v14 = vadd.f32 1.0, %v7262_v51  ;;  %11541 = vst [vmem:[#allocation16_spill] sm:$0xff] %v10459_v44  ;;  %v10471_v46 = vld [vmem:[%s10928_s5 + $0x80] ss:$16 sps:$4 sm:$0xff]   ;;  %v10483_v51 = vld [vmem:[%s10928_s5 + $0xa4] ss:$16 sps:$4 sm:$0xff]  }
 0xd6c   :  { %11543 = vst [vmem:[#allocation18_spill] sm:$0xff] %v10471_v46  ;;  %11545 = vst [vmem:[#allocation20_spill] sm:$0xff] %v10483_v51 }
 0xd6d   :  { %7267 = vrcp.f32 %v5181_v14  ;;  %v10507_v14 = vld [vmem:[%s10928_s5 + $0xc4] ss:$16 sps:$4 sm:$0xff]  }
 0xd6e   :  { %11549 = vst [vmem:[#allocation24_spill] sm:$0xff] %v10507_v14 }
 0xd74   :  { %v7264_v58 = vpop.eup %7263 }
 0xd75   :  { %v5190_v12 = vmul.f32 %v7264_v58, %v7260_v47  ;;  %v7266_v55 = vpop.eup %7265  ;;  %v10477_v47 = vld [vmem:[%s10928_s5 + $0x88] ss:$16 sps:$4 sm:$0xff]   ;;  %v10489_v58 = vld [vmem:[%s10928_s5 + $0xac] ss:$16 sps:$4 sm:$0xff]  }
 0xd76   :  { %v5189_v21 = vmul.f32 %v7266_v55, %v10083_v28  ;;  %v10178_v28 = vld [vmem:[%s10928_s5 + $0x100] ss:$16 sps:$4 sm:$0xff]   ;;  %11544 = vst [vmem:[#allocation19_spill] sm:$0xff] %v10477_v47  ;;  %11546 = vst [vmem:[#allocation21_spill] sm:$0xff] %v10489_v58  ;;  %v10501_v55 = vld [vmem:[%s10928_s5 + $0xa8] ss:$16 sps:$4 sm:$0xff]  }
 0xd77   :  { %v7268_v61 = vpop.eup %7267  ;;  %11548 = vst [vmem:[#allocation23_spill] sm:$0xff] %v10501_v55 }
 0xd78   :  { %v10162_v52 = vadd.f32 %v5190_v12, %v5189_v21  ;;  %v10495_v12 = vld [vmem:[%s10928_s5 + $0xa0] ss:$16 sps:$4 sm:$0xff]   ;;  %v10513_v21 = vld [vmem:[%s10928_s5 + $0xcc] ss:$16 sps:$4 sm:$0xff]  }
 0xd79   :  { %11547 = vst [vmem:[#allocation22_spill] sm:$0xff] %v10495_v12  ;;  %11550 = vst [vmem:[#allocation25_spill] sm:$0xff] %v10513_v21 }
 0xd7a   :  { %7269 = vtanh.f32 %v10162_v52 }
 0xd84   :  { %v7270_v18 = vpop.eup %7269 }
 0xd85   :  { %v5193_v60 = vmul.f32 %v7270_v18, %v7268_v61  ;;  %v10519_v61 = vld [vmem:[%s10928_s5 + $0xc0] ss:$16 sps:$4 sm:$0xff]   ;;  %v10525_v18 = vld [vmem:[%s10928_s5 + $0xc8] ss:$16 sps:$4 sm:$0xff]  }
 0xd86   :  { %11551 = vst [vmem:[#allocation26_spill] sm:$0xff] %v10519_v61  ;;  %11552 = vst [vmem:[#allocation27_spill] sm:$0xff] %v10525_v18 }
 0xd87   :  { %v5195_v15 = vrot.slane %v5193_v60, 4  ;;  %5198 = vst [vmem:[%s10930_s7 + $0x18] sm:$0xc] %v5193_v60  ;;  %v10168_v6 = vpack.c.bf16 %v5193_v60, %v5193_v60  ;;  %v10531_v60 = vld [vmem:[%s10928_s5 + $0xe4] ss:$16 sps:$4 sm:$0xff]  }
 0xd88   :  { %11553 = vst [vmem:[#allocation28_spill] sm:$0xff] %v10531_v60 }
 0xd89   :  { %5197 = vst [vmem:[%s10930_s7] sm:$0x30] %v5195_v15  ;;  %5233 = vmatmul.mubr.bf16.vlgmr.msra.gmra.mrb[104].mxu0 %v10168_v6  ;;  %5274 = vmatmul.mubr.bf16.vlgmr.msra.gmra.mrb[104].mxu1 %v10168_v6  ;;  %v5283_v17 = vrot.slane %v10168_v6, 1  ;;  %v10537_v15 = vld [vmem:[%s10928_s5 + $0xec] ss:$16 sps:$4 sm:$0xff]   ;;  %v10543_v6 = vld [vmem:[%s10928_s5 + $0xe0] ss:$16 sps:$4 sm:$0xff]  }
 0xd8a   :  { %5286 = vmatpush1.bf16.msra.mxu0 %v10178_v28  ;;  %5327 = vmatpush1.bf16.msra.mxu1 %v10184_v1  ;;  %11554 = vst [vmem:[#allocation29_spill] sm:$0xff] %v10537_v15  ;;  %11555 = vst [vmem:[#allocation30_spill] sm:$0xff] %v10543_v6 }
 0xd8b   :  { %5287 = vmatprep.subr.bf16.mxu0 %v10190_v32  ;;  %5328 = vmatprep.subr.bf16.mxu1 %v10196_v49 }
 0xd8c   :  { %5317 = vmatprep.mubr.bf16.mxu0 %v11231_v62  ;;  %5358 = vmatprep.mubr.bf16.mxu1 %v11231_v62 }
 0xd8e   :  { %5288 = vmatpush1.bf16.msra.mxu0 %v10204_v33  ;;  %5329 = vmatpush1.bf16.msra.mxu1 %v10210_v16 }
 0xd8f   :  { %5289 = vmatprep.subr.bf16.mxu0 %v10216_v59  ;;  %5330 = vmatprep.subr.bf16.mxu1 %v10222_v36 }
 0xd92   :  { %5290 = vmatpush1.bf16.msra.mxu0 %v10228_v19  ;;  %5331 = vmatpush1.bf16.msra.mxu1 %v10234_v10 }
 0xd93   :  { %5291 = vmatprep.subr.bf16.mxu0 %v10240_v20  ;;  %5332 = vmatprep.subr.bf16.mxu1 %v10246_v34 }
 0xd96   :  { %5292 = vmatpush1.bf16.msra.mxu0 %v10252_v48  ;;  %5333 = vmatpush1.bf16.msra.mxu1 %v10258_v57 }
 0xd97   :  { %5293 = vmatprep.subr.bf16.mxu0 %v10264_v22  ;;  %5334 = vmatprep.subr.bf16.mxu1 %v10270_v7 }
 0xd9a   :  { %5294 = vmatpush1.bf16.msra.mxu0 %v10276_v54  ;;  %5335 = vmatpush1.bf16.msra.mxu1 %v10282_v8 }
 0xd9b   :  { %5295 = vmatprep.subr.bf16.mxu0 %v10288_v40  ;;  %5336 = vmatprep.subr.bf16.mxu1 %v10294_v63 }
 0xd9e   :  { %5296 = vmatpush1.bf16.msra.mxu0 %v10300_v0  ;;  %5337 = vmatpush1.bf16.msra.mxu1 %v10306_v53 }
 0xd9f   :  { %5297 = vmatprep.subr.bf16.mxu0 %v10312_v39  ;;  %5338 = vmatprep.subr.bf16.mxu1 %v10318_v2 }
 0xda2   :  { %5298 = vmatpush1.bf16.msra.mxu0 %v10324_v23  ;;  %5339 = vmatpush1.bf16.msra.mxu1 %v10330_v56 }
 0xda3   :  { %5299 = vmatprep.subr.bf16.mxu0 %v10336_v13  ;;  %5340 = vmatprep.subr.bf16.mxu1 %v10342_v31 }
 0xda6   :  { %5300 = vmatpush1.bf16.msra.mxu0 %v10348_v30  ;;  %5341 = vmatpush1.bf16.msra.mxu1 %v10354_v9 }
 0xda7   :  { %5453 = vmatprep.subr.bf16.mxu0 %v10361_v50  ;;  %5494 = vmatprep.subr.bf16.mxu1 %v10367_v25 }
 0xda9   :  { %5318 = vmatmul.mubr.bf16.vlgmr.msra.gmra.mrb[108].mxu0 %v5283_v17  ;;  %5359 = vmatmul.mubr.bf16.vlgmr.msra.gmra.mrb[108].mxu1 %v5283_v17  ;;  %v10549_v17 = vld [vmem:[%s10928_s5 + $0xe8] ss:$16 sps:$4 sm:$0xff]  }
 0xdaa   :  { %5454 = vmatpush1.bf16.msra.mxu0 %v10373_v5  ;;  %5495 = vmatpush1.bf16.msra.mxu1 %v10379_v4  ;;  %11556 = vst [vmem:[#allocation31_spill] sm:$0xff] %v10549_v17 }
 0xdab   :  { %5455 = vmatprep.subr.bf16.mxu0 %v10385_v35  ;;  %5496 = vmatprep.subr.bf16.mxu1 %v10391_v37 }
 0xdac   :  { %5485 = vmatprep.mubr.bf16.mxu0 %v11231_v62  ;;  %5526 = vmatprep.mubr.bf16.mxu1 %v11231_v62 }
 0xdae   :  { %5456 = vmatpush1.bf16.msra.mxu0 %v10399_v24  ;;  %5497 = vmatpush1.bf16.msra.mxu1 %v10405_v11 }
 0xdaf   :  { %5457 = vmatprep.subr.bf16.mxu0 %v10411_v27  ;;  %5498 = vmatprep.subr.bf16.mxu1 %v10417_v26  ;;  %v5373_v27 = vld [vmem:[#allocation2 + $0x70] sm:$0x3] }
 0xdb2   :  { %5458 = vmatpush1.bf16.msra.mxu0 %v10423_v29  ;;  %5499 = vmatpush1.bf16.msra.mxu1 %v10429_v38  ;;  %v5371_v29 = vld [vmem:[#allocation2 + $0x60] sm:$0x3] }
 0xdb3   :  { %5459 = vmatprep.subr.bf16.mxu0 %v10435_v3  ;;  %5500 = vmatprep.subr.bf16.mxu1 %v10441_v41  ;;  %v5370_v41 = vld [vmem:[#allocation2 + $0x18] sm:$0xc0] }
 0xdb6   :  { %5460 = vmatpush1.bf16.msra.mxu0 %v10447_v42  ;;  %5501 = vmatpush1.bf16.msra.mxu1 %v10453_v43  ;;  %v5368_v42 = vld [vmem:[#allocation2 + $0x8] sm:$0xc0] }
 0xdb7   :  { %5461 = vmatprep.subr.bf16.mxu0 %v10459_v44  ;;  %5502 = vmatprep.subr.bf16.mxu1 %v10465_v45  ;;  %v5369_v45 = vld [vmem:[#allocation2 + $0x10] sm:$0xc0] }
 0xdba   :  { %5462 = vmatpush1.bf16.msra.mxu0 %v10471_v46  ;;  %5503 = vmatpush1.bf16.msra.mxu1 %v10477_v47 }
 0xdbb   :  { %5463 = vmatprep.subr.bf16.mxu0 %v10483_v51  ;;  %5504 = vmatprep.subr.bf16.mxu1 %v10489_v58 }
 0xdbe   :  { %5464 = vmatpush1.bf16.msra.mxu0 %v10495_v12  ;;  %5505 = vmatpush1.bf16.msra.mxu1 %v10501_v55 }
 0xdbf   :  { %5465 = vmatprep.subr.bf16.mxu0 %v10507_v14  ;;  %5506 = vmatprep.subr.bf16.mxu1 %v10513_v21 }
 0xdc2   :  { %5466 = vmatpush1.bf16.msra.mxu0 %v10519_v61  ;;  %5507 = vmatpush1.bf16.msra.mxu1 %v10525_v18 }
 0xdc3   :  { %5467 = vmatprep.subr.bf16.mxu0 %v10531_v60  ;;  %5508 = vmatprep.subr.bf16.mxu1 %v10537_v15  ;;  %v10555_v60 = vld [vmem:[%s10928_s5 + $0x104] ss:$16 sps:$4 sm:$0xff]   ;;  %v10561_v15 = vld [vmem:[%s10928_s5 + $0x10c] ss:$16 sps:$4 sm:$0xff]  }
 0xdc4   :  { %11557 = vst [vmem:[#allocation32_spill] sm:$0xff] %v10555_v60  ;;  %11558 = vst [vmem:[#allocation33_spill] sm:$0xff] %v10561_v15 }
 0xdc6   :  { %5468 = vmatpush1.bf16.msra.mxu0 %v10543_v6  ;;  %5509 = vmatpush1.bf16.msra.mxu1 %v10549_v17 }
 0xdc7   :  { %5538 = vmatprep.subr.bf16.mxu0 %v10555_v60  ;;  %5579 = vmatprep.subr.bf16.mxu1 %v10561_v15  ;;  %v5367_v60 = vld [vmem:[#allocation2] sm:$0xc0] }
 0xe5c   :  { %v5234_v6 = vpop.f32.mrb[104].mxu0  ;;  %v5275_v18 = vpop.f32.mrb[104].mxu1 }
 0xe5d   :  { %v5236_v61 = vpop.f32.mrb[105].mxu0  ;;  %v5277_v21 = vpop.f32.mrb[105].mxu1  ;;  %v5379_v58 = vrot.slane %v5234_v6, 2  ;;  %v5381_v51 = vrot.slane %v5275_v18, 2  ;;  %v5374_v18 = vld [vmem:[#allocation2 + $0x78] sm:$0x3] }
 0xe5e   :  { %v5238_v14 = vpop.f32.mrb[106].mxu0  ;;  %v5279_v17 = vpop.f32.mrb[106].mxu1  ;;  %v5380_v47 = vrot.slane %v5236_v61, 2  ;;  %v5382_v46 = vrot.slane %v5277_v21, 2 }
 0xe5f   :  { %v5239_v55 = vpop.f32.mrb[107].mxu0  ;;  %v5280_v12 = vpop.f32.mrb[107].mxu1  ;;  %v5387_v44 = vadd.f32 %v5379_v58, %v5367_v60  ;;  %v5389_v43 = vadd.f32 %v5381_v51, %v5369_v45 }
 0xe60   :  { %v5388_v3 = vadd.f32 %v5380_v47, %v5368_v42  ;;  %v5390_v15 = vadd.f32 %v5382_v46, %v5370_v41  ;;  %v5372_v12 = vld [vmem:[#allocation2 + $0x68] sm:$0x3] }
 0xe61   :  { %v5399_v58 = vrot.slane %v5387_v44, 6  ;;  %v5401_v45 = vrot.slane %v5389_v43, 6 }
 0xe62   :  { %v5400_v46 = vrot.slane %v5388_v3, 6  ;;  %v5402_v47 = vrot.slane %v5390_v15, 6 }
 0xe7c   :  { %v5319_v38 = vpop.f32.mrb[108].mxu0  ;;  %v5360_v26 = vpop.f32.mrb[108].mxu1 }
 0xe7d   :  { %v5391_v14 = vadd.f32 %v5371_v29, %v5319_v38  ;;  %v5393_v17 = vadd.f32 %v5373_v27, %v5360_v26  ;;  %v5321_v55 = vpop.f32.mrb[109].mxu0  ;;  %v5362_v6 = vpop.f32.mrb[109].mxu1 }
 0xe7e   :  { %v5392_v61 = vadd.f32 %v5372_v12, %v5321_v55  ;;  %v5394_v21 = vadd.f32 %v5374_v18, %v5362_v6  ;;  %v5323_v11 = vpop.f32.mrb[110].mxu0  ;;  %v5364_v24 = vpop.f32.mrb[110].mxu1 }
 0xe7f   :  { %v5411_v51 = vrot.slane %v5391_v14, 6  ;;  %v5413_v60 = vrot.slane %v5393_v17, 6  ;;  %v5324_v42 = vpop.f32.mrb[111].mxu0  ;;  %v5365_v41 = vpop.f32.mrb[111].mxu1 }
 0xe80   :  { %v5412_v37 = vrot.slane %v5392_v61, 6  ;;  %v5414_v35 = vrot.slane %v5394_v21, 6  ;;  %v11559_v42 = vld [vmem:[#allocation4_spill] sm:$0xff]  ;;  %v11560_v41 = vld [vmem:[#allocation5_spill] sm:$0xff] }
 0xe81   :  { %v5419_v27 = vsel %vm1238_vm0, %v5399_v58, %v5411_v51  ;;  %v5421_v26 = vsel %vm1238_vm0, %v5401_v45, %v5413_v60 }
 0xe82   :  { %v6886_v29 = vmul.f32 -1.442695, %v5419_v27  ;;  %v5420_v38 = vsel %vm1238_vm0, %v5400_v46, %v5412_v37  ;;  %v5422_v11 = vsel %vm1238_vm0, %v5402_v47, %v5414_v35  ;;  %v6888_v43 = vmul.f32 -1.442695, %v5421_v26  ;;  %v11561_v46 = vld [vmem:[#allocation6_spill] sm:$0xff]  ;;  %v11562_v47 = vld [vmem:[#allocation7_spill] sm:$0xff] }
 0xe83   :  { %v6887_v24 = vmul.f32 -1.442695, %v5420_v38  ;;  %v11563_v27 = vld [vmem:[#allocation8_spill] sm:$0xff]  ;;  %v11564_v26 = vld [vmem:[#allocation9_spill] sm:$0xff]  ;;  %v11566_v38 = vld [vmem:[#allocation11_spill] sm:$0xff] }
 0xe84   :  { %7271 = vpow2.f32 %v6886_v29  ;;  %v11565_v29 = vld [vmem:[#allocation10_spill] sm:$0xff] }
 0xe85   :  { %7273 = vpow2.f32 %v6887_v24  ;;  %v11568_v24 = vld [vmem:[#allocation13_spill] sm:$0xff] }
 0xe86   :  { %7275 = vtanh.f32 %v5422_v11  ;;  %v11567_v11 = vld [vmem:[#allocation12_spill] sm:$0xff] }
 0xe87   :  { %7277 = vpow2.f32 %v6888_v43  ;;  %v11569_v43 = vld [vmem:[#allocation14_spill] sm:$0xff] }
 0xe8e   :  { %v7272_v44 = vpop.eup %7271 }
 0xe8f   :  { %v5432_v14 = vadd.f32 1.0, %v7272_v44  ;;  %v7274_v3 = vpop.eup %7273  ;;  %v11570_v44 = vld [vmem:[#allocation15_spill] sm:$0xff] }
 0xe90   :  { %v5433_v15 = vadd.f32 1.0, %v7274_v3  ;;  %v7276_v17 = vpop.eup %7275  ;;  %v11572_v3 = vld [vmem:[#allocation17_spill] sm:$0xff] }
 0xe91   :  { %7279 = vrcp.f32 %v5432_v14  ;;  %v7278_v55 = vpop.eup %7277  ;;  %v11571_v14 = vld [vmem:[#allocation16_spill] sm:$0xff] }
 0xe92   :  { %7281 = vrcp.f32 %v5433_v15  ;;  %v5434_v37 = vadd.f32 1.0, %v7278_v55  ;;  %v11573_v15 = vld [vmem:[#allocation18_spill] sm:$0xff]  ;;  %v11575_v55 = vld [vmem:[#allocation20_spill] sm:$0xff] }
 0xe94   :  { %7283 = vrcp.f32 %v5434_v37  ;;  %v11579_v37 = vld [vmem:[#allocation24_spill] sm:$0xff] }
 0xe9b   :  { %v7280_v12 = vpop.eup %7279 }
 0xe9c   :  { %v5443_v6 = vmul.f32 %v7280_v12, %v7276_v17  ;;  %v7282_v18 = vpop.eup %7281  ;;  %v11574_v17 = vld [vmem:[#allocation19_spill] sm:$0xff]  ;;  %v11576_v12 = vld [vmem:[#allocation21_spill] sm:$0xff] }
 0xe9d   :  { %v5442_v35 = vmul.f32 %v7282_v18, %v10162_v52  ;;  %v11578_v18 = vld [vmem:[#allocation23_spill] sm:$0xff] }
 0xe9e   :  { %v7284_v21 = vpop.eup %7283 }
 0xe9f   :  { %v10569_v61 = vadd.f32 %v5443_v6, %v5442_v35  ;;  %v11577_v6 = vld [vmem:[#allocation22_spill] sm:$0xff]  ;;  %v11580_v35 = vld [vmem:[#allocation25_spill] sm:$0xff] }
 0xea1   :  { %7285 = vtanh.f32 %v10569_v61 }
 0xeab   :  { %v7286_v58 = vpop.eup %7285 }
 0xeac   :  { %v5446_v45 = vmul.f32 %v7286_v58, %v7284_v21  ;;  %v11581_v21 = vld [vmem:[#allocation26_spill] sm:$0xff]  ;;  %v11582_v58 = vld [vmem:[#allocation27_spill] sm:$0xff] }
 0xeae   :  { %v5448_v51 = vrot.slane %v5446_v45, 2  ;;  %v5452_v60 = vpack.c.bf16 %v5446_v45, %v5446_v45  ;;  %v11583_v45 = vld [vmem:[#allocation28_spill] sm:$0xff] }
 0xeb0   :  { %5450 = vst [vmem:[%s10930_s7 + $0x18] ss:$-20 sps:$4 sm:$0xc3] %v5448_v51   ;;  %5486 = vmatmul.mubr.bf16.vlgmr.msra.gmra.mrb[112].mxu0 %v5452_v60  ;;  %5527 = vmatmul.mubr.bf16.vlgmr.msra.gmra.mrb[112].mxu1 %v5452_v60  ;;  %v5536_v52 = vrot.slane %v5452_v60, 1  ;;  %v11584_v51 = vld [vmem:[#allocation29_spill] sm:$0xff]  ;;  %v11585_v60 = vld [vmem:[#allocation30_spill] sm:$0xff] }
 0xeb1   :  { %5539 = vmatpush1.bf16.msra.mxu0 %v10178_v28  ;;  %5580 = vmatpush1.bf16.msra.mxu1 %v10184_v1 }
 0xeb2   :  { %5540 = vmatprep.subr.bf16.mxu0 %v10190_v32  ;;  %5581 = vmatprep.subr.bf16.mxu1 %v10196_v49 }
 0xeb3   :  { %5570 = vmatprep.mubr.bf16.mxu0 %v11231_v62  ;;  %5611 = vmatprep.mubr.bf16.mxu1 %v11231_v62 }
 0xeb5   :  { %5541 = vmatpush1.bf16.msra.mxu0 %v10204_v33  ;;  %5582 = vmatpush1.bf16.msra.mxu1 %v10210_v16 }
 0xeb6   :  { %5542 = vmatprep.subr.bf16.mxu0 %v10216_v59  ;;  %5583 = vmatprep.subr.bf16.mxu1 %v10222_v36 }
 0xeb9   :  { %5543 = vmatpush1.bf16.msra.mxu0 %v10228_v19  ;;  %5584 = vmatpush1.bf16.msra.mxu1 %v10234_v10 }
 0xeba   :  { %5544 = vmatprep.subr.bf16.mxu0 %v10240_v20  ;;  %5585 = vmatprep.subr.bf16.mxu1 %v10246_v34 }
 0xebd   :  { %5545 = vmatpush1.bf16.msra.mxu0 %v10252_v48  ;;  %5586 = vmatpush1.bf16.msra.mxu1 %v10258_v57 }
 0xebe   :  { %5546 = vmatprep.subr.bf16.mxu0 %v10264_v22  ;;  %5587 = vmatprep.subr.bf16.mxu1 %v10270_v7 }
 0xec1   :  { %5547 = vmatpush1.bf16.msra.mxu0 %v10276_v54  ;;  %5588 = vmatpush1.bf16.msra.mxu1 %v10282_v8 }
 0xec2   :  { %5548 = vmatprep.subr.bf16.mxu0 %v10288_v40  ;;  %5589 = vmatprep.subr.bf16.mxu1 %v10294_v63 }
 0xec5   :  { %5549 = vmatpush1.bf16.msra.mxu0 %v10300_v0  ;;  %5590 = vmatpush1.bf16.msra.mxu1 %v10306_v53 }
 0xec6   :  { %5550 = vmatprep.subr.bf16.mxu0 %v10312_v39  ;;  %5591 = vmatprep.subr.bf16.mxu1 %v10318_v2 }
 0xec9   :  { %5551 = vmatpush1.bf16.msra.mxu0 %v10324_v23  ;;  %5592 = vmatpush1.bf16.msra.mxu1 %v10330_v56 }
 0xeca   :  { %5552 = vmatprep.subr.bf16.mxu0 %v10336_v13  ;;  %5593 = vmatprep.subr.bf16.mxu1 %v10342_v31 }
 0xecd   :  { %5553 = vmatpush1.bf16.msra.mxu0 %v10348_v30  ;;  %5594 = vmatpush1.bf16.msra.mxu1 %v10354_v9 }
 0xece   :  { %5694 = vmatprep.subr.bf16.mxu0 %v10361_v50  ;;  %5735 = vmatprep.subr.bf16.mxu1 %v10367_v25 }
 0xed0   :  { %5571 = vmatmul.mubr.bf16.vlgmr.msra.gmra.mrb[116].mxu0 %v5536_v52  ;;  %5612 = vmatmul.mubr.bf16.vlgmr.msra.gmra.mrb[116].mxu1 %v5536_v52  ;;  %v11586_v52 = vld [vmem:[#allocation31_spill] sm:$0xff] }
 0xed1   :  { %5695 = vmatpush1.bf16.msra.mxu0 %v10373_v5  ;;  %5736 = vmatpush1.bf16.msra.mxu1 %v10379_v4 }
 0xed2   :  { %5696 = vmatprep.subr.bf16.mxu0 %v11559_v42  ;;  %5737 = vmatprep.subr.bf16.mxu1 %v11560_v41  ;;  %v5623_v42 = vld [vmem:[#allocation2 + $0x58] sm:$0x3] }
 0xed3   :  { %5726 = vmatprep.mubr.bf16.mxu0 %v11231_v62  ;;  %5767 = vmatprep.mubr.bf16.mxu1 %v11231_v62 }
 0xed5   :  { %5697 = vmatpush1.bf16.msra.mxu0 %v11561_v46  ;;  %5738 = vmatpush1.bf16.msra.mxu1 %v11562_v47 }
 0xed6   :  { %5698 = vmatprep.subr.bf16.mxu0 %v11563_v27  ;;  %5739 = vmatprep.subr.bf16.mxu1 %v11564_v26  ;;  %v5625_v26 = vld [vmem:[#allocation2 + $0x28] sm:$0xc0]  ;;  %v5627_v27 = vld [vmem:[#allocation2 + $0x38] sm:$0xc0] }
 0xed9   :  { %5699 = vmatpush1.bf16.msra.mxu0 %v11565_v29  ;;  %5740 = vmatpush1.bf16.msra.mxu1 %v11566_v38 }
 0xeda   :  { %5700 = vmatprep.subr.bf16.mxu0 %v11567_v11  ;;  %5741 = vmatprep.subr.bf16.mxu1 %v11568_v24 }
 0xedd   :  { %5701 = vmatpush1.bf16.msra.mxu0 %v11569_v43  ;;  %5742 = vmatpush1.bf16.msra.mxu1 %v11570_v44 }
 0xede   :  { %5702 = vmatprep.subr.bf16.mxu0 %v11571_v14  ;;  %5743 = vmatprep.subr.bf16.mxu1 %v11572_v3  ;;  %v5624_v14 = vld [vmem:[#allocation2 + $0x20] sm:$0xc0] }
 0xee1   :  { %5703 = vmatpush1.bf16.msra.mxu0 %v11573_v15  ;;  %5744 = vmatpush1.bf16.msra.mxu1 %v11574_v17 }
 0xee2   :  { %5704 = vmatprep.subr.bf16.mxu0 %v11575_v55  ;;  %5745 = vmatprep.subr.bf16.mxu1 %v11576_v12  ;;  %v11587_v12 = vld [vmem:[#allocation32_spill] sm:$0xff] }
 0xee5   :  { %5705 = vmatpush1.bf16.msra.mxu0 %v11577_v6  ;;  %5746 = vmatpush1.bf16.msra.mxu1 %v11578_v18  ;;  %v11588_v6 = vld [vmem:[#allocation33_spill] sm:$0xff] }
 0xee6   :  { %5706 = vmatprep.subr.bf16.mxu0 %v11579_v37  ;;  %5747 = vmatprep.subr.bf16.mxu1 %v11580_v35 }
 0xee9   :  { %5707 = vmatpush1.bf16.msra.mxu0 %v11581_v21  ;;  %5748 = vmatpush1.bf16.msra.mxu1 %v11582_v58 }
 0xeea   :  { %5708 = vmatprep.subr.bf16.mxu0 %v11583_v45  ;;  %5749 = vmatprep.subr.bf16.mxu1 %v11584_v51 }
 0xeed   :  { %5709 = vmatpush1.bf16.msra.mxu0 %v11585_v60  ;;  %5750 = vmatpush1.bf16.msra.mxu1 %v11586_v52  ;;  %v5626_v52 = vld [vmem:[#allocation2 + $0x30] sm:$0xc0] }
 0xeee   :  { %5779 = vmatprep.subr.bf16.mxu0 %v11587_v12  ;;  %5820 = vmatprep.subr.bf16.mxu1 %v11588_v6 }
 0xf83   :  { %v5487_v18 = vpop.f32.mrb[112].mxu0  ;;  %v5528_v37 = vpop.f32.mrb[112].mxu1 }
 0xf84   :  { %v5489_v55 = vpop.f32.mrb[113].mxu0  ;;  %v5530_v35 = vpop.f32.mrb[113].mxu1 }
 0xf85   :  { %v5491_v17 = vpop.f32.mrb[114].mxu0  ;;  %v5532_v21 = vpop.f32.mrb[114].mxu1 }
 0xf86   :  { %v5492_v15 = vpop.f32.mrb[115].mxu0  ;;  %v5533_v58 = vpop.f32.mrb[115].mxu1 }
 0xf87   :  { %v5620_v15 = vld [vmem:[#allocation2 + $0x40] sm:$0x3]  ;;  %v5622_v58 = vld [vmem:[#allocation2 + $0x50] sm:$0x3] }
 0xf88   :  { %v5628_v41 = vadd.f32 %v5620_v15, %v5487_v18 }
 0xfa3   :  { %v5572_v3 = vpop.f32.mrb[116].mxu0  ;;  %v5613_v45 = vpop.f32.mrb[116].mxu1 }
 0xfa4   :  { %v5636_v51 = vrot.slane %v5572_v3, 2  ;;  %v5638_v44 = vrot.slane %v5613_v45, 2  ;;  %v5574_v60 = vpop.f32.mrb[117].mxu0  ;;  %v5615_v43 = vpop.f32.mrb[117].mxu1  ;;  %v5630_v3 = vadd.f32 %v5622_v58, %v5528_v37  ;;  %v5621_v45 = vld [vmem:[#allocation2 + $0x48] sm:$0x3] }
 0xfa5   :  { %v5637_v24 = vrot.slane %v5574_v60, 2  ;;  %v5639_v12 = vrot.slane %v5615_v43, 2  ;;  %v5576_v11 = vpop.f32.mrb[118].mxu0  ;;  %v5617_v6 = vpop.f32.mrb[118].mxu1  ;;  %v5629_v60 = vadd.f32 %v5621_v45, %v5489_v55  ;;  %v5631_v43 = vadd.f32 %v5623_v42, %v5530_v35  ;;  %v11590_v45 = vld [vmem:[#allocation35_spill] sm:$0xff] }
 0xfa6   :  { %v5644_v38 = vadd.f32 %v5636_v51, %v5624_v14  ;;  %v5646_v29 = vadd.f32 %v5638_v44, %v5626_v52  ;;  %v5577_v17 = vpop.f32.mrb[119].mxu0  ;;  %v5618_v21 = vpop.f32.mrb[119].mxu1 }
 0xfa7   :  { %v5645_v47 = vadd.f32 %v5637_v24, %v5625_v26  ;;  %v5647_v46 = vadd.f32 %v5639_v12, %v5627_v27 }
 0xfa8   :  { %v5652_v4 = vrot.slane %v5644_v38, 4  ;;  %v5654_v5 = vrot.slane %v5646_v29, 4 }
 0xfa9   :  { %v5653_v11 = vrot.slane %v5645_v47, 4  ;;  %v5655_v6 = vrot.slane %v5647_v46, 4 }
 0xfaa   :  { %v5660_v44 = vsel %vm1238_vm0, %v5628_v41, %v5652_v4  ;;  %v5662_v14 = vsel %vm1238_vm0, %v5630_v3, %v5654_v5  ;;  %v11589_v3 = vld [vmem:[#allocation38_spill] sm:$0xff] }
 0xfab   :  { %v6889_v51 = vmul.f32 -1.442695, %v5660_v44  ;;  %v5661_v52 = vsel %vm1238_vm0, %v5629_v60, %v5653_v11  ;;  %v5663_v26 = vsel %vm1238_vm0, %v5631_v43, %v5655_v6  ;;  %v6891_v24 = vmul.f32 -1.442695, %v5662_v14  ;;  %v11591_v60 = vld [vmem:[#allocation4_spill] sm:$0xff]  ;;  %v11592_v43 = vld [vmem:[#allocation5_spill] sm:$0xff] }
 0xfac   :  { %v6890_v27 = vmul.f32 -1.442695, %v5661_v52  ;;  %v11593_v11 = vld [vmem:[#allocation6_spill] sm:$0xff]  ;;  %v11594_v6 = vld [vmem:[#allocation7_spill] sm:$0xff]  ;;  %v11595_v44 = vld [vmem:[#allocation8_spill] sm:$0xff] }
 0xfad   :  { %7287 = vpow2.f32 %v6889_v51  ;;  %v11596_v14 = vld [vmem:[#allocation9_spill] sm:$0xff]  ;;  %v11597_v51 = vld [vmem:[#allocation10_spill] sm:$0xff]  ;;  %v11598_v52 = vld [vmem:[#allocation11_spill] sm:$0xff] }
 0xfae   :  { %7289 = vpow2.f32 %v6890_v27  ;;  %v11600_v27 = vld [vmem:[#allocation13_spill] sm:$0xff] }
 0xfaf   :  { %7291 = vtanh.f32 %v5663_v26  ;;  %v11599_v26 = vld [vmem:[#allocation12_spill] sm:$0xff] }
 0xfb0   :  { %7293 = vpow2.f32 %v6891_v24  ;;  %v11601_v24 = vld [vmem:[#allocation14_spill] sm:$0xff] }
 0xfb7   :  { %v7288_v12 = vpop.eup %7287 }
 0xfb8   :  { %v5673_v38 = vadd.f32 1.0, %v7288_v12  ;;  %v7290_v29 = vpop.eup %7289  ;;  %v11602_v12 = vld [vmem:[#allocation15_spill] sm:$0xff] }
 0xfb9   :  { %v5674_v42 = vadd.f32 1.0, %v7290_v29  ;;  %v7292_v4 = vpop.eup %7291  ;;  %v11604_v29 = vld [vmem:[#allocation17_spill] sm:$0xff] }
 0xfba   :  { %7295 = vrcp.f32 %v5673_v38  ;;  %v7294_v41 = vpop.eup %7293  ;;  %v11603_v38 = vld [vmem:[#allocation16_spill] sm:$0xff] }
 0xfbb   :  { %7297 = vrcp.f32 %v5674_v42  ;;  %v5675_v55 = vadd.f32 1.0, %v7294_v41  ;;  %v11605_v42 = vld [vmem:[#allocation18_spill] sm:$0xff]  ;;  %v11607_v41 = vld [vmem:[#allocation20_spill] sm:$0xff] }
 0xfbd   :  { %7299 = vrcp.f32 %v5675_v55  ;;  %v11611_v55 = vld [vmem:[#allocation24_spill] sm:$0xff] }
 0xfc4   :  { %v7296_v5 = vpop.eup %7295 }
 0xfc5   :  { %v5684_v46 = vmul.f32 %v7296_v5, %v7292_v4  ;;  %v7298_v47 = vpop.eup %7297  ;;  %v11606_v4 = vld [vmem:[#allocation19_spill] sm:$0xff]  ;;  %v11608_v5 = vld [vmem:[#allocation21_spill] sm:$0xff] }
 0xfc6   :  { %v5683_v18 = vmul.f32 %v7298_v47, %v10569_v61  ;;  %v11610_v47 = vld [vmem:[#allocation23_spill] sm:$0xff] }
 0xfc7   :  { %v7300_v35 = vpop.eup %7299 }
 0xfc8   :  { %v10648_v37 = vadd.f32 %v5684_v46, %v5683_v18  ;;  %v11609_v46 = vld [vmem:[#allocation22_spill] sm:$0xff]  ;;  %v11612_v18 = vld [vmem:[#allocation25_spill] sm:$0xff] }
 0xfca   :  { %7301 = vtanh.f32 %v10648_v37 }
 0xfd4   :  { %v7302_v17 = vpop.eup %7301 }
 0xfd5   :  { %v5687_v21 = vmul.f32 %v7302_v17, %v7300_v35  ;;  %v11613_v35 = vld [vmem:[#allocation26_spill] sm:$0xff]  ;;  %v11614_v17 = vld [vmem:[#allocation27_spill] sm:$0xff] }
 0xfd7   :  { %5688 = vst [vmem:[%s10930_s7 + $0x10] sm:$0x3] %v5687_v21  ;;  %v5690_v15 = vrot.slane %v5687_v21, 4  ;;  %v5693_v58 = vpack.c.bf16 %v5687_v21, %v5687_v21  ;;  %v11615_v21 = vld [vmem:[#allocation28_spill] sm:$0xff] }
 0xfd9   :  { %5692 = vst [vmem:[%s10930_s7 + $0x8] sm:$0xc0] %v5690_v15  ;;  %5727 = vmatmul.mubr.bf16.vlgmr.msra.gmra.mrb[120].mxu0 %v5693_v58  ;;  %5768 = vmatmul.mubr.bf16.vlgmr.msra.gmra.mrb[120].mxu1 %v5693_v58  ;;  %v5777_v61 = vrot.slane %v5693_v58, 1  ;;  %v11616_v15 = vld [vmem:[#allocation29_spill] sm:$0xff]  ;;  %v11617_v58 = vld [vmem:[#allocation30_spill] sm:$0xff] }
 0xfda   :  { %5780 = vmatpush1.bf16.msra.mxu0 %v10178_v28  ;;  %5821 = vmatpush1.bf16.msra.mxu1 %v10184_v1 }
 0xfdb   :  { %5781 = vmatprep.subr.bf16.mxu0 %v10190_v32  ;;  %5822 = vmatprep.subr.bf16.mxu1 %v10196_v49 }
 0xfdc   :  { %5811 = vmatprep.mubr.bf16.mxu0 %v11231_v62  ;;  %5852 = vmatprep.mubr.bf16.mxu1 %v11231_v62 }
 0xfde   :  { %5782 = vmatpush1.bf16.msra.mxu0 %v10204_v33  ;;  %5823 = vmatpush1.bf16.msra.mxu1 %v10210_v16 }
 0xfdf   :  { %5783 = vmatprep.subr.bf16.mxu0 %v10216_v59  ;;  %5824 = vmatprep.subr.bf16.mxu1 %v10222_v36 }
 0xfe2   :  { %5784 = vmatpush1.bf16.msra.mxu0 %v10228_v19  ;;  %5825 = vmatpush1.bf16.msra.mxu1 %v10234_v10 }
 0xfe3   :  { %5785 = vmatprep.subr.bf16.mxu0 %v10240_v20  ;;  %5826 = vmatprep.subr.bf16.mxu1 %v10246_v34 }
 0xfe6   :  { %5786 = vmatpush1.bf16.msra.mxu0 %v10252_v48  ;;  %5827 = vmatpush1.bf16.msra.mxu1 %v10258_v57 }
 0xfe7   :  { %5787 = vmatprep.subr.bf16.mxu0 %v10264_v22  ;;  %5828 = vmatprep.subr.bf16.mxu1 %v10270_v7 }
 0xfea   :  { %5788 = vmatpush1.bf16.msra.mxu0 %v10276_v54  ;;  %5829 = vmatpush1.bf16.msra.mxu1 %v10282_v8 }
 0xfeb   :  { %5789 = vmatprep.subr.bf16.mxu0 %v10288_v40  ;;  %5830 = vmatprep.subr.bf16.mxu1 %v10294_v63 }
 0xfee   :  { %5790 = vmatpush1.bf16.msra.mxu0 %v10300_v0  ;;  %5831 = vmatpush1.bf16.msra.mxu1 %v10306_v53 }
 0xfef   :  { %5791 = vmatprep.subr.bf16.mxu0 %v10312_v39  ;;  %5832 = vmatprep.subr.bf16.mxu1 %v10318_v2 }
 0xff2   :  { %5792 = vmatpush1.bf16.msra.mxu0 %v10324_v23  ;;  %5833 = vmatpush1.bf16.msra.mxu1 %v10330_v56 }
 0xff3   :  { %5793 = vmatprep.subr.bf16.mxu0 %v10336_v13  ;;  %5834 = vmatprep.subr.bf16.mxu1 %v10342_v31 }
 0xff6   :  { %5794 = vmatpush1.bf16.msra.mxu0 %v10348_v30  ;;  %5835 = vmatpush1.bf16.msra.mxu1 %v10354_v9 }
 0xff7   :  { %5959 = vmatprep.subr.bf16.mxu0 %v10361_v50  ;;  %6000 = vmatprep.subr.bf16.mxu1 %v10367_v25 }
 0xff9   :  { %5812 = vmatmul.mubr.bf16.vlgmr.msra.gmra.mrb[124].mxu0 %v5777_v61  ;;  %5853 = vmatmul.mubr.bf16.vlgmr.msra.gmra.mrb[124].mxu1 %v5777_v61  ;;  %v11618_v61 = vld [vmem:[#allocation31_spill] sm:$0xff] }
 0xffa   :  { %5960 = vmatpush1.bf16.msra.mxu0 %v11589_v3  ;;  %6001 = vmatpush1.bf16.msra.mxu1 %v11590_v45 }
 0xffb   :  { %5961 = vmatprep.subr.bf16.mxu0 %v11591_v60  ;;  %6002 = vmatprep.subr.bf16.mxu1 %v11592_v43  ;;  %v5866_v43 = vld [vmem:[#allocation2 + $0x28] sm:$0x30]  ;;  %v5868_v60 = vld [vmem:[#allocation2 + $0x38] sm:$0x30] }
 0xffc   :  { %5991 = vmatprep.mubr.bf16.mxu0 %v11231_v62  ;;  %6032 = vmatprep.mubr.bf16.mxu1 %v11231_v62 }
 0xffe   :  { %5962 = vmatpush1.bf16.msra.mxu0 %v11593_v11  ;;  %6003 = vmatpush1.bf16.msra.mxu1 %v11594_v6 }
 0xfff   :  { %5963 = vmatprep.subr.bf16.mxu0 %v11595_v44  ;;  %6004 = vmatprep.subr.bf16.mxu1 %v11596_v14 }
0x1002   :  { %5964 = vmatpush1.bf16.msra.mxu0 %v11597_v51  ;;  %6005 = vmatpush1.bf16.msra.mxu1 %v11598_v52  ;;  %v5865_v52 = vld [vmem:[#allocation2 + $0x20] sm:$0x30] }
0x1003   :  { %5965 = vmatprep.subr.bf16.mxu0 %v11599_v26  ;;  %6006 = vmatprep.subr.bf16.mxu1 %v11600_v27 }
0x1006   :  { %5966 = vmatpush1.bf16.msra.mxu0 %v11601_v24  ;;  %6007 = vmatpush1.bf16.msra.mxu1 %v11602_v12  ;;  %v5861_v12 = vld [vmem:[#allocation2 + $0x40] sm:$0xc]  ;;  %v5862_v24 = vld [vmem:[#allocation2 + $0x48] sm:$0xc] }
0x1007   :  { %5967 = vmatprep.subr.bf16.mxu0 %v11603_v38  ;;  %6008 = vmatprep.subr.bf16.mxu1 %v11604_v29 }
0x100a   :  { %5968 = vmatpush1.bf16.msra.mxu0 %v11605_v42  ;;  %6009 = vmatpush1.bf16.msra.mxu1 %v11606_v4 }
0x100b   :  { %5969 = vmatprep.subr.bf16.mxu0 %v11607_v41  ;;  %6010 = vmatprep.subr.bf16.mxu1 %v11608_v5  ;;  %v11619_v5 = vld [vmem:[#allocation32_spill] sm:$0xff] }
0x100e   :  { %5970 = vmatpush1.bf16.msra.mxu0 %v11609_v46  ;;  %6011 = vmatpush1.bf16.msra.mxu1 %v11610_v47  ;;  %v11620_v46 = vld [vmem:[#allocation33_spill] sm:$0xff] }
0x100f   :  { %5971 = vmatprep.subr.bf16.mxu0 %v11611_v55  ;;  %6012 = vmatprep.subr.bf16.mxu1 %v11612_v18 }
0x1012   :  { %5972 = vmatpush1.bf16.msra.mxu0 %v11613_v35  ;;  %6013 = vmatpush1.bf16.msra.mxu1 %v11614_v17 }
0x1013   :  { %5973 = vmatprep.subr.bf16.mxu0 %v11615_v21  ;;  %6014 = vmatprep.subr.bf16.mxu1 %v11616_v15 }
0x1016   :  { %5974 = vmatpush1.bf16.msra.mxu0 %v11617_v58  ;;  %6015 = vmatpush1.bf16.msra.mxu1 %v11618_v61  ;;  %v5863_v58 = vld [vmem:[#allocation2 + $0x50] sm:$0xc]  ;;  %v5864_v61 = vld [vmem:[#allocation2 + $0x58] sm:$0xc] }
0x1017   :  { %6044 = vmatprep.subr.bf16.mxu0 %v11619_v5  ;;  %6085 = vmatprep.subr.bf16.mxu1 %v11620_v46 }
0x10ac   :  { %v5728_v47 = vpop.f32.mrb[120].mxu0  ;;  %v5769_v55 = vpop.f32.mrb[120].mxu1 }
0x10ad   :  { %v5730_v41 = vpop.f32.mrb[121].mxu0  ;;  %v5771_v18 = vpop.f32.mrb[121].mxu1  ;;  %v5873_v29 = vrot.slane %v5728_v47, 6  ;;  %v5875_v21 = vrot.slane %v5769_v55, 6 }
0x10ae   :  { %v5732_v4 = vpop.f32.mrb[122].mxu0  ;;  %v5773_v35 = vpop.f32.mrb[122].mxu1  ;;  %v5874_v38 = vrot.slane %v5730_v41, 6  ;;  %v5876_v15 = vrot.slane %v5771_v18, 6 }
0x10af   :  { %v5733_v42 = vpop.f32.mrb[123].mxu0  ;;  %v5774_v17 = vpop.f32.mrb[123].mxu1  ;;  %v5881_v26 = vadd.f32 %v5873_v29, %v5861_v12  ;;  %v5883_v46 = vadd.f32 %v5875_v21, %v5863_v58 }
0x10b0   :  { %v5882_v35 = vadd.f32 %v5874_v38, %v5862_v24  ;;  %v5884_v42 = vadd.f32 %v5876_v15, %v5864_v61  ;;  %v5867_v17 = vld [vmem:[#allocation2 + $0x30] sm:$0x30] }
0x10b1   :  { %v5905_v21 = vrot.slane %v5881_v26, 2 }
0x10b2   :  { %v5906_v25 = vrot.slane %v5882_v35, 2  ;;  %v5908_v24 = vrot.slane %v5884_v42, 2 }
0x10cc   :  { %v5813_v27 = vpop.f32.mrb[124].mxu0  ;;  %v5854_v5 = vpop.f32.mrb[124].mxu1 }
0x10cd   :  { %v5889_v51 = vrot.slane %v5813_v27, 4  ;;  %v5891_v14 = vrot.slane %v5854_v5, 4  ;;  %v5815_v44 = vpop.f32.mrb[125].mxu0  ;;  %v5856_v4 = vpop.f32.mrb[125].mxu1  ;;  %v5907_v27 = vrot.slane %v5883_v46, 2 }
0x10ce   :  { %v5890_v47 = vrot.slane %v5815_v44, 4  ;;  %v5892_v55 = vrot.slane %v5856_v4, 4  ;;  %v5817_v41 = vpop.f32.mrb[126].mxu0  ;;  %v5858_v18 = vpop.f32.mrb[126].mxu1 }
0x10cf   :  { %v5897_v6 = vadd.f32 %v5889_v51, %v5865_v52  ;;  %v5899_v11 = vadd.f32 %v5891_v14, %v5867_v17  ;;  %v5818_v45 = vpop.f32.mrb[127].mxu0  ;;  %v5859_v3 = vpop.f32.mrb[127].mxu1 }
0x10d0   :  { %v5898_v12 = vadd.f32 %v5890_v47, %v5866_v43  ;;  %v5900_v29 = vadd.f32 %v5892_v55, %v5868_v60 }
0x10d1   :  { %v5917_v5 = vrot.slane %v5897_v6, 2  ;;  %v5919_v58 = vrot.slane %v5899_v11, 2 }
0x10d2   :  { %v5918_v38 = vrot.slane %v5898_v12, 2  ;;  %v5920_v15 = vrot.slane %v5900_v29, 2 }
0x10d3   :  { %v5925_v44 = vsel %vm1238_vm0, %v5905_v21, %v5917_v5  ;;  %v5927_v61 = vsel %vm1238_vm0, %v5907_v27, %v5919_v58  ;;  %v11652_v21 = vld [vmem:[#allocation32_spill] sm:$0xff]  ;;  %v11653_v27 = vld [vmem:[#allocation33_spill] sm:$0xff] }
0x10d4   :  { %v6892_v51 = vmul.f32 -1.442695, %v5925_v44  ;;  %v5926_v14 = vsel %vm1238_vm0, %v5906_v25, %v5918_v38  ;;  %v5928_v45 = vsel %vm1238_vm0, %v5908_v24, %v5920_v15  ;;  %v6894_v60 = vmul.f32 -1.442695, %v5927_v61 }
0x10d5   :  { %v6893_v3 = vmul.f32 -1.442695, %v5926_v14 }
0x10d6   :  { %7303 = vpow2.f32 %v6892_v51 }
0x10d7   :  { %7305 = vpow2.f32 %v6893_v3 }
0x10d8   :  { %7307 = vtanh.f32 %v5928_v45 }
0x10d9   :  { %7309 = vpow2.f32 %v6894_v60 }
0x10e0   :  { %v7304_v43 = vpop.eup %7303 }
0x10e1   :  { %v5938_v6 = vadd.f32 1.0, %v7304_v43  ;;  %v7306_v11 = vpop.eup %7305  ;;  %v6126_v43 = vld [vmem:[#allocation2 + $0x40] sm:$0x30] }
0x10e2   :  { %v5939_v52 = vadd.f32 1.0, %v7306_v11  ;;  %v7308_v26 = vpop.eup %7307 }
0x10e3   :  { %7311 = vrcp.f32 %v5938_v6  ;;  %v7310_v46 = vpop.eup %7309  ;;  %v6128_v6 = vld [vmem:[#allocation2 + $0x50] sm:$0x30] }
0x10e4   :  { %7313 = vrcp.f32 %v5939_v52  ;;  %v5940_v25 = vadd.f32 1.0, %v7310_v46  ;;  %v6129_v46 = vld [vmem:[#allocation2 + $0x58] sm:$0x30] }
0x10e6   :  { %7315 = vrcp.f32 %v5940_v25  ;;  %v6130_v25 = vld [vmem:[#allocation2 + $0x20] sm:$0xc] }
0x10ed   :  { %v7312_v4 = vpop.eup %7311 }
0x10ee   :  { %v5949_v35 = vmul.f32 %v7312_v4, %v7308_v26  ;;  %v7314_v42 = vpop.eup %7313  ;;  %v6127_v26 = vld [vmem:[#allocation2 + $0x48] sm:$0x30] }
0x10ef   :  { %v5948_v17 = vmul.f32 %v7314_v42, %v10648_v37  ;;  %v11651_v37 = vld [vmem:[#allocation31_spill] sm:$0xff] }
0x10f0   :  { %v7316_v55 = vpop.eup %7315 }
0x10f1   :  { %v10730_v47 = vadd.f32 %v5949_v35, %v5948_v17 }
0x10f3   :  { %7317 = vtanh.f32 %v10730_v47 }
0x10fd   :  { %v7318_v41 = vpop.eup %7317 }
0x10fe   :  { %v5952_v18 = vmul.f32 %v7318_v41, %v7316_v55  ;;  %v6132_v41 = vld [vmem:[#allocation2 + $0x30] sm:$0xc] }
0x1100   :  { %v5954_v12 = vrot.slane %v5952_v18, 6  ;;  %v5958_v29 = vpack.c.bf16 %v5952_v18, %v5952_v18 }
0x1102   :  { %5956 = vst [vmem:[%s10930_s7 + $0x10] ss:$-4 sps:$4 sm:$0x3c] %v5954_v12   ;;  %5992 = vmatmul.mubr.bf16.vlgmr.msra.gmra.mrb[128].mxu0 %v5958_v29  ;;  %6033 = vmatmul.mubr.bf16.vlgmr.msra.gmra.mrb[128].mxu1 %v5958_v29 }
0x1103   :  { %6045 = vmatpush1.bf16.msra.mxu0 %v10178_v28  ;;  %6086 = vmatpush1.bf16.msra.mxu1 %v10184_v1  ;;  %v6042_v28 = vrot.slane %v5958_v29, 1  ;;  %v11621_v1 = vld [vmem:[#allocation36_spill] sm:$0xff] }
0x1104   :  { %6046 = vmatprep.subr.bf16.mxu0 %v10190_v32  ;;  %6087 = vmatprep.subr.bf16.mxu1 %v10196_v49  ;;  %v11622_v32 = vld [vmem:[#allocation38_spill] sm:$0xff]  ;;  %v11623_v49 = vld [vmem:[#allocation35_spill] sm:$0xff] }
0x1105   :  { %6076 = vmatprep.mubr.bf16.mxu0 %v11231_v62  ;;  %6117 = vmatprep.mubr.bf16.mxu1 %v11231_v62 }
0x1107   :  { %6047 = vmatpush1.bf16.msra.mxu0 %v10204_v33  ;;  %6088 = vmatpush1.bf16.msra.mxu1 %v10210_v16  ;;  %v11624_v33 = vld [vmem:[#allocation4_spill] sm:$0xff]  ;;  %v11625_v16 = vld [vmem:[#allocation5_spill] sm:$0xff] }
0x1108   :  { %6048 = vmatprep.subr.bf16.mxu0 %v10216_v59  ;;  %6089 = vmatprep.subr.bf16.mxu1 %v10222_v36  ;;  %v11626_v59 = vld [vmem:[#allocation6_spill] sm:$0xff]  ;;  %v11627_v36 = vld [vmem:[#allocation7_spill] sm:$0xff] }
0x110b   :  { %6049 = vmatpush1.bf16.msra.mxu0 %v10228_v19  ;;  %6090 = vmatpush1.bf16.msra.mxu1 %v10234_v10  ;;  %v11628_v19 = vld [vmem:[#allocation8_spill] sm:$0xff]  ;;  %v11629_v10 = vld [vmem:[#allocation9_spill] sm:$0xff] }
0x110c   :  { %6050 = vmatprep.subr.bf16.mxu0 %v10240_v20  ;;  %6091 = vmatprep.subr.bf16.mxu1 %v10246_v34  ;;  %v11630_v20 = vld [vmem:[#allocation10_spill] sm:$0xff]  ;;  %v11631_v34 = vld [vmem:[#allocation11_spill] sm:$0xff] }
0x110f   :  { %6051 = vmatpush1.bf16.msra.mxu0 %v10252_v48  ;;  %6092 = vmatpush1.bf16.msra.mxu1 %v10258_v57  ;;  %v11632_v48 = vld [vmem:[#allocation12_spill] sm:$0xff]  ;;  %v11633_v57 = vld [vmem:[#allocation13_spill] sm:$0xff] }
0x1110   :  { %6052 = vmatprep.subr.bf16.mxu0 %v10264_v22  ;;  %6093 = vmatprep.subr.bf16.mxu1 %v10270_v7  ;;  %v11634_v22 = vld [vmem:[#allocation14_spill] sm:$0xff]  ;;  %v11635_v7 = vld [vmem:[#allocation15_spill] sm:$0xff] }
0x1113   :  { %6053 = vmatpush1.bf16.msra.mxu0 %v10276_v54  ;;  %6094 = vmatpush1.bf16.msra.mxu1 %v10282_v8  ;;  %v11636_v54 = vld [vmem:[#allocation16_spill] sm:$0xff]  ;;  %v11637_v8 = vld [vmem:[#allocation17_spill] sm:$0xff] }
0x1114   :  { %6054 = vmatprep.subr.bf16.mxu0 %v10288_v40  ;;  %6095 = vmatprep.subr.bf16.mxu1 %v10294_v63  ;;  %v11638_v40 = vld [vmem:[#allocation18_spill] sm:$0xff]  ;;  %v11639_v63 = vld [vmem:[#allocation19_spill] sm:$0xff] }
0x1117   :  { %6055 = vmatpush1.bf16.msra.mxu0 %v10300_v0  ;;  %6096 = vmatpush1.bf16.msra.mxu1 %v10306_v53  ;;  %v11640_v0 = vld [vmem:[#allocation20_spill] sm:$0xff]  ;;  %v11641_v53 = vld [vmem:[#allocation21_spill] sm:$0xff] }
0x1118   :  { %6056 = vmatprep.subr.bf16.mxu0 %v10312_v39  ;;  %6097 = vmatprep.subr.bf16.mxu1 %v10318_v2  ;;  %v11642_v39 = vld [vmem:[#allocation22_spill] sm:$0xff]  ;;  %v11643_v2 = vld [vmem:[#allocation23_spill] sm:$0xff] }
0x111b   :  { %6057 = vmatpush1.bf16.msra.mxu0 %v10324_v23  ;;  %6098 = vmatpush1.bf16.msra.mxu1 %v10330_v56  ;;  %v11644_v23 = vld [vmem:[#allocation24_spill] sm:$0xff]  ;;  %v11645_v56 = vld [vmem:[#allocation25_spill] sm:$0xff] }
0x111c   :  { %6058 = vmatprep.subr.bf16.mxu0 %v10336_v13  ;;  %6099 = vmatprep.subr.bf16.mxu1 %v10342_v31  ;;  %v11646_v13 = vld [vmem:[#allocation26_spill] sm:$0xff]  ;;  %v11647_v31 = vld [vmem:[#allocation27_spill] sm:$0xff] }
0x111f   :  { %6059 = vmatpush1.bf16.msra.mxu0 %v10348_v30  ;;  %6100 = vmatpush1.bf16.msra.mxu1 %v10354_v9  ;;  %v11648_v30 = vld [vmem:[#allocation28_spill] sm:$0xff]  ;;  %v11649_v9 = vld [vmem:[#allocation29_spill] sm:$0xff] }
0x1120   :  { %6212 = vmatprep.subr.bf16.mxu0 %v10361_v50  ;;  %6253 = vmatprep.subr.bf16.mxu1 %v11621_v1  ;;  %v11650_v50 = vld [vmem:[#allocation30_spill] sm:$0xff] }
0x1122   :  { %6077 = vmatmul.mubr.bf16.vlgmr.msra.gmra.mrb[132].mxu0 %v6042_v28  ;;  %6118 = vmatmul.mubr.bf16.vlgmr.msra.gmra.mrb[132].mxu1 %v6042_v28  ;;  %v6131_v28 = vld [vmem:[#allocation2 + $0x28] sm:$0xc] }
0x1123   :  { %6213 = vmatpush1.bf16.msra.mxu0 %v11622_v32  ;;  %6254 = vmatpush1.bf16.msra.mxu1 %v11623_v49 }
0x1124   :  { %6214 = vmatprep.subr.bf16.mxu0 %v11624_v33  ;;  %6255 = vmatprep.subr.bf16.mxu1 %v11625_v16 }
0x1125   :  { %6244 = vmatprep.mubr.bf16.mxu0 %v11231_v62  ;;  %6285 = vmatprep.mubr.bf16.mxu1 %v11231_v62 }
0x1127   :  { %6215 = vmatpush1.bf16.msra.mxu0 %v11626_v59  ;;  %6256 = vmatpush1.bf16.msra.mxu1 %v11627_v36 }
0x1128   :  { %6216 = vmatprep.subr.bf16.mxu0 %v11628_v19  ;;  %6257 = vmatprep.subr.bf16.mxu1 %v11629_v10  ;;  %v6133_v10 = vld [vmem:[#allocation2 + $0x38] sm:$0xc] }
0x112b   :  { %6217 = vmatpush1.bf16.msra.mxu0 %v11630_v20  ;;  %6258 = vmatpush1.bf16.msra.mxu1 %v11631_v34 }
0x112c   :  { %6218 = vmatprep.subr.bf16.mxu0 %v11632_v48  ;;  %6259 = vmatprep.subr.bf16.mxu1 %v11633_v57 }
0x112f   :  { %6219 = vmatpush1.bf16.msra.mxu0 %v11634_v22  ;;  %6260 = vmatpush1.bf16.msra.mxu1 %v11635_v7 }
0x1130   :  { %6220 = vmatprep.subr.bf16.mxu0 %v11636_v54  ;;  %6261 = vmatprep.subr.bf16.mxu1 %v11637_v8 }
0x1133   :  { %6221 = vmatpush1.bf16.msra.mxu0 %v11638_v40  ;;  %6262 = vmatpush1.bf16.msra.mxu1 %v11639_v63 }
0x1134   :  { %6222 = vmatprep.subr.bf16.mxu0 %v11640_v0  ;;  %6263 = vmatprep.subr.bf16.mxu1 %v11641_v53 }
0x1137   :  { %6223 = vmatpush1.bf16.msra.mxu0 %v11642_v39  ;;  %6264 = vmatpush1.bf16.msra.mxu1 %v11643_v2 }
0x1138   :  { %6224 = vmatprep.subr.bf16.mxu0 %v11644_v23  ;;  %6265 = vmatprep.subr.bf16.mxu1 %v11645_v56 }
0x113b   :  { %6225 = vmatpush1.bf16.msra.mxu0 %v11646_v13  ;;  %6266 = vmatpush1.bf16.msra.mxu1 %v11647_v31 }
0x113c   :  { %6226 = vmatprep.subr.bf16.mxu0 %v11648_v30  ;;  %6267 = vmatprep.subr.bf16.mxu1 %v11649_v9 }
0x113f   :  { %6227 = vmatpush1.bf16.msra.mxu0 %v11650_v50  ;;  %6268 = vmatpush1.bf16.msra.mxu1 %v11651_v37 }
0x1140   :  { %6297 = vmatprep.subr.bf16.mxu0 %v11652_v21  ;;  %6338 = vmatprep.subr.bf16.mxu1 %v11653_v27 }
0x11d5   :  { %v5993_v5 = vpop.f32.mrb[128].mxu0  ;;  %v6034_v58 = vpop.f32.mrb[128].mxu1 }
0x11d6   :  { %v5995_v24 = vpop.f32.mrb[129].mxu0  ;;  %v6036_v38 = vpop.f32.mrb[129].mxu1  ;;  %v6138_v14 = vrot.slane %v5993_v5, 4  ;;  %v6140_v45 = vrot.slane %v6034_v58, 4 }
0x11d7   :  { %v5997_v15 = vpop.f32.mrb[130].mxu0  ;;  %v6038_v44 = vpop.f32.mrb[130].mxu1  ;;  %v6139_v3 = vrot.slane %v5995_v24, 4  ;;  %v6141_v60 = vrot.slane %v6036_v38, 4 }
0x11d8   :  { %v5998_v61 = vpop.f32.mrb[131].mxu0  ;;  %v6039_v51 = vpop.f32.mrb[131].mxu1  ;;  %v6146_v11 = vadd.f32 %v6138_v14, %v6126_v43  ;;  %v6148_v52 = vadd.f32 %v6140_v45, %v6128_v6  ;;  %v7514_v14 = vld [vmem:[%s10928_s5 + $0x12c] ss:$16 sps:$4 sm:$0xff]   ;;  %v7515_v45 = vld [vmem:[%s10928_s5 + $0x120] ss:$16 sps:$4 sm:$0xff]  }
0x11d9   :  { %v6147_v4 = vadd.f32 %v6139_v3, %v6127_v26  ;;  %v6149_v35 = vadd.f32 %v6141_v60, %v6129_v46  ;;  %v7512_v61 = vld [vmem:[%s10928_s5 + $0x108] ss:$16 sps:$4 sm:$0xff]   ;;  %v7513_v51 = vld [vmem:[%s10928_s5 + $0x124] ss:$16 sps:$4 sm:$0xff]   ;;  %v7518_v43 = vld [vmem:[%s10928_s5 + $0x14c] ss:$16 sps:$4 sm:$0xff]  }
0x11da   :  { %v6170_v16 = vrot.slane %v6146_v11, 4  ;;  %v6172_v59 = vrot.slane %v6148_v52, 4  ;;  %v7516_v3 = vld [vmem:[%s10928_s5 + $0x128] ss:$16 sps:$4 sm:$0xff]   ;;  %v7517_v60 = vld [vmem:[%s10928_s5 + $0x144] ss:$16 sps:$4 sm:$0xff]  }
0x11db   :  { %v6171_v48 = vrot.slane %v6147_v4, 4  ;;  %v6173_v57 = vrot.slane %v6149_v35, 4  ;;  %v7520_v6 = vld [vmem:[%s10928_s5 + $0x148] ss:$16 sps:$4 sm:$0xff]   ;;  %v7521_v11 = vld [vmem:[%s10928_s5 + $0x164] ss:$16 sps:$4 sm:$0xff]  }
0x11dc   :  { %v7522_v52 = vld [vmem:[%s10928_s5 + $0x16c] ss:$16 sps:$4 sm:$0xff]   ;;  %v7523_v26 = vld [vmem:[%s10928_s5 + $0x160] ss:$16 sps:$4 sm:$0xff]   ;;  %v7524_v46 = vld [vmem:[%s10928_s5 + $0x168] ss:$16 sps:$4 sm:$0xff]  }
0x11dd   :  { %v7525_v4 = vld [vmem:[%s10928_s5 + $0x184] ss:$16 sps:$4 sm:$0xff]   ;;  %v7526_v35 = vld [vmem:[%s10928_s5 + $0x18c] ss:$16 sps:$4 sm:$0xff]  }
0x11f5   :  { %v6078_v42 = vpop.f32.mrb[132].mxu0  ;;  %v6119_v17 = vpop.f32.mrb[132].mxu1 }
0x11f6   :  { %v6154_v55 = vrot.slane %v6078_v42, 6  ;;  %v6156_v18 = vrot.slane %v6119_v17, 6  ;;  %v6080_v12 = vpop.f32.mrb[133].mxu0  ;;  %v6121_v29 = vpop.f32.mrb[133].mxu1  ;;  %v7527_v42 = vld [vmem:[%s10928_s5 + $0x180] ss:$16 sps:$4 sm:$0xff]  }
0x11f7   :  { %v6155_v1 = vrot.slane %v6080_v12, 6  ;;  %v6157_v32 = vrot.slane %v6121_v29, 6  ;;  %v6082_v49 = vpop.f32.mrb[134].mxu0  ;;  %v6123_v33 = vpop.f32.mrb[134].mxu1  ;;  %v7529_v17 = vld [vmem:[%s10928_s5 + $0x1a4] ss:$16 sps:$4 sm:$0xff]  }
0x11f8   :  { %v6162_v36 = vadd.f32 %v6154_v55, %v6130_v25  ;;  %v6164_v19 = vadd.f32 %v6156_v18, %v6132_v41  ;;  %v6083_v20 = vpop.f32.mrb[135].mxu0  ;;  %v6124_v34 = vpop.f32.mrb[135].mxu1  ;;  %v7528_v25 = vld [vmem:[%s10928_s5 + $0x188] ss:$16 sps:$4 sm:$0xff]   ;;  %v7530_v55 = vld [vmem:[%s10928_s5 + $0x1ac] ss:$16 sps:$4 sm:$0xff]  }
0x11f9   :  { %v6163_v22 = vadd.f32 %v6155_v1, %v6131_v28  ;;  %v6165_v7 = vadd.f32 %v6157_v32, %v6133_v10  ;;  %v7531_v41 = vld [vmem:[%s10928_s5 + $0x1a0] ss:$16 sps:$4 sm:$0xff]   ;;  %v7532_v18 = vld [vmem:[%s10928_s5 + $0x1a8] ss:$16 sps:$4 sm:$0xff]   ;;  %v7533_v12 = vld [vmem:[%s10928_s5 + $0x1c4] ss:$16 sps:$4 sm:$0xff]  }
0x11fa   :  { %v6178_v54 = vsel %vm1238_vm0, %v6170_v16, %v6162_v36  ;;  %v6180_v8 = vsel %vm1238_vm0, %v6172_v59, %v6164_v19  ;;  %v7534_v29 = vld [vmem:[%s10928_s5 + $0x1cc] ss:$16 sps:$4 sm:$0xff]   ;;  %v7535_v28 = vld [vmem:[%s10928_s5 + $0x1c0] ss:$16 sps:$4 sm:$0xff]   ;;  %v7536_v1 = vld [vmem:[%s10928_s5 + $0x1c8] ss:$16 sps:$4 sm:$0xff]  }
0x11fb   :  { %v6895_v40 = vmul.f32 -1.442695, %v6178_v54  ;;  %v6179_v63 = vsel %vm1238_vm0, %v6171_v48, %v6163_v22  ;;  %v6181_v0 = vsel %vm1238_vm0, %v6173_v57, %v6165_v7  ;;  %v6897_v39 = vmul.f32 -1.442695, %v6180_v8  ;;  %v7537_v32 = vld [vmem:[%s10928_s5 + $0x1e4] ss:$16 sps:$4 sm:$0xff]  }
0x11fc   :  { %v6896_v53 = vmul.f32 -1.442695, %v6179_v63  ;;  %v7538_v49 = vld [vmem:[%s10928_s5 + $0x1ec] ss:$16 sps:$4 sm:$0xff]   ;;  %v7539_v33 = vld [vmem:[%s10928_s5 + $0x1e0] ss:$16 sps:$4 sm:$0xff]  }
0x11fd   :  { %7319 = vpow2.f32 %v6895_v40  ;;  %v7540_v16 = vld [vmem:[%s10928_s5 + $0x1e8] ss:$16 sps:$4 sm:$0xff]   ;;  %v6379_v63 = vld [vmem:[#allocation2 + $0x40] sm:$0xc0] }
0x11fe   :  { %7321 = vpow2.f32 %v6896_v53 }
0x11ff   :  { %7323 = vtanh.f32 %v6181_v0  ;;  %v6381_v0 = vld [vmem:[#allocation2 + $0x50] sm:$0xc0] }
0x1200   :  { %7325 = vpow2.f32 %v6897_v39 }
0x1207   :  { %v7320_v2 = vpop.eup %7319 }
0x1208   :  { %v6191_v23 = vadd.f32 1.0, %v7320_v2  ;;  %v7322_v56 = vpop.eup %7321  ;;  %v6380_v2 = vld [vmem:[#allocation2 + $0x48] sm:$0xc0] }
0x1209   :  { %v6192_v13 = vadd.f32 1.0, %v7322_v56  ;;  %v7324_v31 = vpop.eup %7323 }
0x120a   :  { %7327 = vrcp.f32 %v6191_v23  ;;  %v7326_v30 = vpop.eup %7325  ;;  %v6382_v23 = vld [vmem:[#allocation2 + $0x58] sm:$0xc0] }
0x120b   :  { %7329 = vrcp.f32 %v6192_v13  ;;  %v6193_v21 = vadd.f32 1.0, %v7326_v30  ;;  %v6383_v30 = vld [vmem:[#allocation2 + $0x20] sm:$0x3] }
0x120d   :  { %7331 = vrcp.f32 %v6193_v21 }
0x1214   :  { %v7328_v9 = vpop.eup %7327 }
0x1215   :  { %v6202_v50 = vmul.f32 %v7328_v9, %v7324_v31  ;;  %v7330_v37 = vpop.eup %7329 }
0x1216   :  { %v6201_v27 = vmul.f32 %v7330_v37, %v10730_v47  ;;  %v7511_v47 = vld [vmem:[%s10928_s5 + $0x100] ss:$16 sps:$4 sm:$0xff]  }
0x1217   :  { %v7332_v58 = vpop.eup %7331 }
0x1218   :  { %v10809_v5 = vadd.f32 %v6202_v50, %v6201_v27  ;;  %v6385_v50 = vld [vmem:[#allocation2 + $0x30] sm:$0x3] }
0x121a   :  { %7333 = vtanh.f32 %v10809_v5 }
0x1224   :  { %v7334_v24 = vpop.eup %7333 }
0x1225   :  { %v6205_v38 = vmul.f32 %v7334_v24, %v7332_v58  ;;  %v6384_v58 = vld [vmem:[#allocation2 + $0x28] sm:$0x3] }
0x1227   :  { %v6207_v15 = vrot.slane %v6205_v38, 4  ;;  %6210 = vst [vmem:[%s10930_s7 + $0x8] sm:$0xc] %v6205_v38  ;;  %v10815_v44 = vpack.c.bf16 %v6205_v38, %v6205_v38  ;;  %v6386_v38 = vld [vmem:[#allocation2 + $0x38] sm:$0x3] }
0x1229   :  { %6209 = vst [vmem:[%s10930_s7 + $0x10] sm:$0x30] %v6207_v15  ;;  %6245 = vmatmul.mubr.bf16.vlgmr.msra.gmra.mrb[136].mxu0 %v10815_v44  ;;  %6286 = vmatmul.mubr.bf16.vlgmr.msra.gmra.mrb[136].mxu1 %v10815_v44  ;;  %v6295_v59 = vrot.slane %v10815_v44, 1 }
0x122a   :  { %6298 = vmatpush1.bf16.msra.mxu0 %v7511_v47  ;;  %6339 = vmatpush1.bf16.msra.mxu1 %v7512_v61 }
0x122b   :  { %6299 = vmatprep.subr.bf16.mxu0 %v7513_v51  ;;  %6340 = vmatprep.subr.bf16.mxu1 %v7514_v14 }
0x122c   :  { %6329 = vmatprep.mubr.bf16.mxu0 %v11231_v62  ;;  %6370 = vmatprep.mubr.bf16.mxu1 %v11231_v62  ;;  %v7519_v62 = vld [vmem:[%s10928_s5 + $0x140] ss:$16 sps:$4 sm:$0xff]  }
0x122e   :  { %6300 = vmatpush1.bf16.msra.mxu0 %v7515_v45  ;;  %6341 = vmatpush1.bf16.msra.mxu1 %v7516_v3 }
0x122f   :  { %6301 = vmatprep.subr.bf16.mxu0 %v7517_v60  ;;  %6342 = vmatprep.subr.bf16.mxu1 %v7518_v43 }
0x1232   :  { %6302 = vmatpush1.bf16.msra.mxu0 %v7519_v62  ;;  %6343 = vmatpush1.bf16.msra.mxu1 %v7520_v6 }
0x1233   :  { %6303 = vmatprep.subr.bf16.mxu0 %v7521_v11  ;;  %6344 = vmatprep.subr.bf16.mxu1 %v7522_v52 }
0x1236   :  { %6304 = vmatpush1.bf16.msra.mxu0 %v7523_v26  ;;  %6345 = vmatpush1.bf16.msra.mxu1 %v7524_v46 }
0x1237   :  { %6305 = vmatprep.subr.bf16.mxu0 %v7525_v4  ;;  %6346 = vmatprep.subr.bf16.mxu1 %v7526_v35 }
0x123a   :  { %6306 = vmatpush1.bf16.msra.mxu0 %v7527_v42  ;;  %6347 = vmatpush1.bf16.msra.mxu1 %v7528_v25 }
0x123b   :  { %6307 = vmatprep.subr.bf16.mxu0 %v7529_v17  ;;  %6348 = vmatprep.subr.bf16.mxu1 %v7530_v55 }
0x123e   :  { %6308 = vmatpush1.bf16.msra.mxu0 %v7531_v41  ;;  %6349 = vmatpush1.bf16.msra.mxu1 %v7532_v18 }
0x123f   :  { %6309 = vmatprep.subr.bf16.mxu0 %v7533_v12  ;;  %6350 = vmatprep.subr.bf16.mxu1 %v7534_v29 }
0x1242   :  { %6310 = vmatpush1.bf16.msra.mxu0 %v7535_v28  ;;  %6351 = vmatpush1.bf16.msra.mxu1 %v7536_v1 }
0x1243   :  { %6311 = vmatprep.subr.bf16.mxu0 %v7537_v32  ;;  %6352 = vmatprep.subr.bf16.mxu1 %v7538_v49 }
0x1246   :  { %6312 = vmatpush1.bf16.msra.mxu0 %v7539_v33  ;;  %6353 = vmatpush1.bf16.msra.mxu1 %v7540_v16 }
0x1249   :  { %6330 = vmatmul.mubr.bf16.vlgmr.msra.gmra.mrb[140].mxu0 %v6295_v59  ;;  %6371 = vmatmul.mubr.bf16.vlgmr.msra.gmra.mrb[140].mxu1 %v6295_v59 }
0x12fc   :  { %v6246_v36 = vpop.f32.mrb[136].mxu0  ;;  %v6287_v19 = vpop.f32.mrb[136].mxu1 }
0x12fd   :  { %v6248_v10 = vpop.f32.mrb[137].mxu0  ;;  %v6289_v20 = vpop.f32.mrb[137].mxu1  ;;  %v6391_v7 = vrot.slane %v6246_v36, 2  ;;  %v6393_v54 = vrot.slane %v6287_v19, 2 }
0x12fe   :  { %v6250_v34 = vpop.f32.mrb[138].mxu0  ;;  %v6291_v48 = vpop.f32.mrb[138].mxu1  ;;  %v6392_v8 = vrot.slane %v6248_v10, 2  ;;  %v6394_v40 = vrot.slane %v6289_v20, 2 }
0x12ff   :  { %v6251_v57 = vpop.f32.mrb[139].mxu0  ;;  %v6292_v22 = vpop.f32.mrb[139].mxu1  ;;  %v6399_v53 = vadd.f32 %v6391_v7, %v6379_v63  ;;  %v6401_v39 = vadd.f32 %v6393_v54, %v6381_v0 }
0x1300   :  { %v6400_v56 = vadd.f32 %v6392_v8, %v6380_v2  ;;  %v6402_v13 = vadd.f32 %v6394_v40, %v6382_v23 }
0x1301   :  { %v6411_v51 = vrot.slane %v6399_v53, 6  ;;  %v6413_v14 = vrot.slane %v6401_v39, 6 }
0x1302   :  { %v6412_v62 = vrot.slane %v6400_v56, 6  ;;  %v6414_v6 = vrot.slane %v6402_v13, 6 }
0x131c   :  { %v6331_v31 = vpop.f32.mrb[140].mxu0  ;;  %v6372_v9 = vpop.f32.mrb[140].mxu1 }
0x131d   :  { %v6403_v37 = vadd.f32 %v6383_v30, %v6331_v31  ;;  %v6405_v21 = vadd.f32 %v6385_v50, %v6372_v9  ;;  %v6333_v27 = vpop.f32.mrb[141].mxu0  ;;  %v6374_v24 = vpop.f32.mrb[141].mxu1 }
0x131e   :  { %v6404_v15 = vadd.f32 %v6384_v58, %v6333_v27  ;;  %v6406_v44 = vadd.f32 %v6386_v38, %v6374_v24  ;;  %v6335_v47 = vpop.f32.mrb[142].mxu0  ;;  %v6376_v61 = vpop.f32.mrb[142].mxu1 }
0x131f   :  { %v6423_v45 = vrot.slane %v6403_v37, 6  ;;  %v6425_v3 = vrot.slane %v6405_v21, 6  ;;  %v6336_v60 = vpop.f32.mrb[143].mxu0  ;;  %v6377_v43 = vpop.f32.mrb[143].mxu1 }
0x1320   :  { %v6424_v11 = vrot.slane %v6404_v15, 6  ;;  %v6426_v52 = vrot.slane %v6406_v44, 6 }
0x1321   :  { %v6431_v26 = vsel %vm1238_vm0, %v6411_v51, %v6423_v45  ;;  %v6433_v46 = vsel %vm1238_vm0, %v6413_v14, %v6425_v3 }
0x1322   :  { %v6898_v4 = vmul.f32 -1.442695, %v6431_v26  ;;  %v6432_v35 = vsel %vm1238_vm0, %v6412_v62, %v6424_v11  ;;  %v6434_v42 = vsel %vm1238_vm0, %v6414_v6, %v6426_v52  ;;  %v6900_v17 = vmul.f32 -1.442695, %v6433_v46 }
0x1323   :  { %v6899_v25 = vmul.f32 -1.442695, %v6432_v35 }
0x1324   :  { %7335 = vpow2.f32 %v6898_v4 }
0x1325   :  { %7337 = vpow2.f32 %v6899_v25 }
0x1326   :  { %7339 = vtanh.f32 %v6434_v42 }
0x1327   :  { %7341 = vpow2.f32 %v6900_v17 }
0x132e   :  { %v7336_v55 = vpop.eup %7335 }
0x132f   :  { %v6444_v41 = vadd.f32 1.0, %v7336_v55  ;;  %v7338_v18 = vpop.eup %7337 }
0x1330   :  { %v6445_v12 = vadd.f32 1.0, %v7338_v18  ;;  %v7340_v29 = vpop.eup %7339 }
0x1331   :  { %7343 = vrcp.f32 %v6444_v41  ;;  %v7342_v28 = vpop.eup %7341 }
0x1332   :  { %7345 = vrcp.f32 %v6445_v12  ;;  %v6446_v33 = vadd.f32 1.0, %v7342_v28 }
0x1334   :  { %7347 = vrcp.f32 %v6446_v33 }
0x133b   :  { %v7344_v1 = vpop.eup %7343 }
0x133c   :  { %v6455_v32 = vmul.f32 %v7344_v1, %v7340_v29  ;;  %v7346_v49 = vpop.eup %7345 }
0x133d   :  { %v6454_v16 = vmul.f32 %v7346_v49, %v10809_v5 }
0x133e   :  { %v7348_v36 = vpop.eup %7347 }
0x133f   :  { %v6456_v59 = vadd.f32 %v6455_v32, %v6454_v16 }
0x1341   :  { %7349 = vtanh.f32 %v6456_v59 }
0x134b   :  { %v7350_v19 = vpop.eup %7349 }
0x134c   :  { %v6458_v10 = vmul.f32 %v7350_v19, %v7348_v36 }
0x134e   :  { %v6460_v20 = vrot.slane %v6458_v10, 2 }
0x1350   :  { %6462 = vst [vmem:[%s10930_s7 + $0x8] ss:$12 sps:$4 sm:$0xc3] %v6460_v20  }

</bundles_post_ra>
